<compile_context>
chip_gen: v7x
topology: tpu7x:2x2x1
jax: 0.10.0
libtpu: 0.0.40
codegen_flags: <defaults>
</compile_context>

<pallas_src>
import functools

import numpy as np
import jax
import jax.numpy as jnp
from jax.experimental import pallas as pl
from jax.experimental.pallas import tpu as pltpu


def _round_up(x, m):
    return ((x + m - 1) // m) * m


# ---------------------------------------------------------------------------
# Fused Conv2d(5x5, pad=2) + bias + MaxPool2d(2) kernel (one image per grid step)
# ---------------------------------------------------------------------------
def _conv_pool_kernel(x_ref, r_ref, b_ref, o_ref, *, H, W, Cout):
    # x_ref: (1, H+4, K)      bf16  spatially padded input, lanes = (w, cin) fused,
    #                               K = round_up((W+4)*Cin, 128)
    # r_ref: (5, K, W*Cout)   bf16  per-dh Toeplitz weight slabs; columns permuted
    #                               to (pw, wo, cout) so W-pooling = lane halves
    # b_ref: (1, W*Cout)      f32   bias tiled to the same column order
    # o_ref: (1, Ho, Wo*Cout) bf16  pooled output, lanes = (wo, cout) fused
    Ho, Wo = H // 2, W // 2

    # 5x5 conv as 5 MXU matmuls (one per row-offset dh); dw/cin reduction is
    # folded into the weight slab.  bf16 operands, f32 accumulation.
    acc = jnp.zeros((H, W * Cout), jnp.float32)
    for dh in range(5):
        lhs = x_ref[0, pl.ds(dh, H), :]                       # (H, K) bf16
        acc = acc + jnp.dot(lhs, r_ref[dh], preferred_element_type=jnp.float32)
    acc = acc + b_ref[...]                                    # f32 bias epilogue

    # Fused 2x2 max pool (all f32, no reshapes):
    half = Wo * Cout
    wpool = jnp.maximum(acc[:, :half], acc[:, half:])         # pool along W -> (H, Wo*Cout)
    # pool along H via 0/1 selection matmuls picking rows 2i and 2i+1
    row = jax.lax.broadcasted_iota(jnp.int32, (Ho, H), 0)
    col = jax.lax.broadcasted_iota(jnp.int32, (Ho, H), 1)
    s_even = (col == 2 * row).astype(jnp.float32)
    s_odd = (col == 2 * row + 1).astype(jnp.float32)
    pooled = jnp.maximum(
        jnp.dot(s_even, wpool, preferred_element_type=jnp.float32),
        jnp.dot(s_odd, wpool, preferred_element_type=jnp.float32),
    )                                                         # (Ho, Wo*Cout)
    o_ref[0] = pooled.astype(o_ref.dtype)


def conv_pool(x_fused, r, b_tiled, *, H, W, Cin, Cout):
    """x_fused: (N, H, W*Cin) bf16 -> (N, H//2, (W//2)*Cout) bf16."""
    N = x_fused.shape[0]
    Hp = H + 4
    K = _round_up((W + 4) * Cin, 128)
    Ho, Wo = H // 2, W // 2
    # 'same' spatial padding (2 each side) + lane alignment padding, all zeros.
    pad_lo = 2 * Cin
    pad_hi = K - (W + 2) * Cin
    xp = jnp.pad(x_fused, ((0, 0), (2, 2), (pad_lo, pad_hi)))

    kernel = functools.partial(_conv_pool_kernel, H=H, W=W, Cout=Cout)
    return pl.pallas_call(
        kernel,
        grid=(N,),
        out_shape=jax.ShapeDtypeStruct((N, Ho, Wo * Cout), jnp.bfloat16),
        in_specs=[
            pl.BlockSpec((1, Hp, K), lambda n: (n, 0, 0)),
            pl.BlockSpec((5, K, W * Cout), lambda n: (0, 0, 0)),   # reused weights
            pl.BlockSpec((1, W * Cout), lambda n: (0, 0)),
        ],
        out_specs=pl.BlockSpec((1, Ho, Wo * Cout), lambda n: (n, 0, 0)),
        compiler_params=pltpu.CompilerParams(
            dimension_semantics=("parallel",),
            vmem_limit_bytes=32 * 1024 * 1024,
        ),
    )(xp, r, b_tiled)


# ---------------------------------------------------------------------------
# Fused Flatten + Linear(1024,64) + Linear(64,10) kernel
# ---------------------------------------------------------------------------
def _fc_kernel(x_ref, w1_ref, b1_ref, w2_ref, b2_ref, o_ref):
    h = jnp.dot(x_ref[...], w1_ref[...], preferred_element_type=jnp.float32)
    h = h + b1_ref[...]                                        # f32 epilogue
    h = h.astype(jnp.bfloat16)
    o = jnp.dot(h, w2_ref[...], preferred_element_type=jnp.float32)
    o_ref[...] = o + b2_ref[...]


def fc_fused(x, w1, b1, w2, b2):
    N, K = x.shape
    H1 = w1.shape[1]
    NO = w2.shape[1]
    # Tiny M/K/N (M=batch, K=1024, N=64/128): a single block is the right choice;
    # fusing both linears removes a kernel launch + glue.
    return pl.pallas_call(
        _fc_kernel,
        grid=(1,),
        out_shape=jax.ShapeDtypeStruct((N, NO), jnp.float32),
        in_specs=[
            pl.BlockSpec((N, K), lambda i: (0, 0)),
            pl.BlockSpec((K, H1), lambda i: (0, 0)),
            pl.BlockSpec((1, H1), lambda i: (0, 0)),
            pl.BlockSpec((H1, NO), lambda i: (0, 0)),
            pl.BlockSpec((1, NO), lambda i: (0, 0)),
        ],
        out_specs=pl.BlockSpec((N, NO), lambda i: (0, 0)),
        compiler_params=pltpu.CompilerParams(dimension_semantics=("arbitrary",)),
    )(x, w1, b1, w2, b2)


# ---------------------------------------------------------------------------
# Parameters (deterministic synthetic init matching the module's shapes)
# ---------------------------------------------------------------------------
def init_params(key):
    ks = jax.random.split(key, 10)

    def conv_w(k, cin, cout):
        scale = 1.0 / np.sqrt(25.0 * cin)
        return jax.random.normal(k, (5, 5, cin, cout), jnp.float32) * scale  # HWIO

    def lin_w(k, fin, fout):
        scale = 1.0 / np.sqrt(float(fin))
        return jax.random.normal(k, (fout, fin), jnp.float32) * scale        # (out, in)

    return {
        "w1": conv_w(ks[0], 3, 32),  "b1": jax.random.normal(ks[1], (32,), jnp.float32) * 0.01,
        "w2": conv_w(ks[2], 32, 32), "b2": jax.random.normal(ks[3], (32,), jnp.float32) * 0.01,
        "w3": conv_w(ks[4], 32, 64), "b3": jax.random.normal(ks[5], (64,), jnp.float32) * 0.01,
        "fc1_w": lin_w(ks[6], 1024, 64), "fc1_b": jax.random.normal(ks[7], (64,), jnp.float32) * 0.01,
        "fc2_w": lin_w(ks[8], 64, 10),   "fc2_b": jax.random.normal(ks[9], (10,), jnp.float32) * 0.01,
    }


def _build_conv_mats(w_hwio, b, H, W):
    """Build (5, K, W*Cout) Toeplitz weight slabs (pool-permuted cols) + tiled bias."""
    w_hwio = np.asarray(w_hwio, np.float32)
    b = np.asarray(b, np.float32)
    Cin, Cout = w_hwio.shape[2], w_hwio.shape[3]
    Wp = W + 4
    K = _round_up(Wp * Cin, 128)
    Wo = W // 2
    R = np.zeros((5, K, W * Cout), np.float32)
    b_tiled = np.zeros((1, W * Cout), np.float32)
    for w in range(W):
        pw, wo = w % 2, w // 2
        j0 = pw * (Wo * Cout) + wo * Cout          # column block for output pixel w
        b_tiled[0, j0:j0 + Cout] = b
        for dh in range(5):
            for dw in range(5):
                k0 = (w + dw) * Cin                # padded-input column block
                R[dh, k0:k0 + Cin, j0:j0 + Cout] = w_hwio[dh, dw]
    return jnp.asarray(R, jnp.bfloat16), jnp.asarray(b_tiled, jnp.float32)


def prepare_params(params):
    p = {}
    p["r1"], p["bt1"] = _build_conv_mats(params["w1"], params["b1"], 32, 32)
    p["r2"], p["bt2"] = _build_conv_mats(params["w2"], params["b2"], 16, 16)
    p["r3"], p["bt3"] = _build_conv_mats(params["w3"], params["b3"], 8, 8)

    # fc1: fold the NCHW flatten permutation into the weight columns.
    Ho, Wo, C = 4, 4, 64
    ho = np.arange(Ho).reshape(Ho, 1, 1)
    wo = np.arange(Wo).reshape(1, Wo, 1)
    c = np.arange(C).reshape(1, 1, C)
    perm = (c * (Ho * Wo) + ho * Wo + wo).reshape(-1)      # our (ho,wo,c) -> torch (c,ho,wo)
    fc1_w = np.asarray(params["fc1_w"], np.float32)        # (64, 1024)
    p["fc1_w"] = jnp.asarray(fc1_w[:, perm].T, jnp.bfloat16)          # (1024, 64)
    p["fc1_b"] = jnp.asarray(params["fc1_b"], jnp.float32).reshape(1, -1)

    # fc2: pad logits 10 -> 128 for a lane-dense, unmasked output store.
    fc2_w = np.asarray(params["fc2_w"], np.float32)        # (10, 64)
    w2p = np.zeros((64, 128), np.float32)
    w2p[:, :10] = fc2_w.T
    b2p = np.zeros((1, 128), np.float32)
    b2p[0, :10] = np.asarray(params["fc2_b"], np.float32)
    p["fc2_w"] = jnp.asarray(w2p, jnp.bfloat16)
    p["fc2_b"] = jnp.asarray(b2p, jnp.float32)
    return p


# ---------------------------------------------------------------------------
# Forward pass (mirrors MyModule.forward)
# ---------------------------------------------------------------------------
def forward(prep, x_nchw):
    N = x_nchw.shape[0]
    # NCHW -> NHWC -> fused (h, w*c) bf16 activations
    x = jnp.transpose(x_nchw, (0, 2, 3, 1)).reshape(N, 32, 32 * 3).astype(jnp.bfloat16)
    x = conv_pool(x, prep["r1"], prep["bt1"], H=32, W=32, Cin=3, Cout=32)   # (N, 16, 512)
    x = conv_pool(x, prep["r2"], prep["bt2"], H=16, W=16, Cin=32, Cout=32)  # (N, 8, 256)
    x = conv_pool(x, prep["r3"], prep["bt3"], H=8, W=8, Cin=32, Cout=64)    # (N, 4, 256)
    x = x.reshape(N, 1024)                       # features ordered (ho, wo, c); perm folded into fc1
    logits = fc_fused(x, prep["fc1_w"], prep["fc1_b"], prep["fc2_w"], prep["fc2_b"])  # (N, 128)
    return logits[:, :10]


if __name__ == "__main__":
    key = jax.random.PRNGKey(0)
    pkey, xkey = jax.random.split(key)
    params = init_params(pkey)
    prep = prepare_params(params)
    # Input must be 32x32 spatial so Flatten yields 1024 features (as the module implies).
    x = jax.random.normal(xkey, (2, 3, 32, 32), jnp.float32)
    out = jax.jit(forward)(prep, x)
    jax.block_until_ready(out)
    assert out.shape == (2, 10) and out.dtype == jnp.float32
    print("KERNEL_OK")
</pallas_src>

<mosaic_0001>
module attributes {stable_mosaic.version = 11 : i64} {
  func.func @_conv_pool_kernel(%arg0: i32, %arg1: memref<1x36x128xbf16, #tpu.memory_space<vmem>>, %arg2: memref<5x128x1024xbf16, #tpu.memory_space<vmem>>, %arg3: memref<1x1024xf32, #tpu.memory_space<vmem>>, %arg4: memref<1x16x512xbf16, #tpu.memory_space<vmem>>) attributes {dimension_semantics = [#tpu.dimension_semantics<parallel>], iteration_bounds = array<i64: 2>, scalar_prefetch = 0 : i64, scratch_operands = 0 : i64, tpu.core_type = #tpu.core_type<tc>, window_params = [{transform_indices = @transform_0, window_bounds = array<i64: 1, 36, 128>}, {pipeline_mode = #tpu.pipeline_mode<synchronous>, transform_indices = @transform_1, window_bounds = array<i64: 5, 128, 1024>}, {pipeline_mode = #tpu.pipeline_mode<synchronous>, transform_indices = @transform_2, window_bounds = array<i64: 1, 1024>}, {transform_indices = @transform_3, window_bounds = array<i64: 1, 16, 512>}]} {
    %cst = arith.constant 0.000000e+00 : f32
    %0 = vector.broadcast %cst : f32 to vector<32x1024xf32>
    %c0 = arith.constant 0 : index
    %c0_0 = arith.constant 0 : index
    %c0_1 = arith.constant 0 : index
    %1 = vector.load %arg1[%c0, %c0_0, %c0_1] : memref<1x36x128xbf16, #tpu.memory_space<vmem>>, vector<1x32x128xbf16>
    %2 = vector.shape_cast %1 : vector<1x32x128xbf16> to vector<32x128xbf16>
    %c0_2 = arith.constant 0 : index
    %c0_3 = arith.constant 0 : index
    %c0_4 = arith.constant 0 : index
    %3 = vector.load %arg2[%c0_2, %c0_3, %c0_4] : memref<5x128x1024xbf16, #tpu.memory_space<vmem>>, vector<1x128x1024xbf16>
    %4 = vector.shape_cast %3 : vector<1x128x1024xbf16> to vector<128x1024xbf16>
    %cst_5 = arith.constant dense<0.000000e+00> : vector<32x1024xf32>
    %5 = tpu.matmul %2, %4, %cst_5 {dimension_numbers = #tpu.dot_dimension_numbers<[1], [0], [0], [1], [0, 0, 1, 1], [], []>} : vector<32x128xbf16>, vector<128x1024xbf16>, vector<32x1024xf32> -> vector<32x1024xf32>
    %6 = arith.addf %0, %5 : vector<32x1024xf32>
    %c0_6 = arith.constant 0 : index
    %c1 = arith.constant 1 : index
    %c0_7 = arith.constant 0 : index
    %7 = vector.load %arg1[%c0_6, %c1, %c0_7] : memref<1x36x128xbf16, #tpu.memory_space<vmem>>, vector<1x32x128xbf16>
    %8 = vector.shape_cast %7 : vector<1x32x128xbf16> to vector<32x128xbf16>
    %c1_8 = arith.constant 1 : index
    %c0_9 = arith.constant 0 : index
    %c0_10 = arith.constant 0 : index
    %9 = vector.load %arg2[%c1_8, %c0_9, %c0_10] : memref<5x128x1024xbf16, #tpu.memory_space<vmem>>, vector<1x128x1024xbf16>
    %10 = vector.shape_cast %9 : vector<1x128x1024xbf16> to vector<128x1024xbf16>
    %cst_11 = arith.constant dense<0.000000e+00> : vector<32x1024xf32>
    %11 = tpu.matmul %8, %10, %cst_11 {dimension_numbers = #tpu.dot_dimension_numbers<[1], [0], [0], [1], [0, 0, 1, 1], [], []>} : vector<32x128xbf16>, vector<128x1024xbf16>, vector<32x1024xf32> -> vector<32x1024xf32>
    %12 = arith.addf %6, %11 : vector<32x1024xf32>
    %c0_12 = arith.constant 0 : index
    %c2 = arith.constant 2 : index
    %c0_13 = arith.constant 0 : index
    %13 = vector.load %arg1[%c0_12, %c2, %c0_13] : memref<1x36x128xbf16, #tpu.memory_space<vmem>>, vector<1x32x128xbf16>
    %14 = vector.shape_cast %13 : vector<1x32x128xbf16> to vector<32x128xbf16>
    %c2_14 = arith.constant 2 : index
    %c0_15 = arith.constant 0 : index
    %c0_16 = arith.constant 0 : index
    %15 = vector.load %arg2[%c2_14, %c0_15, %c0_16] : memref<5x128x1024xbf16, #tpu.memory_space<vmem>>, vector<1x128x1024xbf16>
    %16 = vector.shape_cast %15 : vector<1x128x1024xbf16> to vector<128x1024xbf16>
    %cst_17 = arith.constant dense<0.000000e+00> : vector<32x1024xf32>
    %17 = tpu.matmul %14, %16, %cst_17 {dimension_numbers = #tpu.dot_dimension_numbers<[1], [0], [0], [1], [0, 0, 1, 1], [], []>} : vector<32x128xbf16>, vector<128x1024xbf16>, vector<32x1024xf32> -> vector<32x1024xf32>
    %18 = arith.addf %12, %17 : vector<32x1024xf32>
    %c0_18 = arith.constant 0 : index
    %c3 = arith.constant 3 : index
    %c0_19 = arith.constant 0 : index
    %19 = vector.load %arg1[%c0_18, %c3, %c0_19] : memref<1x36x128xbf16, #tpu.memory_space<vmem>>, vector<1x32x128xbf16>
    %20 = vector.shape_cast %19 : vector<1x32x128xbf16> to vector<32x128xbf16>
    %c3_20 = arith.constant 3 : index
    %c0_21 = arith.constant 0 : index
    %c0_22 = arith.constant 0 : index
    %21 = vector.load %arg2[%c3_20, %c0_21, %c0_22] : memref<5x128x1024xbf16, #tpu.memory_space<vmem>>, vector<1x128x1024xbf16>
    %22 = vector.shape_cast %21 : vector<1x128x1024xbf16> to vector<128x1024xbf16>
    %cst_23 = arith.constant dense<0.000000e+00> : vector<32x1024xf32>
    %23 = tpu.matmul %20, %22, %cst_23 {dimension_numbers = #tpu.dot_dimension_numbers<[1], [0], [0], [1], [0, 0, 1, 1], [], []>} : vector<32x128xbf16>, vector<128x1024xbf16>, vector<32x1024xf32> -> vector<32x1024xf32>
    %24 = arith.addf %18, %23 : vector<32x1024xf32>
    %c0_24 = arith.constant 0 : index
    %c4 = arith.constant 4 : index
    %c0_25 = arith.constant 0 : index
    %25 = vector.load %arg1[%c0_24, %c4, %c0_25] : memref<1x36x128xbf16, #tpu.memory_space<vmem>>, vector<1x32x128xbf16>
    %26 = vector.shape_cast %25 : vector<1x32x128xbf16> to vector<32x128xbf16>
    %c4_26 = arith.constant 4 : index
    %c0_27 = arith.constant 0 : index
    %c0_28 = arith.constant 0 : index
    %27 = vector.load %arg2[%c4_26, %c0_27, %c0_28] : memref<5x128x1024xbf16, #tpu.memory_space<vmem>>, vector<1x128x1024xbf16>
    %28 = vector.shape_cast %27 : vector<1x128x1024xbf16> to vector<128x1024xbf16>
    %cst_29 = arith.constant dense<0.000000e+00> : vector<32x1024xf32>
    %29 = tpu.matmul %26, %28, %cst_29 {dimension_numbers = #tpu.dot_dimension_numbers<[1], [0], [0], [1], [0, 0, 1, 1], [], []>} : vector<32x128xbf16>, vector<128x1024xbf16>, vector<32x1024xf32> -> vector<32x1024xf32>
    %30 = arith.addf %24, %29 : vector<32x1024xf32>
    %c0_30 = arith.constant 0 : index
    %c0_31 = arith.constant 0 : index
    %31 = vector.load %arg3[%c0_30, %c0_31] : memref<1x1024xf32, #tpu.memory_space<vmem>>, vector<1x1024xf32>
    %32 = vector.broadcast %31 : vector<1x1024xf32> to vector<32x1024xf32>
    %33 = arith.addf %30, %32 : vector<32x1024xf32>
    %34 = vector.extract_strided_slice %33 {offsets = [0, 0], sizes = [32, 512], strides = [1, 1]} : vector<32x1024xf32> to vector<32x512xf32>
    %35 = vector.extract_strided_slice %33 {offsets = [0, 512], sizes = [32, 512], strides = [1, 1]} : vector<32x1024xf32> to vector<32x512xf32>
    %36 = arith.maximumf %34, %35 : vector<32x512xf32>
    %37 = tpu.iota {dimensions = array<i32: 0>} : vector<16x32xi32>
    %38 = tpu.iota {dimensions = array<i32: 1>} : vector<16x32xi32>
    %c2_i32 = arith.constant 2 : i32
    %39 = vector.broadcast %c2_i32 : i32 to vector<16x32xi32>
    %40 = arith.muli %39, %37 : vector<16x32xi32>
    %41 = arith.cmpi eq, %38, %40 : vector<16x32xi32>
    %42 = arith.extui %41 : vector<16x32xi1> to vector<16x32xi32>
    %43 = arith.sitofp %42 : vector<16x32xi32> to vector<16x32xf32>
    %c2_i32_32 = arith.constant 2 : i32
    %44 = vector.broadcast %c2_i32_32 : i32 to vector<16x32xi32>
    %45 = arith.muli %44, %37 : vector<16x32xi32>
    %c1_i32 = arith.constant 1 : i32
    %46 = vector.broadcast %c1_i32 : i32 to vector<16x32xi32>
    %47 = arith.addi %45, %46 : vector<16x32xi32>
    %48 = arith.cmpi eq, %38, %47 : vector<16x32xi32>
    %49 = arith.extui %48 : vector<16x32xi1> to vector<16x32xi32>
    %50 = arith.sitofp %49 : vector<16x32xi32> to vector<16x32xf32>
    %cst_33 = arith.constant dense<0.000000e+00> : vector<16x512xf32>
    %51 = tpu.matmul %43, %36, %cst_33 {dimension_numbers = #tpu.dot_dimension_numbers<[1], [0], [0], [1], [0, 0, 1, 1], [], []>} : vector<16x32xf32>, vector<32x512xf32>, vector<16x512xf32> -> vector<16x512xf32>
    %cst_34 = arith.constant dense<0.000000e+00> : vector<16x512xf32>
    %52 = tpu.matmul %50, %36, %cst_34 {dimension_numbers = #tpu.dot_dimension_numbers<[1], [0], [0], [1], [0, 0, 1, 1], [], []>} : vector<16x32xf32>, vector<32x512xf32>, vector<16x512xf32> -> vector<16x512xf32>
    %53 = arith.maximumf %51, %52 : vector<16x512xf32>
    %54 = arith.truncf %53 : vector<16x512xf32> to vector<16x512xbf16>
    %c0_35 = arith.constant 0 : index
    %c0_36 = arith.constant 0 : index
    %c0_37 = arith.constant 0 : index
    %55 = vector.load %arg4[%c0_35, %c0_36, %c0_37] : memref<1x16x512xbf16, #tpu.memory_space<vmem>>, vector<1x16x512xbf16>
    %56 = vector.shape_cast %55 : vector<1x16x512xbf16> to vector<16x512xbf16>
    %57 = vector.shape_cast %54 : vector<16x512xbf16> to vector<1x16x512xbf16>
    tpu.vector_store %arg4[%c0_35, %c0_36, %c0_37], %57 {strides = array<i32>} : memref<1x16x512xbf16, #tpu.memory_space<vmem>>, vector<1x16x512xbf16>,
    return
  }
  func.func @transform_0(%arg0: i32) -> (i32, i32, i32) {
    %c0_i32 = arith.constant 0 : i32
    %c0_i32_0 = arith.constant 0 : i32
    %c0_i32_1 = arith.constant 0 : i32
    return %arg0, %c0_i32, %c0_i32_0 : i32, i32, i32
  }
  func.func @transform_1(%arg0: i32) -> (i32, i32, i32) {
    %c0_i32 = arith.constant 0 : i32
    %c0_i32_0 = arith.constant 0 : i32
    %c0_i32_1 = arith.constant 0 : i32
    %c0_i32_2 = arith.constant 0 : i32
    return %c0_i32, %c0_i32_0, %c0_i32_1 : i32, i32, i32
  }
  func.func @transform_2(%arg0: i32) -> (i32, i32) {
    %c0_i32 = arith.constant 0 : i32
    %c0_i32_0 = arith.constant 0 : i32
    %c0_i32_1 = arith.constant 0 : i32
    return %c0_i32, %c0_i32_0 : i32, i32
  }
  func.func @transform_3(%arg0: i32) -> (i32, i32, i32) {
    %c0_i32 = arith.constant 0 : i32
    %c0_i32_0 = arith.constant 0 : i32
    %c0_i32_1 = arith.constant 0 : i32
    return %arg0, %c0_i32, %c0_i32_0 : i32, i32, i32
  }
}

module attributes {stable_mosaic.version = 11 : i64} {
  func.func @_conv_pool_kernel(%arg0: i32, %arg1: memref<1x20x640xbf16, #tpu.memory_space<vmem>>, %arg2: memref<5x640x512xbf16, #tpu.memory_space<vmem>>, %arg3: memref<1x512xf32, #tpu.memory_space<vmem>>, %arg4: memref<1x8x256xbf16, #tpu.memory_space<vmem>>) attributes {dimension_semantics = [#tpu.dimension_semantics<parallel>], iteration_bounds = array<i64: 2>, scalar_prefetch = 0 : i64, scratch_operands = 0 : i64, tpu.core_type = #tpu.core_type<tc>, window_params = [{transform_indices = @transform_0, window_bounds = array<i64: 1, 20, 640>}, {pipeline_mode = #tpu.pipeline_mode<synchronous>, transform_indices = @transform_1, window_bounds = array<i64: 5, 640, 512>}, {pipeline_mode = #tpu.pipeline_mode<synchronous>, transform_indices = @transform_2, window_bounds = array<i64: 1, 512>}, {transform_indices = @transform_3, window_bounds = array<i64: 1, 8, 256>}]} {
    %cst = arith.constant 0.000000e+00 : f32
    %0 = vector.broadcast %cst : f32 to vector<16x512xf32>
    %c0 = arith.constant 0 : index
    %c0_0 = arith.constant 0 : index
    %c0_1 = arith.constant 0 : index
    %1 = vector.load %arg1[%c0, %c0_0, %c0_1] : memref<1x20x640xbf16, #tpu.memory_space<vmem>>, vector<1x16x640xbf16>
    %2 = vector.shape_cast %1 : vector<1x16x640xbf16> to vector<16x640xbf16>
    %c0_2 = arith.constant 0 : index
    %c0_3 = arith.constant 0 : index
    %c0_4 = arith.constant 0 : index
    %3 = vector.load %arg2[%c0_2, %c0_3, %c0_4] : memref<5x640x512xbf16, #tpu.memory_space<vmem>>, vector<1x640x512xbf16>
    %4 = vector.shape_cast %3 : vector<1x640x512xbf16> to vector<640x512xbf16>
    %cst_5 = arith.constant dense<0.000000e+00> : vector<16x512xf32>
    %5 = tpu.matmul %2, %4, %cst_5 {dimension_numbers = #tpu.dot_dimension_numbers<[1], [0], [0], [1], [0, 0, 1, 1], [], []>} : vector<16x640xbf16>, vector<640x512xbf16>, vector<16x512xf32> -> vector<16x512xf32>
    %6 = arith.addf %0, %5 : vector<16x512xf32>
    %c0_6 = arith.constant 0 : index
    %c1 = arith.constant 1 : index
    %c0_7 = arith.constant 0 : index
    %7 = vector.load %arg1[%c0_6, %c1, %c0_7] : memref<1x20x640xbf16, #tpu.memory_space<vmem>>, vector<1x16x640xbf16>
    %8 = vector.shape_cast %7 : vector<1x16x640xbf16> to vector<16x640xbf16>
    %c1_8 = arith.constant 1 : index
    %c0_9 = arith.constant 0 : index
    %c0_10 = arith.constant 0 : index
    %9 = vector.load %arg2[%c1_8, %c0_9, %c0_10] : memref<5x640x512xbf16, #tpu.memory_space<vmem>>, vector<1x640x512xbf16>
    %10 = vector.shape_cast %9 : vector<1x640x512xbf16> to vector<640x512xbf16>
    %cst_11 = arith.constant dense<0.000000e+00> : vector<16x512xf32>
    %11 = tpu.matmul %8, %10, %cst_11 {dimension_numbers = #tpu.dot_dimension_numbers<[1], [0], [0], [1], [0, 0, 1, 1], [], []>} : vector<16x640xbf16>, vector<640x512xbf16>, vector<16x512xf32> -> vector<16x512xf32>
    %12 = arith.addf %6, %11 : vector<16x512xf32>
    %c0_12 = arith.constant 0 : index
    %c2 = arith.constant 2 : index
    %c0_13 = arith.constant 0 : index
    %13 = vector.load %arg1[%c0_12, %c2, %c0_13] : memref<1x20x640xbf16, #tpu.memory_space<vmem>>, vector<1x16x640xbf16>
    %14 = vector.shape_cast %13 : vector<1x16x640xbf16> to vector<16x640xbf16>
    %c2_14 = arith.constant 2 : index
    %c0_15 = arith.constant 0 : index
    %c0_16 = arith.constant 0 : index
    %15 = vector.load %arg2[%c2_14, %c0_15, %c0_16] : memref<5x640x512xbf16, #tpu.memory_space<vmem>>, vector<1x640x512xbf16>
    %16 = vector.shape_cast %15 : vector<1x640x512xbf16> to vector<640x512xbf16>
    %cst_17 = arith.constant dense<0.000000e+00> : vector<16x512xf32>
    %17 = tpu.matmul %14, %16, %cst_17 {dimension_numbers = #tpu.dot_dimension_numbers<[1], [0], [0], [1], [0, 0, 1, 1], [], []>} : vector<16x640xbf16>, vector<640x512xbf16>, vector<16x512xf32> -> vector<16x512xf32>
    %18 = arith.addf %12, %17 : vector<16x512xf32>
    %c0_18 = arith.constant 0 : index
    %c3 = arith.constant 3 : index
    %c0_19 = arith.constant 0 : index
    %19 = vector.load %arg1[%c0_18, %c3, %c0_19] : memref<1x20x640xbf16, #tpu.memory_space<vmem>>, vector<1x16x640xbf16>
    %20 = vector.shape_cast %19 : vector<1x16x640xbf16> to vector<16x640xbf16>
    %c3_20 = arith.constant 3 : index
    %c0_21 = arith.constant 0 : index
    %c0_22 = arith.constant 0 : index
    %21 = vector.load %arg2[%c3_20, %c0_21, %c0_22] : memref<5x640x512xbf16, #tpu.memory_space<vmem>>, vector<1x640x512xbf16>
    %22 = vector.shape_cast %21 : vector<1x640x512xbf16> to vector<640x512xbf16>
    %cst_23 = arith.constant dense<0.000000e+00> : vector<16x512xf32>
    %23 = tpu.matmul %20, %22, %cst_23 {dimension_numbers = #tpu.dot_dimension_numbers<[1], [0], [0], [1], [0, 0, 1, 1], [], []>} : vector<16x640xbf16>, vector<640x512xbf16>, vector<16x512xf32> -> vector<16x512xf32>
    %24 = arith.addf %18, %23 : vector<16x512xf32>
    %c0_24 = arith.constant 0 : index
    %c4 = arith.constant 4 : index
    %c0_25 = arith.constant 0 : index
    %25 = vector.load %arg1[%c0_24, %c4, %c0_25] : memref<1x20x640xbf16, #tpu.memory_space<vmem>>, vector<1x16x640xbf16>
    %26 = vector.shape_cast %25 : vector<1x16x640xbf16> to vector<16x640xbf16>
    %c4_26 = arith.constant 4 : index
    %c0_27 = arith.constant 0 : index
    %c0_28 = arith.constant 0 : index
    %27 = vector.load %arg2[%c4_26, %c0_27, %c0_28] : memref<5x640x512xbf16, #tpu.memory_space<vmem>>, vector<1x640x512xbf16>
    %28 = vector.shape_cast %27 : vector<1x640x512xbf16> to vector<640x512xbf16>
    %cst_29 = arith.constant dense<0.000000e+00> : vector<16x512xf32>
    %29 = tpu.matmul %26, %28, %cst_29 {dimension_numbers = #tpu.dot_dimension_numbers<[1], [0], [0], [1], [0, 0, 1, 1], [], []>} : vector<16x640xbf16>, vector<640x512xbf16>, vector<16x512xf32> -> vector<16x512xf32>
    %30 = arith.addf %24, %29 : vector<16x512xf32>
    %c0_30 = arith.constant 0 : index
    %c0_31 = arith.constant 0 : index
    %31 = vector.load %arg3[%c0_30, %c0_31] : memref<1x512xf32, #tpu.memory_space<vmem>>, vector<1x512xf32>
    %32 = vector.broadcast %31 : vector<1x512xf32> to vector<16x512xf32>
    %33 = arith.addf %30, %32 : vector<16x512xf32>
    %34 = vector.extract_strided_slice %33 {offsets = [0, 0], sizes = [16, 256], strides = [1, 1]} : vector<16x512xf32> to vector<16x256xf32>
    %35 = vector.extract_strided_slice %33 {offsets = [0, 256], sizes = [16, 256], strides = [1, 1]} : vector<16x512xf32> to vector<16x256xf32>
    %36 = arith.maximumf %34, %35 : vector<16x256xf32>
    %37 = tpu.iota {dimensions = array<i32: 0>} : vector<8x16xi32>
    %38 = tpu.iota {dimensions = array<i32: 1>} : vector<8x16xi32>
    %c2_i32 = arith.constant 2 : i32
    %39 = vector.broadcast %c2_i32 : i32 to vector<8x16xi32>
    %40 = arith.muli %39, %37 : vector<8x16xi32>
    %41 = arith.cmpi eq, %38, %40 : vector<8x16xi32>
    %42 = arith.extui %41 : vector<8x16xi1> to vector<8x16xi32>
    %43 = arith.sitofp %42 : vector<8x16xi32> to vector<8x16xf32>
    %c2_i32_32 = arith.constant 2 : i32
    %44 = vector.broadcast %c2_i32_32 : i32 to vector<8x16xi32>
    %45 = arith.muli %44, %37 : vector<8x16xi32>
    %c1_i32 = arith.constant 1 : i32
    %46 = vector.broadcast %c1_i32 : i32 to vector<8x16xi32>
    %47 = arith.addi %45, %46 : vector<8x16xi32>
    %48 = arith.cmpi eq, %38, %47 : vector<8x16xi32>
    %49 = arith.extui %48 : vector<8x16xi1> to vector<8x16xi32>
    %50 = arith.sitofp %49 : vector<8x16xi32> to vector<8x16xf32>
    %cst_33 = arith.constant dense<0.000000e+00> : vector<8x256xf32>
    %51 = tpu.matmul %43, %36, %cst_33 {dimension_numbers = #tpu.dot_dimension_numbers<[1], [0], [0], [1], [0, 0, 1, 1], [], []>} : vector<8x16xf32>, vector<16x256xf32>, vector<8x256xf32> -> vector<8x256xf32>
    %cst_34 = arith.constant dense<0.000000e+00> : vector<8x256xf32>
    %52 = tpu.matmul %50, %36, %cst_34 {dimension_numbers = #tpu.dot_dimension_numbers<[1], [0], [0], [1], [0, 0, 1, 1], [], []>} : vector<8x16xf32>, vector<16x256xf32>, vector<8x256xf32> -> vector<8x256xf32>
    %53 = arith.maximumf %51, %52 : vector<8x256xf32>
    %54 = arith.truncf %53 : vector<8x256xf32> to vector<8x256xbf16>
    %c0_35 = arith.constant 0 : index
    %c0_36 = arith.constant 0 : index
    %c0_37 = arith.constant 0 : index
    %55 = vector.load %arg4[%c0_35, %c0_36, %c0_37] : memref<1x8x256xbf16, #tpu.memory_space<vmem>>, vector<1x8x256xbf16>
    %56 = vector.shape_cast %55 : vector<1x8x256xbf16> to vector<8x256xbf16>
    %57 = vector.shape_cast %54 : vector<8x256xbf16> to vector<1x8x256xbf16>
    tpu.vector_store %arg4[%c0_35, %c0_36, %c0_37], %57 {strides = array<i32>} : memref<1x8x256xbf16, #tpu.memory_space<vmem>>, vector<1x8x256xbf16>,
    return
  }
  func.func @transform_0(%arg0: i32) -> (i32, i32, i32) {
    %c0_i32 = arith.constant 0 : i32
    %c0_i32_0 = arith.constant 0 : i32
    %c0_i32_1 = arith.constant 0 : i32
    return %arg0, %c0_i32, %c0_i32_0 : i32, i32, i32
  }
  func.func @transform_1(%arg0: i32) -> (i32, i32, i32) {
    %c0_i32 = arith.constant 0 : i32
    %c0_i32_0 = arith.constant 0 : i32
    %c0_i32_1 = arith.constant 0 : i32
    %c0_i32_2 = arith.constant 0 : i32
    return %c0_i32, %c0_i32_0, %c0_i32_1 : i32, i32, i32
  }
  func.func @transform_2(%arg0: i32) -> (i32, i32) {
    %c0_i32 = arith.constant 0 : i32
    %c0_i32_0 = arith.constant 0 : i32
    %c0_i32_1 = arith.constant 0 : i32
    return %c0_i32, %c0_i32_0 : i32, i32
  }
  func.func @transform_3(%arg0: i32) -> (i32, i32, i32) {
    %c0_i32 = arith.constant 0 : i32
    %c0_i32_0 = arith.constant 0 : i32
    %c0_i32_1 = arith.constant 0 : i32
    return %arg0, %c0_i32, %c0_i32_0 : i32, i32, i32
  }
}

module attributes {stable_mosaic.version = 11 : i64} {
  func.func @_conv_pool_kernel(%arg0: i32, %arg1: memref<1x12x384xbf16, #tpu.memory_space<vmem>>, %arg2: memref<5x384x512xbf16, #tpu.memory_space<vmem>>, %arg3: memref<1x512xf32, #tpu.memory_space<vmem>>, %arg4: memref<1x4x256xbf16, #tpu.memory_space<vmem>>) attributes {dimension_semantics = [#tpu.dimension_semantics<parallel>], iteration_bounds = array<i64: 2>, scalar_prefetch = 0 : i64, scratch_operands = 0 : i64, tpu.core_type = #tpu.core_type<tc>, window_params = [{transform_indices = @transform_0, window_bounds = array<i64: 1, 12, 384>}, {pipeline_mode = #tpu.pipeline_mode<synchronous>, transform_indices = @transform_1, window_bounds = array<i64: 5, 384, 512>}, {pipeline_mode = #tpu.pipeline_mode<synchronous>, transform_indices = @transform_2, window_bounds = array<i64: 1, 512>}, {transform_indices = @transform_3, window_bounds = array<i64: 1, 4, 256>}]} {
    %cst = arith.constant 0.000000e+00 : f32
    %0 = vector.broadcast %cst : f32 to vector<8x512xf32>
    %c0 = arith.constant 0 : index
    %c0_0 = arith.constant 0 : index
    %c0_1 = arith.constant 0 : index
    %1 = vector.load %arg1[%c0, %c0_0, %c0_1] : memref<1x12x384xbf16, #tpu.memory_space<vmem>>, vector<1x8x384xbf16>
    %2 = vector.shape_cast %1 : vector<1x8x384xbf16> to vector<8x384xbf16>
    %c0_2 = arith.constant 0 : index
    %c0_3 = arith.constant 0 : index
    %c0_4 = arith.constant 0 : index
    %3 = vector.load %arg2[%c0_2, %c0_3, %c0_4] : memref<5x384x512xbf16, #tpu.memory_space<vmem>>, vector<1x384x512xbf16>
    %4 = vector.shape_cast %3 : vector<1x384x512xbf16> to vector<384x512xbf16>
    %cst_5 = arith.constant dense<0.000000e+00> : vector<8x512xf32>
    %5 = tpu.matmul %2, %4, %cst_5 {dimension_numbers = #tpu.dot_dimension_numbers<[1], [0], [0], [1], [0, 0, 1, 1], [], []>} : vector<8x384xbf16>, vector<384x512xbf16>, vector<8x512xf32> -> vector<8x512xf32>
    %6 = arith.addf %0, %5 : vector<8x512xf32>
    %c0_6 = arith.constant 0 : index
    %c1 = arith.constant 1 : index
    %c0_7 = arith.constant 0 : index
    %7 = vector.load %arg1[%c0_6, %c1, %c0_7] : memref<1x12x384xbf16, #tpu.memory_space<vmem>>, vector<1x8x384xbf16>
    %8 = vector.shape_cast %7 : vector<1x8x384xbf16> to vector<8x384xbf16>
    %c1_8 = arith.constant 1 : index
    %c0_9 = arith.constant 0 : index
    %c0_10 = arith.constant 0 : index
    %9 = vector.load %arg2[%c1_8, %c0_9, %c0_10] : memref<5x384x512xbf16, #tpu.memory_space<vmem>>, vector<1x384x512xbf16>
    %10 = vector.shape_cast %9 : vector<1x384x512xbf16> to vector<384x512xbf16>
    %cst_11 = arith.constant dense<0.000000e+00> : vector<8x512xf32>
    %11 = tpu.matmul %8, %10, %cst_11 {dimension_numbers = #tpu.dot_dimension_numbers<[1], [0], [0], [1], [0, 0, 1, 1], [], []>} : vector<8x384xbf16>, vector<384x512xbf16>, vector<8x512xf32> -> vector<8x512xf32>
    %12 = arith.addf %6, %11 : vector<8x512xf32>
    %c0_12 = arith.constant 0 : index
    %c2 = arith.constant 2 : index
    %c0_13 = arith.constant 0 : index
    %13 = vector.load %arg1[%c0_12, %c2, %c0_13] : memref<1x12x384xbf16, #tpu.memory_space<vmem>>, vector<1x8x384xbf16>
    %14 = vector.shape_cast %13 : vector<1x8x384xbf16> to vector<8x384xbf16>
    %c2_14 = arith.constant 2 : index
    %c0_15 = arith.constant 0 : index
    %c0_16 = arith.constant 0 : index
    %15 = vector.load %arg2[%c2_14, %c0_15, %c0_16] : memref<5x384x512xbf16, #tpu.memory_space<vmem>>, vector<1x384x512xbf16>
    %16 = vector.shape_cast %15 : vector<1x384x512xbf16> to vector<384x512xbf16>
    %cst_17 = arith.constant dense<0.000000e+00> : vector<8x512xf32>
    %17 = tpu.matmul %14, %16, %cst_17 {dimension_numbers = #tpu.dot_dimension_numbers<[1], [0], [0], [1], [0, 0, 1, 1], [], []>} : vector<8x384xbf16>, vector<384x512xbf16>, vector<8x512xf32> -> vector<8x512xf32>
    %18 = arith.addf %12, %17 : vector<8x512xf32>
    %c0_18 = arith.constant 0 : index
    %c3 = arith.constant 3 : index
    %c0_19 = arith.constant 0 : index
    %19 = vector.load %arg1[%c0_18, %c3, %c0_19] : memref<1x12x384xbf16, #tpu.memory_space<vmem>>, vector<1x8x384xbf16>
    %20 = vector.shape_cast %19 : vector<1x8x384xbf16> to vector<8x384xbf16>
    %c3_20 = arith.constant 3 : index
    %c0_21 = arith.constant 0 : index
    %c0_22 = arith.constant 0 : index
    %21 = vector.load %arg2[%c3_20, %c0_21, %c0_22] : memref<5x384x512xbf16, #tpu.memory_space<vmem>>, vector<1x384x512xbf16>
    %22 = vector.shape_cast %21 : vector<1x384x512xbf16> to vector<384x512xbf16>
    %cst_23 = arith.constant dense<0.000000e+00> : vector<8x512xf32>
    %23 = tpu.matmul %20, %22, %cst_23 {dimension_numbers = #tpu.dot_dimension_numbers<[1], [0], [0], [1], [0, 0, 1, 1], [], []>} : vector<8x384xbf16>, vector<384x512xbf16>, vector<8x512xf32> -> vector<8x512xf32>
    %24 = arith.addf %18, %23 : vector<8x512xf32>
    %c0_24 = arith.constant 0 : index
    %c4 = arith.constant 4 : index
    %c0_25 = arith.constant 0 : index
    %25 = vector.load %arg1[%c0_24, %c4, %c0_25] : memref<1x12x384xbf16, #tpu.memory_space<vmem>>, vector<1x8x384xbf16>
    %26 = vector.shape_cast %25 : vector<1x8x384xbf16> to vector<8x384xbf16>
    %c4_26 = arith.constant 4 : index
    %c0_27 = arith.constant 0 : index
    %c0_28 = arith.constant 0 : index
    %27 = vector.load %arg2[%c4_26, %c0_27, %c0_28] : memref<5x384x512xbf16, #tpu.memory_space<vmem>>, vector<1x384x512xbf16>
    %28 = vector.shape_cast %27 : vector<1x384x512xbf16> to vector<384x512xbf16>
    %cst_29 = arith.constant dense<0.000000e+00> : vector<8x512xf32>
    %29 = tpu.matmul %26, %28, %cst_29 {dimension_numbers = #tpu.dot_dimension_numbers<[1], [0], [0], [1], [0, 0, 1, 1], [], []>} : vector<8x384xbf16>, vector<384x512xbf16>, vector<8x512xf32> -> vector<8x512xf32>
    %30 = arith.addf %24, %29 : vector<8x512xf32>
    %c0_30 = arith.constant 0 : index
    %c0_31 = arith.constant 0 : index
    %31 = vector.load %arg3[%c0_30, %c0_31] : memref<1x512xf32, #tpu.memory_space<vmem>>, vector<1x512xf32>
    %32 = vector.broadcast %31 : vector<1x512xf32> to vector<8x512xf32>
    %33 = arith.addf %30, %32 : vector<8x512xf32>
    %34 = vector.extract_strided_slice %33 {offsets = [0, 0], sizes = [8, 256], strides = [1, 1]} : vector<8x512xf32> to vector<8x256xf32>
    %35 = vector.extract_strided_slice %33 {offsets = [0, 256], sizes = [8, 256], strides = [1, 1]} : vector<8x512xf32> to vector<8x256xf32>
    %36 = arith.maximumf %34, %35 : vector<8x256xf32>
    %37 = tpu.iota {dimensions = array<i32: 0>} : vector<4x8xi32>
    %38 = tpu.iota {dimensions = array<i32: 1>} : vector<4x8xi32>
    %c2_i32 = arith.constant 2 : i32
    %39 = vector.broadcast %c2_i32 : i32 to vector<4x8xi32>
    %40 = arith.muli %39, %37 : vector<4x8xi32>
    %41 = arith.cmpi eq, %38, %40 : vector<4x8xi32>
    %42 = arith.extui %41 : vector<4x8xi1> to vector<4x8xi32>
    %43 = arith.sitofp %42 : vector<4x8xi32> to vector<4x8xf32>
    %c2_i32_32 = arith.constant 2 : i32
    %44 = vector.broadcast %c2_i32_32 : i32 to vector<4x8xi32>
    %45 = arith.muli %44, %37 : vector<4x8xi32>
    %c1_i32 = arith.constant 1 : i32
    %46 = vector.broadcast %c1_i32 : i32 to vector<4x8xi32>
    %47 = arith.addi %45, %46 : vector<4x8xi32>
    %48 = arith.cmpi eq, %38, %47 : vector<4x8xi32>
    %49 = arith.extui %48 : vector<4x8xi1> to vector<4x8xi32>
    %50 = arith.sitofp %49 : vector<4x8xi32> to vector<4x8xf32>
    %cst_33 = arith.constant dense<0.000000e+00> : vector<4x256xf32>
    %51 = tpu.matmul %43, %36, %cst_33 {dimension_numbers = #tpu.dot_dimension_numbers<[1], [0], [0], [1], [0, 0, 1, 1], [], []>} : vector<4x8xf32>, vector<8x256xf32>, vector<4x256xf32> -> vector<4x256xf32>
    %cst_34 = arith.constant dense<0.000000e+00> : vector<4x256xf32>
    %52 = tpu.matmul %50, %36, %cst_34 {dimension_numbers = #tpu.dot_dimension_numbers<[1], [0], [0], [1], [0, 0, 1, 1], [], []>} : vector<4x8xf32>, vector<8x256xf32>, vector<4x256xf32> -> vector<4x256xf32>
    %53 = arith.maximumf %51, %52 : vector<4x256xf32>
    %54 = arith.truncf %53 : vector<4x256xf32> to vector<4x256xbf16>
    %c0_35 = arith.constant 0 : index
    %c0_36 = arith.constant 0 : index
    %c0_37 = arith.constant 0 : index
    %55 = vector.load %arg4[%c0_35, %c0_36, %c0_37] : memref<1x4x256xbf16, #tpu.memory_space<vmem>>, vector<1x4x256xbf16>
    %56 = vector.shape_cast %55 : vector<1x4x256xbf16> to vector<4x256xbf16>
    %57 = vector.shape_cast %54 : vector<4x256xbf16> to vector<1x4x256xbf16>
    tpu.vector_store %arg4[%c0_35, %c0_36, %c0_37], %57 {strides = array<i32>} : memref<1x4x256xbf16, #tpu.memory_space<vmem>>, vector<1x4x256xbf16>,
    return
  }
  func.func @transform_0(%arg0: i32) -> (i32, i32, i32) {
    %c0_i32 = arith.constant 0 : i32
    %c0_i32_0 = arith.constant 0 : i32
    %c0_i32_1 = arith.constant 0 : i32
    return %arg0, %c0_i32, %c0_i32_0 : i32, i32, i32
  }
  func.func @transform_1(%arg0: i32) -> (i32, i32, i32) {
    %c0_i32 = arith.constant 0 : i32
    %c0_i32_0 = arith.constant 0 : i32
    %c0_i32_1 = arith.constant 0 : i32
    %c0_i32_2 = arith.constant 0 : i32
    return %c0_i32, %c0_i32_0, %c0_i32_1 : i32, i32, i32
  }
  func.func @transform_2(%arg0: i32) -> (i32, i32) {
    %c0_i32 = arith.constant 0 : i32
    %c0_i32_0 = arith.constant 0 : i32
    %c0_i32_1 = arith.constant 0 : i32
    return %c0_i32, %c0_i32_0 : i32, i32
  }
  func.func @transform_3(%arg0: i32) -> (i32, i32, i32) {
    %c0_i32 = arith.constant 0 : i32
    %c0_i32_0 = arith.constant 0 : i32
    %c0_i32_1 = arith.constant 0 : i32
    return %arg0, %c0_i32, %c0_i32_0 : i32, i32, i32
  }
}

module attributes {stable_mosaic.version = 11 : i64} {
  func.func @_fc_kernel(%arg0: i32, %arg1: memref<2x1024xbf16, #tpu.memory_space<vmem>>, %arg2: memref<1024x64xbf16, #tpu.memory_space<vmem>>, %arg3: memref<1x64xf32, #tpu.memory_space<vmem>>, %arg4: memref<64x128xbf16, #tpu.memory_space<vmem>>, %arg5: memref<1x128xf32, #tpu.memory_space<vmem>>, %arg6: memref<2x128xf32, #tpu.memory_space<vmem>>) attributes {dimension_semantics = [#tpu.dimension_semantics<arbitrary>], iteration_bounds = array<i64: 1>, scalar_prefetch = 0 : i64, scratch_operands = 0 : i64, tpu.core_type = #tpu.core_type<tc>, window_params = [{pipeline_mode = #tpu.pipeline_mode<synchronous>, transform_indices = @transform_0, window_bounds = array<i64: 2, 1024>}, {pipeline_mode = #tpu.pipeline_mode<synchronous>, transform_indices = @transform_1, window_bounds = array<i64: 1024, 64>}, {pipeline_mode = #tpu.pipeline_mode<synchronous>, transform_indices = @transform_2, window_bounds = array<i64: 1, 64>}, {pipeline_mode = #tpu.pipeline_mode<synchronous>, transform_indices = @transform_3, window_bounds = array<i64: 64, 128>}, {pipeline_mode = #tpu.pipeline_mode<synchronous>, transform_indices = @transform_4, window_bounds = array<i64: 1, 128>}, {pipeline_mode = #tpu.pipeline_mode<synchronous>, transform_indices = @transform_5, window_bounds = array<i64: 2, 128>}]} {
    %c0 = arith.constant 0 : index
    %c0_0 = arith.constant 0 : index
    %0 = vector.load %arg1[%c0, %c0_0] : memref<2x1024xbf16, #tpu.memory_space<vmem>>, vector<2x1024xbf16>
    %c0_1 = arith.constant 0 : index
    %c0_2 = arith.constant 0 : index
    %1 = vector.load %arg2[%c0_1, %c0_2] : memref<1024x64xbf16, #tpu.memory_space<vmem>>, vector<1024x64xbf16>
    %cst = arith.constant dense<0.000000e+00> : vector<2x64xf32>
    %2 = tpu.matmul %0, %1, %cst {dimension_numbers = #tpu.dot_dimension_numbers<[1], [0], [0], [1], [0, 0, 1, 1], [], []>} : vector<2x1024xbf16>, vector<1024x64xbf16>, vector<2x64xf32> -> vector<2x64xf32>
    %c0_3 = arith.constant 0 : index
    %c0_4 = arith.constant 0 : index
    %3 = vector.load %arg3[%c0_3, %c0_4] : memref<1x64xf32, #tpu.memory_space<vmem>>, vector<1x64xf32>
    %4 = vector.broadcast %3 : vector<1x64xf32> to vector<2x64xf32>
    %5 = arith.addf %2, %4 : vector<2x64xf32>
    %6 = arith.truncf %5 : vector<2x64xf32> to vector<2x64xbf16>
    %c0_5 = arith.constant 0 : index
    %c0_6 = arith.constant 0 : index
    %7 = vector.load %arg4[%c0_5, %c0_6] : memref<64x128xbf16, #tpu.memory_space<vmem>>, vector<64x128xbf16>
    %cst_7 = arith.constant dense<0.000000e+00> : vector<2x128xf32>
    %8 = tpu.matmul %6, %7, %cst_7 {dimension_numbers = #tpu.dot_dimension_numbers<[1], [0], [0], [1], [0, 0, 1, 1], [], []>} : vector<2x64xbf16>, vector<64x128xbf16>, vector<2x128xf32> -> vector<2x128xf32>
    %c0_8 = arith.constant 0 : index
    %c0_9 = arith.constant 0 : index
    %9 = vector.load %arg5[%c0_8, %c0_9] : memref<1x128xf32, #tpu.memory_space<vmem>>, vector<1x128xf32>
    %10 = vector.broadcast %9 : vector<1x128xf32> to vector<2x128xf32>
    %11 = arith.addf %8, %10 : vector<2x128xf32>
    %c0_10 = arith.constant 0 : index
    %c0_11 = arith.constant 0 : index
    %12 = vector.load %arg6[%c0_10, %c0_11] : memref<2x128xf32, #tpu.memory_space<vmem>>, vector<2x128xf32>
    tpu.vector_store %arg6[%c0_10, %c0_11], %11 {strides = array<i32>} : memref<2x128xf32, #tpu.memory_space<vmem>>, vector<2x128xf32>,
    return
  }
  func.func @transform_0(%arg0: i32) -> (i32, i32) {
    %c0_i32 = arith.constant 0 : i32
    %c0_i32_0 = arith.constant 0 : i32
    %c0_i32_1 = arith.constant 0 : i32
    return %c0_i32, %c0_i32_0 : i32, i32
  }
  func.func @transform_1(%arg0: i32) -> (i32, i32) {
    %c0_i32 = arith.constant 0 : i32
    %c0_i32_0 = arith.constant 0 : i32
    %c0_i32_1 = arith.constant 0 : i32
    return %c0_i32, %c0_i32_0 : i32, i32
  }
  func.func @transform_2(%arg0: i32) -> (i32, i32) {
    %c0_i32 = arith.constant 0 : i32
    %c0_i32_0 = arith.constant 0 : i32
    %c0_i32_1 = arith.constant 0 : i32
    return %c0_i32, %c0_i32_0 : i32, i32
  }
  func.func @transform_3(%arg0: i32) -> (i32, i32) {
    %c0_i32 = arith.constant 0 : i32
    %c0_i32_0 = arith.constant 0 : i32
    %c0_i32_1 = arith.constant 0 : i32
    return %c0_i32, %c0_i32_0 : i32, i32
  }
  func.func @transform_4(%arg0: i32) -> (i32, i32) {
    %c0_i32 = arith.constant 0 : i32
    %c0_i32_0 = arith.constant 0 : i32
    %c0_i32_1 = arith.constant 0 : i32
    return %c0_i32, %c0_i32_0 : i32, i32
  }
  func.func @transform_5(%arg0: i32) -> (i32, i32) {
    %c0_i32 = arith.constant 0 : i32
    %c0_i32_0 = arith.constant 0 : i32
    %c0_i32_1 = arith.constant 0 : i32
    return %c0_i32, %c0_i32_0 : i32, i32
  }
}

</mosaic_0001>

<bundles_post_ra>
// kernel: forward.7
= control target key start
LH: loop header
LB: loop body
LE: loop exit
PB: predicated region body
PF: predicated region fallthrough
CT: control target
= control target key end

     0   :  { %v163_v28 = vlaneseq  ;;  %v1132_v36 = vmov 1966171168   ;;  %s1404_s0 = inlined_call_operand.vmem [shape: bf16[2,1024], index: 0, kind: input, shape index: {}]   ;;  %s1405_s1 = inlined_call_operand.vmem [shape: bf16[1024,64], index: 1, kind: input, shape index: {}]   ;;  %s1406_s2 = inlined_call_operand.vmem [shape: f32[1,64], index: 2, kind: input, shape index: {}]   ;;  %s1407_s3 = inlined_call_operand.vmem [shape: bf16[64,128], index: 3, kind: input, shape index: {}]   ;;  %s1408_s4 = inlined_call_operand.vmem [shape: f32[1,128], index: 4, kind: input, shape index: {}]   ;;  %s1409_s5 = inlined_call_operand.hbm [shape: f32[2,128], index: 5, kind: output, shape index: {}]  }
   0x1   :  { %v1039_v0 = vld [vmem:[%s1405_s1 + $0x40] sm:$0xff]   ;;  %v1043_v4 = vld [vmem:[%s1405_s1 + $0x48] sm:$0xff]   ;;  %v1047_v8 = vld [vmem:[%s1405_s1 + $0x50] sm:$0xff]   ;;  %v161_v37 = vunpack.c.l.s4 %v1132_v36 }
   0x2   :  { %v1040_v1 = vld [vmem:[%s1405_s1 + $0xc0] sm:$0xff]   ;;  %930 = vmatprep.subr.bf16.mxu0 %v1039_v0  ;;  %v1044_v5 = vld [vmem:[%s1405_s1 + $0xc8] sm:$0xff]   ;;  %v1048_v9 = vld [vmem:[%s1405_s1 + $0xd0] sm:$0xff]   ;;  %v164_v33 = vshrl.u32 %v163_v28, 7 }
   0x3   :  { %v1041_v2 = vld [vmem:[%s1405_s1] sm:$0xff]   ;;  %952 = vmatprep.subr.bf16.mxu1 %v1040_v1  ;;  %v1045_v6 = vld [vmem:[%s1405_s1 + $0x8] sm:$0xff]   ;;  %v1049_v10 = vld [vmem:[%s1405_s1 + $0x10] sm:$0xff]   ;;  %v162_v40 = vunpack.c.0.s8 %v161_v37 }
   0x4   :  { %v1042_v3 = vld [vmem:[%s1405_s1 + $0x80] sm:$0xff]   ;;  %931 = vmatpush3.bf16.msra.mxu0 %v1041_v2  ;;  %v1046_v7 = vld [vmem:[%s1405_s1 + $0x88] sm:$0xff]   ;;  %v1050_v11 = vld [vmem:[%s1405_s1 + $0x90] sm:$0xff]  }
   0x5   :  { %953 = vmatpush3.bf16.msra.mxu1 %v1042_v3  ;;  %932 = vmatprep.subr.bf16.mxu0 %v1043_v4  ;;  %v1051_v12 = vld [vmem:[%s1405_s1 + $0x58] sm:$0xff]   ;;  %v1055_v16 = vld [vmem:[%s1405_s1 + $0x60] sm:$0xff]   ;;  %v1059_v20 = vld [vmem:[%s1405_s1 + $0x68] sm:$0xff]   ;;  %v1271_v41 = vsub.s32 %v162_v40, %v164_v33 }
   0x6   :  { %954 = vmatprep.subr.bf16.mxu1 %v1044_v5  ;;  %v1052_v13 = vld [vmem:[%s1405_s1 + $0xd8] sm:$0xff]   ;;  %v1056_v17 = vld [vmem:[%s1405_s1 + $0xe0] sm:$0xff]   ;;  %v1060_v21 = vld [vmem:[%s1405_s1 + $0xe8] sm:$0xff]  }
   0x7   :  { %v1053_v14 = vld [vmem:[%s1405_s1 + $0x18] sm:$0xff]   ;;  %v1057_v18 = vld [vmem:[%s1405_s1 + $0x20] sm:$0xff]   ;;  %v1061_v22 = vld [vmem:[%s1405_s1 + $0x28] sm:$0xff]  }
   0x8   :  { %933 = vmatpush3.bf16.msra.mxu0 %v1045_v6  ;;  %v1054_v15 = vld [vmem:[%s1405_s1 + $0x98] sm:$0xff]   ;;  %v1058_v19 = vld [vmem:[%s1405_s1 + $0xa0] sm:$0xff]   ;;  %v1062_v23 = vld [vmem:[%s1405_s1 + $0xa8] sm:$0xff]  }
   0x9   :  { %955 = vmatpush3.bf16.msra.mxu1 %v1046_v7  ;;  %934 = vmatprep.subr.bf16.mxu0 %v1047_v8  ;;  %v1063_v24 = vld [vmem:[%s1405_s1 + $0x70] sm:$0xff]   ;;  %v1067_v29 = vld [vmem:[%s1405_s1 + $0x78] sm:$0xff]   ;;  %v22_v34 = vld [vmem:[%s1404_s0] sm:$0xff] }
   0xa   :  { %956 = vmatprep.subr.bf16.mxu1 %v1048_v9  ;;  %v1064_v25 = vld [vmem:[%s1405_s1 + $0xf0] sm:$0xff]   ;;  %v1068_v30 = vld [vmem:[%s1405_s1 + $0xf8] sm:$0xff]   ;;  %v1072_v35 = vld [vmem:[%s1405_s1 + $0x140] sm:$0xff]   ;;  %v159_v39 = vcombine.high %v22_v34, %v22_v34  ;;  %v166_v42 = vrot.slane %v22_v34, %v1271_v41 }
   0xb   :  { %v1065_v26 = vld [vmem:[%s1405_s1 + $0x30] sm:$0xff]   ;;  %v1069_v31 = vld [vmem:[%s1405_s1 + $0x38] sm:$0xff]   ;;  %v1073_v38 = vld [vmem:[%s1405_s1 + $0x1c0] sm:$0xff]  }
   0xc   :  { %935 = vmatpush3.bf16.msra.mxu0 %v1049_v10  ;;  %v1066_v27 = vld [vmem:[%s1405_s1 + $0xb0] sm:$0xff]   ;;  %v1070_v32 = vld [vmem:[%s1405_s1 + $0xb8] sm:$0xff]   ;;  %v1275_v43 = vrot.slane %v159_v39, %v1271_v41  ;;  %v174_v44 = vcombine.high %v166_v42, %v166_v42  ;;  %v182_v45 = vrot.slane %v166_v42, %v1271_v41  ;;  %v1074_v47 = vld [vmem:[%s1405_s1 + $0x100] sm:$0xff]  }
   0xd   :  { %957 = vmatpush3.bf16.msra.mxu1 %v1050_v11  ;;  %936 = vmatprep.subr.bf16.mxu0 %v1051_v12  ;;  %v1075_v49 = vld [vmem:[%s1405_s1 + $0x180] sm:$0xff]   ;;  %v1076_v52 = vld [vmem:[%s1405_s1 + $0x148] sm:$0xff]   ;;  %v1080_v58 = vld [vmem:[%s1405_s1 + $0x150] sm:$0xff]  }
   0xe   :  { %958 = vmatprep.subr.bf16.mxu1 %v1052_v13  ;;  %v175_v46 = vcombine.high %v1275_v43, %v1275_v43  ;;  %v196_v48 = vrot.slane %v174_v44, %v1271_v41  ;;  %v204_v51 = vcombine.high %v182_v45, %v182_v45  ;;  %v1077_v54 = vld [vmem:[%s1405_s1 + $0x1c8] sm:$0xff]   ;;  %v1081_v59 = vld [vmem:[%s1405_s1 + $0x1d0] sm:$0xff]   ;;  %v1084_v62 = vld [vmem:[%s1405_s1 + $0x158] sm:$0xff]  }
   0xf   :  { %v1078_v55 = vld [vmem:[%s1405_s1 + $0x108] sm:$0xff]   ;;  %v1082_v60 = vld [vmem:[%s1405_s1 + $0x110] sm:$0xff]   ;;  %v1085_v63 = vld [vmem:[%s1405_s1 + $0x1d8] sm:$0xff]  }
  0x10   :  { %937 = vmatpush3.bf16.msra.mxu0 %v1053_v14  ;;  %v203_v50 = vrot.slane %v175_v46, %v1271_v41  ;;  %632 = vmatprep.mubr.bf16.mxu0 %v196_v48  ;;  %v206_v53 = vcombine.high %v196_v48, %v196_v48  ;;  %v1079_v57 = vld [vmem:[%s1405_s1 + $0x188] sm:$0xff]   ;;  %v1083_v61 = vld [vmem:[%s1405_s1 + $0x190] sm:$0xff]   ;;  %v1086_v0 = vld [vmem:[%s1405_s1 + $0x118] sm:$0xff]  }
  0x11   :  { %959 = vmatpush3.bf16.msra.mxu1 %v1054_v15  ;;  %938 = vmatprep.subr.bf16.mxu0 %v1055_v16  ;;  %v1087_v1 = vld [vmem:[%s1405_s1 + $0x198] sm:$0xff]   ;;  %v1088_v2 = vld [vmem:[%s1405_s1 + $0x160] sm:$0xff]   ;;  %v1092_v6 = vld [vmem:[%s1405_s1 + $0x168] sm:$0xff]  }
  0x12   :  { %960 = vmatprep.subr.bf16.mxu1 %v1056_v17  ;;  %v207_v56 = vcombine.high %v203_v50, %v203_v50  ;;  %672 = vmatprep.mubr.bf16.mxu1 %v206_v53  ;;  %v1089_v3 = vld [vmem:[%s1405_s1 + $0x1e0] sm:$0xff]   ;;  %v1093_v7 = vld [vmem:[%s1405_s1 + $0x1e8] sm:$0xff]   ;;  %v1096_v10 = vld [vmem:[%s1405_s1 + $0x170] sm:$0xff]  }
  0x13   :  { %v1090_v4 = vld [vmem:[%s1405_s1 + $0x120] sm:$0xff]   ;;  %v1094_v8 = vld [vmem:[%s1405_s1 + $0x128] sm:$0xff]   ;;  %v1097_v11 = vld [vmem:[%s1405_s1 + $0x1f0] sm:$0xff]  }
  0x14   :  { %939 = vmatpush3.bf16.msra.mxu0 %v1057_v18  ;;  %v1091_v5 = vld [vmem:[%s1405_s1 + $0x1a0] sm:$0xff]   ;;  %v1095_v9 = vld [vmem:[%s1405_s1 + $0x1a8] sm:$0xff]   ;;  %v1098_v12 = vld [vmem:[%s1405_s1 + $0x130] sm:$0xff]  }
  0x15   :  { %961 = vmatpush3.bf16.msra.mxu1 %v1058_v19  ;;  %940 = vmatprep.subr.bf16.mxu0 %v1059_v20 }
  0x16   :  { %962 = vmatprep.subr.bf16.mxu1 %v1060_v21 }
  0x18   :  { %941 = vmatpush3.bf16.msra.mxu0 %v1061_v22 }
  0x19   :  { %963 = vmatpush3.bf16.msra.mxu1 %v1062_v23  ;;  %942 = vmatprep.subr.bf16.mxu0 %v1063_v24 }
  0x1a   :  { %964 = vmatprep.subr.bf16.mxu1 %v1064_v25 }
  0x1c   :  { %943 = vmatpush3.bf16.msra.mxu0 %v1065_v26 }
  0x1d   :  { %965 = vmatpush3.bf16.msra.mxu1 %v1066_v27  ;;  %944 = vmatprep.subr.bf16.mxu0 %v1067_v29 }
  0x1e   :  { %966 = vmatprep.subr.bf16.mxu1 %v1068_v30 }
  0x20   :  { %945 = vmatpush3.bf16.msra.mxu0 %v1069_v31 }
  0x21   :  { %967 = vmatpush3.bf16.msra.mxu1 %v1070_v32  ;;  %974 = vmatprep.subr.bf16.mxu0 %v1072_v35 }
  0x22   :  { %996 = vmatprep.subr.bf16.mxu1 %v1073_v38 }
  0x23   :  { %633 = vmatmul.mubr.bf16.vlgmr.msra.gmra.mrb[0].mxu0 %v182_v45 }
  0x24   :  { %975 = vmatpush3.bf16.msra.mxu0 %v1074_v47  ;;  %673 = vmatmul.mubr.bf16.vlgmr.msra.gmra.mrb[0].mxu1 %v204_v51 }
  0x25   :  { %976 = vmatprep.subr.bf16.mxu0 %v1076_v52  ;;  %997 = vmatpush3.bf16.msra.mxu1 %v1075_v49 }
  0x26   :  { %712 = vmatprep.mubr.bf16.mxu0 %v203_v50  ;;  %998 = vmatprep.subr.bf16.mxu1 %v1077_v54 }
  0x27   :  { %752 = vmatprep.mubr.bf16.mxu1 %v207_v56 }
  0x28   :  { %977 = vmatpush3.bf16.msra.mxu0 %v1078_v55 }
  0x29   :  { %978 = vmatprep.subr.bf16.mxu0 %v1080_v58  ;;  %999 = vmatpush3.bf16.msra.mxu1 %v1079_v57 }
  0x2a   :  { %1000 = vmatprep.subr.bf16.mxu1 %v1081_v59 }
  0x2c   :  { %979 = vmatpush3.bf16.msra.mxu0 %v1082_v60 }
  0x2d   :  { %980 = vmatprep.subr.bf16.mxu0 %v1084_v62  ;;  %1001 = vmatpush3.bf16.msra.mxu1 %v1083_v61 }
  0x2e   :  { %1002 = vmatprep.subr.bf16.mxu1 %v1085_v63 }
  0x30   :  { %981 = vmatpush3.bf16.msra.mxu0 %v1086_v0 }
  0x31   :  { %982 = vmatprep.subr.bf16.mxu0 %v1088_v2  ;;  %1003 = vmatpush3.bf16.msra.mxu1 %v1087_v1 }
  0x32   :  { %1004 = vmatprep.subr.bf16.mxu1 %v1089_v3 }
  0x34   :  { %983 = vmatpush3.bf16.msra.mxu0 %v1090_v4 }
  0x35   :  { %984 = vmatprep.subr.bf16.mxu0 %v1092_v6  ;;  %1005 = vmatpush3.bf16.msra.mxu1 %v1091_v5 }
  0x36   :  { %1006 = vmatprep.subr.bf16.mxu1 %v1093_v7 }
  0x38   :  { %985 = vmatpush3.bf16.msra.mxu0 %v1094_v8 }
  0x39   :  { %10 = vsyncpa [#allocation3], 0  ;;  %986 = vmatprep.subr.bf16.mxu0 %v1096_v10  ;;  %v1100_v13 = vld [vmem:[%s1405_s1 + $0x178] sm:$0xff]   ;;  %1007 = vmatpush3.bf16.msra.mxu1 %v1095_v9  ;;  %v1099_v14 = vld [vmem:[%s1405_s1 + $0x1b0] sm:$0xff]   ;;  %v189_v17 = vrot.slane %v1275_v43, %v1271_v41  ;;  %v1133_v21 = vmov 0.0   ;;  %vm1134_vm0 = vmmov 0  }
  0x3a   :  { %1008 = vmatprep.subr.bf16.mxu1 %v1097_v11  ;;  %v1101_v15 = vld [vmem:[%s1405_s1 + $0x1f8] sm:$0xff]   ;;  %v1104_v20 = vld [vmem:[%s1407_s3] sm:$0xff]   ;;  %v1105_v22 = vld [vmem:[%s1407_s3 + $0x8] sm:$0xff]   ;;  %vm800_vm1 = vcmask 523264   ;;  %s1135_s29 = smov [#allocation2]  }
  0x3b   :  { %v1102_v16 = vld [vmem:[%s1405_s1 + $0x138] sm:$0xff]   ;;  %v205_v19 = vcombine.high %v189_v17, %v189_v17  ;;  %v1106_v23 = vld [vmem:[%s1407_s3 + $0x10] sm:$0xff]   ;;  %v859_v26 = vld [vmem:[%s1406_s2] ss:$0 sm:$0xff]  ;;  %s851_s30 = sshll.u32 %s1135_s29, 4  ;;  %s852_s30 = int_to_ptr.vmem [resolvable:$true] %s851_s30 }
  0x3c   :  { %987 = vmatpush3.bf16.msra.mxu0 %v1098_v12  ;;  %v1103_v18 = vld [vmem:[%s1405_s1 + $0x1b8] sm:$0xff]   ;;  %v924_v51 = vld [vmem:[%s1408_s4] ss:$0 sm:$0xff]  ;;  %s1108_s6 = scalar_lea.vmem %s852_s30, 32  ;;  %p1113_p1 = scmp.lt.s32.totalorder %s852_s30, %s852_s30 }
  0x3d   :  { %988 = vmatprep.subr.bf16.mxu0 %v1100_v13  ;;  %1009 = vmatpush3.bf16.msra.mxu1 %v1099_v14  ;;  %v1107_v24 = vld [vmem:[%s1407_s3 + $0x18] sm:$0xff]   ;;  %p1109_p0 = scmp.ne.s32.totalorder %s852_s30, %s1108_s6  ;;  %p1114_p2 = scmp.lt.s32.totalorder %s1108_s6, %s1108_s6 }
  0x3e   :  { %1010 = vmatprep.subr.bf16.mxu1 %v1101_v15 }
  0x3f   :  { %p1115_p3 = por %p1114_p2, %p1113_p1 }
  0x40   :  { %989 = vmatpush3.bf16.msra.mxu0 %v1102_v16 }
  0x41   :  { %1011 = vmatpush3.bf16.msra.mxu1 %v1103_v18  ;;  %1023 = vmatprep.subr.bf16.mxu0 %v1133_v21  ;;  %p1116_p4 = pnand %p1115_p3, %p1109_p0 }
  0x43   :  { %713 = vmatmul.mubr.bf16.vlgmr.msra.gmra.mrb[4].mxu0 %v189_v17 }
  0x44   :  { %753 = vmatmul.mubr.bf16.vlgmr.msra.gmra.mrb[4].mxu1 %v205_v19  ;;  %1024 = vmatpush3.bf16.msra.mxu0 %v1104_v20 }
  0x45   :  { %1025 = vmatprep.subr.bf16.mxu0 %v1133_v21  ;;  %1031 = vmatprep.mubr.msk.bf16.mxu0 %vm1134_vm0, %v1133_v21 }
  0x48   :  { %1026 = vmatpush3.bf16.msra.mxu0 %v1105_v22 }
  0x49   :  { %1027 = vmatprep.subr.bf16.mxu0 %v1133_v21 }
  0x4c   :  { %1028 = vmatpush3.bf16.msra.mxu0 %v1106_v23 }
  0x4d   :  { %1029 = vmatprep.subr.bf16.mxu0 %v1133_v21 }
  0x50   :  { %1030 = vmatpush3.bf16.msra.mxu0 %v1107_v24 }
  0xf6   :  { %v946_v25 = vpop.f32.mrb[0].mxu0 }
  0xf7   :  { %v947_v27 = vpop.f32.mrb[1].mxu0  ;;  %v968_v28 = vpop.f32.mrb[0].mxu1 }
  0xf8   :  { %v948_v29 = vadd.f32 %v947_v27, %v946_v25  ;;  %v949_v30 = vpop.f32.mrb[2].mxu0  ;;  %v969_v31 = vpop.f32.mrb[1].mxu1 }
  0xf9   :  { %v950_v32 = vpop.f32.mrb[3].mxu0  ;;  %v970_v34 = vadd.f32 %v969_v31, %v968_v28  ;;  %v971_v35 = vpop.f32.mrb[2].mxu1 }
  0xfa   :  { %v635_v33 = vadd.f32 %v948_v29, %v859_v26  ;;  %v972_v36 = vpop.f32.mrb[3].mxu1 }
  0xfc   :  { %v675_v37 = vadd.f32 %v970_v34, %v635_v33 }
 0x116   :  { %v990_v38 = vpop.f32.mrb[4].mxu0 }
 0x117   :  { %v991_v39 = vpop.f32.mrb[5].mxu0  ;;  %v1012_v40 = vpop.f32.mrb[4].mxu1 }
 0x118   :  { %v992_v41 = vadd.f32 %v991_v39, %v990_v38  ;;  %v993_v42 = vpop.f32.mrb[6].mxu0  ;;  %v1013_v43 = vpop.f32.mrb[5].mxu1 }
 0x119   :  { %v994_v44 = vpop.f32.mrb[7].mxu0  ;;  %v1014_v46 = vadd.f32 %v1013_v43, %v1012_v40  ;;  %v1015_v47 = vpop.f32.mrb[6].mxu1 }
 0x11a   :  { %v715_v45 = vadd.f32 %v992_v41, %v675_v37  ;;  %v1016_v48 = vpop.f32.mrb[7].mxu1 }
 0x11c   :  { %v755_v49 = vadd.f32 %v1014_v46, %v715_v45 }
 0x11e   :  { %v760_v50 = vpack.c.bf16 %v755_v49, %v755_v49 }
 0x120   :  { %1032 = vmatmul.mubr.msk.bf16.vlgmr.msra.gmra.mrb[8].mxu0 %vm800_vm1, %v760_v50 }
 0x1f3   :  { %v838_v52 = vpop.f32.mrb[8].mxu0 }
 0x1f4   :  { %v839_v53 = vadd.f32 %v924_v51, %v838_v52  ;;  %v1033_v54 = vpop.f32.mrb[9].mxu0 }
 0x1f5   :  { %v841_v55 = vpop.f32.mrb[10].mxu0 }
 0x1f6   :  { %844 = vst [vmem:[#allocation2] sm:$0x3] %v839_v53  ;;  %v1034_v56 = vpop.f32.mrb[11].mxu0 }
 0x1f7   :  { %1119 = shalt.err (!%p1116_p4)
}
 0x1f8   :  { %s1120_s4 = scalar_lea.hbm %s1409_s5, 32 }
 0x1f9   :  { %p1121_p5 = scmp.ne.s32.totalorder %s1409_s5, %s1120_s4  ;;  %p1124_p6 = scmp.lt.u32.totalorder %s1120_s4, %s1409_s5 }
 0x1fb   :  { %p1126_p7 = pnand %p1124_p6, %p1121_p5 }
 0x1fd   :  { %1129 = shalt.err (!%p1126_p7)
}
 0x1fe   :  { %854 = dma.vmem_to_hbm [thread:$0]  %s852_s30, 32, %s1409_s5, [#allocation3]  }
 0x1ff   :  { %1130 = dma.done.wait [#allocation3], 32  }
 0x200   :  { %1131 = vsyncadd [#allocation3], 4294967264 }
 0x201   :  { %858 = vsyncpa [#allocation3], 1 }

// kernel: forward.4
= control target key start
LH: loop header
LB: loop body
LE: loop exit
PB: predicated region body
PF: predicated region fallthrough
CT: control target
= control target key end

     0   :  { %8 = vsyncpa [#allocation3], 0  ;;  %s4911_s0 = inlined_call_operand.vmem [shape: bf16[2,36,128], index: 0, kind: input, shape index: {}]   ;;  %s4912_s1 = inlined_call_operand.hbm [shape: bf16[5,128,1024], index: 1, kind: input, shape index: {}]   ;;  %s4913_s2 = inlined_call_operand.hbm [shape: f32[1,1024], index: 2, kind: input, shape index: {}]   ;;  %s4914_s3 = inlined_call_operand.vmem [shape: bf16[2,16,512], index: 3, kind: output, shape index: {}]  }
   0x1   :  { %9 = vsyncpa [#allocation5], 0  ;;  %s4581_s12 = smov 0  }
   0x2 LB: > { %s4587_s13 = sadd.s32 4294967295, %s4553_s12   ;;  %p3922_p0 = scmp.ge.s32.totalorder %s4553_s12, 1  ;;  %s4553_s12 = sphi %s4581_s12, %s15_s12  }
   0x3   : > { %p114_p1 = scmp.lt.s32.totalorder %s4553_s12, 3  ;;  %s4555_s14 = smov [#allocation2]  }
   0x4   : > { %s126_s15 = sshll.u32 %s4555_s14, 4  ;;  %p4915_p3 = scmp.eq.s32.totalorder %s4587_s13, 0  ;;  %s127_s15 = int_to_ptr.vmem [resolvable:$true] %s126_s15 }
   0x5   : > { %p4591_p2 = pnand %p3922_p0, %p114_p1  ;;  %s4556_s17 = smov [#allocation4]  }
   0x6   : > { %s140_s18 = sshll.u32 %s4556_s17, 4  ;;  %s4483_s22 = scalar_lea.hbm %s4912_s1, 40960  ;;  %s4604_s18 = int_to_ptr.vmem [resolvable:$true] %s140_s18 }
   0x7   : > { %s4917_s16 = scalar_select %p4591_p2, 1, 0 }
   0x8   : > { %p4450_p4 = pneg %p4591_p2  ;;  %p4484_p6 = scmp.ne.s32.totalorder %s4912_s1, %s4483_s22 }
   0x9   : > { %p4490_p10 = scmp.lt.u32.totalorder %s4483_s22, %s4912_s1 }
   0xa   : > { %p4600_p5 = pnand %p4915_p3, %p4450_p4 }
   0xc   : > { %p4485_p7 = pneg %p4600_p5 }
   0xe   : > { %p4486_p8 = pnand %p4485_p7, %p4484_p6 }
  0x10   : > { %p4487_p9 = pneg %p4486_p8 }
  0x12   : > { %p4492_p11 = pnand %p4490_p10, %p4487_p9 }
  0x14   : > { %4495 = shalt.err (!%p4492_p11)
}
  0x15   : > { %s4496_s27 = scalar_lea.vmem %s127_s15, 40960  ;;  %p4504_p1 = scmp.lt.s32.totalorder %s127_s15, %s127_s15 }
  0x16   : > { %p4497_p12 = scmp.ne.s32.totalorder %s127_s15, %s4496_s27  ;;  %p4505_p4 = scmp.lt.s32.totalorder %s4496_s27, %s4496_s27 }
  0x18   : > { %p4499_p13 = pnand %p4497_p12, %p4485_p7  ;;  %p4506_p3 = por %p4505_p4, %p4504_p1 }
  0x1a   : > { %p4500_p0 = pneg %p4499_p13 }
  0x1c   : > { %p4507_p2 = pnand %p4506_p3, %p4500_p0 }
  0x1e   : > { %4510 = shalt.err (!%p4507_p2)
}
  0x1f   : > { %s4557_s28 = smov 512   ;;  %s4558_s29 = smov 32  }
  0x20   : > { %4453 = dma.hbm_to_vmem [thread:$0]  (!%p4600_p5), %s4912_s1, 40960, %s127_s15, [#allocation3], %s4557_s28, %s4557_s28, %s4558_s29  }
  0x21   : > { %s4511_s7 = scalar_lea.hbm %s4913_s2, 128 }
  0x22   : > { %p4512_p6 = scmp.ne.s32.totalorder %s4913_s2, %s4511_s7  ;;  %p4518_p8 = scmp.lt.u32.totalorder %s4511_s7, %s4913_s2 }
  0x24   : > { %p4514_p2 = pnand %p4512_p6, %p4485_p7 }
  0x26   : > { %p4515_p3 = pneg %p4514_p2 }
  0x28   : > { %p4520_p9 = pnand %p4518_p8, %p4515_p3 }
  0x2a   : > { %4523 = shalt.err (!%p4520_p9)
}
  0x2b   : > { %s4524_s14 = scalar_lea.vmem %s4604_s18, 128  ;;  %p4532_p13 = scmp.lt.s32.totalorder %s4604_s18, %s4604_s18 }
  0x2c   : > { %p4525_p10 = scmp.ne.s32.totalorder %s4604_s18, %s4524_s14  ;;  %p4533_p0 = scmp.lt.s32.totalorder %s4524_s14, %s4524_s14 }
  0x2e   : > { %p4527_p11 = pnand %p4525_p10, %p4485_p7  ;;  %p4534_p1 = por %p4533_p0, %p4532_p13 }
  0x30   : > { %p4528_p12 = pneg %p4527_p11 }
  0x32   : > { %p4535_p4 = pnand %p4534_p1, %p4528_p12 }
  0x34   : > { %4538 = shalt.err (!%p4535_p4)
}
  0x35   : > { %4456 = dma.hbm_to_vmem [thread:$0]  (!%p4600_p5), %s4913_s2, 128, %s4604_s18, [#allocation5]  }
  0x36   : > { %p4919_p6 = scmp.ne.s32.totalorder %s4917_s16, 0 }
  0x37   : > { %p4920_p2 = scmp.eq.s32.totalorder (!%p4919_p6), %s4587_s13, 0 }
  0x38   : > { %161 = sbr.rel (%p4919_p6) target bundleno = 854 (0x356), region = 32 }
  0x3f   : > { %4544 = dma.done.wait (%p4920_p2), [#allocation3], 40960   ;;  %p4921_p7 = pmov %p4920_p2 }
  0x40   : > { %p4922_p3 = pmov %p4920_p2 }
  0x41   : > { %4546 = vsyncadd (%p4921_p7), [#allocation3], 4294926336 }
  0x42   : > { %4548 = dma.done.wait (%p4922_p3), [#allocation5], 128   ;;  %p4923_p8 = pmov %p4920_p2 }
  0x43   : > { %v4559_v0 = vmov 0   ;;  %p189_p5 = scmp.lt.s32.totalorder %s4587_s13, 1  ;;  %v270_v1 = vld [vmem:[#allocation2 + $0x200] sm:$0xff]  ;;  %v271_v3 = vld [vmem:[#allocation2 + $0x208] sm:$0xff]  ;;  %vm347_vm0 = vsmask.f32 7424 }
  0x44   : > { %4550 = vsyncadd (%p4923_p8), [#allocation5], 4294967168  ;;  %722 = vmatprep.mubr.bf16.mxu0 %v4559_v0  ;;  %775 = vmatprep.mubr.bf16.mxu1 %v4559_v0  ;;  %v274_v2 = vld [vmem:[#allocation2 + $0x220] sm:$0xff]  ;;  %v275_v5 = vld [vmem:[#allocation2 + $0x228] sm:$0xff]  ;;  %vm1505_vm1 = vcmask 1046528   ;;  %vm2803_vm3 = vcmask 1045504  }
  0x45   : > { %v3936_v4 = vcombine.high %v270_v1, %v274_v2  ;;  %v3935_v6 = vcombine.low %v270_v1, %v274_v2  ;;  %v278_v7 = vld [vmem:[#allocation2 + $0x240] sm:$0xff]  ;;  %v3938_v9 = vcombine.high %v271_v3, %v275_v5  ;;  %v3937_v10 = vcombine.low %v271_v3, %v275_v5  ;;  %v279_v12 = vld [vmem:[#allocation2 + $0x248] sm:$0xff]  ;;  %s4925_s13 = smov (!%p189_p5, %s4587_s13), 1 }
  0x46   : > { %v282_v8 = vld [vmem:[#allocation2 + $0x260] sm:$0xff]  ;;  %v283_v13 = vld [vmem:[#allocation2 + $0x268] sm:$0xff]  ;;  %s4441_s16 = smul.u32 20, %s4925_s13  ;;  %vm2146_vm2 = vsmask.f32 6400  ;;  %vm3486_vm5 = vcmask 261120  }
  0x47   : > { %v3944_v11 = vcombine.high %v278_v7, %v282_v8  ;;  %v286_v14 = vld [vmem:[#allocation2 + $0x280] sm:$0xff]  ;;  %690 = vmatprep.subr.bf16.mxu0 %v3936_v4  ;;  %v3946_v15 = vcombine.high %v279_v12, %v283_v13  ;;  %v287_v17 = vld [vmem:[#allocation2 + $0x288] sm:$0xff]  ;;  %743 = vmatprep.subr.bf16.mxu1 %v3938_v9  ;;  %v3943_v19 = vcombine.low %v278_v7, %v282_v8  ;;  %v272_v8 = vld [vmem:[#allocation2 + $0x210] sm:$0xff]  ;;  %s4276_s21 = sshll.u32 %s4925_s13, 5 }
  0x48   : > { %v290_v16 = vld [vmem:[#allocation2 + $0x2a0] sm:$0xff]  ;;  %v291_v18 = vld [vmem:[#allocation2 + $0x2a8] sm:$0xff]  ;;  %691 = vmatpush1.bf16.msra.mxu0 %v3935_v6  ;;  %744 = vmatpush1.bf16.msra.mxu1 %v3937_v10  ;;  %v3945_v20 = vcombine.low %v279_v12, %v283_v13  ;;  %s4675_s20 = scalar_lea.vmem %s4911_s0, %s4441_s16  ;;  %v276_v9 = vld [vmem:[#allocation2 + $0x230] sm:$0xff]  ;;  %s198_s24 = scalar_lea.vmem %s4914_s3, %s4276_s21 }
  0x49   : > { %692 = vmatprep.subr.bf16.mxu0 %v3944_v11  ;;  %v3952_v21 = vcombine.high %v286_v14, %v290_v16  ;;  %745 = vmatprep.subr.bf16.mxu1 %v3946_v15  ;;  %v3954_v22 = vcombine.high %v287_v17, %v291_v18  ;;  %v294_v23 = vld [vmem:[#allocation2 + $0x2c0] sm:$0xff]  ;;  %v295_v25 = vld [vmem:[#allocation2 + $0x2c8] sm:$0xff]  ;;  %v3951_v27 = vcombine.low %v286_v14, %v290_v16  ;;  %v273_v10 = vld [vmem:[#allocation2 + $0x218] sm:$0xff] }
  0x4a   : > { %v298_v24 = vld [vmem:[#allocation2 + $0x2e0] sm:$0xff]  ;;  %v299_v26 = vld [vmem:[#allocation2 + $0x2e8] sm:$0xff]  ;;  %v3953_v28 = vcombine.low %v287_v17, %v291_v18  ;;  %v277_v11 = vld [vmem:[#allocation2 + $0x238] sm:$0xff]  ;;  %v3940_v17 = vcombine.high %v272_v8, %v276_v9 }
  0x4b   : > { %v3960_v29 = vcombine.high %v294_v23, %v298_v24  ;;  %v3962_v30 = vcombine.high %v295_v25, %v299_v26  ;;  %v302_v31 = vld [vmem:[#allocation2 + $0x300] sm:$0xff]  ;;  %v303_v33 = vld [vmem:[#allocation2 + $0x308] sm:$0xff]  ;;  %v3959_v35 = vcombine.low %v294_v23, %v298_v24  ;;  %v3961_v36 = vcombine.low %v295_v25, %v299_v26  ;;  %v4693_v15 = vld [vmem:[%s4675_s20 + $0x10] ss:$0 sps:$4 sm:$0x11]  }
  0x4c   : > { %693 = vmatpush1.bf16.msra.mxu0 %v3943_v19  ;;  %746 = vmatpush1.bf16.msra.mxu1 %v3945_v20  ;;  %v306_v32 = vld [vmem:[#allocation2 + $0x320] sm:$0xff]  ;;  %v307_v34 = vld [vmem:[#allocation2 + $0x328] sm:$0xff]  ;;  %v3942_v18 = vcombine.high %v273_v10, %v277_v11  ;;  %v280_v19 = vld [vmem:[#allocation2 + $0x250] sm:$0xff]  ;;  %v3939_v23 = vcombine.low %v272_v8, %v276_v9  ;;  %v364_v26 = vshll.u32 %v4693_v15, 16 }
  0x4d   : > { %694 = vmatprep.subr.bf16.mxu0 %v3952_v21  ;;  %747 = vmatprep.subr.bf16.mxu1 %v3954_v22  ;;  %v3968_v37 = vcombine.high %v302_v31, %v306_v32  ;;  %v200_v38 = vld [vmem:[%s4675_s20] sm:$0xf]  ;;  %v4679_v39 = vld [vmem:[%s4675_s20 + $0x4] sm:$0xf]  ;;  %v3970_v40 = vcombine.high %v303_v33, %v307_v34  ;;  %v311_v43 = vld [vmem:[#allocation2 + $0x348] sm:$0xff]  ;;  %v3967_v45 = vcombine.low %v302_v31, %v306_v32 }
  0x4e   : > { %v310_v41 = vld [vmem:[#allocation2 + $0x340] sm:$0xff]  ;;  %v315_v44 = vld [vmem:[#allocation2 + $0x368] sm:$0xff]  ;;  %v4682_v46 = vcombine.low %v200_v38, %v4679_v39  ;;  %v3969_v47 = vcombine.low %v303_v33, %v307_v34  ;;  %v284_v20 = vld [vmem:[#allocation2 + $0x270] sm:$0xff] }
  0x4f   : > { %v314_v42 = vld [vmem:[#allocation2 + $0x360] sm:$0xff]  ;;  %v3978_v49 = vcombine.high %v311_v43, %v315_v44  ;;  %v319_v52 = vld [vmem:[#allocation2 + $0x388] sm:$0xff]  ;;  %v3977_v57 = vcombine.low %v311_v43, %v315_v44  ;;  %v281_v21 = vld [vmem:[#allocation2 + $0x258] sm:$0xff]  ;;  %v3947_v34 = vcombine.low %v280_v19, %v284_v20 }
  0x50   : > { %695 = vmatpush1.bf16.msra.mxu0 %v3951_v27  ;;  %748 = vmatpush1.bf16.msra.mxu1 %v3953_v28  ;;  %v3976_v48 = vcombine.high %v310_v41, %v314_v42  ;;  %v318_v50 = vld [vmem:[#allocation2 + $0x380] sm:$0xff]  ;;  %v323_v53 = vld [vmem:[#allocation2 + $0x3a8] sm:$0xff]  ;;  %v3975_v54 = vcombine.low %v310_v41, %v314_v42  ;;  %v351_v56 = vshll.u32 %v4682_v46, 16  ;;  %v349_v2 = vshrl.u32 %v4682_v46, 16  ;;  %v285_v22 = vld [vmem:[#allocation2 + $0x278] sm:$0xff] }
  0x51   : > { %696 = vmatprep.subr.bf16.mxu0 %v3960_v29  ;;  %749 = vmatprep.subr.bf16.mxu1 %v3962_v30  ;;  %v322_v51 = vld [vmem:[#allocation2 + $0x3a0] sm:$0xff]  ;;  %v4685_v55 = vld [vmem:[%s4675_s20 + $0x8] sm:$0xff]   ;;  %v3986_v59 = vcombine.high %v319_v52, %v323_v53  ;;  %v3985_v5 = vcombine.low %v319_v52, %v323_v53  ;;  %v3941_v27 = vcombine.low %v273_v10, %v277_v11  ;;  %v288_v30 = vld [vmem:[#allocation2 + $0x290] sm:$0xff] }
  0x52   : > { %v3984_v58 = vcombine.high %v318_v50, %v322_v51  ;;  %v326_v60 = vld [vmem:[#allocation2 + $0x3c0] sm:$0xff]  ;;  %v327_v62 = vld [vmem:[#allocation2 + $0x3c8] sm:$0xff]  ;;  %v3983_v1 = vcombine.low %v318_v50, %v322_v51  ;;  %v353_v3 = vrot.slane %v351_v56, 1  ;;  %v356_v4 = vshll.u32 %v4685_v55, 16  ;;  %v292_v31 = vld [vmem:[#allocation2 + $0x2b0] sm:$0xff] }
  0x53   : > { %v330_v61 = vld [vmem:[#allocation2 + $0x3e0] sm:$0xff]  ;;  %v331_v63 = vld [vmem:[#allocation2 + $0x3e8] sm:$0xff]  ;;  %v360_v25 = vshrl.u32 %v4685_v55, 16  ;;  %v3948_v28 = vcombine.high %v280_v19, %v284_v20  ;;  %v3950_v29 = vcombine.high %v281_v21, %v285_v22  ;;  %v289_v32 = vld [vmem:[#allocation2 + $0x298] sm:$0xff]  ;;  %v3956_v38 = vcombine.high %v288_v30, %v292_v31 }
  0x54   : > { %697 = vmatpush1.bf16.msra.mxu0 %v3959_v35  ;;  %750 = vmatpush1.bf16.msra.mxu1 %v3961_v36  ;;  %v3992_v6 = vcombine.high %v326_v60, %v330_v61  ;;  %v3994_v7 = vcombine.high %v327_v62, %v331_v63  ;;  %v3991_v12 = vcombine.low %v326_v60, %v330_v61  ;;  %v358_v14 = vrot.slane %v356_v4, 1  ;;  %v293_v33 = vld [vmem:[#allocation2 + $0x2b8] sm:$0xff]  ;;  %v296_v41 = vld [vmem:[#allocation2 + $0x2d0] sm:$0xff] }
  0x55   : > { %698 = vmatprep.subr.bf16.mxu0 %v3968_v37  ;;  %751 = vmatprep.subr.bf16.mxu1 %v3970_v40  ;;  %v354_v13 = vor.u32 %v353_v3, %v349_v2  ;;  %v3993_v16 = vcombine.low %v327_v62, %v331_v63  ;;  %v366_v36 = vrot.slane %v364_v26, 1  ;;  %v3949_v37 = vcombine.low %v281_v21, %v285_v22  ;;  %v300_v42 = vld [vmem:[#allocation2 + $0x2f0] sm:$0xff]  ;;  %v297_v43 = vld [vmem:[#allocation2 + $0x2d8] sm:$0xff]  ;;  %v208_v26 = vld [vmem:[#allocation2 + $0x20] sm:$0xff] }
  0x56   : > { %v362_v35 = vor.u32 %v360_v25, %v358_v14  ;;  %v3958_v40 = vcombine.high %v289_v32, %v293_v33  ;;  %v301_v44 = vld [vmem:[#allocation2 + $0x2f8] sm:$0xff]  ;;  %v304_v51 = vld [vmem:[#allocation2 + $0x310] sm:$0xff]  ;;  %v3963_v56 = vcombine.low %v296_v41, %v300_v42 }
  0x57   : > { %v4696_v24 = vsel %vm347_vm0, %v354_v13, %v358_v14  ;;  %v3966_v50 = vcombine.high %v297_v43, %v301_v44  ;;  %v308_v52 = vld [vmem:[#allocation2 + $0x330] sm:$0xff]  ;;  %v305_v53 = vld [vmem:[#allocation2 + $0x318] sm:$0xff] }
  0x58   : > { %699 = vmatpush1.bf16.msra.mxu0 %v3967_v45  ;;  %752 = vmatpush1.bf16.msra.mxu1 %v3969_v47  ;;  %v3955_v45 = vcombine.low %v288_v30, %v292_v31  ;;  %v4707_v47 = vsel %vm347_vm0, %v362_v35, %v366_v36  ;;  %v312_v60 = vld [vmem:[#allocation2 + $0x350] sm:$0xff]  ;;  %v313_v62 = vld [vmem:[#allocation2 + $0x358] sm:$0xff]  ;;  %v213_v35 = vld [vmem:[#allocation2 + $0x48] sm:$0xff] }
  0x59   : > { %700 = vmatprep.subr.bf16.mxu0 %v3976_v48  ;;  %753 = vmatprep.subr.bf16.mxu1 %v3978_v49  ;;  %v3957_v48 = vcombine.low %v289_v32, %v293_v33  ;;  %v3964_v49 = vcombine.high %v296_v41, %v300_v42  ;;  %v316_v61 = vld [vmem:[#allocation2 + $0x370] sm:$0xff]  ;;  %v317_v63 = vld [vmem:[#allocation2 + $0x378] sm:$0xff]  ;;  %v212_v33 = vld [vmem:[#allocation2 + $0x40] sm:$0xff] }
  0x5a   : > { %v3980_v3 = vcombine.high %v312_v60, %v316_v61  ;;  %v321_v8 = vld [vmem:[#allocation2 + $0x398] sm:$0xff]  ;;  %v3979_v10 = vcombine.low %v312_v60, %v316_v61  ;;  %v3981_v11 = vcombine.low %v313_v62, %v317_v63  ;;  %v328_v14 = vld [vmem:[#allocation2 + $0x3d0] sm:$0xff]  ;;  %v217_v36 = vld [vmem:[#allocation2 + $0x68] sm:$0xff] }
  0x5b   : > { %v325_v9 = vld [vmem:[#allocation2 + $0x3b8] sm:$0xff]  ;;  %v4010_v41 = vcombine.high %v213_v35, %v217_v36  ;;  %v220_v42 = vld [vmem:[#allocation2 + $0x80] sm:$0xff] }
  0x5c   : > { %701 = vmatpush1.bf16.msra.mxu0 %v3975_v54  ;;  %754 = vmatpush1.bf16.msra.mxu1 %v3977_v57  ;;  %v309_v54 = vld [vmem:[#allocation2 + $0x338] sm:$0xff]  ;;  %v3965_v57 = vcombine.low %v297_v43, %v301_v44  ;;  %v3990_v13 = vcombine.high %v321_v8, %v325_v9  ;;  %v3989_v20 = vcombine.low %v321_v8, %v325_v9  ;;  %v224_v43 = vld [vmem:[#allocation2 + $0xa0] sm:$0xff]  ;;  %v221_v44 = vld [vmem:[#allocation2 + $0x88] sm:$0xff] }
  0x5d   : > { %702 = vmatprep.subr.bf16.mxu0 %v3984_v58  ;;  %755 = vmatprep.subr.bf16.mxu1 %v3986_v59  ;;  %v3972_v58 = vcombine.high %v304_v51, %v308_v52  ;;  %v3974_v59 = vcombine.high %v305_v53, %v309_v54  ;;  %v3973_v2 = vcombine.low %v305_v53, %v309_v54  ;;  %v232_v53 = vld [vmem:[#allocation2 + $0xe0] sm:$0xff]  ;;  %v229_v54 = vld [vmem:[#allocation2 + $0xc8] sm:$0xff] }
  0x5e   : > { %v236_v60 = vld [vmem:[#allocation2 + $0x100] sm:$0xff]  ;;  %v245_v8 = vld [vmem:[#allocation2 + $0x148] sm:$0xff] }
  0x5f   : > { %v240_v61 = vld [vmem:[#allocation2 + $0x120] sm:$0xff]  ;;  %v249_v9 = vld [vmem:[#allocation2 + $0x168] sm:$0xff] }
  0x60   : > { %703 = vmatpush1.bf16.msra.mxu0 %v3983_v1  ;;  %756 = vmatpush1.bf16.msra.mxu1 %v3985_v5  ;;  %v3971_v1 = vcombine.low %v304_v51, %v308_v52  ;;  %v3982_v5 = vcombine.high %v313_v62, %v317_v63  ;;  %v228_v52 = vld [vmem:[#allocation2 + $0xc0] sm:$0xff]  ;;  %v237_v62 = vld [vmem:[#allocation2 + $0x108] sm:$0xff] }
  0x61   : > { %704 = vmatprep.subr.bf16.mxu0 %v3992_v6  ;;  %757 = vmatprep.subr.bf16.mxu1 %v3994_v7  ;;  %v320_v6 = vld [vmem:[#allocation2 + $0x390] sm:$0xff]  ;;  %v241_v63 = vld [vmem:[#allocation2 + $0x128] sm:$0xff] }
  0x62   : > { %v324_v7 = vld [vmem:[#allocation2 + $0x3b0] sm:$0xff] }
  0x63   : > { %v3987_v19 = vcombine.low %v320_v6, %v324_v7 }
  0x64   : > { %705 = vmatpush1.bf16.msra.mxu0 %v3991_v12  ;;  %758 = vmatpush1.bf16.msra.mxu1 %v3993_v16  ;;  %v3988_v12 = vcombine.high %v320_v6, %v324_v7  ;;  %v332_v16 = vld [vmem:[#allocation2 + $0x3f0] sm:$0xff]  ;;  %v244_v6 = vld [vmem:[#allocation2 + $0x140] sm:$0xff] }
  0x65   : > { %796 = vmatprep.subr.bf16.mxu0 %v3940_v17  ;;  %849 = vmatprep.subr.bf16.mxu1 %v3942_v18  ;;  %v329_v17 = vld [vmem:[#allocation2 + $0x3d8] sm:$0xff]  ;;  %v3996_v21 = vcombine.high %v328_v14, %v332_v16  ;;  %v248_v7 = vld [vmem:[#allocation2 + $0x160] sm:$0xff] }
  0x66   : > { %v333_v18 = vld [vmem:[#allocation2 + $0x3f8] sm:$0xff] }
  0x67   : > { %723 = vmatmul.mubr.bf16.vlgmr.msra.gmra.mrb[0].mxu0 %v4696_v24  ;;  %776 = vmatmul.mubr.bf16.vlgmr.msra.gmra.mrb[0].mxu1 %v4696_v24  ;;  %v3998_v22 = vcombine.high %v329_v17, %v333_v18  ;;  %v3997_v30 = vcombine.low %v329_v17, %v333_v18  ;;  %v257_v17 = vld [vmem:[#allocation2 + $0x1a8] sm:$0xff]  ;;  %v4039_v18 = vcombine.low %v244_v6, %v248_v7 }
  0x68   : > { %797 = vmatpush1.bf16.msra.mxu0 %v3939_v23  ;;  %850 = vmatpush1.bf16.msra.mxu1 %v3941_v27  ;;  %v204_v23 = vld [vmem:[#allocation2] sm:$0xff]  ;;  %v205_v27 = vld [vmem:[#allocation2 + $0x8] sm:$0xff] }
  0x69   : > { %798 = vmatprep.subr.bf16.mxu0 %v3948_v28  ;;  %851 = vmatprep.subr.bf16.mxu1 %v3950_v29  ;;  %v209_v28 = vld [vmem:[#allocation2 + $0x28] sm:$0xff]  ;;  %v3995_v29 = vcombine.low %v328_v14, %v332_v16  ;;  %v4000_v31 = vcombine.high %v204_v23, %v208_v26  ;;  %v256_v14 = vld [vmem:[#allocation2 + $0x1a0] sm:$0xff] }
  0x6a   : > { %732 = vmatprep.mubr.bf16.mxu0 %v4559_v0  ;;  %785 = vmatprep.mubr.bf16.mxu1 %v4559_v0  ;;  %v4002_v32 = vcombine.high %v205_v27, %v209_v28  ;;  %v253_v16 = vld [vmem:[#allocation2 + $0x188] sm:$0xff] }
  0x6c   : > { %799 = vmatpush1.bf16.msra.mxu0 %v3947_v34  ;;  %852 = vmatpush1.bf16.msra.mxu1 %v3949_v37  ;;  %v216_v34 = vld [vmem:[#allocation2 + $0x60] sm:$0xff]  ;;  %v3999_v37 = vcombine.low %v204_v23, %v208_v26  ;;  %v261_v26 = vld [vmem:[#allocation2 + $0x1c8] sm:$0xff] }
  0x6d   : > { %800 = vmatprep.subr.bf16.mxu0 %v3956_v38  ;;  %853 = vmatprep.subr.bf16.mxu1 %v3958_v40  ;;  %v4001_v38 = vcombine.low %v205_v27, %v209_v28  ;;  %v4008_v40 = vcombine.high %v212_v33, %v216_v34  ;;  %v264_v23 = vld [vmem:[#allocation2 + $0x1e0] sm:$0xff]  ;;  %v265_v27 = vld [vmem:[#allocation2 + $0x1e8] sm:$0xff] }
  0x6f   : > { %733 = vmatmul.mubr.bf16.gmra.mrb[4].mxu0 %v4707_v47  ;;  %786 = vmatmul.mubr.bf16.gmra.mrb[4].mxu1 %v4707_v47 }
  0x70   : > { %801 = vmatpush1.bf16.msra.mxu0 %v3955_v45  ;;  %854 = vmatpush1.bf16.msra.mxu1 %v3957_v48  ;;  %v225_v45 = vld [vmem:[#allocation2 + $0xa8] sm:$0xff]  ;;  %v4007_v48 = vcombine.low %v212_v33, %v216_v34  ;;  %v210_v33 = vld [vmem:[#allocation2 + $0x30] sm:$0xff]  ;;  %v207_v34 = vld [vmem:[#allocation2 + $0x18] sm:$0xff] }
  0x71   : > { %802 = vmatprep.subr.bf16.mxu0 %v3964_v49  ;;  %855 = vmatprep.subr.bf16.mxu1 %v3966_v50  ;;  %v4009_v49 = vcombine.low %v213_v35, %v217_v36  ;;  %v4016_v50 = vcombine.high %v220_v42, %v224_v43  ;;  %v4018_v51 = vcombine.high %v221_v44, %v225_v45  ;;  %v211_v35 = vld [vmem:[#allocation2 + $0x38] sm:$0xff] }
  0x72   : > { %828 = vmatprep.mubr.bf16.mxu0 %v4559_v0  ;;  %881 = vmatprep.mubr.bf16.mxu1 %v4559_v0 }
  0x74   : > { %803 = vmatpush1.bf16.msra.mxu0 %v3963_v56  ;;  %856 = vmatpush1.bf16.msra.mxu1 %v3965_v57  ;;  %v233_v56 = vld [vmem:[#allocation2 + $0xe8] sm:$0xff]  ;;  %v4015_v57 = vcombine.low %v220_v42, %v224_v43  ;;  %v218_v42 = vld [vmem:[#allocation2 + $0x70] sm:$0xff]  ;;  %v2156_v43 = vrot.slane %v356_v4, 2 }
  0x75   : > { %804 = vmatprep.subr.bf16.mxu0 %v3972_v58  ;;  %857 = vmatprep.subr.bf16.mxu1 %v3974_v59  ;;  %v4024_v58 = vcombine.high %v228_v52, %v232_v53  ;;  %v4026_v59 = vcombine.high %v229_v54, %v233_v56 }
  0x78   : > { %805 = vmatpush1.bf16.msra.mxu0 %v3971_v1  ;;  %858 = vmatpush1.bf16.msra.mxu1 %v3973_v2  ;;  %v4023_v1 = vcombine.low %v228_v52, %v232_v53  ;;  %v4025_v2 = vcombine.low %v229_v54, %v233_v56  ;;  %v222_v53 = vld [vmem:[#allocation2 + $0x90] sm:$0xff]  ;;  %v223_v56 = vld [vmem:[#allocation2 + $0x98] sm:$0xff] }
  0x79   : > { %806 = vmatprep.subr.bf16.mxu0 %v3980_v3  ;;  %859 = vmatprep.subr.bf16.mxu1 %v3982_v5  ;;  %v4032_v3 = vcombine.high %v236_v60, %v240_v61  ;;  %v4034_v5 = vcombine.high %v237_v62, %v241_v63  ;;  %v226_v54 = vld [vmem:[#allocation2 + $0xb0] sm:$0xff] }
  0x7c   : > { %807 = vmatpush1.bf16.msra.mxu0 %v3979_v10  ;;  %860 = vmatpush1.bf16.msra.mxu1 %v3981_v11  ;;  %v4031_v10 = vcombine.low %v236_v60, %v240_v61  ;;  %v4033_v11 = vcombine.low %v237_v62, %v241_v63  ;;  %v230_v60 = vld [vmem:[#allocation2 + $0xd0] sm:$0xff]  ;;  %v231_v62 = vld [vmem:[#allocation2 + $0xd8] sm:$0xff] }
  0x7d   : > { %808 = vmatprep.subr.bf16.mxu0 %v3988_v12  ;;  %861 = vmatprep.subr.bf16.mxu1 %v3990_v13  ;;  %v4042_v12 = vcombine.high %v245_v8, %v249_v9  ;;  %v252_v13 = vld [vmem:[#allocation2 + $0x180] sm:$0xff]  ;;  %v234_v61 = vld [vmem:[#allocation2 + $0xf0] sm:$0xff]  ;;  %v235_v63 = vld [vmem:[#allocation2 + $0xf8] sm:$0xff] }
  0x7e   : > { %v4047_v28 = vcombine.low %v252_v13, %v256_v14 }
  0x80   : > { %809 = vmatpush1.bf16.msra.mxu0 %v3987_v19  ;;  %862 = vmatpush1.bf16.msra.mxu1 %v3989_v20  ;;  %v4041_v19 = vcombine.low %v245_v8, %v249_v9  ;;  %v4048_v20 = vcombine.high %v252_v13, %v256_v14  ;;  %v239_v8 = vld [vmem:[#allocation2 + $0x118] sm:$0xff]  ;;  %v246_v13 = vld [vmem:[#allocation2 + $0x150] sm:$0xff] }
  0x81   : > { %810 = vmatprep.subr.bf16.mxu0 %v3996_v21  ;;  %863 = vmatprep.subr.bf16.mxu1 %v3998_v22  ;;  %v4050_v21 = vcombine.high %v253_v16, %v257_v17  ;;  %v260_v22 = vld [vmem:[#allocation2 + $0x1c0] sm:$0xff]  ;;  %v243_v9 = vld [vmem:[#allocation2 + $0x138] sm:$0xff]  ;;  %v250_v14 = vld [vmem:[#allocation2 + $0x170] sm:$0xff] }
  0x82   : > { %v4055_v36 = vcombine.low %v260_v22, %v264_v23 }
  0x84   : > { %811 = vmatpush1.bf16.msra.mxu0 %v3995_v29  ;;  %864 = vmatpush1.bf16.msra.mxu1 %v3997_v30  ;;  %v4049_v29 = vcombine.low %v253_v16, %v257_v17  ;;  %v4056_v30 = vcombine.high %v260_v22, %v264_v23  ;;  %v247_v16 = vld [vmem:[#allocation2 + $0x158] sm:$0xff]  ;;  %v254_v22 = vld [vmem:[#allocation2 + $0x190] sm:$0xff] }
  0x85   : > { %1224 = vmatprep.subr.bf16.mxu0 %v4000_v31  ;;  %1277 = vmatprep.subr.bf16.mxu1 %v4002_v32  ;;  %v4058_v31 = vcombine.high %v261_v26, %v265_v27  ;;  %v206_v32 = vld [vmem:[#allocation2 + $0x10] sm:$0xff]  ;;  %v251_v17 = vld [vmem:[#allocation2 + $0x178] sm:$0xff] }
  0x86   : > { %v258_v23 = vld [vmem:[#allocation2 + $0x1b0] sm:$0xff] }
  0x87   : > { %829 = vmatmul.mubr.bf16.vlgmr.msra.gmra.mrb[8].mxu0 %v4696_v24  ;;  %882 = vmatmul.mubr.bf16.vlgmr.msra.gmra.mrb[8].mxu1 %v4696_v24  ;;  %v4017_v24 = vcombine.low %v221_v44, %v225_v45  ;;  %v2155_v44 = vrot.slane %v360_v25, 1  ;;  %v215_v45 = vld [vmem:[#allocation2 + $0x58] sm:$0xff] }
  0x88   : > { %1225 = vmatpush1.bf16.msra.mxu0 %v3999_v37  ;;  %1278 = vmatpush1.bf16.msra.mxu1 %v4001_v38  ;;  %v4057_v37 = vcombine.low %v261_v26, %v265_v27  ;;  %v4004_v38 = vcombine.high %v206_v32, %v210_v33  ;;  %v255_v26 = vld [vmem:[#allocation2 + $0x198] sm:$0xff] }
  0x89   : > { %1226 = vmatprep.subr.bf16.mxu0 %v4008_v40  ;;  %1279 = vmatprep.subr.bf16.mxu1 %v4010_v41  ;;  %v4006_v40 = vcombine.high %v207_v34, %v211_v35  ;;  %v214_v41 = vld [vmem:[#allocation2 + $0x50] sm:$0xff]  ;;  %v4726_v4 = vor.u32 %v2156_v43, %v2155_v44  ;;  %v259_v27 = vld [vmem:[#allocation2 + $0x1b8] sm:$0xff]  ;;  %v1439_v43 = vld [vmem:[#allocation2 + $0x408] sm:$0xff] }
  0x8a   : > { %838 = vmatprep.mubr.bf16.mxu0 %v4559_v0  ;;  %891 = vmatprep.mubr.bf16.mxu1 %v4559_v0  ;;  %v4011_v25 = vcombine.low %v214_v41, %v218_v42  ;;  %v1443_v44 = vld [vmem:[#allocation2 + $0x428] sm:$0xff] }
  0x8c   : > { %1227 = vmatpush1.bf16.msra.mxu0 %v4007_v48  ;;  %1280 = vmatpush1.bf16.msra.mxu1 %v4009_v49  ;;  %v219_v48 = vld [vmem:[#allocation2 + $0x78] sm:$0xff]  ;;  %v4003_v49 = vcombine.low %v206_v32, %v210_v33  ;;  %v262_v32 = vld [vmem:[#allocation2 + $0x1d0] sm:$0xff] }
  0x8d   : > { %1228 = vmatprep.subr.bf16.mxu0 %v4016_v50  ;;  %1281 = vmatprep.subr.bf16.mxu1 %v4018_v51  ;;  %v4005_v50 = vcombine.low %v207_v34, %v211_v35  ;;  %v4012_v51 = vcombine.high %v214_v41, %v218_v42  ;;  %v4014_v52 = vcombine.high %v215_v45, %v219_v48  ;;  %v266_v33 = vld [vmem:[#allocation2 + $0x1f0] sm:$0xff]  ;;  %v263_v34 = vld [vmem:[#allocation2 + $0x1d8] sm:$0xff]  ;;  %v1438_v41 = vld [vmem:[#allocation2 + $0x400] sm:$0xff] }
  0x8e   : > { %v267_v35 = vld [vmem:[#allocation2 + $0x1f8] sm:$0xff]  ;;  %v1442_v42 = vld [vmem:[#allocation2 + $0x420] sm:$0xff] }
  0x8f   : > { %839 = vmatmul.mubr.bf16.gmra.mrb[12].mxu0 %v4707_v47  ;;  %892 = vmatmul.mubr.bf16.gmra.mrb[12].mxu1 %v4707_v47  ;;  %v4040_v47 = vcombine.high %v244_v6, %v248_v7  ;;  %v238_v6 = vld [vmem:[#allocation2 + $0x110] sm:$0xff] }
  0x90   : > { %1229 = vmatpush1.bf16.msra.mxu0 %v4015_v57  ;;  %1282 = vmatpush1.bf16.msra.mxu1 %v4017_v24  ;;  %v227_v57 = vld [vmem:[#allocation2 + $0xb8] sm:$0xff]  ;;  %v4013_v24 = vcombine.low %v215_v45, %v219_v48  ;;  %v242_v7 = vld [vmem:[#allocation2 + $0x130] sm:$0xff]  ;;  %v4059_v45 = vcombine.low %v262_v32, %v266_v33  ;;  %v4061_v48 = vcombine.low %v263_v34, %v267_v35 }
  0x91   : > { %1230 = vmatprep.subr.bf16.mxu0 %v4024_v58  ;;  %1283 = vmatprep.subr.bf16.mxu1 %v4026_v59  ;;  %v4020_v58 = vcombine.high %v222_v53, %v226_v54  ;;  %v4022_v59 = vcombine.high %v223_v56, %v227_v57 }
  0x92   : > { %1256 = vmatprep.mubr.bf16.mxu0 %v4559_v0  ;;  %1309 = vmatprep.mubr.bf16.mxu1 %v4559_v0 }
  0x94   : > { %1231 = vmatpush1.bf16.msra.mxu0 %v4023_v1  ;;  %1284 = vmatpush1.bf16.msra.mxu1 %v4025_v2  ;;  %v4019_v1 = vcombine.low %v222_v53, %v226_v54  ;;  %v4021_v2 = vcombine.low %v223_v56, %v227_v57  ;;  %v1447_v53 = vld [vmem:[#allocation2 + $0x448] sm:$0xff]  ;;  %v4064_v56 = vcombine.low %v1438_v41, %v1442_v42 }
  0x95   : > { %1232 = vmatprep.subr.bf16.mxu0 %v4032_v3  ;;  %1285 = vmatprep.subr.bf16.mxu1 %v4034_v5  ;;  %v4028_v3 = vcombine.high %v230_v60, %v234_v61  ;;  %v4030_v5 = vcombine.high %v231_v62, %v235_v63  ;;  %v1451_v54 = vld [vmem:[#allocation2 + $0x468] sm:$0xff]  ;;  %v4066_v57 = vcombine.low %v1439_v43, %v1443_v44 }
  0x98   : > { %1233 = vmatpush1.bf16.msra.mxu0 %v4031_v10  ;;  %1286 = vmatpush1.bf16.msra.mxu1 %v4033_v11  ;;  %v4027_v10 = vcombine.low %v230_v60, %v234_v61  ;;  %v4029_v11 = vcombine.low %v231_v62, %v235_v63  ;;  %v1455_v60 = vld [vmem:[#allocation2 + $0x488] sm:$0xff]  ;;  %v4074_v63 = vcombine.low %v1447_v53, %v1451_v54 }
  0x99   : > { %1234 = vmatprep.subr.bf16.mxu0 %v4040_v47  ;;  %1287 = vmatprep.subr.bf16.mxu1 %v4042_v12  ;;  %v4036_v47 = vcombine.high %v238_v6, %v242_v7  ;;  %v4038_v12 = vcombine.high %v239_v8, %v243_v9  ;;  %v1459_v61 = vld [vmem:[#allocation2 + $0x4a8] sm:$0xff] }
  0x9c   : > { %1235 = vmatpush1.bf16.msra.mxu0 %v4039_v18  ;;  %1288 = vmatpush1.bf16.msra.mxu1 %v4041_v19  ;;  %v4035_v18 = vcombine.low %v238_v6, %v242_v7  ;;  %v4037_v19 = vcombine.low %v239_v8, %v243_v9  ;;  %v1463_v6 = vld [vmem:[#allocation2 + $0x4c8] sm:$0xff] }
  0x9d   : > { %1236 = vmatprep.subr.bf16.mxu0 %v4048_v20  ;;  %1289 = vmatprep.subr.bf16.mxu1 %v4050_v21  ;;  %v4044_v20 = vcombine.high %v246_v13, %v250_v14  ;;  %v4046_v21 = vcombine.high %v247_v16, %v251_v17  ;;  %v1467_v7 = vld [vmem:[#allocation2 + $0x4e8] sm:$0xff] }
  0xa0   : > { %1237 = vmatpush1.bf16.msra.mxu0 %v4047_v28  ;;  %1290 = vmatpush1.bf16.msra.mxu1 %v4049_v29  ;;  %v4043_v28 = vcombine.low %v246_v13, %v250_v14  ;;  %v4045_v29 = vcombine.low %v247_v16, %v251_v17  ;;  %v1475_v13 = vld [vmem:[#allocation2 + $0x528] sm:$0xff]  ;;  %v4090_v16 = vcombine.low %v1463_v6, %v1467_v7 }
  0xa1   : > { %1238 = vmatprep.subr.bf16.mxu0 %v4056_v30  ;;  %1291 = vmatprep.subr.bf16.mxu1 %v4058_v31  ;;  %v4052_v30 = vcombine.high %v254_v22, %v258_v23  ;;  %v4054_v31 = vcombine.high %v255_v26, %v259_v27 }
  0xa4   : > { %1239 = vmatpush1.bf16.msra.mxu0 %v4055_v36  ;;  %1292 = vmatpush1.bf16.msra.mxu1 %v4057_v37  ;;  %v4051_v36 = vcombine.low %v254_v22, %v258_v23  ;;  %v4053_v37 = vcombine.low %v255_v26, %v259_v27  ;;  %v1483_v22 = vld [vmem:[#allocation2 + $0x568] sm:$0xff] }
  0xa5   : > { %1330 = vmatprep.subr.bf16.mxu0 %v4004_v38  ;;  %1383 = vmatprep.subr.bf16.mxu1 %v4006_v40  ;;  %v4060_v38 = vcombine.high %v262_v32, %v266_v33  ;;  %v4062_v40 = vcombine.high %v263_v34, %v267_v35  ;;  %v1491_v32 = vld [vmem:[#allocation2 + $0x5a8] sm:$0xff] }
  0xa7   : > { %1257 = vmatmul.mubr.bf16.vlgmr.msra.gmra.mrb[0].mxu0 %v4682_v46  ;;  %1310 = vmatmul.mubr.bf16.vlgmr.msra.gmra.mrb[0].mxu1 %v4682_v46 }
  0xa8   : > { %1331 = vmatpush1.bf16.msra.mxu0 %v4003_v49  ;;  %1384 = vmatpush1.bf16.msra.mxu1 %v4005_v50  ;;  %v4065_v49 = vcombine.high %v1438_v41, %v1442_v42  ;;  %v4067_v50 = vcombine.high %v1439_v43, %v1443_v44  ;;  %v1495_v41 = vld [vmem:[#allocation2 + $0x5c8] sm:$0xff] }
  0xa9   : > { %1332 = vmatprep.subr.bf16.mxu0 %v4012_v51  ;;  %1385 = vmatprep.subr.bf16.mxu1 %v4014_v52  ;;  %v1446_v51 = vld [vmem:[#allocation2 + $0x440] sm:$0xff]  ;;  %v1499_v42 = vld [vmem:[#allocation2 + $0x5e8] sm:$0xff] }
  0xaa   : > { %1266 = vmatprep.mubr.bf16.mxu0 %v4559_v0  ;;  %1319 = vmatprep.mubr.bf16.mxu1 %v4559_v0  ;;  %v1450_v52 = vld [vmem:[#allocation2 + $0x460] sm:$0xff] }
  0xab   : > { %v4072_v62 = vcombine.low %v1446_v51, %v1450_v52 }
  0xac   : > { %1333 = vmatpush1.bf16.msra.mxu0 %v4011_v25  ;;  %1386 = vmatpush1.bf16.msra.mxu1 %v4013_v24  ;;  %v4073_v25 = vcombine.high %v1446_v51, %v1450_v52  ;;  %v4075_v24 = vcombine.high %v1447_v53, %v1451_v54  ;;  %v1444_v51 = vld [vmem:[#allocation2 + $0x430] sm:$0xff]  ;;  %v1441_v52 = vld [vmem:[#allocation2 + $0x418] sm:$0xff] }
  0xad   : > { %1334 = vmatprep.subr.bf16.mxu0 %v4020_v58  ;;  %1387 = vmatprep.subr.bf16.mxu1 %v4022_v59  ;;  %v1454_v58 = vld [vmem:[#allocation2 + $0x480] sm:$0xff]  ;;  %v1445_v53 = vld [vmem:[#allocation2 + $0x438] sm:$0xff] }
  0xae   : > { %v1458_v59 = vld [vmem:[#allocation2 + $0x4a0] sm:$0xff] }
  0xaf   : > { %1267 = vmatmul.mubr.bf16.gmra.mrb[4].mxu0 %v4685_v55  ;;  %1320 = vmatmul.mubr.bf16.gmra.mrb[4].mxu1 %v4685_v55  ;;  %v4080_v8 = vcombine.low %v1454_v58, %v1458_v59 }
  0xb0   : > { %1335 = vmatpush1.bf16.msra.mxu0 %v4019_v1  ;;  %1388 = vmatpush1.bf16.msra.mxu1 %v4021_v2  ;;  %v4081_v1 = vcombine.high %v1454_v58, %v1458_v59  ;;  %v4083_v2 = vcombine.high %v1455_v60, %v1459_v61  ;;  %v1448_v58 = vld [vmem:[#allocation2 + $0x450] sm:$0xff] }
  0xb1   : > { %1336 = vmatprep.subr.bf16.mxu0 %v4028_v3  ;;  %1389 = vmatprep.subr.bf16.mxu1 %v4030_v5  ;;  %v1462_v3 = vld [vmem:[#allocation2 + $0x4c0] sm:$0xff]  ;;  %v1452_v59 = vld [vmem:[#allocation2 + $0x470] sm:$0xff] }
  0xb2   : > { %1362 = vmatprep.mubr.bf16.mxu0 %v4559_v0  ;;  %1415 = vmatprep.mubr.bf16.mxu1 %v4559_v0  ;;  %v1466_v5 = vld [vmem:[#allocation2 + $0x4e0] sm:$0xff] }
  0xb3   : > { %v4089_v9 = vcombine.high %v1462_v3, %v1466_v5  ;;  %v4088_v14 = vcombine.low %v1462_v3, %v1466_v5  ;;  %v1456_v3 = vld [vmem:[#allocation2 + $0x490] sm:$0xff] }
  0xb4   : > { %1337 = vmatpush1.bf16.msra.mxu0 %v4027_v10  ;;  %1390 = vmatpush1.bf16.msra.mxu1 %v4029_v11  ;;  %v4091_v10 = vcombine.high %v1463_v6, %v1467_v7  ;;  %v1470_v11 = vld [vmem:[#allocation2 + $0x500] sm:$0xff]  ;;  %v1460_v5 = vld [vmem:[#allocation2 + $0x4b0] sm:$0xff]  ;;  %v1457_v6 = vld [vmem:[#allocation2 + $0x498] sm:$0xff] }
  0xb5   : > { %1338 = vmatprep.subr.bf16.mxu0 %v4036_v47  ;;  %1391 = vmatprep.subr.bf16.mxu1 %v4038_v12  ;;  %v1474_v47 = vld [vmem:[#allocation2 + $0x520] sm:$0xff]  ;;  %v1471_v12 = vld [vmem:[#allocation2 + $0x508] sm:$0xff]  ;;  %v1461_v7 = vld [vmem:[#allocation2 + $0x4b8] sm:$0xff] }
  0xb6   : > { %v4097_v17 = vcombine.high %v1470_v11, %v1474_v47  ;;  %v4096_v23 = vcombine.low %v1470_v11, %v1474_v47  ;;  %v4098_v26 = vcombine.low %v1471_v12, %v1475_v13  ;;  %v4087_v11 = vcombine.high %v1457_v6, %v1461_v7  ;;  %v1464_v47 = vld [vmem:[#allocation2 + $0x4d0] sm:$0xff] }
  0xb8   : > { %1339 = vmatpush1.bf16.msra.mxu0 %v4035_v18  ;;  %1392 = vmatpush1.bf16.msra.mxu1 %v4037_v19  ;;  %v4099_v18 = vcombine.high %v1471_v12, %v1475_v13  ;;  %v1478_v19 = vld [vmem:[#allocation2 + $0x540] sm:$0xff]  ;;  %v1468_v12 = vld [vmem:[#allocation2 + $0x4f0] sm:$0xff]  ;;  %v1465_v13 = vld [vmem:[#allocation2 + $0x4d8] sm:$0xff] }
  0xb9   : > { %1340 = vmatprep.subr.bf16.mxu0 %v4044_v20  ;;  %1393 = vmatprep.subr.bf16.mxu1 %v4046_v21  ;;  %v1482_v20 = vld [vmem:[#allocation2 + $0x560] sm:$0xff]  ;;  %v1479_v21 = vld [vmem:[#allocation2 + $0x548] sm:$0xff] }
  0xba   : > { %v4105_v27 = vcombine.high %v1478_v19, %v1482_v20  ;;  %v4104_v33 = vcombine.low %v1478_v19, %v1482_v20  ;;  %v4106_v34 = vcombine.low %v1479_v21, %v1483_v22  ;;  %v1472_v20 = vld [vmem:[#allocation2 + $0x510] sm:$0xff] }
  0xbc   : > { %1341 = vmatpush1.bf16.msra.mxu0 %v4043_v28  ;;  %1394 = vmatpush1.bf16.msra.mxu1 %v4045_v29  ;;  %v4107_v28 = vcombine.high %v1479_v21, %v1483_v22  ;;  %v1486_v29 = vld [vmem:[#allocation2 + $0x580] sm:$0xff]  ;;  %v1476_v21 = vld [vmem:[#allocation2 + $0x530] sm:$0xff]  ;;  %v1473_v22 = vld [vmem:[#allocation2 + $0x518] sm:$0xff] }
  0xbd   : > { %1342 = vmatprep.subr.bf16.mxu0 %v4052_v30  ;;  %1395 = vmatprep.subr.bf16.mxu1 %v4054_v31  ;;  %v1490_v30 = vld [vmem:[#allocation2 + $0x5a0] sm:$0xff]  ;;  %v1487_v31 = vld [vmem:[#allocation2 + $0x588] sm:$0xff] }
  0xbe   : > { %v4113_v35 = vcombine.high %v1486_v29, %v1490_v30  ;;  %v4112_v43 = vcombine.low %v1486_v29, %v1490_v30  ;;  %v1480_v30 = vld [vmem:[#allocation2 + $0x550] sm:$0xff] }
  0xc0   : > { %1343 = vmatpush1.bf16.msra.mxu0 %v4051_v36  ;;  %1396 = vmatpush1.bf16.msra.mxu1 %v4053_v37  ;;  %v1436_v36 = vld [vmem:[%s4675_s20] sm:$0xe]  ;;  %v4115_v37 = vcombine.high %v1487_v31, %v1491_v32 }
  0xc1   : > { %1344 = vmatprep.subr.bf16.mxu0 %v4060_v38  ;;  %1397 = vmatprep.subr.bf16.mxu1 %v4062_v40  ;;  %v1494_v38 = vld [vmem:[#allocation2 + $0x5c0] sm:$0xff]  ;;  %v4745_v44 = vcombine.low %v1436_v36, %v4679_v39  ;;  %v4122_v39 = vcombine.low %v1495_v41, %v1499_v42 }
  0xc2   : > { %v1498_v40 = vld [vmem:[#allocation2 + $0x5e0] sm:$0xff] }
  0xc3   : > { %v4120_v54 = vcombine.low %v1494_v38, %v1498_v40 }
  0xc4   : > { %1345 = vmatpush1.bf16.msra.mxu0 %v4059_v45  ;;  %1398 = vmatpush1.bf16.msra.mxu1 %v4061_v48  ;;  %v4114_v45 = vcombine.low %v1487_v31, %v1491_v32  ;;  %v4121_v48 = vcombine.high %v1494_v38, %v1498_v40  ;;  %v1484_v31 = vld [vmem:[#allocation2 + $0x570] sm:$0xff]  ;;  %v1481_v32 = vld [vmem:[#allocation2 + $0x558] sm:$0xff] }
  0xc5   : > { %1833 = vmatprep.subr.bf16.mxu0 %v4065_v49  ;;  %1886 = vmatprep.subr.bf16.mxu1 %v4067_v50  ;;  %v4123_v49 = vcombine.high %v1495_v41, %v1499_v42  ;;  %v1440_v50 = vld [vmem:[#allocation2 + $0x410] sm:$0xff]  ;;  %v4109_v36 = vcombine.high %v1480_v30, %v1484_v31  ;;  %v1489_v41 = vld [vmem:[#allocation2 + $0x598] sm:$0xff] }
  0xc6   : > { %v1488_v38 = vld [vmem:[#allocation2 + $0x590] sm:$0xff]  ;;  %v1493_v42 = vld [vmem:[#allocation2 + $0x5b8] sm:$0xff] }
  0xc7   : > { %1363 = vmatmul.mubr.bf16.vlgmr.msra.gmra.mrb[8].mxu0 %v4682_v46  ;;  %1416 = vmatmul.mubr.bf16.vlgmr.msra.gmra.mrb[8].mxu1 %v4682_v46  ;;  %v4082_v46 = vcombine.low %v1455_v60, %v1459_v61  ;;  %v1449_v60 = vld [vmem:[#allocation2 + $0x458] sm:$0xff]  ;;  %v1492_v40 = vld [vmem:[#allocation2 + $0x5b0] sm:$0xff] }
  0xc8   : > { %1834 = vmatpush1.bf16.msra.mxu0 %v4064_v56  ;;  %1887 = vmatpush1.bf16.msra.mxu1 %v4066_v57  ;;  %v1506_v56 = vrot.slane %v4745_v44, 1  ;;  %v1507_v57 = vrot.slane %v4685_v55, 1  ;;  %v1453_v61 = vld [vmem:[#allocation2 + $0x478] sm:$0xff] }
  0xc9   : > { %1835 = vmatprep.subr.bf16.mxu0 %v4073_v25  ;;  %1888 = vmatprep.subr.bf16.mxu1 %v4075_v24  ;;  %v4069_v25 = vcombine.high %v1440_v50, %v1444_v51  ;;  %v4071_v24 = vcombine.high %v1441_v52, %v1445_v53 }
  0xca   : > { %1372 = vmatprep.mubr.bf16.mxu0 %v4559_v0  ;;  %1425 = vmatprep.mubr.bf16.mxu1 %v4559_v0 }
  0xcc   : > { %1836 = vmatpush1.bf16.msra.mxu0 %v4072_v62  ;;  %1889 = vmatpush1.bf16.msra.mxu1 %v4074_v63  ;;  %v4068_v62 = vcombine.low %v1440_v50, %v1444_v51  ;;  %v4750_v63 = vsel %vm1505_vm1, %v1506_v56, %v1507_v57  ;;  %v1496_v50 = vld [vmem:[#allocation2 + $0x5d0] sm:$0xff]  ;;  %v4118_v56 = vcombine.low %v1489_v41, %v1493_v42 }
  0xcd   : > { %1837 = vmatprep.subr.bf16.mxu0 %v4081_v1  ;;  %1890 = vmatprep.subr.bf16.mxu1 %v4083_v2  ;;  %v4070_v1 = vcombine.low %v1441_v52, %v1445_v53  ;;  %v4079_v2 = vcombine.high %v1449_v60, %v1453_v61  ;;  %v1500_v51 = vld [vmem:[#allocation2 + $0x5f0] sm:$0xff]  ;;  %v1497_v52 = vld [vmem:[#allocation2 + $0x5d8] sm:$0xff] }
  0xce   : > { %v1501_v53 = vld [vmem:[#allocation2 + $0x5f8] sm:$0xff] }
  0xcf   : > { %1373 = vmatmul.mubr.bf16.gmra.mrb[12].mxu0 %v4685_v55  ;;  %1426 = vmatmul.mubr.bf16.gmra.mrb[12].mxu1 %v4685_v55  ;;  %v4077_v55 = vcombine.high %v1448_v58, %v1452_v59 }
  0xd0   : > { %1838 = vmatpush1.bf16.msra.mxu0 %v4080_v8  ;;  %1891 = vmatpush1.bf16.msra.mxu1 %v4082_v46  ;;  %v4076_v8 = vcombine.low %v1448_v58, %v1452_v59  ;;  %v1509_v46 = vrot.slane %v4693_v15, 1  ;;  %v4086_v15 = vcombine.low %v1457_v6, %v1461_v7  ;;  %v2080_v58 = vld [vmem:[#allocation2 + $0x608] sm:$0xff] }
  0xd1   : > { %1839 = vmatprep.subr.bf16.mxu0 %v4089_v9  ;;  %1892 = vmatprep.subr.bf16.mxu1 %v4091_v10  ;;  %v4078_v9 = vcombine.low %v1449_v60, %v1453_v61  ;;  %v4085_v10 = vcombine.high %v1456_v3, %v1460_v5  ;;  %v2084_v59 = vld [vmem:[#allocation2 + $0x628] sm:$0xff]  ;;  %v4124_v60 = vcombine.low %v1496_v50, %v1500_v51 }
  0xd2   : > { %1865 = vmatprep.mubr.bf16.mxu0 %v4559_v0  ;;  %1918 = vmatprep.mubr.bf16.mxu1 %v4559_v0  ;;  %v4126_v61 = vcombine.low %v1497_v52, %v1501_v53  ;;  %v4131_v7 = vcombine.low %v2080_v58, %v2084_v59 }
  0xd4   : > { %1840 = vmatpush1.bf16.msra.mxu0 %v4088_v14  ;;  %1893 = vmatpush1.bf16.msra.mxu1 %v4090_v16  ;;  %v1469_v14 = vld [vmem:[#allocation2 + $0x4f8] sm:$0xff]  ;;  %v4084_v16 = vcombine.low %v1456_v3, %v1460_v5  ;;  %v2088_v3 = vld [vmem:[#allocation2 + $0x648] sm:$0xff] }
  0xd5   : > { %1841 = vmatprep.subr.bf16.mxu0 %v4097_v17  ;;  %1894 = vmatprep.subr.bf16.mxu1 %v4099_v18  ;;  %v4758_v17 = vsel %vm1505_vm1, %v1507_v57, %v1509_v46  ;;  %v4093_v18 = vcombine.high %v1464_v47, %v1468_v12  ;;  %v4095_v19 = vcombine.high %v1465_v13, %v1469_v14  ;;  %v2092_v5 = vld [vmem:[#allocation2 + $0x668] sm:$0xff] }
  0xd6   : > { %v4125_v57 = vcombine.high %v1496_v50, %v1500_v51  ;;  %v4140_v46 = vcombine.high %v2088_v3, %v2092_v5  ;;  %v2148_v50 = vshrl.u32 %v4745_v44, 16  ;;  %v2151_v51 = vshll.u32 %v4745_v44, 16 }
  0xd8   : > { %1842 = vmatpush1.bf16.msra.mxu0 %v4096_v23  ;;  %1895 = vmatpush1.bf16.msra.mxu1 %v4098_v26  ;;  %v1477_v23 = vld [vmem:[#allocation2 + $0x538] sm:$0xff]  ;;  %v4092_v26 = vcombine.low %v1464_v47, %v1468_v12  ;;  %v2100_v47 = vld [vmem:[#allocation2 + $0x6a8] sm:$0xff] }
  0xd9   : > { %1843 = vmatprep.subr.bf16.mxu0 %v4105_v27  ;;  %1896 = vmatprep.subr.bf16.mxu1 %v4107_v28  ;;  %v4094_v27 = vcombine.low %v1465_v13, %v1469_v14  ;;  %v4101_v28 = vcombine.high %v1472_v20, %v1476_v21  ;;  %v4103_v29 = vcombine.high %v1473_v22, %v1477_v23 }
  0xda   : > { %v4139_v13 = vcombine.low %v2088_v3, %v2092_v5  ;;  %v2086_v3 = vld [vmem:[#allocation2 + $0x638] sm:$0xff] }
  0xdc   : > { %1844 = vmatpush1.bf16.msra.mxu0 %v4104_v33  ;;  %1897 = vmatpush1.bf16.msra.mxu1 %v4106_v34  ;;  %v1485_v33 = vld [vmem:[#allocation2 + $0x578] sm:$0xff]  ;;  %v4100_v34 = vcombine.low %v1472_v20, %v1476_v21  ;;  %v2108_v20 = vld [vmem:[#allocation2 + $0x6e8] sm:$0xff] }
  0xdd   : > { %1845 = vmatprep.subr.bf16.mxu0 %v4113_v35  ;;  %1898 = vmatprep.subr.bf16.mxu1 %v4115_v37  ;;  %v4102_v35 = vcombine.low %v1473_v22, %v1477_v23  ;;  %v4111_v37 = vcombine.high %v1481_v32, %v1485_v33 }
  0xe0   : > { %1846 = vmatpush1.bf16.msra.mxu0 %v4112_v43  ;;  %1899 = vmatpush1.bf16.msra.mxu1 %v4114_v45  ;;  %v4108_v43 = vcombine.low %v1480_v30, %v1484_v31  ;;  %v4110_v45 = vcombine.low %v1481_v32, %v1485_v33 }
  0xe1   : > { %1847 = vmatprep.subr.bf16.mxu0 %v4121_v48  ;;  %1900 = vmatprep.subr.bf16.mxu1 %v4123_v49  ;;  %v4117_v48 = vcombine.high %v1488_v38, %v1492_v40  ;;  %v4119_v49 = vcombine.high %v1489_v41, %v1493_v42  ;;  %v2127_v42 = vld [vmem:[#allocation2 + $0x780] sm:$0xff] }
  0xe4   : > { %1848 = vmatpush1.bf16.msra.mxu0 %v4120_v54  ;;  %1901 = vmatpush1.bf16.msra.mxu1 %v4122_v39  ;;  %v4116_v54 = vcombine.low %v1488_v38, %v1492_v40  ;;  %v4127_v39 = vcombine.high %v1497_v52, %v1501_v53 }
  0xe5   : > { %1939 = vmatprep.subr.bf16.mxu0 %v4069_v25  ;;  %1992 = vmatprep.subr.bf16.mxu1 %v4071_v24  ;;  %v2079_v25 = vld [vmem:[#allocation2 + $0x600] sm:$0xff] }
  0xe6   : > { %v2083_v24 = vld [vmem:[#allocation2 + $0x620] sm:$0xff] }
  0xe7   : > { %1866 = vmatmul.mubr.bf16.vlgmr.msra.gmra.mrb[0].mxu0 %v4750_v63  ;;  %1919 = vmatmul.mubr.bf16.vlgmr.msra.gmra.mrb[0].mxu1 %v4750_v63  ;;  %v4129_v6 = vcombine.low %v2079_v25, %v2083_v24 }
  0xe8   : > { %1940 = vmatpush1.bf16.msra.mxu0 %v4068_v62  ;;  %1993 = vmatpush1.bf16.msra.mxu1 %v4070_v1  ;;  %v4130_v62 = vcombine.high %v2079_v25, %v2083_v24  ;;  %v4132_v1 = vcombine.high %v2080_v58, %v2084_v59  ;;  %v2140_v25 = vld [vmem:[#allocation2 + $0x7e8] sm:$0xff]  ;;  %v2150_v58 = vrot.slane %v2148_v50, 1  ;;  %v2153_v59 = vrot.slane %v2151_v51, 2  ;;  %v2121_v51 = vld [vmem:[#allocation2 + $0x750] sm:$0xff] }
  0xe9   : > { %1941 = vmatprep.subr.bf16.mxu0 %v4077_v55  ;;  %1994 = vmatprep.subr.bf16.mxu1 %v4079_v2  ;;  %v2087_v55 = vld [vmem:[#allocation2 + $0x640] sm:$0xff] }
  0xea   : > { %1875 = vmatprep.mubr.bf16.mxu0 %v4559_v0  ;;  %1928 = vmatprep.mubr.bf16.mxu1 %v4559_v0  ;;  %v2091_v2 = vld [vmem:[#allocation2 + $0x660] sm:$0xff] }
  0xeb   : > { %v4137_v12 = vcombine.low %v2087_v55, %v2091_v2 }
  0xec   : > { %1942 = vmatpush1.bf16.msra.mxu0 %v4076_v8  ;;  %1995 = vmatpush1.bf16.msra.mxu1 %v4078_v9  ;;  %v4138_v8 = vcombine.high %v2087_v55, %v2091_v2  ;;  %v2095_v9 = vld [vmem:[#allocation2 + $0x680] sm:$0xff]  ;;  %v2085_v55 = vld [vmem:[#allocation2 + $0x630] sm:$0xff]  ;;  %v2082_v2 = vld [vmem:[#allocation2 + $0x618] sm:$0xff] }
  0xed   : > { %1943 = vmatprep.subr.bf16.mxu0 %v4085_v10  ;;  %1996 = vmatprep.subr.bf16.mxu1 %v4087_v11  ;;  %v2099_v10 = vld [vmem:[#allocation2 + $0x6a0] sm:$0xff]  ;;  %v2096_v11 = vld [vmem:[#allocation2 + $0x688] sm:$0xff] }
  0xee   : > { %v4146_v14 = vcombine.high %v2095_v9, %v2099_v10  ;;  %v4145_v21 = vcombine.low %v2095_v9, %v2099_v10  ;;  %v4136_v10 = vcombine.high %v2082_v2, %v2086_v3 }
  0xef   : > { %1876 = vmatmul.mubr.bf16.gmra.mrb[4].mxu0 %v4758_v17  ;;  %1929 = vmatmul.mubr.bf16.gmra.mrb[4].mxu1 %v4758_v17 }
  0xf0   : > { %1944 = vmatpush1.bf16.msra.mxu0 %v4084_v16  ;;  %1997 = vmatpush1.bf16.msra.mxu1 %v4086_v15  ;;  %v4148_v16 = vcombine.high %v2096_v11, %v2100_v47  ;;  %v2103_v15 = vld [vmem:[#allocation2 + $0x6c0] sm:$0xff] }
  0xf1   : > { %1945 = vmatprep.subr.bf16.mxu0 %v4093_v18  ;;  %1998 = vmatprep.subr.bf16.mxu1 %v4095_v19  ;;  %v2107_v18 = vld [vmem:[#allocation2 + $0x6e0] sm:$0xff]  ;;  %v2104_v19 = vld [vmem:[#allocation2 + $0x6c8] sm:$0xff] }
  0xf2   : > { %1971 = vmatprep.mubr.bf16.mxu0 %v4559_v0  ;;  %2024 = vmatprep.mubr.bf16.mxu1 %v4559_v0  ;;  %v4154_v22 = vcombine.high %v2103_v15, %v2107_v18  ;;  %v4156_v23 = vcombine.high %v2104_v19, %v2108_v20  ;;  %v4153_v30 = vcombine.low %v2103_v15, %v2107_v18 }
  0xf3   : > { %v4155_v31 = vcombine.low %v2104_v19, %v2108_v20  ;;  %v4135_v19 = vcombine.low %v2082_v2, %v2086_v3  ;;  %v2137_v2 = vld [vmem:[#allocation2 + $0x7d0] sm:$0xff] }
  0xf4   : > { %1946 = vmatpush1.bf16.msra.mxu0 %v4092_v26  ;;  %1999 = vmatpush1.bf16.msra.mxu1 %v4094_v27  ;;  %v2111_v26 = vld [vmem:[#allocation2 + $0x700] sm:$0xff]  ;;  %v2141_v3 = vld [vmem:[#allocation2 + $0x7f0] sm:$0xff] }
  0xf5   : > { %1947 = vmatprep.subr.bf16.mxu0 %v4101_v28  ;;  %2000 = vmatprep.subr.bf16.mxu1 %v4103_v29  ;;  %v2115_v27 = vld [vmem:[#allocation2 + $0x720] sm:$0xff]  ;;  %v2112_v28 = vld [vmem:[#allocation2 + $0x708] sm:$0xff] }
  0xf6   : > { %v2116_v29 = vld [vmem:[#allocation2 + $0x728] sm:$0xff]  ;;  %v4162_v32 = vcombine.high %v2111_v26, %v2115_v27  ;;  %v4161_v38 = vcombine.low %v2111_v26, %v2115_v27  ;;  %v2102_v26 = vld [vmem:[#allocation2 + $0x6b8] sm:$0xff] }
  0xf7   : > { %v4164_v33 = vcombine.high %v2112_v28, %v2116_v29  ;;  %v4163_v40 = vcombine.low %v2112_v28, %v2116_v29 }
  0xf8   : > { %1948 = vmatpush1.bf16.msra.mxu0 %v4100_v34  ;;  %2001 = vmatpush1.bf16.msra.mxu1 %v4102_v35  ;;  %v2119_v34 = vld [vmem:[#allocation2 + $0x740] sm:$0xff] }
  0xf9   : > { %1949 = vmatprep.subr.bf16.mxu0 %v4109_v36  ;;  %2002 = vmatprep.subr.bf16.mxu1 %v4111_v37  ;;  %v2123_v35 = vld [vmem:[#allocation2 + $0x760] sm:$0xff]  ;;  %v2120_v36 = vld [vmem:[#allocation2 + $0x748] sm:$0xff] }
  0xfa   : > { %v2124_v37 = vld [vmem:[#allocation2 + $0x768] sm:$0xff] }
  0xfb   : > { %v4172_v41 = vcombine.high %v2120_v36, %v2124_v37  ;;  %v4171_v52 = vcombine.low %v2120_v36, %v2124_v37 }
  0xfc   : > { %1950 = vmatpush1.bf16.msra.mxu0 %v4108_v43  ;;  %2003 = vmatpush1.bf16.msra.mxu1 %v4110_v45  ;;  %v2131_v43 = vld [vmem:[#allocation2 + $0x7a0] sm:$0xff]  ;;  %v2128_v45 = vld [vmem:[#allocation2 + $0x788] sm:$0xff] }
  0xfd   : > { %1951 = vmatprep.subr.bf16.mxu0 %v4117_v48  ;;  %2004 = vmatprep.subr.bf16.mxu1 %v4119_v49  ;;  %v2132_v48 = vld [vmem:[#allocation2 + $0x7a8] sm:$0xff]  ;;  %v4169_v49 = vcombine.low %v2119_v34, %v2123_v35  ;;  %v4178_v53 = vcombine.high %v2127_v42, %v2131_v43  ;;  %v4177_v24 = vcombine.low %v2127_v42, %v2131_v43  ;;  %v2117_v42 = vld [vmem:[#allocation2 + $0x730] sm:$0xff]  ;;  %v2114_v43 = vld [vmem:[#allocation2 + $0x718] sm:$0xff] }
 0x100   : > { %1952 = vmatpush1.bf16.msra.mxu0 %v4116_v54  ;;  %2005 = vmatpush1.bf16.msra.mxu1 %v4118_v56  ;;  %v4180_v54 = vcombine.high %v2128_v45, %v2132_v48  ;;  %v2135_v56 = vld [vmem:[#allocation2 + $0x7c0] sm:$0xff] }
 0x101   : > { %1953 = vmatprep.subr.bf16.mxu0 %v4125_v57  ;;  %2006 = vmatprep.subr.bf16.mxu1 %v4127_v39  ;;  %v2139_v57 = vld [vmem:[#allocation2 + $0x7e0] sm:$0xff]  ;;  %v2136_v39 = vld [vmem:[#allocation2 + $0x7c8] sm:$0xff] }
 0x102   : > { %v4186_v44 = vcombine.high %v2135_v56, %v2139_v57  ;;  %v4185_v5 = vcombine.low %v2135_v56, %v2139_v57 }
 0x104   : > { %1954 = vmatpush1.bf16.msra.mxu0 %v4124_v60  ;;  %2007 = vmatpush1.bf16.msra.mxu1 %v4126_v61  ;;  %v4775_v60 = vld [vmem:[%s4675_s20 + $0x10] ss:$0 sps:$4 sm:$0x33]   ;;  %v4179_v61 = vcombine.low %v2128_v45, %v2132_v48  ;;  %v2118_v45 = vld [vmem:[#allocation2 + $0x738] sm:$0xff] }
 0x105   : > { %2490 = vmatprep.subr.bf16.mxu0 %v4130_v62  ;;  %2543 = vmatprep.subr.bf16.mxu1 %v4132_v1  ;;  %v4188_v62 = vcombine.high %v2136_v39, %v2140_v25  ;;  %v2081_v1 = vld [vmem:[#allocation2 + $0x610] sm:$0xff]  ;;  %v4168_v50 = vcombine.high %v2114_v43, %v2118_v45  ;;  %v4167_v57 = vcombine.low %v2114_v43, %v2118_v45  ;;  %v2768_v45 = vld [vmem:[#allocation2 + $0x900] sm:$0xff] }
 0x106   : > { %v4134_v9 = vcombine.high %v2081_v1, %v2085_v55 }
 0x107   : > { %1972 = vmatmul.mubr.bf16.vlgmr.msra.gmra.mrb[8].mxu0 %v4750_v63  ;;  %2025 = vmatmul.mubr.bf16.vlgmr.msra.gmra.mrb[8].mxu1 %v4750_v63  ;;  %v4147_v63 = vcombine.low %v2096_v11, %v2100_v47  ;;  %v2089_v11 = vld [vmem:[#allocation2 + $0x650] sm:$0xff] }
 0x108   : > { %2491 = vmatpush1.bf16.msra.mxu0 %v4129_v6  ;;  %2544 = vmatpush1.bf16.msra.mxu1 %v4131_v7  ;;  %v2154_v6 = vor.u32 %v2153_v59, %v2150_v58  ;;  %v2160_v7 = vshrl.u32 %v4775_v60, 16  ;;  %v2093_v47 = vld [vmem:[#allocation2 + $0x670] sm:$0xff]  ;;  %v2130_v59 = vld [vmem:[#allocation2 + $0x798] sm:$0xff] }
 0x109   : > { %2492 = vmatprep.subr.bf16.mxu0 %v4138_v8  ;;  %2545 = vmatprep.subr.bf16.mxu1 %v4140_v46  ;;  %v2163_v8 = vshll.u32 %v4775_v60, 16  ;;  %v4187_v46 = vcombine.low %v2136_v39, %v2140_v25  ;;  %v4142_v20 = vcombine.high %v2089_v11, %v2093_v47  ;;  %v4141_v27 = vcombine.low %v2089_v11, %v2093_v47  ;;  %v2133_v58 = vld [vmem:[#allocation2 + $0x7b0] sm:$0xff]  ;;  %v2740_v11 = vld [vmem:[#allocation2 + $0x820] sm:$0xff]  ;;  %v2737_v47 = vld [vmem:[#allocation2 + $0x808] sm:$0xff] }
 0x10a   : > { %1981 = vmatprep.mubr.bf16.mxu0 %v4559_v0  ;;  %2034 = vmatprep.mubr.bf16.mxu1 %v4559_v0  ;;  %v2162_v15 = vrot.slane %v2160_v7, 1 }
 0x10b   : > { %v2165_v18 = vrot.slane %v2163_v8, 2 }
 0x10c   : > { %2493 = vmatpush1.bf16.msra.mxu0 %v4137_v12  ;;  %2546 = vmatpush1.bf16.msra.mxu1 %v4139_v13  ;;  %v2090_v12 = vld [vmem:[#allocation2 + $0x658] sm:$0xff] }
 0x10d   : > { %2494 = vmatprep.subr.bf16.mxu0 %v4146_v14  ;;  %2547 = vmatprep.subr.bf16.mxu1 %v4148_v16  ;;  %v2094_v13 = vld [vmem:[#allocation2 + $0x678] sm:$0xff]  ;;  %v4133_v14 = vcombine.low %v2081_v1, %v2085_v55  ;;  %v4781_v16 = vsel %vm2146_vm2, %v2154_v6, %v4726_v4  ;;  %v2166_v28 = vor.u32 %v2165_v18, %v2162_v15 }
 0x10e   : > { %v4143_v29 = vcombine.low %v2090_v12, %v2094_v13  ;;  %v2142_v6 = vld [vmem:[#allocation2 + $0x7f8] sm:$0xff] }
 0x10f   : > { %1982 = vmatmul.mubr.bf16.gmra.mrb[12].mxu0 %v4758_v17  ;;  %2035 = vmatmul.mubr.bf16.gmra.mrb[12].mxu1 %v4758_v17  ;;  %v4170_v17 = vcombine.high %v2119_v34, %v2123_v35  ;;  %v2106_v34 = vld [vmem:[#allocation2 + $0x6d8] sm:$0xff]  ;;  %v4789_v37 = vsel %vm2146_vm2, %v4726_v4, %v2166_v28  ;;  %v2752_v28 = vld [vmem:[#allocation2 + $0x880] sm:$0xff] }
 0x110   : > { %2495 = vmatpush1.bf16.msra.mxu0 %v4145_v21  ;;  %2548 = vmatpush1.bf16.msra.mxu1 %v4147_v63  ;;  %v4144_v21 = vcombine.high %v2090_v12, %v2094_v13  ;;  %v2097_v63 = vld [vmem:[#allocation2 + $0x690] sm:$0xff]  ;;  %v2110_v35 = vld [vmem:[#allocation2 + $0x6f8] sm:$0xff]  ;;  %v2741_v12 = vld [vmem:[#allocation2 + $0x828] sm:$0xff]  ;;  %v4189_v13 = vcombine.low %v2137_v2, %v2141_v3 }
 0x111   : > { %2496 = vmatprep.subr.bf16.mxu0 %v4154_v22  ;;  %2549 = vmatprep.subr.bf16.mxu1 %v4156_v23  ;;  %v2101_v22 = vld [vmem:[#allocation2 + $0x6b0] sm:$0xff]  ;;  %v2098_v23 = vld [vmem:[#allocation2 + $0x698] sm:$0xff]  ;;  %v4159_v4 = vcombine.low %v2106_v34, %v2110_v35  ;;  %v4197_v18 = vcombine.high %v2737_v47, %v2741_v12 }
 0x112   : > { %2522 = vmatprep.mubr.bf16.mxu0 %v4559_v0  ;;  %2575 = vmatprep.mubr.bf16.mxu1 %v4559_v0  ;;  %v4149_v36 = vcombine.low %v2097_v63, %v2101_v22 }
 0x114   : > { %2497 = vmatpush1.bf16.msra.mxu0 %v4153_v30  ;;  %2550 = vmatpush1.bf16.msra.mxu1 %v4155_v31  ;;  %v4150_v30 = vcombine.high %v2097_v63, %v2101_v22  ;;  %v4152_v31 = vcombine.high %v2098_v23, %v2102_v26  ;;  %v2749_v63 = vld [vmem:[#allocation2 + $0x868] sm:$0xff] }
 0x115   : > { %2498 = vmatprep.subr.bf16.mxu0 %v4162_v32  ;;  %2551 = vmatprep.subr.bf16.mxu1 %v4164_v33  ;;  %v2105_v32 = vld [vmem:[#allocation2 + $0x6d0] sm:$0xff] }
 0x116   : > { %v2109_v33 = vld [vmem:[#allocation2 + $0x6f0] sm:$0xff] }
 0x117   : > { %v4157_v48 = vcombine.low %v2105_v32, %v2109_v33 }
 0x118   : > { %2499 = vmatpush1.bf16.msra.mxu0 %v4161_v38  ;;  %2552 = vmatpush1.bf16.msra.mxu1 %v4163_v40  ;;  %v4151_v38 = vcombine.low %v2098_v23, %v2102_v26  ;;  %v4158_v40 = vcombine.high %v2105_v32, %v2109_v33  ;;  %v4196_v23 = vcombine.low %v2737_v47, %v2741_v12 }
 0x119   : > { %2500 = vmatprep.subr.bf16.mxu0 %v4170_v17  ;;  %2553 = vmatprep.subr.bf16.mxu1 %v4172_v41  ;;  %v4160_v17 = vcombine.high %v2106_v34, %v2110_v35  ;;  %v2113_v41 = vld [vmem:[#allocation2 + $0x710] sm:$0xff] }
 0x11a   : > { %v4165_v56 = vcombine.low %v2113_v41, %v2117_v42 }
 0x11c   : > { %2501 = vmatpush1.bf16.msra.mxu0 %v4169_v49  ;;  %2554 = vmatpush1.bf16.msra.mxu1 %v4171_v52  ;;  %v4166_v49 = vcombine.high %v2113_v41, %v2117_v42  ;;  %v2125_v52 = vld [vmem:[#allocation2 + $0x770] sm:$0xff] }
 0x11d   : > { %2502 = vmatprep.subr.bf16.mxu0 %v4178_v53  ;;  %2555 = vmatprep.subr.bf16.mxu1 %v4180_v54  ;;  %v2122_v53 = vld [vmem:[#allocation2 + $0x758] sm:$0xff]  ;;  %v4174_v39 = vcombine.high %v2121_v51, %v2125_v52 }
 0x11e   : > { %v2126_v54 = vld [vmem:[#allocation2 + $0x778] sm:$0xff] }
 0x11f   : > { %v4176_v25 = vcombine.high %v2122_v53, %v2126_v54 }
 0x120   : > { %2503 = vmatpush1.bf16.msra.mxu0 %v4177_v24  ;;  %2556 = vmatpush1.bf16.msra.mxu1 %v4179_v61  ;;  %v2129_v24 = vld [vmem:[#allocation2 + $0x790] sm:$0xff]  ;;  %v2134_v61 = vld [vmem:[#allocation2 + $0x7b8] sm:$0xff] }
 0x121   : > { %2504 = vmatprep.subr.bf16.mxu0 %v4186_v44  ;;  %2557 = vmatprep.subr.bf16.mxu1 %v4188_v62  ;;  %v4173_v44 = vcombine.low %v2121_v51, %v2125_v52  ;;  %v4175_v62 = vcombine.low %v2122_v53, %v2126_v54  ;;  %v4182_v1 = vcombine.high %v2129_v24, %v2133_v58  ;;  %v2776_v54 = vld [vmem:[#allocation2 + $0x940] sm:$0xff] }
 0x122   : > { %v4184_v55 = vcombine.high %v2130_v59, %v2134_v61  ;;  %v4181_v7 = vcombine.low %v2129_v24, %v2133_v58  ;;  %v4183_v8 = vcombine.low %v2130_v59, %v2134_v61  ;;  %v2784_v59 = vld [vmem:[#allocation2 + $0x980] sm:$0xff] }
 0x123   : > { %v2788_v61 = vld [vmem:[#allocation2 + $0x9a0] sm:$0xff] }
 0x124   : > { %2505 = vmatpush1.bf16.msra.mxu0 %v4185_v5  ;;  %2558 = vmatpush1.bf16.msra.mxu1 %v4187_v46  ;;  %v2138_v5 = vld [vmem:[#allocation2 + $0x7d8] sm:$0xff]  ;;  %v4190_v46 = vcombine.high %v2137_v2, %v2141_v3  ;;  %v4243_v2 = vcombine.high %v2784_v59, %v2788_v61  ;;  %v2734_v3 = vld [vmem:[%s4675_s20] sm:$0xc] }
 0x125   : > { %2596 = vmatprep.subr.bf16.mxu0 %v4134_v9  ;;  %2649 = vmatprep.subr.bf16.mxu1 %v4136_v10  ;;  %v4192_v9 = vcombine.high %v2138_v5, %v2142_v6  ;;  %v2736_v10 = vld [vmem:[#allocation2 + $0x800] sm:$0xff] }
 0x126   : > { %v4195_v15 = vcombine.high %v2736_v10, %v2740_v11  ;;  %v4194_v22 = vcombine.low %v2736_v10, %v2740_v11  ;;  %v4481_v10 = vld [vmem:[%s4675_s20 + $0x4] sm:$0xf] }
 0x127   : > { %2523 = vmatmul.mubr.bf16.vlgmr.msra.gmra.mrb[0].mxu0 %v4781_v16  ;;  %2576 = vmatmul.mubr.bf16.vlgmr.msra.gmra.mrb[0].mxu1 %v4781_v16  ;;  %v4193_v11 = vcombine.low %v2734_v3, %v4481_v10 }
 0x128   : > { %2597 = vmatpush1.bf16.msra.mxu0 %v4133_v14  ;;  %2650 = vmatpush1.bf16.msra.mxu1 %v4135_v19  ;;  %v4191_v14 = vcombine.low %v2138_v5, %v2142_v6  ;;  %v2744_v19 = vld [vmem:[#allocation2 + $0x840] sm:$0xff] }
 0x129   : > { %2598 = vmatprep.subr.bf16.mxu0 %v4142_v20  ;;  %2651 = vmatprep.subr.bf16.mxu1 %v4144_v21  ;;  %v2748_v20 = vld [vmem:[#allocation2 + $0x860] sm:$0xff]  ;;  %v2745_v21 = vld [vmem:[#allocation2 + $0x848] sm:$0xff] }
 0x12a   : > { %2532 = vmatprep.mubr.bf16.mxu0 %v4559_v0  ;;  %2585 = vmatprep.mubr.bf16.mxu1 %v4559_v0  ;;  %v4203_v26 = vcombine.high %v2744_v19, %v2748_v20  ;;  %v4202_v32 = vcombine.low %v2744_v19, %v2748_v20  ;;  %v4204_v33 = vcombine.low %v2745_v21, %v2749_v63  ;;  %v2792_v6 = vld [vmem:[#allocation2 + $0x9c0] sm:$0xff]  ;;  %v2743_v19 = vld [vmem:[#allocation2 + $0x838] sm:$0xff] }
 0x12c   : > { %2599 = vmatpush1.bf16.msra.mxu0 %v4141_v27  ;;  %2652 = vmatpush1.bf16.msra.mxu1 %v4143_v29  ;;  %v4205_v27 = vcombine.high %v2745_v21, %v2749_v63  ;;  %v2756_v29 = vld [vmem:[#allocation2 + $0x8a0] sm:$0xff]  ;;  %v2804_v21 = vrot.slane %v4193_v11, 2  ;;  %v4482_v63 = vld [vmem:[%s4675_s20 + $0x8] sm:$0xff]  }
 0x12d   : > { %2600 = vmatprep.subr.bf16.mxu0 %v4150_v30  ;;  %2653 = vmatprep.subr.bf16.mxu1 %v4152_v31  ;;  %v2753_v30 = vld [vmem:[#allocation2 + $0x888] sm:$0xff]  ;;  %v4211_v34 = vcombine.high %v2752_v28, %v2756_v29  ;;  %v4210_v41 = vcombine.low %v2752_v28, %v2756_v29  ;;  %v2746_v28 = vld [vmem:[#allocation2 + $0x850] sm:$0xff] }
 0x12e   : > { %v2757_v31 = vld [vmem:[#allocation2 + $0x8a8] sm:$0xff]  ;;  %v2750_v29 = vld [vmem:[#allocation2 + $0x870] sm:$0xff] }
 0x12f   : > { %2533 = vmatmul.mubr.bf16.gmra.mrb[4].mxu0 %v4789_v37  ;;  %2586 = vmatmul.mubr.bf16.gmra.mrb[4].mxu1 %v4789_v37  ;;  %v4213_v35 = vcombine.high %v2753_v30, %v2757_v31 }
 0x130   : > { %2601 = vmatpush1.bf16.msra.mxu0 %v4149_v36  ;;  %2654 = vmatpush1.bf16.msra.mxu1 %v4151_v38  ;;  %v2760_v36 = vld [vmem:[#allocation2 + $0x8c0] sm:$0xff] }
 0x131   : > { %2602 = vmatprep.subr.bf16.mxu0 %v4158_v40  ;;  %2655 = vmatprep.subr.bf16.mxu1 %v4160_v17  ;;  %v2764_v38 = vld [vmem:[#allocation2 + $0x8e0] sm:$0xff]  ;;  %v2761_v40 = vld [vmem:[#allocation2 + $0x8c8] sm:$0xff] }
 0x132   : > { %2628 = vmatprep.mubr.bf16.mxu0 %v4559_v0  ;;  %2681 = vmatprep.mubr.bf16.mxu1 %v4559_v0  ;;  %v2765_v17 = vld [vmem:[#allocation2 + $0x8e8] sm:$0xff]  ;;  %v4219_v42 = vcombine.high %v2760_v36, %v2764_v38 }
 0x133   : > { %v4221_v43 = vcombine.high %v2761_v40, %v2765_v17  ;;  %v4220_v51 = vcombine.low %v2761_v40, %v2765_v17  ;;  %v2758_v40 = vld [vmem:[#allocation2 + $0x8b0] sm:$0xff]  ;;  %v2755_v17 = vld [vmem:[#allocation2 + $0x898] sm:$0xff] }
 0x134   : > { %2603 = vmatpush1.bf16.msra.mxu0 %v4157_v48  ;;  %2656 = vmatpush1.bf16.msra.mxu1 %v4159_v4  ;;  %v2772_v48 = vld [vmem:[#allocation2 + $0x920] sm:$0xff]  ;;  %v2769_v4 = vld [vmem:[#allocation2 + $0x908] sm:$0xff] }
 0x135   : > { %2604 = vmatprep.subr.bf16.mxu0 %v4166_v49  ;;  %2657 = vmatprep.subr.bf16.mxu1 %v4168_v50  ;;  %v2773_v49 = vld [vmem:[#allocation2 + $0x928] sm:$0xff]  ;;  %v4218_v50 = vcombine.low %v2760_v36, %v2764_v38  ;;  %v4227_v52 = vcombine.high %v2768_v45, %v2772_v48  ;;  %v2754_v38 = vld [vmem:[#allocation2 + $0x890] sm:$0xff] }
 0x136   : > { %v4229_v53 = vcombine.high %v2769_v4, %v2773_v49 }
 0x138   : > { %2605 = vmatpush1.bf16.msra.mxu0 %v4165_v56  ;;  %2658 = vmatpush1.bf16.msra.mxu1 %v4167_v57  ;;  %v2780_v56 = vld [vmem:[#allocation2 + $0x960] sm:$0xff]  ;;  %v2777_v57 = vld [vmem:[#allocation2 + $0x948] sm:$0xff] }
 0x139   : > { %2606 = vmatprep.subr.bf16.mxu0 %v4174_v39  ;;  %2659 = vmatprep.subr.bf16.mxu1 %v4176_v25  ;;  %v2781_v39 = vld [vmem:[#allocation2 + $0x968] sm:$0xff]  ;;  %v4226_v25 = vcombine.low %v2768_v45, %v2772_v48  ;;  %v4235_v24 = vcombine.high %v2776_v54, %v2780_v56  ;;  %v4215_v45 = vcombine.high %v2754_v38, %v2758_v40 }
 0x13a   : > { %v4237_v58 = vcombine.high %v2777_v57, %v2781_v39 }
 0x13c   : > { %2607 = vmatpush1.bf16.msra.mxu0 %v4173_v44  ;;  %2660 = vmatpush1.bf16.msra.mxu1 %v4175_v62  ;;  %v2785_v44 = vld [vmem:[#allocation2 + $0x988] sm:$0xff] }
 0x13d   : > { %2608 = vmatprep.subr.bf16.mxu0 %v4182_v1  ;;  %2661 = vmatprep.subr.bf16.mxu1 %v4184_v55  ;;  %v2789_v62 = vld [vmem:[#allocation2 + $0x9a8] sm:$0xff]  ;;  %v4234_v1 = vcombine.low %v2776_v54, %v2780_v56  ;;  %v4236_v55 = vcombine.low %v2777_v57, %v2781_v39  ;;  %v2770_v57 = vld [vmem:[#allocation2 + $0x910] sm:$0xff] }
 0x13e   : > { %v4245_v5 = vcombine.high %v2785_v44, %v2789_v62  ;;  %v4244_v47 = vcombine.low %v2785_v44, %v2789_v62  ;;  %v2774_v39 = vld [vmem:[#allocation2 + $0x930] sm:$0xff] }
 0x13f   : > { %v2778_v44 = vld [vmem:[#allocation2 + $0x950] sm:$0xff] }
 0x140   : > { %2609 = vmatpush1.bf16.msra.mxu0 %v4181_v7  ;;  %2662 = vmatpush1.bf16.msra.mxu1 %v4183_v8  ;;  %v2796_v7 = vld [vmem:[#allocation2 + $0x9e0] sm:$0xff]  ;;  %v2793_v8 = vld [vmem:[#allocation2 + $0x9c8] sm:$0xff]  ;;  %v2782_v62 = vld [vmem:[#allocation2 + $0x970] sm:$0xff] }
 0x141   : > { %2610 = vmatprep.subr.bf16.mxu0 %v4190_v46  ;;  %2663 = vmatprep.subr.bf16.mxu1 %v4192_v9  ;;  %v2797_v46 = vld [vmem:[#allocation2 + $0x9e8] sm:$0xff]  ;;  %v4242_v9 = vcombine.low %v2784_v59, %v2788_v61  ;;  %v4251_v12 = vcombine.high %v2792_v6, %v2796_v7  ;;  %v4250_v20 = vcombine.low %v2792_v6, %v2796_v7  ;;  %v2786_v7 = vld [vmem:[#allocation2 + $0x990] sm:$0xff] }
 0x142   : > { %v4231_v59 = vcombine.high %v2770_v57, %v2774_v39  ;;  %v4238_v10 = vcombine.low %v2778_v44, %v2782_v62 }
 0x144   : > { %2611 = vmatpush1.bf16.msra.mxu0 %v4189_v13  ;;  %2664 = vmatpush1.bf16.msra.mxu1 %v4191_v14  ;;  %v4253_v13 = vcombine.high %v2793_v8, %v2797_v46  ;;  %v2738_v14 = vld [vmem:[#allocation2 + $0x810] sm:$0xff] }
 0x145   : > { %3131 = vmatprep.subr.bf16.mxu0 %v4195_v15  ;;  %3184 = vmatprep.subr.bf16.mxu1 %v4197_v18  ;;  %v2742_v15 = vld [vmem:[#allocation2 + $0x830] sm:$0xff]  ;;  %v2739_v18 = vld [vmem:[#allocation2 + $0x818] sm:$0xff] }
 0x147   : > { %2629 = vmatmul.mubr.bf16.vlgmr.msra.gmra.mrb[8].mxu0 %v4781_v16  ;;  %2682 = vmatmul.mubr.bf16.vlgmr.msra.gmra.mrb[8].mxu1 %v4781_v16  ;;  %v4212_v16 = vcombine.low %v2753_v30, %v2757_v31  ;;  %v2747_v30 = vld [vmem:[#allocation2 + $0x858] sm:$0xff] }
 0x148   : > { %3132 = vmatpush1.bf16.msra.mxu0 %v4194_v22  ;;  %3185 = vmatpush1.bf16.msra.mxu1 %v4196_v23  ;;  %v2805_v22 = vrot.slane %v4482_v63, 2  ;;  %v4252_v23 = vcombine.low %v2793_v8, %v2797_v46  ;;  %v2751_v31 = vld [vmem:[#allocation2 + $0x878] sm:$0xff]  ;;  %v2790_v8 = vld [vmem:[#allocation2 + $0x9b0] sm:$0xff] }
 0x149   : > { %3133 = vmatprep.subr.bf16.mxu0 %v4203_v26  ;;  %3186 = vmatprep.subr.bf16.mxu1 %v4205_v27  ;;  %v4199_v26 = vcombine.high %v2738_v14, %v2742_v15  ;;  %v4201_v27 = vcombine.high %v2739_v18, %v2743_v19  ;;  %v4209_v36 = vcombine.high %v2747_v30, %v2751_v31  ;;  %v2787_v46 = vld [vmem:[#allocation2 + $0x998] sm:$0xff] }
 0x14a   : > { %2638 = vmatprep.mubr.bf16.mxu0 %v4559_v0  ;;  %2691 = vmatprep.mubr.bf16.mxu1 %v4559_v0 }
 0x14c   : > { %3134 = vmatpush1.bf16.msra.mxu0 %v4202_v32  ;;  %3187 = vmatpush1.bf16.msra.mxu1 %v4204_v33  ;;  %v4807_v32 = vsel %vm2803_vm3, %v2804_v21, %v2805_v22  ;;  %v4198_v33 = vcombine.low %v2738_v14, %v2742_v15  ;;  %v2798_v14 = vld [vmem:[#allocation2 + $0x9f0] sm:$0xff]  ;;  %v2795_v15 = vld [vmem:[#allocation2 + $0x9d8] sm:$0xff] }
 0x14d   : > { %3135 = vmatprep.subr.bf16.mxu0 %v4211_v34  ;;  %3188 = vmatprep.subr.bf16.mxu1 %v4213_v35  ;;  %v4200_v34 = vcombine.low %v2739_v18, %v2743_v19  ;;  %v4207_v35 = vcombine.high %v2746_v28, %v2750_v29  ;;  %v2799_v18 = vld [vmem:[#allocation2 + $0x9f8] sm:$0xff]  ;;  %v4246_v19 = vcombine.low %v2786_v7, %v2790_v8 }
 0x14e   : > { %v4257_v63 = vcombine.high %v2795_v15, %v2799_v18 }
 0x14f   : > { %2639 = vmatmul.mubr.bf16.gmra.mrb[12].mxu0 %v4789_v37  ;;  %2692 = vmatmul.mubr.bf16.gmra.mrb[12].mxu1 %v4789_v37  ;;  %v4228_v37 = vcombine.low %v2769_v4, %v2773_v49  ;;  %v2762_v4 = vld [vmem:[#allocation2 + $0x8d0] sm:$0xff] }
 0x150   : > { %3136 = vmatpush1.bf16.msra.mxu0 %v4210_v41  ;;  %3189 = vmatpush1.bf16.msra.mxu1 %v4212_v16  ;;  %v2759_v41 = vld [vmem:[#allocation2 + $0x8b8] sm:$0xff]  ;;  %v4206_v16 = vcombine.low %v2746_v28, %v2750_v29  ;;  %v2766_v49 = vld [vmem:[#allocation2 + $0x8f0] sm:$0xff] }
 0x151   : > { %3137 = vmatprep.subr.bf16.mxu0 %v4219_v42  ;;  %3190 = vmatprep.subr.bf16.mxu1 %v4221_v43  ;;  %v2807_v42 = vrot.slane %v4775_v60, 2  ;;  %v4208_v43 = vcombine.low %v2747_v30, %v2751_v31  ;;  %v4217_v48 = vcombine.high %v2755_v17, %v2759_v41  ;;  %v4216_v60 = vcombine.low %v2755_v17, %v2759_v41 }
 0x152   : > { %3163 = vmatprep.mubr.bf16.mxu0 %v4559_v0  ;;  %3216 = vmatprep.mubr.bf16.mxu1 %v4559_v0  ;;  %v4223_v54 = vcombine.high %v2762_v4, %v2766_v49 }
 0x154   : > { %3138 = vmatpush1.bf16.msra.mxu0 %v4218_v50  ;;  %3191 = vmatpush1.bf16.msra.mxu1 %v4220_v51  ;;  %v2763_v50 = vld [vmem:[#allocation2 + $0x8d8] sm:$0xff] }
 0x155   : > { %3139 = vmatprep.subr.bf16.mxu0 %v4227_v52  ;;  %3192 = vmatprep.subr.bf16.mxu1 %v4229_v53  ;;  %v2767_v51 = vld [vmem:[#allocation2 + $0x8f8] sm:$0xff]  ;;  %v4815_v52 = vsel %vm2803_vm3, %v2805_v22, %v2807_v42  ;;  %v4214_v53 = vcombine.low %v2754_v38, %v2758_v40  ;;  %v3377_v42 = vlaneseq }
 0x156   : > { %v4225_v56 = vcombine.high %v2763_v50, %v2767_v51 }
 0x158   : > { %3140 = vmatpush1.bf16.msra.mxu0 %v4226_v25  ;;  %3193 = vmatpush1.bf16.msra.mxu1 %v4228_v37  ;;  %v2771_v25 = vld [vmem:[#allocation2 + $0x918] sm:$0xff] }
 0x159   : > { %3141 = vmatprep.subr.bf16.mxu0 %v4235_v24  ;;  %3194 = vmatprep.subr.bf16.mxu1 %v4237_v58  ;;  %v2775_v37 = vld [vmem:[#allocation2 + $0x938] sm:$0xff]  ;;  %v4222_v24 = vcombine.low %v2762_v4, %v2766_v49  ;;  %v4224_v58 = vcombine.low %v2763_v50, %v2767_v51 }
 0x15a   : > { %v4233_v61 = vcombine.high %v2771_v25, %v2775_v37  ;;  %v4232_v3 = vcombine.low %v2771_v25, %v2775_v37 }
 0x15c   : > { %3142 = vmatpush1.bf16.msra.mxu0 %v4234_v1  ;;  %3195 = vmatpush1.bf16.msra.mxu1 %v4236_v55  ;;  %v2779_v1 = vld [vmem:[#allocation2 + $0x958] sm:$0xff] }
 0x15d   : > { %3143 = vmatprep.subr.bf16.mxu0 %v4243_v2  ;;  %3196 = vmatprep.subr.bf16.mxu1 %v4245_v5  ;;  %v2783_v55 = vld [vmem:[#allocation2 + $0x978] sm:$0xff]  ;;  %v4230_v2 = vcombine.low %v2770_v57, %v2774_v39  ;;  %v4239_v5 = vcombine.high %v2778_v44, %v2782_v62 }
 0x15e   : > { %v4241_v6 = vcombine.high %v2779_v1, %v2783_v55  ;;  %v4240_v11 = vcombine.low %v2779_v1, %v2783_v55 }
 0x160   : > { %3144 = vmatpush1.bf16.msra.mxu0 %v4242_v9  ;;  %3197 = vmatpush1.bf16.msra.mxu1 %v4244_v47  ;;  %v2791_v9 = vld [vmem:[#allocation2 + $0x9b8] sm:$0xff]  ;;  %v4247_v47 = vcombine.high %v2786_v7, %v2790_v8 }
 0x161   : > { %3145 = vmatprep.subr.bf16.mxu0 %v4251_v12  ;;  %3198 = vmatprep.subr.bf16.mxu1 %v4253_v13  ;;  %v4249_v12 = vcombine.high %v2787_v46, %v2791_v9  ;;  %v2794_v13 = vld [vmem:[#allocation2 + $0x9d0] sm:$0xff] }
 0x162   : > { %v4255_v21 = vcombine.high %v2794_v13, %v2798_v14  ;;  %v4254_v22 = vcombine.low %v2794_v13, %v2798_v14 }
 0x164   : > { %3146 = vmatpush1.bf16.msra.mxu0 %v4250_v20  ;;  %3199 = vmatpush1.bf16.msra.mxu1 %v4252_v23  ;;  %v4248_v20 = vcombine.low %v2787_v46, %v2791_v9  ;;  %v4256_v23 = vcombine.low %v2795_v15, %v2799_v18 }
 0x165   : > { %3237 = vmatprep.subr.bf16.mxu0 %v4199_v26  ;;  %3290 = vmatprep.subr.bf16.mxu1 %v4201_v27  ;;  %v4560_v26 = vmov 0.0  }
 0x167   : > { %3164 = vmatmul.mubr.bf16.vlgmr.msra.gmra.mrb[0].mxu0 %v4807_v32  ;;  %3217 = vmatmul.mubr.bf16.vlgmr.msra.gmra.mrb[0].mxu1 %v4807_v32 }
 0x168   : > { %3238 = vmatpush1.bf16.msra.mxu0 %v4198_v33  ;;  %3291 = vmatpush1.bf16.msra.mxu1 %v4200_v34 }
 0x169   : > { %3239 = vmatprep.subr.bf16.mxu0 %v4207_v35  ;;  %3292 = vmatprep.subr.bf16.mxu1 %v4209_v36 }
 0x16a   : > { %3173 = vmatprep.mubr.bf16.mxu0 %v4559_v0  ;;  %3226 = vmatprep.mubr.bf16.mxu1 %v4559_v0 }
 0x16c   : > { %3240 = vmatpush1.bf16.msra.mxu0 %v4206_v16  ;;  %3293 = vmatpush1.bf16.msra.mxu1 %v4208_v43  ;;  %v4839_v43 = vshrl.u32 %v3377_v42, 7 }
 0x16d   : > { %3241 = vmatprep.subr.bf16.mxu0 %v4215_v45  ;;  %3294 = vmatprep.subr.bf16.mxu1 %v4217_v48  ;;  %v3375_v48 = vld [vmem:[#allocation4] sm:$0xff] }
 0x16e   : > { %v3379_v45 = vsub.s32 0, %v4839_v43  ;;  %v3387_v4 = vsub.s32 2, %v4839_v43  ;;  %v3383_v49 = vsub.s32 1, %v4839_v43  ;;  %v3391_v50 = vsub.s32 3, %v4839_v43 }
 0x16f   : > { %3174 = vmatmul.mubr.bf16.gmra.mrb[4].mxu0 %v4815_v52  ;;  %3227 = vmatmul.mubr.bf16.gmra.mrb[4].mxu1 %v4815_v52  ;;  %v3395_v51 = vsub.s32 4, %v4839_v43 }
 0x170   : > { %3242 = vmatpush1.bf16.msra.mxu0 %v4214_v53  ;;  %3295 = vmatpush1.bf16.msra.mxu1 %v4216_v60  ;;  %v3399_v53 = vsub.s32 5, %v4839_v43  ;;  %v3407_v60 = vsub.s32 7, %v4839_v43  ;;  %v3384_v57 = vrot.slane %v3375_v48, %v3383_v49  ;;  %v4849_v39 = vrot.slane %v3375_v48, %v3391_v50 }
 0x171   : > { %3243 = vmatprep.subr.bf16.mxu0 %v4223_v54  ;;  %3296 = vmatprep.subr.bf16.mxu1 %v4225_v56  ;;  %v3380_v54 = vrot.slane %v3375_v48, %v3379_v45  ;;  %v3388_v56 = vrot.slane %v3375_v48, %v3387_v4  ;;  %v3396_v25 = vrot.slane %v3375_v48, %v3395_v51  ;;  %v3470_v45 = vmul.u32 2, %v4839_v43 }
 0x172   : > { %3269 = vmatprep.mubr.bf16.mxu0 %v4559_v0  ;;  %3322 = vmatprep.mubr.bf16.mxu1 %v4559_v0 }
 0x174   : > { %3244 = vmatpush1.bf16.msra.mxu0 %v4222_v24  ;;  %3297 = vmatpush1.bf16.msra.mxu1 %v4224_v58  ;;  %v4853_v24 = vrot.slane %v3375_v48, %v3399_v53  ;;  %v4855_v58 = vrot.slane %v3375_v48, %v3407_v60 }
 0x175   : > { %3245 = vmatprep.subr.bf16.mxu0 %v4231_v59  ;;  %3298 = vmatprep.subr.bf16.mxu1 %v4233_v61 }
 0x178   : > { %3246 = vmatpush1.bf16.msra.mxu0 %v4230_v2  ;;  %3299 = vmatpush1.bf16.msra.mxu1 %v4232_v3 }
 0x179   : > { %3247 = vmatprep.subr.bf16.mxu0 %v4239_v5  ;;  %3300 = vmatprep.subr.bf16.mxu1 %v4241_v6 }
 0x17c   : > { %3248 = vmatpush1.bf16.msra.mxu0 %v4238_v10  ;;  %3301 = vmatpush1.bf16.msra.mxu1 %v4240_v11 }
 0x17d   : > { %3249 = vmatprep.subr.bf16.mxu0 %v4247_v47  ;;  %3302 = vmatprep.subr.bf16.mxu1 %v4249_v12 }
 0x180   : > { %3250 = vmatpush1.bf16.msra.mxu0 %v4246_v19  ;;  %3303 = vmatpush1.bf16.msra.mxu1 %v4248_v20 }
 0x181   : > { %3251 = vmatprep.subr.bf16.mxu0 %v4255_v21  ;;  %3304 = vmatprep.subr.bf16.mxu1 %v4257_v63 }
 0x184   : > { %3252 = vmatpush1.bf16.msra.mxu0 %v4254_v22  ;;  %3305 = vmatpush1.bf16.msra.mxu1 %v4256_v23 }
 0x187   : > { %3270 = vmatmul.mubr.bf16.vlgmr.msra.gmra.mrb[8].mxu0 %v4807_v32  ;;  %3323 = vmatmul.mubr.bf16.vlgmr.msra.gmra.mrb[8].mxu1 %v4807_v32 }
 0x188   : > { %3279 = vmatprep.mubr.bf16.mxu0 %v4559_v0  ;;  %3332 = vmatprep.mubr.bf16.mxu1 %v4559_v0 }
 0x18f   : > { %3280 = vmatmul.mubr.bf16.gmra.mrb[12].mxu0 %v4815_v52  ;;  %3333 = vmatmul.mubr.bf16.gmra.mrb[12].mxu1 %v4815_v52  ;;  %v3403_v52 = vsub.s32 6, %v4839_v43 }
 0x190   : > { %3557 = vmatprep.mubr.f32.mxu0 %v4560_v26  ;;  %3634 = vmatprep.mubr.f32.mxu1 %v4560_v26 }
 0x191   : > { %v4851_v37 = vrot.slane %v3375_v48, %v3403_v52 }
 0x23a   : > { %v3165_v27 = vpop.f32.mrb[0].mxu0  ;;  %v3218_v28 = vpop.f32.mrb[0].mxu1 }
 0x23b   : > { %v3167_v29 = vpop.f32.mrb[1].mxu0  ;;  %v3220_v30 = vpop.f32.mrb[1].mxu1  ;;  %v3417_v59 = vadd.f32 %v3380_v54, %v3165_v27  ;;  %v3419_v44 = vadd.f32 %v3388_v56, %v3218_v28 }
 0x23c   : > { %v3169_v31 = vpop.f32.mrb[2].mxu0  ;;  %v3222_v33 = vpop.f32.mrb[2].mxu1  ;;  %v3418_v62 = vadd.f32 %v3384_v57, %v3167_v29  ;;  %v3420_v1 = vadd.f32 %v4849_v39, %v3220_v30  ;;  %v4865_v30 = vand.u32 127, %v3377_v42 }
 0x23d   : > { %v3171_v32 = vpop.f32.mrb[3].mxu0  ;;  %v3224_v34 = vpop.f32.mrb[3].mxu1  ;;  %v3425_v5 = vadd.f32 %v3380_v54, %v3169_v31  ;;  %v3427_v6 = vadd.f32 %v3388_v56, %v3222_v33 }
 0x23e   : > { %v3426_v10 = vadd.f32 %v3384_v57, %v3171_v32  ;;  %v3428_v63 = vadd.f32 %v4849_v39, %v3224_v34  ;;  %vm3472_vm4 = vcmp.eq.s32.totalorder %v4865_v30, %v3470_v45 }
 0x242   : > { %v3175_v35 = vpop.f32.mrb[4].mxu0  ;;  %v3228_v36 = vpop.f32.mrb[4].mxu1 }
 0x243   : > { %v3177_v0 = vpop.f32.mrb[5].mxu0  ;;  %v4829_v38 = vpop.f32.mrb[5].mxu1  ;;  %v3433_v31 = vadd.f32 %v3380_v54, %v3175_v35  ;;  %v3435_v48 = vadd.f32 %v3388_v56, %v3228_v36 }
 0x244   : > { %v4831_v40 = vpop.f32.mrb[6].mxu0  ;;  %v4833_v17 = vpop.f32.mrb[6].mxu1  ;;  %v3434_v4 = vadd.f32 %v3384_v57, %v3177_v0  ;;  %v3436_v34 = vadd.f32 %v4849_v39, %v4829_v38 }
 0x245   : > { %v4835_v41 = vpop.f32.mrb[7].mxu0  ;;  %v4837_v16 = vpop.f32.mrb[7].mxu1  ;;  %v3441_v52 = vadd.f32 %v3380_v54, %v4831_v40  ;;  %v3443_v35 = vadd.f32 %v3388_v56, %v4833_v17 }
 0x25a   : > { %v3271_v61 = vpop.f32.mrb[8].mxu0  ;;  %v3324_v2 = vpop.f32.mrb[8].mxu1 }
 0x25b   : > { %v3421_v55 = vadd.f32 %v3396_v25, %v3271_v61  ;;  %v3273_v3 = vpop.f32.mrb[9].mxu0  ;;  %v3423_v7 = vadd.f32 %v4851_v37, %v3324_v2  ;;  %v3326_v46 = vpop.f32.mrb[9].mxu1  ;;  %v3442_v61 = vadd.f32 %v3384_v57, %v4835_v41  ;;  %v3467_v2 = vadd.s32 8, %v4839_v43 }
 0x25c   : > { %v3422_v8 = vadd.f32 %v4853_v24, %v3273_v3  ;;  %v3275_v9 = vpop.f32.mrb[10].mxu0  ;;  %v3424_v47 = vadd.f32 %v4855_v58, %v3326_v46  ;;  %v3328_v13 = vpop.f32.mrb[10].mxu1 }
 0x25d   : > { %v3449_v11 = vmax.f32 %v3417_v59, %v3421_v55  ;;  %v3429_v12 = vadd.f32 %v3396_v25, %v3275_v9  ;;  %v3277_v14 = vpop.f32.mrb[11].mxu0  ;;  %v3451_v15 = vmax.f32 %v3419_v44, %v3423_v7  ;;  %v3431_v19 = vadd.f32 %v4851_v37, %v3328_v13  ;;  %v3330_v21 = vpop.f32.mrb[11].mxu1 }
 0x25e   : > { %v3450_v18 = vmax.f32 %v3418_v62, %v3422_v8  ;;  %v3430_v20 = vadd.f32 %v4853_v24, %v3277_v14  ;;  %v3452_v22 = vmax.f32 %v3420_v1, %v3424_v47  ;;  %v3432_v27 = vadd.f32 %v4855_v58, %v3330_v21 }
 0x25f   : > { %v3453_v23 = vmax.f32 %v3425_v5, %v3429_v12  ;;  %v3455_v28 = vmax.f32 %v3427_v6, %v3431_v19  ;;  %v3444_v5 = vadd.f32 %v4849_v39, %v4837_v16  ;;  %v3478_v16 = vadd.s32 1, %v3470_v45 }
 0x260   : > { %v3454_v29 = vmax.f32 %v3426_v10, %v3430_v20  ;;  %v3456_v32 = vmax.f32 %v3428_v63, %v3432_v27 }
 0x261   : > { %v4283_v33 = vpack.c.bf16 %v3453_v23, %v3449_v11  ;;  %v4291_v49 = vpack.c.bf16 %v3455_v28, %v3451_v15  ;;  %vm3480_vm7 = vcmp.eq.s32.totalorder %v4865_v30, %v3478_v16 }
 0x262   : > { %v3281_v50 = vpop.f32.mrb[12].mxu0  ;;  %v4281_v51 = vpack.c.bf16 %v3454_v29, %v3450_v18  ;;  %v3334_v60 = vpop.f32.mrb[12].mxu1  ;;  %v4289_v42 = vpack.c.bf16 %v3456_v32, %v3452_v22  ;;  %v4260_v12 = vsel %vm3480_vm7, 1.0, %v4560_v26 }
 0x263   : > { %v3437_v53 = vadd.f32 %v3396_v25, %v3281_v50  ;;  %v3283_v59 = vpop.f32.mrb[13].mxu0  ;;  %v3439_v44 = vadd.f32 %v4851_v37, %v3334_v60  ;;  %v3336_v0 = vpop.f32.mrb[13].mxu1 }
 0x264   : > { %v3438_v36 = vadd.f32 %v4853_v24, %v3283_v59  ;;  %v3285_v62 = vpop.f32.mrb[14].mxu0  ;;  %4282 = vmatprep.subr.bf16.mxu0 %v4281_v51  ;;  %v3440_v38 = vadd.f32 %v4855_v58, %v3336_v0  ;;  %v3338_v40 = vpop.f32.mrb[14].mxu1  ;;  %4290 = vmatprep.subr.bf16.mxu1 %v4289_v42 }
 0x265   : > { %v3457_v1 = vmax.f32 %v3433_v31, %v3437_v53  ;;  %v3445_v55 = vadd.f32 %v3396_v25, %v3285_v62  ;;  %v3287_v54 = vpop.f32.mrb[15].mxu0  ;;  %4284 = vmatpush1.bf16.msra.mxu0 %v4283_v33  ;;  %v3459_v17 = vmax.f32 %v3435_v48, %v3439_v44  ;;  %v3447_v41 = vadd.f32 %v4851_v37, %v3338_v40  ;;  %v3340_v3 = vpop.f32.mrb[15].mxu1 }
 0x266   : > { %v3458_v56 = vmax.f32 %v3434_v4, %v3438_v36  ;;  %v3446_v57 = vadd.f32 %v4853_v24, %v3287_v54  ;;  %4292 = vmatpush1.bf16.msra.mxu1 %v4291_v49  ;;  %v3460_v6 = vmax.f32 %v3436_v34, %v3440_v38  ;;  %v3448_v25 = vadd.f32 %v4855_v58, %v3340_v3 }
 0x267   : > { %v3461_v7 = vmax.f32 %v3441_v52, %v3445_v55  ;;  %v3463_v8 = vmax.f32 %v3443_v35, %v3447_v41  ;;  %v3471_v37 = vmul.u32 2, %v3467_v2  ;;  %v4258_v24 = vsel %vm3472_vm4, 1.0, %v4560_v26 }
 0x268   : > { %v3462_v46 = vmax.f32 %v3442_v61, %v3446_v57  ;;  %v3464_v10 = vmax.f32 %v3444_v5, %v3448_v25 }
 0x269   : > { %v4287_v9 = vpack.c.bf16 %v3461_v7, %v3457_v1  ;;  %v4295_v43 = vpack.c.bf16 %v3463_v8, %v3459_v17  ;;  %vm3473_vm6 = vcmp.eq.s32.totalorder %v4865_v30, %v3471_v37  ;;  %v3479_v58 = vadd.s32 1, %v3471_v37 }
 0x26a   : > { %v4285_v11 = vpack.c.bf16 %v3462_v46, %v3458_v56  ;;  %v4293_v47 = vpack.c.bf16 %v3464_v10, %v3460_v6  ;;  %v4259_v39 = vsel %vm3473_vm6, 1.0, %v4560_v26 }
 0x26b   : > { %vm3481_vm8 = vcmp.eq.s32.totalorder %v4865_v30, %v3479_v58 }
 0x26c   : > { %4286 = vmatprep.subr.bf16.mxu0 %v4285_v11  ;;  %4294 = vmatprep.subr.bf16.mxu1 %v4293_v47  ;;  %v4261_v13 = vsel %vm3481_vm8, 1.0, %v4560_v26 }
 0x26d   : > { %4288 = vmatpush1.bf16.msra.mxu0 %v4287_v9  ;;  %4296 = vmatpush1.bf16.msra.mxu1 %v4295_v43 }
 0x26e   : > { %4298 = vmatprep.subr.bf16.mxu0 %v4281_v51  ;;  %4306 = vmatprep.subr.bf16.mxu1 %v4289_v42 }
 0x270   : > { %4262 = vmatmul.mubr.msk.f32.vlgmr.msra.gmra.mrb[16].mxu0 %vm3486_vm5, %v4258_v24  ;;  %4264 = vmatmul.mubr.msk.f32.vlgmr.msra.gmra.mrb[16].mxu1 %vm3486_vm5, %v4258_v24 }
 0x271   : > { %4300 = vmatpush1.bf16.msra.mxu0 %v4283_v33  ;;  %4308 = vmatpush1.bf16.msra.mxu1 %v4291_v49 }
 0x272   : > { %4302 = vmatprep.subr.bf16.mxu0 %v4285_v11  ;;  %4310 = vmatprep.subr.bf16.mxu1 %v4293_v47 }
 0x273   : > { %3563 = vmatprep.mubr.f32.mxu0 %v4560_v26  ;;  %3640 = vmatprep.mubr.f32.mxu1 %v4560_v26 }
 0x274   : > { %4263 = vmatmul.mubr.msk.f32.gmra.mrb[18].mxu0 %vm3486_vm5, %v4259_v39  ;;  %4265 = vmatmul.mubr.msk.f32.gmra.mrb[18].mxu1 %vm3486_vm5, %v4259_v39 }
 0x275   : > { %4304 = vmatpush1.bf16.msra.mxu0 %v4287_v9  ;;  %4312 = vmatpush1.bf16.msra.mxu1 %v4295_v43 }
 0x276   : > { %3717 = vmatprep.mubr.f32.mxu0 %v4560_v26  ;;  %3794 = vmatprep.mubr.f32.mxu1 %v4560_v26 }
 0x278   : > { %4266 = vmatmul.mubr.msk.f32.vlgmr.msra.gmra.mrb[20].mxu0 %vm3486_vm5, %v4260_v12  ;;  %4268 = vmatmul.mubr.msk.f32.vlgmr.msra.gmra.mrb[20].mxu1 %vm3486_vm5, %v4260_v12 }
 0x279   : > { %3723 = vmatprep.mubr.f32.mxu0 %v4560_v26  ;;  %3800 = vmatprep.mubr.f32.mxu1 %v4560_v26 }
 0x27c   : > { %4267 = vmatmul.mubr.msk.f32.gmra.mrb[22].mxu0 %vm3486_vm5, %v4261_v13  ;;  %4269 = vmatmul.mubr.msk.f32.gmra.mrb[22].mxu1 %vm3486_vm5, %v4261_v13 }
 0x343   : > { %v3559_v14 = vpop.f32.mrb[16].mxu0  ;;  %v3636_v15 = vpop.f32.mrb[16].mxu1 }
 0x344   : > { %v3561_v18 = vpop.f32.mrb[17].mxu0  ;;  %v3638_v19 = vpop.f32.mrb[17].mxu1 }
 0x347   : > { %v3565_v20 = vpop.f32.mrb[18].mxu0  ;;  %v3642_v21 = vpop.f32.mrb[18].mxu1 }
 0x348   : > { %v3567_v63 = vpop.f32.mrb[19].mxu0  ;;  %v3644_v22 = vpop.f32.mrb[19].mxu1 }
 0x34b   : > { %v3719_v23 = vpop.f32.mrb[20].mxu0  ;;  %v3796_v28 = vpop.f32.mrb[20].mxu1 }
 0x34c   : > { %v3807_v27 = vmax.f32 %v3559_v14, %v3719_v23  ;;  %v3721_v29 = vpop.f32.mrb[21].mxu0  ;;  %v3809_v30 = vmax.f32 %v3636_v15, %v3796_v28  ;;  %v3798_v26 = vpop.f32.mrb[21].mxu1 }
 0x34d   : > { %v3808_v31 = vmax.f32 %v3561_v18, %v3721_v29  ;;  %v3810_v33 = vmax.f32 %v3638_v19, %v3798_v26 }
 0x34f   : > { %v4277_v32 = vpack.c.bf16 %v3808_v31, %v3807_v27  ;;  %v3725_v45 = vpop.f32.mrb[22].mxu0  ;;  %v4278_v48 = vpack.c.bf16 %v3810_v33, %v3809_v30  ;;  %v3802_v49 = vpop.f32.mrb[22].mxu1 }
 0x350   : > { %v3811_v4 = vmax.f32 %v3565_v20, %v3725_v45  ;;  %v3727_v50 = vpop.f32.mrb[23].mxu0  ;;  %v3813_v51 = vmax.f32 %v3642_v21, %v3802_v49  ;;  %v3804_v52 = vpop.f32.mrb[23].mxu1 }
 0x351   : > { %3839 = vst [vmem:[%s198_s24] sm:$0xff] %v4277_v32  ;;  %v3812_v34 = vmax.f32 %v3567_v63, %v3727_v50  ;;  %3840 = vst [vmem:[%s198_s24 + $0x8] sm:$0xff] %v4278_v48  ;;  %v3814_v53 = vmax.f32 %v3644_v22, %v3804_v52 }
 0x353   : > { %v4279_v60 = vpack.c.bf16 %v3812_v34, %v3811_v4  ;;  %v4280_v59 = vpack.c.bf16 %v3814_v53, %v3813_v51 }
 0x355   : > { %3841 = vst [vmem:[%s198_s24 + $0x10] sm:$0xff] %v4279_v60  ;;  %3842 = vst [vmem:[%s198_s24 + $0x18] sm:$0xff] %v4280_v59 }
 0x356 PF: > { %s15_s12 = sadd.s32 1, %s4553_s12  }
 0x357   : > { %p12_p9 = scmp.ge.s32.totalorder %s15_s12, 4  }
 0x359   :  { %14 = sbr.rel (!%p12_p9) target bundleno = 2 (0x2), region = 75 }
 0x360   :  { %3864 = vsyncpa [#allocation3], 1 }
 0x361   :  { %3866 = vsyncpa [#allocation3 + $0x1], 1 }
 0x362   :  { %3867 = vsyncpa [#allocation5], 1 }

// kernel: forward.6
= control target key start
LH: loop header
LB: loop body
LE: loop exit
PB: predicated region body
PF: predicated region fallthrough
CT: control target
= control target key end

     0   :  { %s5939_s12 = smov 0   ;;  %s7574_s0 = inlined_call_operand.vmem [shape: bf16[2,12,384], index: 0, kind: input, shape index: {}]   ;;  %s7575_s1 = inlined_call_operand.vmem [shape: bf16[5,384,512], index: 1, kind: input, shape index: {}]   ;;  %s7576_s2 = inlined_call_operand.vmem [shape: f32[1,512], index: 2, kind: input, shape index: {}]   ;;  %s7577_s3 = inlined_call_operand.vmem [shape: bf16[2,4,256], index: 3, kind: output, shape index: {}]  }
   0x1 LB: > { %s4264_s13 = sadd.s32 4294967295, %s5915_s12   ;;  %p4268_p0 = scmp.ge.s32.totalorder %s5915_s12, 1  ;;  %s5915_s12 = sphi %s5939_s12, %s13_s12  }
   0x2   : > { %p137_p1 = scmp.lt.s32.totalorder %s5915_s12, 3 }
   0x4   : > { %p138_p2 = pnand %p4268_p0, %p137_p1 }
   0x5   : > { %v5171_v0 = vld [vmem:[%s7575_s1 + $0x304] ss:$16 sps:$4 sm:$0xff] (!%p138_p2)   ;;  %v5917_v2 = vmov (!%p138_p2), 0   ;;  %v5175_v3 = vld [vmem:[%s7575_s1 + $0x300] ss:$16 sps:$4 sm:$0xff] (!%p138_p2)   ;;  %p161_p3 = scmp.lt.s32.totalorder (!%p138_p2), %s4264_s13, 1 }
   0x6   : > { %141 = sbr.rel (%p138_p2) target bundleno = 928 (0x3a0), region = 32  ;;  %v5173_v1 = vld [vmem:[%s7575_s1 + $0x504] ss:$16 sps:$4 sm:$0xff] (!%p138_p2)   ;;  %959 = vmatprep.mubr.bf16.mxu1 (!%p138_p2), %v5917_v2  ;;  %886 = vmatprep.subr.bf16.mxu0 (!%p138_p2), %v5171_v0  ;;  %v5176_v4 = vld [vmem:[%s7575_s1 + $0x500] ss:$16 sps:$4 sm:$0xff] (!%p138_p2)   ;;  %vm4044_vm2 = vcmask (!%p138_p2), 64512  }
   0x7   : > { %927 = vmatprep.subr.bf16.mxu1 (!%p138_p2), %v5173_v1  ;;  %v5177_v5 = vld [vmem:[%s7575_s1 + $0x324] ss:$16 sps:$4 sm:$0xff] (!%p138_p2)   ;;  %887 = vmatpush1.bf16.msra.mxu0 (!%p138_p2), %v5175_v3  ;;  %v5181_v7 = vld [vmem:[%s7575_s1 + $0x320] ss:$16 sps:$4 sm:$0xff] (!%p138_p2)   ;;  %v5224_v40 = vld [vmem:[%s7575_s1 + $0x30c] ss:$16 sps:$4 sm:$0xff] (!%p138_p2)  }
   0x8   : > { %928 = vmatpush1.bf16.msra.mxu1 (!%p138_p2), %v5176_v4  ;;  %v5179_v6 = vld [vmem:[%s7575_s1 + $0x524] ss:$16 sps:$4 sm:$0xff] (!%p138_p2)   ;;  %888 = vmatprep.subr.bf16.mxu0 (!%p138_p2), %v5177_v5  ;;  %v5182_v8 = vld [vmem:[%s7575_s1 + $0x520] ss:$16 sps:$4 sm:$0xff] (!%p138_p2)   ;;  %v5222_v42 = vld [vmem:[%s7575_s1 + $0x308] ss:$16 sps:$4 sm:$0xff] (!%p138_p2)  }
   0x9   : > { %929 = vmatprep.subr.bf16.mxu1 (!%p138_p2), %v5179_v6  ;;  %v5183_v9 = vld [vmem:[%s7575_s1 + $0x344] ss:$16 sps:$4 sm:$0xff] (!%p138_p2)   ;;  %v5187_v11 = vld [vmem:[%s7575_s1 + $0x340] ss:$16 sps:$4 sm:$0xff] (!%p138_p2)   ;;  %v5230_v45 = vld [vmem:[%s7575_s1 + $0x32c] ss:$16 sps:$4 sm:$0xff] (!%p138_p2)  }
   0xa   : > { %v5185_v10 = vld [vmem:[%s7575_s1 + $0x544] ss:$16 sps:$4 sm:$0xff] (!%p138_p2)   ;;  %v5188_v12 = vld [vmem:[%s7575_s1 + $0x540] ss:$16 sps:$4 sm:$0xff] (!%p138_p2)   ;;  %v5228_v46 = vld [vmem:[%s7575_s1 + $0x328] ss:$16 sps:$4 sm:$0xff] (!%p138_p2)  }
   0xb   : > { %889 = vmatpush1.bf16.msra.mxu0 (!%p138_p2), %v5181_v7  ;;  %v5189_v13 = vld [vmem:[%s7575_s1 + $0x364] ss:$16 sps:$4 sm:$0xff] (!%p138_p2)   ;;  %v5193_v15 = vld [vmem:[%s7575_s1 + $0x360] ss:$16 sps:$4 sm:$0xff] (!%p138_p2)   ;;  %v5236_v49 = vld [vmem:[%s7575_s1 + $0x34c] ss:$16 sps:$4 sm:$0xff] (!%p138_p2)  }
   0xc   : > { %930 = vmatpush1.bf16.msra.mxu1 (!%p138_p2), %v5182_v8  ;;  %890 = vmatprep.subr.bf16.mxu0 (!%p138_p2), %v5183_v9  ;;  %v5191_v14 = vld [vmem:[%s7575_s1 + $0x564] ss:$16 sps:$4 sm:$0xff] (!%p138_p2)   ;;  %v5194_v16 = vld [vmem:[%s7575_s1 + $0x560] ss:$16 sps:$4 sm:$0xff] (!%p138_p2)   ;;  %v5234_v50 = vld [vmem:[%s7575_s1 + $0x348] ss:$16 sps:$4 sm:$0xff] (!%p138_p2)  }
   0xd   : > { %931 = vmatprep.subr.bf16.mxu1 %v5185_v10  ;;  %s7579_s13 = smov (!%p161_p3, %s4264_s13), 1  ;;  %v5195_v17 = vld [vmem:[%s7575_s1 + $0x384] ss:$16 sps:$4 sm:$0xff]   ;;  %v5199_v19 = vld [vmem:[%s7575_s1 + $0x380] ss:$16 sps:$4 sm:$0xff]  }
   0xe   : > { %v5197_v18 = vld [vmem:[%s7575_s1 + $0x584] ss:$16 sps:$4 sm:$0xff]   ;;  %v5200_v20 = vld [vmem:[%s7575_s1 + $0x580] ss:$16 sps:$4 sm:$0xff]   ;;  %s5160_s29 = smul.u32 24, %s7579_s13  ;;  %s5159_s9 = sshll.u32 %s7579_s13, 2 }
   0xf   : > { %891 = vmatpush1.bf16.msra.mxu0 %v5187_v11  ;;  %v5201_v21 = vld [vmem:[%s7575_s1 + $0x3a4] ss:$16 sps:$4 sm:$0xff]   ;;  %v5205_v23 = vld [vmem:[%s7575_s1 + $0x3a0] ss:$16 sps:$4 sm:$0xff]   ;;  %v5242_v53 = vld [vmem:[%s7575_s1 + $0x36c] ss:$16 sps:$4 sm:$0xff]   ;;  %s170_s15 = scalar_lea.vmem %s7577_s3, %s5159_s9 }
  0x10   : > { %932 = vmatpush1.bf16.msra.mxu1 %v5188_v12  ;;  %892 = vmatprep.subr.bf16.mxu0 %v5189_v13  ;;  %v5203_v22 = vld [vmem:[%s7575_s1 + $0x5a4] ss:$16 sps:$4 sm:$0xff]   ;;  %s6027_s11 = scalar_lea.vmem %s7574_s0, %s5160_s29  ;;  %v5206_v24 = vld [vmem:[%s7575_s1 + $0x5a0] ss:$16 sps:$4 sm:$0xff]   ;;  %v5240_v54 = vld [vmem:[%s7575_s1 + $0x368] ss:$16 sps:$4 sm:$0xff]  }
  0x11   : > { %933 = vmatprep.subr.bf16.mxu1 %v5191_v14  ;;  %v5207_v25 = vld [vmem:[%s7575_s1 + $0x3c4] ss:$16 sps:$4 sm:$0xff]   ;;  %v6039_v27 = vld [vmem:[%s6027_s11 + $0x8] sm:$0xf]  ;;  %v5211_v29 = vld [vmem:[%s7575_s1 + $0x3c0] ss:$16 sps:$4 sm:$0xff]  }
  0x12   : > { %v5209_v26 = vld [vmem:[%s7575_s1 + $0x5c4] ss:$16 sps:$4 sm:$0xff]   ;;  %v5212_v31 = vld [vmem:[%s7575_s1 + $0x5c0] ss:$16 sps:$4 sm:$0xff]   ;;  %v5248_v60 = vld [vmem:[%s7575_s1 + $0x38c] ss:$16 sps:$4 sm:$0xff]  }
  0x13   : > { %893 = vmatpush1.bf16.msra.mxu0 %v5193_v15  ;;  %v271_v28 = vld [vmem:[%s6027_s11 + $0x14] sm:$0x1]  ;;  %v5217_v35 = vld [vmem:[%s7575_s1 + $0x3e0] ss:$16 sps:$4 sm:$0xff]   ;;  %v5246_v63 = vld [vmem:[%s7575_s1 + $0x388] ss:$16 sps:$4 sm:$0xff]  }
  0x14   : > { %934 = vmatpush1.bf16.msra.mxu1 %v5194_v16  ;;  %894 = vmatprep.subr.bf16.mxu0 %v5195_v17  ;;  %v4370_v30 = vcombine.low %v6039_v27, %v271_v28  ;;  %v5213_v32 = vld [vmem:[%s7575_s1 + $0x3e4] ss:$16 sps:$4 sm:$0xff]   ;;  %v5218_v38 = vld [vmem:[%s7575_s1 + $0x5e0] ss:$16 sps:$4 sm:$0xff]   ;;  %v5254_v4 = vld [vmem:[%s7575_s1 + $0x3ac] ss:$16 sps:$4 sm:$0xff]  }
  0x15   : > { %935 = vmatprep.subr.bf16.mxu1 %v5197_v18  ;;  %v5215_v33 = vld [vmem:[%s7575_s1 + $0x5e4] ss:$16 sps:$4 sm:$0xff]   ;;  %v5225_v43 = vld [vmem:[%s7575_s1 + $0x400] ss:$16 sps:$4 sm:$0xff]   ;;  %v5252_v6 = vld [vmem:[%s7575_s1 + $0x3a8] ss:$16 sps:$4 sm:$0xff]  }
  0x16   : > { %v399_v34 = vshll.u32 %v4370_v30, 16  ;;  %v397_v36 = vshrl.u32 %v4370_v30, 16  ;;  %v5219_v39 = vld [vmem:[%s7575_s1 + $0x404] ss:$16 sps:$4 sm:$0xff]   ;;  %v5231_v47 = vld [vmem:[%s7575_s1 + $0x420] ss:$16 sps:$4 sm:$0xff]  }
  0x17   : > { %895 = vmatpush1.bf16.msra.mxu0 %v5199_v19  ;;  %v5226_v44 = vld [vmem:[%s7575_s1 + $0x424] ss:$16 sps:$4 sm:$0xff]   ;;  %v5237_v51 = vld [vmem:[%s7575_s1 + $0x440] ss:$16 sps:$4 sm:$0xff]   ;;  %v5260_v10 = vld [vmem:[%s7575_s1 + $0x3cc] ss:$16 sps:$4 sm:$0xff]  }
  0x18   : > { %936 = vmatpush1.bf16.msra.mxu1 %v5200_v20  ;;  %896 = vmatprep.subr.bf16.mxu0 %v5201_v21  ;;  %v401_v37 = vrot.slane %v399_v34, 1  ;;  %v5232_v48 = vld [vmem:[%s7575_s1 + $0x444] ss:$16 sps:$4 sm:$0xff]   ;;  %v5243_v55 = vld [vmem:[%s7575_s1 + $0x460] ss:$16 sps:$4 sm:$0xff]  }
  0x19   : > { %937 = vmatprep.subr.bf16.mxu1 %v5203_v22  ;;  %v5238_v52 = vld [vmem:[%s7575_s1 + $0x464] ss:$16 sps:$4 sm:$0xff]   ;;  %v270_v57 = vld [vmem:[%s6027_s11 + $0xc] sm:$0x11]  ;;  %v5258_v11 = vld [vmem:[%s7575_s1 + $0x3c8] ss:$16 sps:$4 sm:$0xff]  }
  0x1a   : > { %v6067_v41 = vor.u32 %v401_v37, %v397_v36  ;;  %v6113_v56 = vld [vmem:[%s6027_s11] sm:$0xff]  ;;  %v5266_v15 = vld [vmem:[%s7575_s1 + $0x3ec] ss:$16 sps:$4 sm:$0xff]   ;;  %v5264_v16 = vld [vmem:[%s7575_s1 + $0x3e8] ss:$16 sps:$4 sm:$0xff]  }
  0x1b   : > { %897 = vmatpush1.bf16.msra.mxu0 %v5205_v23  ;;  %v5244_v58 = vld [vmem:[%s7575_s1 + $0x484] ss:$16 sps:$4 sm:$0xff]   ;;  %v4369_v59 = vcombine.high %v6113_v56, %v270_v57  ;;  %v5249_v0 = vld [vmem:[%s7575_s1 + $0x480] ss:$16 sps:$4 sm:$0xff]   ;;  %v4368_v7 = vcombine.low %v6113_v56, %v270_v57  ;;  %v5272_v20 = vld [vmem:[%s7575_s1 + $0x40c] ss:$16 sps:$4 sm:$0xff]  }
  0x1c   : > { %938 = vmatpush1.bf16.msra.mxu1 %v5206_v24  ;;  %898 = vmatprep.subr.bf16.mxu0 %v5207_v25  ;;  %v5250_v1 = vld [vmem:[%s7575_s1 + $0x4a4] ss:$16 sps:$4 sm:$0xff]   ;;  %v5255_v8 = vld [vmem:[%s7575_s1 + $0x4a0] ss:$16 sps:$4 sm:$0xff]   ;;  %v5275_v21 = vld [vmem:[%s7575_s1 + $0x50c] ss:$16 sps:$4 sm:$0xff]  }
  0x1d   : > { %939 = vmatprep.subr.bf16.mxu1 %v5209_v26  ;;  %v390_v61 = vshrl.u32 %v4369_v59, 16  ;;  %v392_v62 = vshll.u32 %v4369_v59, 16  ;;  %v5256_v9 = vld [vmem:[%s7575_s1 + $0x4c4] ss:$16 sps:$4 sm:$0xff]   ;;  %v385_v12 = vshll.u32 %v4368_v7, 16  ;;  %v383_v17 = vshrl.u32 %v4368_v7, 16 }
  0x1e   : > { %v5261_v13 = vld [vmem:[%s7575_s1 + $0x4c0] ss:$16 sps:$4 sm:$0xff]   ;;  %v5262_v14 = vld [vmem:[%s7575_s1 + $0x4e4] ss:$16 sps:$4 sm:$0xff]   ;;  %v5270_v23 = vld [vmem:[%s7575_s1 + $0x408] ss:$16 sps:$4 sm:$0xff]  }
  0x1f   : > { %899 = vmatpush1.bf16.msra.mxu0 %v5211_v29  ;;  %v394_v3 = vrot.slane %v392_v62, 1  ;;  %v387_v18 = vrot.slane %v385_v12, 1  ;;  %v5267_v19 = vld [vmem:[%s7575_s1 + $0x4e0] ss:$16 sps:$4 sm:$0xff]   ;;  %v5273_v24 = vld [vmem:[%s7575_s1 + $0x508] ss:$16 sps:$4 sm:$0xff]   ;;  %v6286_v62 = vcombine.high %v6113_v56, %v6113_v56 }
  0x20   : > { %940 = vmatpush1.bf16.msra.mxu1 %v5212_v31  ;;  %900 = vmatprep.subr.bf16.mxu0 %v5213_v32  ;;  %v5278_v25 = vld [vmem:[%s7575_s1 + $0x42c] ss:$16 sps:$4 sm:$0xff]   ;;  %v5276_v28 = vld [vmem:[%s7575_s1 + $0x428] ss:$16 sps:$4 sm:$0xff]   ;;  %v5323_v57 = vld [vmem:[%s7575_s1 + $0x204] ss:$16 sps:$4 sm:$0xff]  }
  0x21   : > { %941 = vmatprep.subr.bf16.mxu1 %v5215_v33  ;;  %v395_v5 = vor.u32 %v394_v3, %v390_v61  ;;  %v6172_v22 = vor.u32 %v387_v18, %v383_v17  ;;  %v5281_v26 = vld [vmem:[%s7575_s1 + $0x52c] ss:$16 sps:$4 sm:$0xff]   ;;  %v5279_v29 = vld [vmem:[%s7575_s1 + $0x528] ss:$16 sps:$4 sm:$0xff]   ;;  %v5321_v59 = vld [vmem:[%s7575_s1 + $0x200] ss:$16 sps:$4 sm:$0xff]  }
  0x22   : > { %v5284_v30 = vld [vmem:[%s7575_s1 + $0x44c] ss:$16 sps:$4 sm:$0xff]   ;;  %v5282_v32 = vld [vmem:[%s7575_s1 + $0x448] ss:$16 sps:$4 sm:$0xff]   ;;  %v5329_v61 = vld [vmem:[%s7575_s1 + $0x224] ss:$16 sps:$4 sm:$0xff]  }
  0x23   : > { %901 = vmatpush1.bf16.msra.mxu0 %v5217_v35  ;;  %918 = vmatprep.mubr.bf16.mxu0 %v395_v5  ;;  %v5287_v31 = vld [vmem:[%s7575_s1 + $0x54c] ss:$16 sps:$4 sm:$0xff]   ;;  %v5285_v33 = vld [vmem:[%s7575_s1 + $0x548] ss:$16 sps:$4 sm:$0xff]   ;;  %v5330_v3 = vld [vmem:[%s7575_s1 + $0x40] ss:$16 sps:$4 sm:$0xff]  }
  0x24   : > { %942 = vmatpush1.bf16.msra.mxu1 %v5218_v38  ;;  %902 = vmatprep.subr.bf16.mxu0 %v5219_v39  ;;  %v5290_v34 = vld [vmem:[%s7575_s1 + $0x46c] ss:$16 sps:$4 sm:$0xff]   ;;  %v5288_v36 = vld [vmem:[%s7575_s1 + $0x468] ss:$16 sps:$4 sm:$0xff]   ;;  %v5336_v7 = vld [vmem:[%s7575_s1 + $0x60] ss:$16 sps:$4 sm:$0xff]  }
  0x25   : > { %968 = vmatprep.subr.bf16.mxu1 %v5224_v40  ;;  %v5293_v35 = vld [vmem:[%s7575_s1 + $0x56c] ss:$16 sps:$4 sm:$0xff]   ;;  %v5291_v37 = vld [vmem:[%s7575_s1 + $0x568] ss:$16 sps:$4 sm:$0xff]   ;;  %v5345_v12 = vld [vmem:[%s7575_s1 + $0x280] ss:$16 sps:$4 sm:$0xff]  }
  0x26   : > { %v5296_v38 = vld [vmem:[%s7575_s1 + $0x48c] ss:$16 sps:$4 sm:$0xff]   ;;  %v5294_v40 = vld [vmem:[%s7575_s1 + $0x488] ss:$16 sps:$4 sm:$0xff]   ;;  %v5356_v17 = vld [vmem:[%s7575_s1 + $0xc4] ss:$16 sps:$4 sm:$0xff]  }
  0x27   : > { %960 = vmatmul.mubr.bf16.vlgmr.msra.gmra.mrb[0].mxu1 %v6067_v41  ;;  %903 = vmatpush1.bf16.msra.mxu0 %v5225_v43  ;;  %v5299_v39 = vld [vmem:[%s7575_s1 + $0x58c] ss:$16 sps:$4 sm:$0xff]   ;;  %v5359_v18 = vld [vmem:[%s7575_s1 + $0x2c4] ss:$16 sps:$4 sm:$0xff]  }
  0x28   : > { %969 = vmatpush1.bf16.msra.mxu1 %v5222_v42  ;;  %904 = vmatprep.subr.bf16.mxu0 %v5226_v44  ;;  %v5297_v42 = vld [vmem:[%s7575_s1 + $0x588] ss:$16 sps:$4 sm:$0xff]   ;;  %v5302_v43 = vld [vmem:[%s7575_s1 + $0x4ac] ss:$16 sps:$4 sm:$0xff]  }
  0x29   : > { %970 = vmatprep.subr.bf16.mxu1 %v5230_v45  ;;  %1000 = vmatprep.mubr.bf16.mxu1 %v395_v5  ;;  %v5305_v44 = vld [vmem:[%s7575_s1 + $0x5ac] ss:$16 sps:$4 sm:$0xff]   ;;  %v5300_v45 = vld [vmem:[%s7575_s1 + $0x4a8] ss:$16 sps:$4 sm:$0xff]   ;;  %v5338_v5 = vld [vmem:[%s7575_s1 + $0x64] ss:$16 sps:$4 sm:$0xff]  }
  0x2b   : > { %905 = vmatpush1.bf16.msra.mxu0 %v5231_v47  ;;  %v5308_v47 = vld [vmem:[%s7575_s1 + $0x4cc] ss:$16 sps:$4 sm:$0xff]  }
  0x2c   : > { %971 = vmatpush1.bf16.msra.mxu1 %v5228_v46  ;;  %906 = vmatprep.subr.bf16.mxu0 %v5232_v48  ;;  %v5303_v46 = vld [vmem:[%s7575_s1 + $0x5a8] ss:$16 sps:$4 sm:$0xff]   ;;  %v5311_v48 = vld [vmem:[%s7575_s1 + $0x5cc] ss:$16 sps:$4 sm:$0xff]  }
  0x2d   : > { %972 = vmatprep.subr.bf16.mxu1 %v5236_v49  ;;  %v5306_v49 = vld [vmem:[%s7575_s1 + $0x4c8] ss:$16 sps:$4 sm:$0xff]  }
  0x2f   : > { %907 = vmatpush1.bf16.msra.mxu0 %v5237_v51  ;;  %v5314_v51 = vld [vmem:[%s7575_s1 + $0x4ec] ss:$16 sps:$4 sm:$0xff]  }
  0x30   : > { %973 = vmatpush1.bf16.msra.mxu1 %v5234_v50  ;;  %908 = vmatprep.subr.bf16.mxu0 %v5238_v52  ;;  %v5309_v50 = vld [vmem:[%s7575_s1 + $0x5c8] ss:$16 sps:$4 sm:$0xff]   ;;  %v5317_v52 = vld [vmem:[%s7575_s1 + $0x5ec] ss:$16 sps:$4 sm:$0xff]  }
  0x31   : > { %974 = vmatprep.subr.bf16.mxu1 %v5242_v53  ;;  %v5312_v53 = vld [vmem:[%s7575_s1 + $0x4e8] ss:$16 sps:$4 sm:$0xff]  }
  0x33   : > { %909 = vmatpush1.bf16.msra.mxu0 %v5243_v55  ;;  %v5320_v55 = vld [vmem:[%s7575_s1 + $0x4] ss:$16 sps:$4 sm:$0xff]  }
  0x34   : > { %975 = vmatpush1.bf16.msra.mxu1 %v5240_v54  ;;  %910 = vmatprep.subr.bf16.mxu0 %v5244_v58  ;;  %v5315_v54 = vld [vmem:[%s7575_s1 + $0x5e8] ss:$16 sps:$4 sm:$0xff]   ;;  %v5318_v58 = vld [vmem:[%s7575_s1] ss:$16 sps:$4 sm:$0xff]  }
  0x35   : > { %976 = vmatprep.subr.bf16.mxu1 %v5248_v60  ;;  %v5326_v60 = vld [vmem:[%s7575_s1 + $0x24] ss:$16 sps:$4 sm:$0xff]  }
  0x37   : > { %911 = vmatpush1.bf16.msra.mxu0 %v5249_v0  ;;  %v5327_v0 = vld [vmem:[%s7575_s1 + $0x220] ss:$16 sps:$4 sm:$0xff]  }
  0x38   : > { %977 = vmatpush1.bf16.msra.mxu1 %v5246_v63  ;;  %912 = vmatprep.subr.bf16.mxu0 %v5250_v1  ;;  %v5324_v63 = vld [vmem:[%s7575_s1 + $0x20] ss:$16 sps:$4 sm:$0xff]   ;;  %v5332_v1 = vld [vmem:[%s7575_s1 + $0x44] ss:$16 sps:$4 sm:$0xff]  }
  0x39   : > { %978 = vmatprep.subr.bf16.mxu1 %v5254_v4  ;;  %v5333_v4 = vld [vmem:[%s7575_s1 + $0x240] ss:$16 sps:$4 sm:$0xff]  }
  0x3b   : > { %913 = vmatpush1.bf16.msra.mxu0 %v5255_v8  ;;  %v5339_v8 = vld [vmem:[%s7575_s1 + $0x260] ss:$16 sps:$4 sm:$0xff]  }
  0x3c   : > { %979 = vmatpush1.bf16.msra.mxu1 %v5252_v6  ;;  %914 = vmatprep.subr.bf16.mxu0 %v5256_v9  ;;  %v5341_v6 = vld [vmem:[%s7575_s1 + $0x264] ss:$16 sps:$4 sm:$0xff]  }
  0x3d   : > { %980 = vmatprep.subr.bf16.mxu1 %v5260_v10  ;;  %v5344_v9 = vld [vmem:[%s7575_s1 + $0x84] ss:$16 sps:$4 sm:$0xff]  }
  0x3e   : > { %v5347_v10 = vld [vmem:[%s7575_s1 + $0x284] ss:$16 sps:$4 sm:$0xff]  }
  0x3f   : > { %915 = vmatpush1.bf16.msra.mxu0 %v5261_v13  ;;  %v5350_v13 = vld [vmem:[%s7575_s1 + $0xa4] ss:$16 sps:$4 sm:$0xff]  }
  0x40   : > { %981 = vmatpush1.bf16.msra.mxu1 %v5258_v11  ;;  %916 = vmatprep.subr.bf16.mxu0 %v5262_v14  ;;  %v5342_v11 = vld [vmem:[%s7575_s1 + $0x80] ss:$16 sps:$4 sm:$0xff]   ;;  %v5353_v14 = vld [vmem:[%s7575_s1 + $0x2a4] ss:$16 sps:$4 sm:$0xff]  }
  0x41   : > { %982 = vmatprep.subr.bf16.mxu1 %v5266_v15  ;;  %v5348_v15 = vld [vmem:[%s7575_s1 + $0xa0] ss:$16 sps:$4 sm:$0xff]  }
  0x43   : > { %917 = vmatpush1.bf16.msra.mxu0 %v5267_v19  ;;  %v5354_v19 = vld [vmem:[%s7575_s1 + $0xc0] ss:$16 sps:$4 sm:$0xff]  }
  0x44   : > { %983 = vmatpush1.bf16.msra.mxu1 %v5264_v16  ;;  %1009 = vmatprep.subr.bf16.mxu0 %v5275_v21  ;;  %v5351_v16 = vld [vmem:[%s7575_s1 + $0x2a0] ss:$16 sps:$4 sm:$0xff]   ;;  %v5362_v21 = vld [vmem:[%s7575_s1 + $0xe4] ss:$16 sps:$4 sm:$0xff]  }
  0x45   : > { %984 = vmatprep.subr.bf16.mxu1 %v5272_v20  ;;  %v5357_v20 = vld [vmem:[%s7575_s1 + $0x2c0] ss:$16 sps:$4 sm:$0xff]  }
  0x46   : > { %919 = vmatmul.mubr.bf16.vlgmr.msra.gmra.mrb[0].mxu0 %v6172_v22 }
  0x47   : > { %1010 = vmatpush1.bf16.msra.mxu0 %v5273_v24  ;;  %1041 = vmatprep.mubr.bf16.mxu0 %v5917_v2  ;;  %v5363_v24 = vld [vmem:[%s7575_s1 + $0x2e0] ss:$16 sps:$4 sm:$0xff]  }
  0x48   : > { %985 = vmatpush1.bf16.msra.mxu1 %v5270_v23  ;;  %1011 = vmatprep.subr.bf16.mxu0 %v5281_v26  ;;  %v5360_v23 = vld [vmem:[%s7575_s1 + $0xe0] ss:$16 sps:$4 sm:$0xff]   ;;  %v5372_v26 = vld [vmem:[%s7575_s1 + $0xc] ss:$16 sps:$4 sm:$0xff]  }
  0x49   : > { %986 = vmatprep.subr.bf16.mxu1 %v5278_v25  ;;  %v5368_v25 = vld [vmem:[%s7575_s1 + $0x104] ss:$16 sps:$4 sm:$0xff]  }
  0x4b   : > { %1012 = vmatpush1.bf16.msra.mxu0 %v5279_v29  ;;  %v6381_v29 = vcombine.low %v6039_v27, %v6039_v27  ;;  %v5373_v27 = vld [vmem:[%s7575_s1 + $0x120] ss:$16 sps:$4 sm:$0xff]  }
  0x4c   : > { %987 = vmatpush1.bf16.msra.mxu1 %v5276_v28  ;;  %1013 = vmatprep.subr.bf16.mxu0 %v5287_v31  ;;  %v5366_v28 = vld [vmem:[%s7575_s1 + $0x100] ss:$16 sps:$4 sm:$0xff]   ;;  %v5375_v31 = vld [vmem:[%s7575_s1 + $0x124] ss:$16 sps:$4 sm:$0xff]  }
  0x4d   : > { %988 = vmatprep.subr.bf16.mxu1 %v5284_v30  ;;  %v5370_v30 = vld [vmem:[%s7575_s1 + $0x8] ss:$16 sps:$4 sm:$0xff]  }
  0x4f   : > { %1014 = vmatpush1.bf16.msra.mxu0 %v5285_v33  ;;  %v5376_v33 = vld [vmem:[%s7575_s1 + $0x28] ss:$16 sps:$4 sm:$0xff]  }
  0x50   : > { %989 = vmatpush1.bf16.msra.mxu1 %v5282_v32  ;;  %1015 = vmatprep.subr.bf16.mxu0 %v5293_v35  ;;  %v5378_v32 = vld [vmem:[%s7575_s1 + $0x2c] ss:$16 sps:$4 sm:$0xff]  }
  0x51   : > { %990 = vmatprep.subr.bf16.mxu1 %v5290_v34  ;;  %v5381_v34 = vld [vmem:[%s7575_s1 + $0x144] ss:$16 sps:$4 sm:$0xff]   ;;  %v5384_v35 = vld [vmem:[%s7575_s1 + $0x4c] ss:$16 sps:$4 sm:$0xff]  }
  0x53   : > { %1016 = vmatpush1.bf16.msra.mxu0 %v5291_v37  ;;  %v5382_v37 = vld [vmem:[%s7575_s1 + $0x48] ss:$16 sps:$4 sm:$0xff]  }
  0x54   : > { %991 = vmatpush1.bf16.msra.mxu1 %v5288_v36  ;;  %1017 = vmatprep.subr.bf16.mxu0 %v5299_v39  ;;  %v5379_v36 = vld [vmem:[%s7575_s1 + $0x140] ss:$16 sps:$4 sm:$0xff]   ;;  %v5390_v39 = vld [vmem:[%s7575_s1 + $0x6c] ss:$16 sps:$4 sm:$0xff]  }
  0x55   : > { %992 = vmatprep.subr.bf16.mxu1 %v5296_v38  ;;  %v5387_v38 = vld [vmem:[%s7575_s1 + $0x164] ss:$16 sps:$4 sm:$0xff]  }
  0x57   : > { %1018 = vmatpush1.bf16.msra.mxu0 %v5297_v42  ;;  %v5388_v42 = vld [vmem:[%s7575_s1 + $0x68] ss:$16 sps:$4 sm:$0xff]  }
  0x58   : > { %993 = vmatpush1.bf16.msra.mxu1 %v5294_v40  ;;  %1019 = vmatprep.subr.bf16.mxu0 %v5305_v44  ;;  %v5385_v40 = vld [vmem:[%s7575_s1 + $0x160] ss:$16 sps:$4 sm:$0xff]   ;;  %v5396_v44 = vld [vmem:[%s7575_s1 + $0x8c] ss:$16 sps:$4 sm:$0xff]  }
  0x59   : > { %994 = vmatprep.subr.bf16.mxu1 %v5302_v43  ;;  %v5393_v43 = vld [vmem:[%s7575_s1 + $0x184] ss:$16 sps:$4 sm:$0xff]  }
  0x5b   : > { %1020 = vmatpush1.bf16.msra.mxu0 %v5303_v46  ;;  %v5394_v46 = vld [vmem:[%s7575_s1 + $0x88] ss:$16 sps:$4 sm:$0xff]  }
  0x5c   : > { %995 = vmatpush1.bf16.msra.mxu1 %v5300_v45  ;;  %1021 = vmatprep.subr.bf16.mxu0 %v5311_v48  ;;  %v5391_v45 = vld [vmem:[%s7575_s1 + $0x180] ss:$16 sps:$4 sm:$0xff]   ;;  %v5402_v48 = vld [vmem:[%s7575_s1 + $0xac] ss:$16 sps:$4 sm:$0xff]  }
  0x5d   : > { %996 = vmatprep.subr.bf16.mxu1 %v5308_v47  ;;  %v5399_v47 = vld [vmem:[%s7575_s1 + $0x1a4] ss:$16 sps:$4 sm:$0xff]  }
  0x5f   : > { %1022 = vmatpush1.bf16.msra.mxu0 %v5309_v50  ;;  %v5400_v50 = vld [vmem:[%s7575_s1 + $0xa8] ss:$16 sps:$4 sm:$0xff]  }
  0x60   : > { %997 = vmatpush1.bf16.msra.mxu1 %v5306_v49  ;;  %1023 = vmatprep.subr.bf16.mxu0 %v5317_v52  ;;  %v5397_v49 = vld [vmem:[%s7575_s1 + $0x1a0] ss:$16 sps:$4 sm:$0xff]   ;;  %v5408_v52 = vld [vmem:[%s7575_s1 + $0xcc] ss:$16 sps:$4 sm:$0xff]  }
  0x61   : > { %998 = vmatprep.subr.bf16.mxu1 %v5314_v51  ;;  %v5405_v51 = vld [vmem:[%s7575_s1 + $0x1c4] ss:$16 sps:$4 sm:$0xff]  }
  0x63   : > { %1024 = vmatpush1.bf16.msra.mxu0 %v5315_v54  ;;  %v5406_v54 = vld [vmem:[%s7575_s1 + $0xc8] ss:$16 sps:$4 sm:$0xff]  }
  0x64   : > { %999 = vmatpush1.bf16.msra.mxu1 %v5312_v53  ;;  %1536 = vmatprep.subr.bf16.mxu0 %v5320_v55  ;;  %v5403_v53 = vld [vmem:[%s7575_s1 + $0x1c0] ss:$16 sps:$4 sm:$0xff]   ;;  %v5411_v55 = vld [vmem:[%s7575_s1 + $0x1e4] ss:$16 sps:$4 sm:$0xff]  }
  0x65   : > { %1577 = vmatprep.subr.bf16.mxu1 %v5323_v57  ;;  %v5414_v57 = vld [vmem:[%s7575_s1 + $0xec] ss:$16 sps:$4 sm:$0xff]  }
  0x66   : > { %1042 = vmatmul.mubr.bf16.vlgmr.msra.gmra.mrb[4].mxu0 %v6067_v41  ;;  %v5335_v41 = vld [vmem:[%s7575_s1 + $0x244] ss:$16 sps:$4 sm:$0xff]  }
  0x67   : > { %1001 = vmatmul.mubr.bf16.vlgmr.msra.gmra.mrb[4].mxu1 %v6172_v22  ;;  %1537 = vmatpush1.bf16.msra.mxu0 %v5318_v58  ;;  %v5365_v22 = vld [vmem:[%s7575_s1 + $0x2e4] ss:$16 sps:$4 sm:$0xff]   ;;  %v5409_v58 = vld [vmem:[%s7575_s1 + $0x1e0] ss:$16 sps:$4 sm:$0xff]  }
  0x68   : > { %1578 = vmatpush1.bf16.msra.mxu1 %v5321_v59  ;;  %1538 = vmatprep.subr.bf16.mxu0 %v5326_v60  ;;  %v5412_v59 = vld [vmem:[%s7575_s1 + $0xe8] ss:$16 sps:$4 sm:$0xff]   ;;  %v5419_v60 = vld [vmem:[%s7575_s1 + $0x10c] ss:$16 sps:$4 sm:$0xff]  }
  0x69   : > { %1579 = vmatprep.subr.bf16.mxu1 %v5329_v61  ;;  %1609 = vmatprep.mubr.bf16.mxu1 %v5917_v2  ;;  %v5422_v61 = vld [vmem:[%s7575_s1 + $0x20c] ss:$16 sps:$4 sm:$0xff]  }
  0x6a   : > { %1568 = vmatprep.mubr.bf16.mxu0 %v6286_v62 }
  0x6b   : > { %1539 = vmatpush1.bf16.msra.mxu0 %v5324_v63  ;;  %v5417_v63 = vld [vmem:[%s7575_s1 + $0x108] ss:$16 sps:$4 sm:$0xff]  }
  0x6c   : > { %1580 = vmatpush1.bf16.msra.mxu1 %v5327_v0  ;;  %1540 = vmatprep.subr.bf16.mxu0 %v5332_v1  ;;  %v5420_v0 = vld [vmem:[%s7575_s1 + $0x208] ss:$16 sps:$4 sm:$0xff]   ;;  %v5425_v1 = vld [vmem:[%s7575_s1 + $0x12c] ss:$16 sps:$4 sm:$0xff]  }
  0x6d   : > { %1581 = vmatprep.subr.bf16.mxu1 %v5335_v41  ;;  %v5423_v41 = vld [vmem:[%s7575_s1 + $0x128] ss:$16 sps:$4 sm:$0xff]  }
  0x6f   : > { %1541 = vmatpush1.bf16.msra.mxu0 %v5330_v3  ;;  %v5426_v3 = vld [vmem:[%s7575_s1 + $0x228] ss:$16 sps:$4 sm:$0xff]  }
  0x70   : > { %1582 = vmatpush1.bf16.msra.mxu1 %v5333_v4  ;;  %1542 = vmatprep.subr.bf16.mxu0 %v5338_v5  ;;  %v5431_v4 = vld [vmem:[%s7575_s1 + $0x14c] ss:$16 sps:$4 sm:$0xff]  }
  0x71   : > { %1583 = vmatprep.subr.bf16.mxu1 %v5341_v6  ;;  %v5434_v5 = vld [vmem:[%s7575_s1 + $0x24c] ss:$16 sps:$4 sm:$0xff]   ;;  %v5429_v6 = vld [vmem:[%s7575_s1 + $0x148] ss:$16 sps:$4 sm:$0xff]  }
  0x73   : > { %1543 = vmatpush1.bf16.msra.mxu0 %v5336_v7  ;;  %v5432_v7 = vld [vmem:[%s7575_s1 + $0x248] ss:$16 sps:$4 sm:$0xff]  }
  0x74   : > { %1584 = vmatpush1.bf16.msra.mxu1 %v5339_v8  ;;  %1544 = vmatprep.subr.bf16.mxu0 %v5344_v9  ;;  %v5437_v8 = vld [vmem:[%s7575_s1 + $0x16c] ss:$16 sps:$4 sm:$0xff]  }
  0x75   : > { %1585 = vmatprep.subr.bf16.mxu1 %v5347_v10  ;;  %v5440_v9 = vld [vmem:[%s7575_s1 + $0x26c] ss:$16 sps:$4 sm:$0xff]   ;;  %v5435_v10 = vld [vmem:[%s7575_s1 + $0x168] ss:$16 sps:$4 sm:$0xff]  }
  0x77   : > { %1545 = vmatpush1.bf16.msra.mxu0 %v5342_v11  ;;  %v5438_v11 = vld [vmem:[%s7575_s1 + $0x268] ss:$16 sps:$4 sm:$0xff]  }
  0x78   : > { %1586 = vmatpush1.bf16.msra.mxu1 %v5345_v12  ;;  %1546 = vmatprep.subr.bf16.mxu0 %v5350_v13  ;;  %v5443_v12 = vld [vmem:[%s7575_s1 + $0x18c] ss:$16 sps:$4 sm:$0xff]  }
  0x79   : > { %1587 = vmatprep.subr.bf16.mxu1 %v5353_v14  ;;  %v5446_v13 = vld [vmem:[%s7575_s1 + $0x28c] ss:$16 sps:$4 sm:$0xff]   ;;  %v5441_v14 = vld [vmem:[%s7575_s1 + $0x188] ss:$16 sps:$4 sm:$0xff]  }
  0x7b   : > { %1547 = vmatpush1.bf16.msra.mxu0 %v5348_v15  ;;  %v5444_v15 = vld [vmem:[%s7575_s1 + $0x288] ss:$16 sps:$4 sm:$0xff]  }
  0x7c   : > { %1588 = vmatpush1.bf16.msra.mxu1 %v5351_v16  ;;  %1548 = vmatprep.subr.bf16.mxu0 %v5356_v17  ;;  %v5449_v16 = vld [vmem:[%s7575_s1 + $0x1ac] ss:$16 sps:$4 sm:$0xff]  }
  0x7d   : > { %1589 = vmatprep.subr.bf16.mxu1 %v5359_v18  ;;  %v5452_v17 = vld [vmem:[%s7575_s1 + $0x2ac] ss:$16 sps:$4 sm:$0xff]   ;;  %v5447_v18 = vld [vmem:[%s7575_s1 + $0x1a8] ss:$16 sps:$4 sm:$0xff]  }
  0x7f   : > { %1549 = vmatpush1.bf16.msra.mxu0 %v5354_v19  ;;  %v5450_v19 = vld [vmem:[%s7575_s1 + $0x2a8] ss:$16 sps:$4 sm:$0xff]  }
  0x80   : > { %1590 = vmatpush1.bf16.msra.mxu1 %v5357_v20  ;;  %1550 = vmatprep.subr.bf16.mxu0 %v5362_v21  ;;  %v5455_v20 = vld [vmem:[%s7575_s1 + $0x1cc] ss:$16 sps:$4 sm:$0xff]  }
  0x81   : > { %1591 = vmatprep.subr.bf16.mxu1 %v5365_v22  ;;  %v5458_v21 = vld [vmem:[%s7575_s1 + $0x2cc] ss:$16 sps:$4 sm:$0xff]   ;;  %v5453_v22 = vld [vmem:[%s7575_s1 + $0x1c8] ss:$16 sps:$4 sm:$0xff]  }
  0x83   : > { %1551 = vmatpush1.bf16.msra.mxu0 %v5360_v23  ;;  %v5456_v23 = vld [vmem:[%s7575_s1 + $0x2c8] ss:$16 sps:$4 sm:$0xff]  }
  0x84   : > { %1592 = vmatpush1.bf16.msra.mxu1 %v5363_v24  ;;  %1552 = vmatprep.subr.bf16.mxu0 %v5368_v25  ;;  %v5461_v24 = vld [vmem:[%s7575_s1 + $0x1ec] ss:$16 sps:$4 sm:$0xff]  }
  0x85   : > { %1618 = vmatprep.subr.bf16.mxu1 %v5372_v26  ;;  %v5464_v25 = vld [vmem:[%s7575_s1 + $0x2ec] ss:$16 sps:$4 sm:$0xff]   ;;  %v5459_v26 = vld [vmem:[%s7575_s1 + $0x1e8] ss:$16 sps:$4 sm:$0xff]  }
  0x87   : > { %1610 = vmatmul.mubr.bf16.vlgmr.msra.gmra.mrb[8].mxu1 %v6381_v29  ;;  %1553 = vmatpush1.bf16.msra.mxu0 %v5366_v28  ;;  %v6572_v28 = vld [vmem:[%s6027_s11] sm:$0xee] }
  0x88   : > { %1619 = vmatpush1.bf16.msra.mxu1 %v5370_v30  ;;  %1554 = vmatprep.subr.bf16.mxu0 %v5375_v31  ;;  %v5462_v30 = vld [vmem:[%s7575_s1 + $0x2e8] ss:$16 sps:$4 sm:$0xff]   ;;  %v5467_v31 = vld [vmem:[%s7575_s1 + $0x604] ss:$16 sps:$4 sm:$0xff]  }
  0x89   : > { %1620 = vmatprep.subr.bf16.mxu1 %v5378_v32  ;;  %1650 = vmatprep.mubr.bf16.mxu1 %v6286_v62  ;;  %v6480_v62 = vcombine.low %v6113_v56, %v6113_v56  ;;  %v5428_v56 = vld [vmem:[%s7575_s1 + $0x22c] ss:$16 sps:$4 sm:$0xff]   ;;  %v5470_v32 = vld [vmem:[%s7575_s1 + $0x804] ss:$16 sps:$4 sm:$0xff]  }
  0x8b   : > { %1555 = vmatpush1.bf16.msra.mxu0 %v5373_v27  ;;  %v6584_v27 = vld [vmem:[%s6027_s11 + $0xc] sm:$0x11] }
  0x8c   : > { %1621 = vmatpush1.bf16.msra.mxu1 %v5376_v33  ;;  %1556 = vmatprep.subr.bf16.mxu0 %v5381_v34  ;;  %v4663_v33 = vcombine.high %v6572_v28, %v6584_v27  ;;  %v5465_v34 = vld [vmem:[%s7575_s1 + $0x600] ss:$16 sps:$4 sm:$0xff]  }
  0x8d   : > { %1622 = vmatprep.subr.bf16.mxu1 %v5384_v35  ;;  %v5468_v35 = vld [vmem:[%s7575_s1 + $0x800] ss:$16 sps:$4 sm:$0xff]  }
  0x8f   : > { %1557 = vmatpush1.bf16.msra.mxu0 %v5379_v36  ;;  %v5473_v36 = vld [vmem:[%s7575_s1 + $0x624] ss:$16 sps:$4 sm:$0xff]  }
  0x90   : > { %1623 = vmatpush1.bf16.msra.mxu1 %v5382_v37  ;;  %1558 = vmatprep.subr.bf16.mxu0 %v5387_v38  ;;  %v5476_v37 = vld [vmem:[%s7575_s1 + $0x824] ss:$16 sps:$4 sm:$0xff]   ;;  %v6600_v38 = vrot.slane %v4663_v33, 1  ;;  %v5556_v33 = vld [vmem:[%s7575_s1 + $0x6cc] ss:$16 sps:$4 sm:$0xff]  }
  0x91   : > { %1624 = vmatprep.subr.bf16.mxu1 %v5390_v39  ;;  %v5471_v39 = vld [vmem:[%s7575_s1 + $0x620] ss:$16 sps:$4 sm:$0xff]  }
  0x93   : > { %1559 = vmatpush1.bf16.msra.mxu0 %v5385_v40  ;;  %v5474_v40 = vld [vmem:[%s7575_s1 + $0x820] ss:$16 sps:$4 sm:$0xff]  }
  0x94   : > { %1625 = vmatpush1.bf16.msra.mxu1 %v5388_v42  ;;  %1560 = vmatprep.subr.bf16.mxu0 %v5393_v43  ;;  %v5479_v42 = vld [vmem:[%s7575_s1 + $0x644] ss:$16 sps:$4 sm:$0xff]   ;;  %v5477_v43 = vld [vmem:[%s7575_s1 + $0x640] ss:$16 sps:$4 sm:$0xff]  }
  0x95   : > { %1626 = vmatprep.subr.bf16.mxu1 %v5396_v44  ;;  %v5480_v44 = vld [vmem:[%s7575_s1 + $0x840] ss:$16 sps:$4 sm:$0xff]  }
  0x97   : > { %1561 = vmatpush1.bf16.msra.mxu0 %v5391_v45  ;;  %v5485_v45 = vld [vmem:[%s7575_s1 + $0x664] ss:$16 sps:$4 sm:$0xff]  }
  0x98   : > { %1627 = vmatpush1.bf16.msra.mxu1 %v5394_v46  ;;  %1562 = vmatprep.subr.bf16.mxu0 %v5399_v47  ;;  %v5488_v46 = vld [vmem:[%s7575_s1 + $0x864] ss:$16 sps:$4 sm:$0xff]   ;;  %v5483_v47 = vld [vmem:[%s7575_s1 + $0x660] ss:$16 sps:$4 sm:$0xff]  }
  0x99   : > { %1628 = vmatprep.subr.bf16.mxu1 %v5402_v48  ;;  %v5486_v48 = vld [vmem:[%s7575_s1 + $0x860] ss:$16 sps:$4 sm:$0xff]  }
  0x9b   : > { %1563 = vmatpush1.bf16.msra.mxu0 %v5397_v49  ;;  %v5491_v49 = vld [vmem:[%s7575_s1 + $0x684] ss:$16 sps:$4 sm:$0xff]  }
  0x9c   : > { %1629 = vmatpush1.bf16.msra.mxu1 %v5400_v50  ;;  %1564 = vmatprep.subr.bf16.mxu0 %v5405_v51  ;;  %v5494_v50 = vld [vmem:[%s7575_s1 + $0x884] ss:$16 sps:$4 sm:$0xff]   ;;  %v5489_v51 = vld [vmem:[%s7575_s1 + $0x680] ss:$16 sps:$4 sm:$0xff]  }
  0x9d   : > { %1630 = vmatprep.subr.bf16.mxu1 %v5408_v52  ;;  %v5492_v52 = vld [vmem:[%s7575_s1 + $0x880] ss:$16 sps:$4 sm:$0xff]  }
  0x9f   : > { %1565 = vmatpush1.bf16.msra.mxu0 %v5403_v53  ;;  %v5497_v53 = vld [vmem:[%s7575_s1 + $0x6a4] ss:$16 sps:$4 sm:$0xff]  }
  0xa0   : > { %1631 = vmatpush1.bf16.msra.mxu1 %v5406_v54  ;;  %1566 = vmatprep.subr.bf16.mxu0 %v5411_v55  ;;  %v5500_v54 = vld [vmem:[%s7575_s1 + $0x8a4] ss:$16 sps:$4 sm:$0xff]   ;;  %v5495_v55 = vld [vmem:[%s7575_s1 + $0x6a0] ss:$16 sps:$4 sm:$0xff]  }
  0xa1   : > { %1632 = vmatprep.subr.bf16.mxu1 %v5414_v57  ;;  %v5498_v57 = vld [vmem:[%s7575_s1 + $0x8a0] ss:$16 sps:$4 sm:$0xff]  }
  0xa3   : > { %1567 = vmatpush1.bf16.msra.mxu0 %v5409_v58  ;;  %v5503_v58 = vld [vmem:[%s7575_s1 + $0x6c4] ss:$16 sps:$4 sm:$0xff]  }
  0xa4   : > { %1633 = vmatpush1.bf16.msra.mxu1 %v5412_v59  ;;  %1659 = vmatprep.subr.bf16.mxu0 %v5422_v61  ;;  %v5506_v59 = vld [vmem:[%s7575_s1 + $0x8c4] ss:$16 sps:$4 sm:$0xff]   ;;  %v5504_v61 = vld [vmem:[%s7575_s1 + $0x8c0] ss:$16 sps:$4 sm:$0xff]  }
  0xa5   : > { %1634 = vmatprep.subr.bf16.mxu1 %v5419_v60  ;;  %v5501_v60 = vld [vmem:[%s7575_s1 + $0x6c0] ss:$16 sps:$4 sm:$0xff]  }
  0xa6   : > { %1569 = vmatmul.mubr.bf16.vlgmr.msra.gmra.mrb[8].mxu0 %v6480_v62 }
  0xa7   : > { %1660 = vmatpush1.bf16.msra.mxu0 %v5420_v0  ;;  %1691 = vmatprep.mubr.bf16.mxu0 %v5917_v2  ;;  %v5512_v0 = vld [vmem:[%s7575_s1 + $0x8e4] ss:$16 sps:$4 sm:$0xff]  }
  0xa8   : > { %1635 = vmatpush1.bf16.msra.mxu1 %v5417_v63  ;;  %1661 = vmatprep.subr.bf16.mxu0 %v5428_v56  ;;  %v6676_v63 = vld [vmem:[%s6027_s11 + $0x8] sm:$0xe]  ;;  %v5907_v56 = vld [vmem:[%s6027_s11 + $0x14] sm:$0x1] }
  0xa9   : > { %1636 = vmatprep.subr.bf16.mxu1 %v5425_v1  ;;  %v5507_v1 = vld [vmem:[%s7575_s1 + $0x6e0] ss:$16 sps:$4 sm:$0xff]  }
  0xab   : > { %1662 = vmatpush1.bf16.msra.mxu0 %v5426_v3  ;;  %v5510_v3 = vld [vmem:[%s7575_s1 + $0x8e0] ss:$16 sps:$4 sm:$0xff]  }
  0xac   : > { %1637 = vmatpush1.bf16.msra.mxu1 %v5423_v41  ;;  %1663 = vmatprep.subr.bf16.mxu0 %v5434_v5  ;;  %v4664_v41 = vcombine.low %v6676_v63, %v5907_v56  ;;  %v5520_v5 = vld [vmem:[%s7575_s1 + $0x60c] ss:$16 sps:$4 sm:$0xff]   ;;  %v5592_v56 = vld [vmem:[%s7575_s1 + $0x888] ss:$16 sps:$4 sm:$0xff]  }
  0xad   : > { %1638 = vmatprep.subr.bf16.mxu1 %v5431_v4  ;;  %v5515_v4 = vld [vmem:[%s7575_s1 + $0x704] ss:$16 sps:$4 sm:$0xff]  }
  0xaf   : > { %1664 = vmatpush1.bf16.msra.mxu0 %v5432_v7  ;;  %v6698_v7 = vrot.slane %v4664_v41, 1  ;;  %v5597_v41 = vld [vmem:[%s7575_s1 + $0x7ac] ss:$16 sps:$4 sm:$0xff]  }
  0xb0   : > { %1639 = vmatpush1.bf16.msra.mxu1 %v5429_v6  ;;  %1665 = vmatprep.subr.bf16.mxu0 %v5440_v9  ;;  %v5513_v6 = vld [vmem:[%s7575_s1 + $0x700] ss:$16 sps:$4 sm:$0xff]   ;;  %v5523_v9 = vld [vmem:[%s7575_s1 + $0x724] ss:$16 sps:$4 sm:$0xff]  }
  0xb1   : > { %1640 = vmatprep.subr.bf16.mxu1 %v5437_v8  ;;  %v5518_v8 = vld [vmem:[%s7575_s1 + $0x608] ss:$16 sps:$4 sm:$0xff]  }
  0xb3   : > { %1666 = vmatpush1.bf16.msra.mxu0 %v5438_v11  ;;  %v5521_v11 = vld [vmem:[%s7575_s1 + $0x720] ss:$16 sps:$4 sm:$0xff]  }
  0xb4   : > { %1641 = vmatpush1.bf16.msra.mxu1 %v5435_v10  ;;  %1667 = vmatprep.subr.bf16.mxu0 %v5446_v13  ;;  %v5526_v10 = vld [vmem:[%s7575_s1 + $0x62c] ss:$16 sps:$4 sm:$0xff]   ;;  %v5529_v13 = vld [vmem:[%s7575_s1 + $0x744] ss:$16 sps:$4 sm:$0xff]  }
  0xb5   : > { %1642 = vmatprep.subr.bf16.mxu1 %v5443_v12  ;;  %v5524_v12 = vld [vmem:[%s7575_s1 + $0x628] ss:$16 sps:$4 sm:$0xff]  }
  0xb7   : > { %1668 = vmatpush1.bf16.msra.mxu0 %v5444_v15  ;;  %v5527_v15 = vld [vmem:[%s7575_s1 + $0x740] ss:$16 sps:$4 sm:$0xff]  }
  0xb8   : > { %1643 = vmatpush1.bf16.msra.mxu1 %v5441_v14  ;;  %1669 = vmatprep.subr.bf16.mxu0 %v5452_v17  ;;  %v5532_v14 = vld [vmem:[%s7575_s1 + $0x64c] ss:$16 sps:$4 sm:$0xff]   ;;  %v5535_v17 = vld [vmem:[%s7575_s1 + $0x764] ss:$16 sps:$4 sm:$0xff]  }
  0xb9   : > { %1644 = vmatprep.subr.bf16.mxu1 %v5449_v16  ;;  %v5530_v16 = vld [vmem:[%s7575_s1 + $0x648] ss:$16 sps:$4 sm:$0xff]  }
  0xbb   : > { %1670 = vmatpush1.bf16.msra.mxu0 %v5450_v19  ;;  %v5533_v19 = vld [vmem:[%s7575_s1 + $0x760] ss:$16 sps:$4 sm:$0xff]  }
  0xbc   : > { %1645 = vmatpush1.bf16.msra.mxu1 %v5447_v18  ;;  %1671 = vmatprep.subr.bf16.mxu0 %v5458_v21  ;;  %v5538_v18 = vld [vmem:[%s7575_s1 + $0x66c] ss:$16 sps:$4 sm:$0xff]   ;;  %v5541_v21 = vld [vmem:[%s7575_s1 + $0x784] ss:$16 sps:$4 sm:$0xff]  }
  0xbd   : > { %1646 = vmatprep.subr.bf16.mxu1 %v5455_v20  ;;  %v5536_v20 = vld [vmem:[%s7575_s1 + $0x668] ss:$16 sps:$4 sm:$0xff]  }
  0xbf   : > { %1672 = vmatpush1.bf16.msra.mxu0 %v5456_v23  ;;  %v5539_v23 = vld [vmem:[%s7575_s1 + $0x780] ss:$16 sps:$4 sm:$0xff]  }
  0xc0   : > { %1647 = vmatpush1.bf16.msra.mxu1 %v5453_v22  ;;  %1673 = vmatprep.subr.bf16.mxu0 %v5464_v25  ;;  %v5544_v22 = vld [vmem:[%s7575_s1 + $0x68c] ss:$16 sps:$4 sm:$0xff]   ;;  %v5547_v25 = vld [vmem:[%s7575_s1 + $0x7a4] ss:$16 sps:$4 sm:$0xff]  }
  0xc1   : > { %1648 = vmatprep.subr.bf16.mxu1 %v5461_v24  ;;  %v5542_v24 = vld [vmem:[%s7575_s1 + $0x688] ss:$16 sps:$4 sm:$0xff]  }
  0xc3   : > { %1674 = vmatpush1.bf16.msra.mxu0 %v5462_v30  ;;  %v5545_v30 = vld [vmem:[%s7575_s1 + $0x7a0] ss:$16 sps:$4 sm:$0xff]  }
  0xc4   : > { %1649 = vmatpush1.bf16.msra.mxu1 %v5459_v26  ;;  %2293 = vmatprep.subr.bf16.mxu0 %v5467_v31  ;;  %v5550_v26 = vld [vmem:[%s7575_s1 + $0x6ac] ss:$16 sps:$4 sm:$0xff]   ;;  %v5548_v31 = vld [vmem:[%s7575_s1 + $0x6a8] ss:$16 sps:$4 sm:$0xff]  }
  0xc5   : > { %2334 = vmatprep.subr.bf16.mxu1 %v5470_v32  ;;  %v5553_v32 = vld [vmem:[%s7575_s1 + $0x7c4] ss:$16 sps:$4 sm:$0xff]  }
  0xc6   : > { %1692 = vmatmul.mubr.bf16.vlgmr.msra.gmra.mrb[12].mxu0 %v6381_v29  ;;  %v5482_v29 = vld [vmem:[%s7575_s1 + $0x844] ss:$16 sps:$4 sm:$0xff]  }
  0xc7   : > { %1651 = vmatmul.mubr.bf16.vlgmr.msra.gmra.mrb[12].mxu1 %v6480_v62  ;;  %2294 = vmatpush1.bf16.msra.mxu0 %v5465_v34  ;;  %v5509_v62 = vld [vmem:[%s7575_s1 + $0x6e4] ss:$16 sps:$4 sm:$0xff]  }
  0xc8   : > { %2335 = vmatpush1.bf16.msra.mxu1 %v5468_v35  ;;  %2295 = vmatprep.subr.bf16.mxu0 %v5473_v36  ;;  %v5551_v36 = vld [vmem:[%s7575_s1 + $0x7c0] ss:$16 sps:$4 sm:$0xff]  }
  0xc9   : > { %2336 = vmatprep.subr.bf16.mxu1 %v5476_v37  ;;  %2366 = vmatprep.mubr.bf16.mxu1 %v5917_v2  ;;  %v5554_v37 = vld [vmem:[%s7575_s1 + $0x6c8] ss:$16 sps:$4 sm:$0xff]  }
  0xca   : > { %2325 = vmatprep.mubr.bf16.mxu0 %v6600_v38 }
  0xcb   : > { %2296 = vmatpush1.bf16.msra.mxu0 %v5471_v39  ;;  %v5559_v39 = vld [vmem:[%s7575_s1 + $0x7e4] ss:$16 sps:$4 sm:$0xff]  }
  0xcc   : > { %2337 = vmatpush1.bf16.msra.mxu1 %v5474_v40  ;;  %2297 = vmatprep.subr.bf16.mxu0 %v5479_v42  ;;  %v5562_v42 = vld [vmem:[%s7575_s1 + $0x6ec] ss:$16 sps:$4 sm:$0xff]  }
  0xcd   : > { %2338 = vmatprep.subr.bf16.mxu1 %v5482_v29  ;;  %v5557_v29 = vld [vmem:[%s7575_s1 + $0x7e0] ss:$16 sps:$4 sm:$0xff]  }
  0xcf   : > { %2298 = vmatpush1.bf16.msra.mxu0 %v5477_v43  ;;  %v5560_v43 = vld [vmem:[%s7575_s1 + $0x6e8] ss:$16 sps:$4 sm:$0xff]  }
  0xd0   : > { %2339 = vmatpush1.bf16.msra.mxu1 %v5480_v44  ;;  %2299 = vmatprep.subr.bf16.mxu0 %v5485_v45  ;;  %v4662_v44 = vcombine.low %v6572_v28, %v6584_v27  ;;  %v5567_v45 = vld [vmem:[%s7575_s1 + $0x70c] ss:$16 sps:$4 sm:$0xff]   ;;  %v5568_v27 = vld [vmem:[%s7575_s1 + $0x808] ss:$16 sps:$4 sm:$0xff]  }
  0xd1   : > { %2340 = vmatprep.subr.bf16.mxu1 %v5488_v46  ;;  %v5570_v46 = vld [vmem:[%s7575_s1 + $0x80c] ss:$16 sps:$4 sm:$0xff]  }
  0xd3   : > { %2300 = vmatpush1.bf16.msra.mxu0 %v5483_v47  ;;  %v6801_v47 = vrot.slane %v4662_v44, 1  ;;  %v5634_v44 = vld [vmem:[%s7575_s1 + $0xb60] ss:$16 sps:$4 sm:$0xff]  }
  0xd4   : > { %2341 = vmatpush1.bf16.msra.mxu1 %v5486_v48  ;;  %2301 = vmatprep.subr.bf16.mxu0 %v5491_v49  ;;  %v5565_v48 = vld [vmem:[%s7575_s1 + $0x708] ss:$16 sps:$4 sm:$0xff]   ;;  %v5573_v49 = vld [vmem:[%s7575_s1 + $0x72c] ss:$16 sps:$4 sm:$0xff]  }
  0xd5   : > { %2342 = vmatprep.subr.bf16.mxu1 %v5494_v50  ;;  %v5576_v50 = vld [vmem:[%s7575_s1 + $0x82c] ss:$16 sps:$4 sm:$0xff]  }
  0xd7   : > { %2302 = vmatpush1.bf16.msra.mxu0 %v5489_v51  ;;  %v5571_v51 = vld [vmem:[%s7575_s1 + $0x728] ss:$16 sps:$4 sm:$0xff]  }
  0xd8   : > { %2343 = vmatpush1.bf16.msra.mxu1 %v5492_v52  ;;  %2303 = vmatprep.subr.bf16.mxu0 %v5497_v53  ;;  %v5574_v52 = vld [vmem:[%s7575_s1 + $0x828] ss:$16 sps:$4 sm:$0xff]   ;;  %v5579_v53 = vld [vmem:[%s7575_s1 + $0x74c] ss:$16 sps:$4 sm:$0xff]  }
  0xd9   : > { %2344 = vmatprep.subr.bf16.mxu1 %v5500_v54  ;;  %v5582_v54 = vld [vmem:[%s7575_s1 + $0x84c] ss:$16 sps:$4 sm:$0xff]  }
  0xdb   : > { %2304 = vmatpush1.bf16.msra.mxu0 %v5495_v55  ;;  %v5577_v55 = vld [vmem:[%s7575_s1 + $0x748] ss:$16 sps:$4 sm:$0xff]  }
  0xdc   : > { %2345 = vmatpush1.bf16.msra.mxu1 %v5498_v57  ;;  %2305 = vmatprep.subr.bf16.mxu0 %v5503_v58  ;;  %v5580_v57 = vld [vmem:[%s7575_s1 + $0x848] ss:$16 sps:$4 sm:$0xff]   ;;  %v5585_v58 = vld [vmem:[%s7575_s1 + $0x76c] ss:$16 sps:$4 sm:$0xff]  }
  0xdd   : > { %2346 = vmatprep.subr.bf16.mxu1 %v5506_v59  ;;  %v5588_v59 = vld [vmem:[%s7575_s1 + $0x86c] ss:$16 sps:$4 sm:$0xff]  }
  0xdf   : > { %2306 = vmatpush1.bf16.msra.mxu0 %v5501_v60  ;;  %v5583_v60 = vld [vmem:[%s7575_s1 + $0x768] ss:$16 sps:$4 sm:$0xff]  }
  0xe0   : > { %2347 = vmatpush1.bf16.msra.mxu1 %v5504_v61  ;;  %2307 = vmatprep.subr.bf16.mxu0 %v5509_v62  ;;  %v5586_v61 = vld [vmem:[%s7575_s1 + $0x868] ss:$16 sps:$4 sm:$0xff]   ;;  %v5591_v62 = vld [vmem:[%s7575_s1 + $0x78c] ss:$16 sps:$4 sm:$0xff]  }
  0xe1   : > { %2348 = vmatprep.subr.bf16.mxu1 %v5512_v0  ;;  %v5594_v0 = vld [vmem:[%s7575_s1 + $0x88c] ss:$16 sps:$4 sm:$0xff]  }
  0xe3   : > { %2308 = vmatpush1.bf16.msra.mxu0 %v5507_v1  ;;  %v5589_v1 = vld [vmem:[%s7575_s1 + $0x788] ss:$16 sps:$4 sm:$0xff]  }
  0xe4   : > { %2349 = vmatpush1.bf16.msra.mxu1 %v5510_v3  ;;  %2309 = vmatprep.subr.bf16.mxu0 %v5515_v4  ;;  %v5600_v3 = vld [vmem:[%s7575_s1 + $0x8ac] ss:$16 sps:$4 sm:$0xff]   ;;  %v5595_v4 = vld [vmem:[%s7575_s1 + $0x7a8] ss:$16 sps:$4 sm:$0xff]  }
  0xe5   : > { %2375 = vmatprep.subr.bf16.mxu1 %v5520_v5  ;;  %v5598_v5 = vld [vmem:[%s7575_s1 + $0x8a8] ss:$16 sps:$4 sm:$0xff]  }
  0xe7   : > { %2367 = vmatmul.mubr.bf16.vlgmr.msra.gmra.mrb[16].mxu1 %v6698_v7  ;;  %2310 = vmatpush1.bf16.msra.mxu0 %v5513_v6  ;;  %v6872_v6 = vld [vmem:[%s6027_s11 + $0xc] sm:$0x33] }
  0xe8   : > { %2376 = vmatpush1.bf16.msra.mxu1 %v5518_v8  ;;  %2311 = vmatprep.subr.bf16.mxu0 %v5523_v9  ;;  %v5603_v8 = vld [vmem:[%s7575_s1 + $0x7cc] ss:$16 sps:$4 sm:$0xff]  }
  0xe9   : > { %2377 = vmatprep.subr.bf16.mxu1 %v5526_v10  ;;  %2407 = vmatprep.mubr.bf16.mxu1 %v6600_v38  ;;  %v5606_v9 = vld [vmem:[%s7575_s1 + $0x8cc] ss:$16 sps:$4 sm:$0xff]  }
  0xeb   : > { %2312 = vmatpush1.bf16.msra.mxu0 %v5521_v11  ;;  %v5601_v11 = vld [vmem:[%s7575_s1 + $0x7c8] ss:$16 sps:$4 sm:$0xff]  }
  0xec   : > { %2378 = vmatpush1.bf16.msra.mxu1 %v5524_v12  ;;  %2313 = vmatprep.subr.bf16.mxu0 %v5529_v13  ;;  %v5604_v12 = vld [vmem:[%s7575_s1 + $0x8c8] ss:$16 sps:$4 sm:$0xff]   ;;  %v4858_v13 = vcombine.high %v6572_v28, %v6872_v6  ;;  %v5612_v28 = vld [vmem:[%s7575_s1 + $0x8ec] ss:$16 sps:$4 sm:$0xff]  }
  0xed   : > { %2379 = vmatprep.subr.bf16.mxu1 %v5532_v14 }
  0xef   : > { %2314 = vmatpush1.bf16.msra.mxu0 %v5527_v15 }
  0xf0   : > { %2380 = vmatpush1.bf16.msra.mxu1 %v5530_v16  ;;  %2315 = vmatprep.subr.bf16.mxu0 %v5535_v17 }
  0xf1   : > { %2381 = vmatprep.subr.bf16.mxu1 %v5538_v18 }
  0xf3   : > { %2316 = vmatpush1.bf16.msra.mxu0 %v5533_v19  ;;  %v5609_v19 = vld [vmem:[%s7575_s1 + $0x7ec] ss:$16 sps:$4 sm:$0xff]  }
  0xf4   : > { %2382 = vmatpush1.bf16.msra.mxu1 %v5536_v20  ;;  %2317 = vmatprep.subr.bf16.mxu0 %v5541_v21  ;;  %v2577_v20 = vshrl.u32 %v4858_v13, 16  ;;  %v2580_v21 = vshll.u32 %v4858_v13, 16  ;;  %v5658_v13 = vld [vmem:[%s7575_s1 + $0xbe0] ss:$16 sps:$4 sm:$0xff]  }
  0xf5   : > { %2383 = vmatprep.subr.bf16.mxu1 %v5544_v22  ;;  %v5607_v22 = vld [vmem:[%s7575_s1 + $0x7e8] ss:$16 sps:$4 sm:$0xff]  }
  0xf7   : > { %2318 = vmatpush1.bf16.msra.mxu0 %v5539_v23  ;;  %v5610_v23 = vld [vmem:[%s7575_s1 + $0x8e8] ss:$16 sps:$4 sm:$0xff]  }
  0xf8   : > { %2384 = vmatpush1.bf16.msra.mxu1 %v5542_v24  ;;  %2319 = vmatprep.subr.bf16.mxu0 %v5547_v25  ;;  %v5615_v24 = vld [vmem:[%s7575_s1 + $0x904] ss:$16 sps:$4 sm:$0xff]  }
  0xf9   : > { %2385 = vmatprep.subr.bf16.mxu1 %v5550_v26  ;;  %v5618_v25 = vld [vmem:[%s7575_s1 + $0xb04] ss:$16 sps:$4 sm:$0xff]   ;;  %v5613_v26 = vld [vmem:[%s7575_s1 + $0x900] ss:$16 sps:$4 sm:$0xff]  }
  0xfa   : > { %v6771_v34 = vpop.f32.mrb[0].mxu1 }
  0xfb   : > { %v6773_v35 = vpop.f32.mrb[1].mxu1  ;;  %2320 = vmatpush1.bf16.msra.mxu0 %v5545_v30  ;;  %v2579_v30 = vrot.slane %v2577_v20, 1  ;;  %v5669_v20 = vld [vmem:[%s7575_s1 + $0xa24] ss:$16 sps:$4 sm:$0xff]  }
  0xfc   : > { %v965_v38 = vpop.f32.mrb[2].mxu1  ;;  %2386 = vmatpush1.bf16.msra.mxu1 %v5548_v31  ;;  %2321 = vmatprep.subr.bf16.mxu0 %v5553_v32  ;;  %v2582_v31 = vrot.slane %v2580_v21, 2  ;;  %v5616_v32 = vld [vmem:[%s7575_s1 + $0xb00] ss:$16 sps:$4 sm:$0xff]   ;;  %v5672_v21 = vld [vmem:[%s7575_s1 + $0x92c] ss:$16 sps:$4 sm:$0xff]  }
  0xfd   : > { %v966_v40 = vpop.f32.mrb[3].mxu1  ;;  %2387 = vmatprep.subr.bf16.mxu1 %v5556_v33  ;;  %v5621_v33 = vld [vmem:[%s7575_s1 + $0x924] ss:$16 sps:$4 sm:$0xff]  }
  0xfe   : > { %v5627_v38 = vld [vmem:[%s7575_s1 + $0x944] ss:$16 sps:$4 sm:$0xff]   ;;  %v5628_v40 = vld [vmem:[%s7575_s1 + $0xb40] ss:$16 sps:$4 sm:$0xff]  }
  0xff   : > { %2322 = vmatpush1.bf16.msra.mxu0 %v5551_v36  ;;  %v5619_v36 = vld [vmem:[%s7575_s1 + $0x920] ss:$16 sps:$4 sm:$0xff]  }
 0x100   : > { %2388 = vmatpush1.bf16.msra.mxu1 %v5554_v37  ;;  %2323 = vmatprep.subr.bf16.mxu0 %v5559_v39  ;;  %v5622_v37 = vld [vmem:[%s7575_s1 + $0xb20] ss:$16 sps:$4 sm:$0xff]  }
 0x101   : > { %2389 = vmatprep.subr.bf16.mxu1 %v5562_v42  ;;  %v5625_v39 = vld [vmem:[%s7575_s1 + $0x940] ss:$16 sps:$4 sm:$0xff]   ;;  %v5633_v42 = vld [vmem:[%s7575_s1 + $0x964] ss:$16 sps:$4 sm:$0xff]  }
 0x103   : > { %2324 = vmatpush1.bf16.msra.mxu0 %v5557_v29  ;;  %v5636_v29 = vld [vmem:[%s7575_s1 + $0xb64] ss:$16 sps:$4 sm:$0xff]  }
 0x104   : > { %2390 = vmatpush1.bf16.msra.mxu1 %v5560_v43  ;;  %2416 = vmatprep.subr.bf16.mxu0 %v5570_v46  ;;  %v5631_v43 = vld [vmem:[%s7575_s1 + $0x960] ss:$16 sps:$4 sm:$0xff]   ;;  %v5639_v46 = vld [vmem:[%s7575_s1 + $0x984] ss:$16 sps:$4 sm:$0xff]  }
 0x105   : > { %2391 = vmatprep.subr.bf16.mxu1 %v5567_v45  ;;  %v6961_v45 = vld [vmem:[%s6027_s11 + $0x14] sm:$0x3] }
 0x106   : > { %2326 = vmatmul.mubr.bf16.vlgmr.msra.gmra.mrb[16].mxu0 %v6801_v47 }
 0x107   : > { %2417 = vmatpush1.bf16.msra.mxu0 %v5568_v27  ;;  %2448 = vmatprep.mubr.bf16.mxu0 %v5917_v2  ;;  %v5640_v27 = vld [vmem:[%s7575_s1 + $0xb80] ss:$16 sps:$4 sm:$0xff]  }
 0x108   : > { %2392 = vmatpush1.bf16.msra.mxu1 %v5565_v48  ;;  %2418 = vmatprep.subr.bf16.mxu0 %v5576_v50  ;;  %v5637_v48 = vld [vmem:[%s7575_s1 + $0x980] ss:$16 sps:$4 sm:$0xff]   ;;  %v5648_v50 = vld [vmem:[%s7575_s1 + $0xba4] ss:$16 sps:$4 sm:$0xff]  }
 0x109   : > { %2393 = vmatprep.subr.bf16.mxu1 %v5573_v49  ;;  %v5645_v49 = vld [vmem:[%s7575_s1 + $0x9a4] ss:$16 sps:$4 sm:$0xff]  }
 0x10b   : > { %2419 = vmatpush1.bf16.msra.mxu0 %v5574_v52  ;;  %v5643_v52 = vld [vmem:[%s7575_s1 + $0x9a0] ss:$16 sps:$4 sm:$0xff]  }
 0x10c   : > { %2394 = vmatpush1.bf16.msra.mxu1 %v5571_v51  ;;  %2420 = vmatprep.subr.bf16.mxu0 %v5582_v54  ;;  %v4859_v51 = vcombine.low %v6676_v63, %v6961_v45  ;;  %v5651_v54 = vld [vmem:[%s7575_s1 + $0x9c4] ss:$16 sps:$4 sm:$0xff]  }
 0x10d   : > { %2395 = vmatprep.subr.bf16.mxu1 %v5579_v53  ;;  %v5646_v53 = vld [vmem:[%s7575_s1 + $0xba0] ss:$16 sps:$4 sm:$0xff]   ;;  %v5654_v63 = vld [vmem:[%s7575_s1 + $0xbc4] ss:$16 sps:$4 sm:$0xff]  }
 0x10f   : > { %2421 = vmatpush1.bf16.msra.mxu0 %v5580_v57 }
 0x110   : > { %2396 = vmatpush1.bf16.msra.mxu1 %v5577_v55  ;;  %2422 = vmatprep.subr.bf16.mxu0 %v5588_v59  ;;  %v2585_v59 = vshrl.u32 %v4859_v51, 16 }
 0x111   : > { %2397 = vmatprep.subr.bf16.mxu1 %v5585_v58  ;;  %v5649_v58 = vld [vmem:[%s7575_s1 + $0x9c0] ss:$16 sps:$4 sm:$0xff]  }
 0x113   : > { %2423 = vmatpush1.bf16.msra.mxu0 %v5586_v61 }
 0x114   : > { %2398 = vmatpush1.bf16.msra.mxu1 %v5583_v60  ;;  %2424 = vmatprep.subr.bf16.mxu0 %v5594_v0  ;;  %v2588_v0 = vshll.u32 %v4859_v51, 16  ;;  %v5697_v51 = vld [vmem:[%s7575_s1 + $0xac0] ss:$16 sps:$4 sm:$0xff]  }
 0x115   : > { %2399 = vmatprep.subr.bf16.mxu1 %v5591_v62 }
 0x117   : > { %2425 = vmatpush1.bf16.msra.mxu0 %v5592_v56 }
 0x118   : > { %2400 = vmatpush1.bf16.msra.mxu1 %v5589_v1  ;;  %2426 = vmatprep.subr.bf16.mxu0 %v5600_v3  ;;  %v5652_v3 = vld [vmem:[%s7575_s1 + $0xbc0] ss:$16 sps:$4 sm:$0xff]  }
 0x119   : > { %2401 = vmatprep.subr.bf16.mxu1 %v5597_v41  ;;  %v920_v10 = vpop.f32.mrb[0].mxu0 }
 0x11a   : > { %v6889_v14 = vadd.f32 %v6771_v34, %v920_v10  ;;  %v922_v15 = vpop.f32.mrb[1].mxu0  ;;  %v5624_v34 = vld [vmem:[%s7575_s1 + $0xb24] ss:$16 sps:$4 sm:$0xff]   ;;  %v2587_v10 = vrot.slane %v2585_v59, 1  ;;  %v5706_v59 = vld [vmem:[%s7575_s1 + $0x9e8] ss:$16 sps:$4 sm:$0xff]  }
 0x11b   : > { %v6892_v16 = vadd.f32 %v6773_v35, %v922_v15  ;;  %v924_v17 = vpop.f32.mrb[2].mxu0  ;;  %2427 = vmatpush1.bf16.msra.mxu0 %v5598_v5  ;;  %v6924_v35 = vor.u32 %v2582_v31, %v2579_v30  ;;  %v5663_v15 = vld [vmem:[%s7575_s1 + $0xa04] ss:$16 sps:$4 sm:$0xff]   ;;  %v5676_v30 = vld [vmem:[%s7575_s1 + $0x948] ss:$16 sps:$4 sm:$0xff]  }
 0x11c   : > { %2402 = vmatpush1.bf16.msra.mxu1 %v5595_v4  ;;  %v925_v18 = vpop.f32.mrb[3].mxu0  ;;  %2428 = vmatprep.subr.bf16.mxu0 %v5606_v9  ;;  %v5660_v9 = vld [vmem:[%s7575_s1 + $0xbe4] ss:$16 sps:$4 sm:$0xff]   ;;  %v5666_v17 = vld [vmem:[%s7575_s1 + $0x90c] ss:$16 sps:$4 sm:$0xff]  }
 0x11d   : > { %2403 = vmatprep.subr.bf16.mxu1 %v5603_v8  ;;  %v5657_v8 = vld [vmem:[%s7575_s1 + $0x9e4] ss:$16 sps:$4 sm:$0xff]  }
 0x11e   : > { %v5681_v31 = vld [vmem:[%s7575_s1 + $0xa64] ss:$16 sps:$4 sm:$0xff]  }
 0x11f   : > { %2429 = vmatpush1.bf16.msra.mxu0 %v5604_v12  ;;  %v5655_v12 = vld [vmem:[%s7575_s1 + $0x9e0] ss:$16 sps:$4 sm:$0xff]  }
 0x120   : > { %2404 = vmatpush1.bf16.msra.mxu1 %v5601_v11  ;;  %2430 = vmatprep.subr.bf16.mxu0 %v5612_v28  ;;  %v2590_v11 = vrot.slane %v2588_v0, 2  ;;  %v5664_v28 = vld [vmem:[%s7575_s1 + $0x908] ss:$16 sps:$4 sm:$0xff]  }
 0x121   : > { %2405 = vmatprep.subr.bf16.mxu1 %v5609_v19  ;;  %v5661_v19 = vld [vmem:[%s7575_s1 + $0xa00] ss:$16 sps:$4 sm:$0xff]  }
 0x122   : > { %v7023_v18 = vor.u32 %v2590_v11, %v2587_v10  ;;  %v5728_v10 = vld [vmem:[%s7575_s1 + $0xb4c] ss:$16 sps:$4 sm:$0xff]   ;;  %v5723_v11 = vld [vmem:[%s7575_s1 + $0xa48] ss:$16 sps:$4 sm:$0xff]  }
 0x123   : > { %2431 = vmatpush1.bf16.msra.mxu0 %v5610_v23  ;;  %v5670_v23 = vld [vmem:[%s7575_s1 + $0x928] ss:$16 sps:$4 sm:$0xff]  }
 0x124   : > { %2406 = vmatpush1.bf16.msra.mxu1 %v5607_v22  ;;  %3075 = vmatprep.subr.bf16.mxu0 %v5615_v24  ;;  %v5667_v22 = vld [vmem:[%s7575_s1 + $0xa20] ss:$16 sps:$4 sm:$0xff]   ;;  %v5675_v24 = vld [vmem:[%s7575_s1 + $0xa44] ss:$16 sps:$4 sm:$0xff]  }
 0x125   : > { %3116 = vmatprep.subr.bf16.mxu1 %v5618_v25  ;;  %v5678_v25 = vld [vmem:[%s7575_s1 + $0x94c] ss:$16 sps:$4 sm:$0xff]  }
 0x126   : > { %2449 = vmatmul.mubr.bf16.vlgmr.msra.gmra.mrb[20].mxu0 %v6698_v7  ;;  %v5630_v7 = vld [vmem:[%s7575_s1 + $0xb44] ss:$16 sps:$4 sm:$0xff]  }
 0x127   : > { %2408 = vmatmul.mubr.bf16.vlgmr.msra.gmra.mrb[20].mxu1 %v6801_v47  ;;  %3076 = vmatpush1.bf16.msra.mxu0 %v5613_v26  ;;  %v5642_v47 = vld [vmem:[%s7575_s1 + $0xb84] ss:$16 sps:$4 sm:$0xff]   ;;  %v5673_v26 = vld [vmem:[%s7575_s1 + $0xa40] ss:$16 sps:$4 sm:$0xff]  }
 0x128   : > { %3117 = vmatpush1.bf16.msra.mxu1 %v5616_v32  ;;  %3077 = vmatprep.subr.bf16.mxu0 %v5621_v33  ;;  %v5684_v32 = vld [vmem:[%s7575_s1 + $0x96c] ss:$16 sps:$4 sm:$0xff]   ;;  %v5679_v33 = vld [vmem:[%s7575_s1 + $0xa60] ss:$16 sps:$4 sm:$0xff]  }
 0x129   : > { %3118 = vmatprep.subr.bf16.mxu1 %v5624_v34  ;;  %3148 = vmatprep.mubr.bf16.mxu1 %v5917_v2  ;;  %v5682_v34 = vld [vmem:[%s7575_s1 + $0x968] ss:$16 sps:$4 sm:$0xff]  }
 0x12a   : > { %3107 = vmatprep.mubr.bf16.mxu0 %v6924_v35 }
 0x12b   : > { %3078 = vmatpush1.bf16.msra.mxu0 %v5619_v36  ;;  %v5690_v36 = vld [vmem:[%s7575_s1 + $0x98c] ss:$16 sps:$4 sm:$0xff]  }
 0x12c   : > { %3119 = vmatpush1.bf16.msra.mxu1 %v5622_v37  ;;  %3079 = vmatprep.subr.bf16.mxu0 %v5627_v38  ;;  %v5685_v37 = vld [vmem:[%s7575_s1 + $0xa80] ss:$16 sps:$4 sm:$0xff]   ;;  %v5688_v38 = vld [vmem:[%s7575_s1 + $0x988] ss:$16 sps:$4 sm:$0xff]  }
 0x12d   : > { %3120 = vmatprep.subr.bf16.mxu1 %v5630_v7  ;;  %v5693_v7 = vld [vmem:[%s7575_s1 + $0xaa4] ss:$16 sps:$4 sm:$0xff]  }
 0x12f   : > { %3080 = vmatpush1.bf16.msra.mxu0 %v5625_v39  ;;  %v5696_v39 = vld [vmem:[%s7575_s1 + $0x9ac] ss:$16 sps:$4 sm:$0xff]  }
 0x130   : > { %3121 = vmatpush1.bf16.msra.mxu1 %v5628_v40  ;;  %3081 = vmatprep.subr.bf16.mxu0 %v5633_v42  ;;  %v5908_v40 = vld [vmem:[%s6027_s11] sm:$0xee] }
 0x131   : > { %3122 = vmatprep.subr.bf16.mxu1 %v5636_v29  ;;  %v4857_v42 = vcombine.low %v5908_v40, %v6872_v6  ;;  %v5691_v29 = vld [vmem:[%s7575_s1 + $0xaa0] ss:$16 sps:$4 sm:$0xff]  }
 0x133   : > { %3082 = vmatpush1.bf16.msra.mxu0 %v5631_v43  ;;  %v5694_v43 = vld [vmem:[%s7575_s1 + $0x9a8] ss:$16 sps:$4 sm:$0xff]  }
 0x134   : > { %3123 = vmatpush1.bf16.msra.mxu1 %v5634_v44  ;;  %3083 = vmatprep.subr.bf16.mxu0 %v5639_v46  ;;  %v5699_v44 = vld [vmem:[%s7575_s1 + $0xac4] ss:$16 sps:$4 sm:$0xff]   ;;  %v5702_v46 = vld [vmem:[%s7575_s1 + $0x9cc] ss:$16 sps:$4 sm:$0xff]  }
 0x135   : > { %3124 = vmatprep.subr.bf16.mxu1 %v5642_v47 }
 0x137   : > { %3084 = vmatpush1.bf16.msra.mxu0 %v5637_v48 }
 0x138   : > { %3125 = vmatpush1.bf16.msra.mxu1 %v5640_v27  ;;  %3085 = vmatprep.subr.bf16.mxu0 %v5645_v49  ;;  %v2569_v27 = vshrl.u32 %v4857_v42, 16  ;;  %v2572_v49 = vshll.u32 %v4857_v42, 16  ;;  %v7226_v42 = vld [vmem:[%s6027_s11] sm:$0xcc] }
 0x139   : > { %3126 = vmatprep.subr.bf16.mxu1 %v5648_v50  ;;  %v1043_v57 = vpop.f32.mrb[4].mxu0 }
 0x13a   : > { %v1002_v55 = vpop.f32.mrb[4].mxu1  ;;  %v1045_v62 = vpop.f32.mrb[5].mxu0 }
 0x13b   : > { %v6998_v60 = vadd.f32 %v1043_v57, %v1002_v55  ;;  %v1004_v61 = vpop.f32.mrb[5].mxu1  ;;  %v1047_v41 = vpop.f32.mrb[6].mxu0  ;;  %3086 = vmatpush1.bf16.msra.mxu0 %v5643_v52  ;;  %v5700_v52 = vld [vmem:[%s7575_s1 + $0x9c8] ss:$16 sps:$4 sm:$0xff]   ;;  %v2571_v55 = vrot.slane %v2569_v27, 1  ;;  %v2574_v57 = vrot.slane %v2572_v49, 2 }
 0x13c   : > { %v7000_v1 = vadd.f32 %v1045_v62, %v1004_v61  ;;  %v1006_v56 = vpop.f32.mrb[6].mxu1  ;;  %3127 = vmatpush1.bf16.msra.mxu1 %v5646_v53  ;;  %v1048_v5 = vpop.f32.mrb[7].mxu0  ;;  %3087 = vmatprep.subr.bf16.mxu0 %v5651_v54  ;;  %v5705_v54 = vld [vmem:[%s7575_s1 + $0xae4] ss:$16 sps:$4 sm:$0xff]   ;;  %v5713_v61 = vld [vmem:[%s7575_s1 + $0xa0c] ss:$16 sps:$4 sm:$0xff]  }
 0x13d   : > { %v1007_v4 = vpop.f32.mrb[7].mxu1  ;;  %3128 = vmatprep.subr.bf16.mxu1 %v5654_v63  ;;  %v5708_v63 = vld [vmem:[%s7575_s1 + $0x9ec] ss:$16 sps:$4 sm:$0xff]   ;;  %v7129_v0 = vor.u32 %v2574_v57, %v2571_v55  ;;  %v5711_v56 = vld [vmem:[%s7575_s1 + $0xa08] ss:$16 sps:$4 sm:$0xff]  }
 0x13e   : > { %v5716_v62 = vld [vmem:[%s7575_s1 + $0xb0c] ss:$16 sps:$4 sm:$0xff]   ;;  %v5714_v41 = vld [vmem:[%s7575_s1 + $0xb08] ss:$16 sps:$4 sm:$0xff]   ;;  %v5762_v27 = vld [vmem:[%s7575_s1 + $0xe00] ss:$16 sps:$4 sm:$0xff]  }
 0x13f   : > { %3088 = vmatpush1.bf16.msra.mxu0 %v5649_v58  ;;  %v5703_v58 = vld [vmem:[%s7575_s1 + $0xae0] ss:$16 sps:$4 sm:$0xff]   ;;  %v5722_v4 = vld [vmem:[%s7575_s1 + $0xb2c] ss:$16 sps:$4 sm:$0xff]   ;;  %v5717_v5 = vld [vmem:[%s7575_s1 + $0xa28] ss:$16 sps:$4 sm:$0xff]  }
 0x140   : > { %3129 = vmatpush1.bf16.msra.mxu1 %v5652_v3  ;;  %3089 = vmatprep.subr.bf16.mxu0 %v5657_v8  ;;  %v5719_v3 = vld [vmem:[%s7575_s1 + $0xa2c] ss:$16 sps:$4 sm:$0xff]   ;;  %v5720_v8 = vld [vmem:[%s7575_s1 + $0xb28] ss:$16 sps:$4 sm:$0xff]   ;;  %v5767_v49 = vld [vmem:[%s7575_s1 + $0xc24] ss:$16 sps:$4 sm:$0xff]  }
 0x141   : > { %3130 = vmatprep.subr.bf16.mxu1 %v5660_v9  ;;  %v5725_v9 = vld [vmem:[%s7575_s1 + $0xa4c] ss:$16 sps:$4 sm:$0xff]   ;;  %v5774_v55 = vld [vmem:[%s7575_s1 + $0xe40] ss:$16 sps:$4 sm:$0xff]   ;;  %v5779_v57 = vld [vmem:[%s7575_s1 + $0xc64] ss:$16 sps:$4 sm:$0xff]  }
 0x143   : > { %3090 = vmatpush1.bf16.msra.mxu0 %v5655_v12  ;;  %v5726_v12 = vld [vmem:[%s7575_s1 + $0xb48] ss:$16 sps:$4 sm:$0xff]  }
 0x144   : > { %3131 = vmatpush1.bf16.msra.mxu1 %v5658_v13  ;;  %3091 = vmatprep.subr.bf16.mxu0 %v5663_v15  ;;  %v5731_v13 = vld [vmem:[%s7575_s1 + $0xa6c] ss:$16 sps:$4 sm:$0xff]  }
 0x145   : > { %3157 = vmatprep.subr.bf16.mxu1 %v5666_v17  ;;  %v5734_v15 = vld [vmem:[%s7575_s1 + $0xb6c] ss:$16 sps:$4 sm:$0xff]   ;;  %v5729_v17 = vld [vmem:[%s7575_s1 + $0xa68] ss:$16 sps:$4 sm:$0xff]  }
 0x147   : > { %3149 = vmatmul.mubr.bf16.vlgmr.msra.gmra.mrb[24].mxu1 %v7023_v18  ;;  %3092 = vmatpush1.bf16.msra.mxu0 %v5661_v19  ;;  %v5732_v19 = vld [vmem:[%s7575_s1 + $0xb68] ss:$16 sps:$4 sm:$0xff]  }
 0x148   : > { %3158 = vmatpush1.bf16.msra.mxu1 %v5664_v28  ;;  %3093 = vmatprep.subr.bf16.mxu0 %v5669_v20  ;;  %v5737_v28 = vld [vmem:[%s7575_s1 + $0xa8c] ss:$16 sps:$4 sm:$0xff]  }
 0x149   : > { %3159 = vmatprep.subr.bf16.mxu1 %v5672_v21  ;;  %3189 = vmatprep.mubr.bf16.mxu1 %v6924_v35  ;;  %v5687_v35 = vld [vmem:[%s7575_s1 + $0xa84] ss:$16 sps:$4 sm:$0xff]   ;;  %v5740_v20 = vld [vmem:[%s7575_s1 + $0xb8c] ss:$16 sps:$4 sm:$0xff]   ;;  %v5735_v21 = vld [vmem:[%s7575_s1 + $0xa88] ss:$16 sps:$4 sm:$0xff]  }
 0x14b   : > { %3094 = vmatpush1.bf16.msra.mxu0 %v5667_v22  ;;  %v5738_v22 = vld [vmem:[%s7575_s1 + $0xb88] ss:$16 sps:$4 sm:$0xff]  }
 0x14c   : > { %3160 = vmatpush1.bf16.msra.mxu1 %v5670_v23  ;;  %3095 = vmatprep.subr.bf16.mxu0 %v5675_v24  ;;  %v5743_v23 = vld [vmem:[%s7575_s1 + $0xaac] ss:$16 sps:$4 sm:$0xff]  }
 0x14d   : > { %3161 = vmatprep.subr.bf16.mxu1 %v5678_v25  ;;  %v5746_v24 = vld [vmem:[%s7575_s1 + $0xbac] ss:$16 sps:$4 sm:$0xff]   ;;  %v5741_v25 = vld [vmem:[%s7575_s1 + $0xaa8] ss:$16 sps:$4 sm:$0xff]  }
 0x14f   : > { %3096 = vmatpush1.bf16.msra.mxu0 %v5673_v26  ;;  %v5744_v26 = vld [vmem:[%s7575_s1 + $0xba8] ss:$16 sps:$4 sm:$0xff]  }
 0x150   : > { %3162 = vmatpush1.bf16.msra.mxu1 %v5676_v30  ;;  %3097 = vmatprep.subr.bf16.mxu0 %v5681_v31  ;;  %v5749_v30 = vld [vmem:[%s7575_s1 + $0xacc] ss:$16 sps:$4 sm:$0xff]  }
 0x151   : > { %3163 = vmatprep.subr.bf16.mxu1 %v5684_v32  ;;  %v5752_v31 = vld [vmem:[%s7575_s1 + $0xbcc] ss:$16 sps:$4 sm:$0xff]  }
 0x153   : > { %3098 = vmatpush1.bf16.msra.mxu0 %v5679_v33 }
 0x154   : > { %3164 = vmatpush1.bf16.msra.mxu1 %v5682_v34  ;;  %3099 = vmatprep.subr.bf16.mxu0 %v5687_v35 }
 0x155   : > { %3165 = vmatprep.subr.bf16.mxu1 %v5690_v36 }
 0x157   : > { %3100 = vmatpush1.bf16.msra.mxu0 %v5685_v37  ;;  %v5747_v37 = vld [vmem:[%s7575_s1 + $0xac8] ss:$16 sps:$4 sm:$0xff]  }
 0x158   : > { %3166 = vmatpush1.bf16.msra.mxu1 %v5688_v38  ;;  %3101 = vmatprep.subr.bf16.mxu0 %v5693_v7  ;;  %v5750_v38 = vld [vmem:[%s7575_s1 + $0xbc8] ss:$16 sps:$4 sm:$0xff]  }
 0x159   : > { %3167 = vmatprep.subr.bf16.mxu1 %v5696_v39 }
 0x15a   : > { %v7101_v47 = vpop.f32.mrb[8].mxu1 }
 0x15b   : > { %v7103_v48 = vpop.f32.mrb[9].mxu1  ;;  %3102 = vmatpush1.bf16.msra.mxu0 %v5691_v29  ;;  %v5753_v29 = vld [vmem:[%s7575_s1 + $0xae8] ss:$16 sps:$4 sm:$0xff]  }
 0x15c   : > { %v1615_v50 = vpop.f32.mrb[10].mxu1  ;;  %3168 = vmatpush1.bf16.msra.mxu1 %v5694_v43  ;;  %3103 = vmatprep.subr.bf16.mxu0 %v5699_v44  ;;  %v5756_v43 = vld [vmem:[%s7575_s1 + $0xbe8] ss:$16 sps:$4 sm:$0xff]   ;;  %v5761_v44 = vld [vmem:[%s7575_s1 + $0xc04] ss:$16 sps:$4 sm:$0xff]  }
 0x15d   : > { %v1616_v53 = vpop.f32.mrb[11].mxu1  ;;  %3169 = vmatprep.subr.bf16.mxu1 %v5702_v46  ;;  %v5764_v46 = vld [vmem:[%s7575_s1 + $0xe04] ss:$16 sps:$4 sm:$0xff]  }
 0x15e   : > { %v5770_v50 = vld [vmem:[%s7575_s1 + $0xe24] ss:$16 sps:$4 sm:$0xff]   ;;  %v5768_v53 = vld [vmem:[%s7575_s1 + $0xe20] ss:$16 sps:$4 sm:$0xff]  }
 0x15f   : > { %3104 = vmatpush1.bf16.msra.mxu0 %v5697_v51 }
 0x160   : > { %3170 = vmatpush1.bf16.msra.mxu1 %v5700_v52  ;;  %3105 = vmatprep.subr.bf16.mxu0 %v5705_v54  ;;  %v5765_v52 = vld [vmem:[%s7575_s1 + $0xc20] ss:$16 sps:$4 sm:$0xff]   ;;  %v5773_v54 = vld [vmem:[%s7575_s1 + $0xc44] ss:$16 sps:$4 sm:$0xff]  }
 0x161   : > { %3171 = vmatprep.subr.bf16.mxu1 %v5708_v63  ;;  %v5771_v63 = vld [vmem:[%s7575_s1 + $0xc40] ss:$16 sps:$4 sm:$0xff]  }
 0x163   : > { %3106 = vmatpush1.bf16.msra.mxu0 %v5703_v58  ;;  %v5782_v58 = vld [vmem:[%s7575_s1 + $0xe64] ss:$16 sps:$4 sm:$0xff]  }
 0x164   : > { %3172 = vmatpush1.bf16.msra.mxu1 %v5706_v59  ;;  %3198 = vmatprep.subr.bf16.mxu0 %v5716_v62  ;;  %v5777_v59 = vld [vmem:[%s7575_s1 + $0xc60] ss:$16 sps:$4 sm:$0xff]   ;;  %v5785_v62 = vld [vmem:[%s7575_s1 + $0xc84] ss:$16 sps:$4 sm:$0xff]  }
 0x165   : > { %3173 = vmatprep.subr.bf16.mxu1 %v5713_v61  ;;  %v5780_v61 = vld [vmem:[%s7575_s1 + $0xe60] ss:$16 sps:$4 sm:$0xff]  }
 0x166   : > { %3108 = vmatmul.mubr.bf16.vlgmr.msra.gmra.mrb[24].mxu0 %v7129_v0 }
 0x167   : > { %3199 = vmatpush1.bf16.msra.mxu0 %v5714_v41  ;;  %3230 = vmatprep.mubr.bf16.mxu0 %v5917_v2  ;;  %v5786_v41 = vld [vmem:[%s7575_s1 + $0xe80] ss:$16 sps:$4 sm:$0xff]  }
 0x168   : > { %3174 = vmatpush1.bf16.msra.mxu1 %v5711_v56  ;;  %3200 = vmatprep.subr.bf16.mxu0 %v5722_v4  ;;  %v5783_v56 = vld [vmem:[%s7575_s1 + $0xc80] ss:$16 sps:$4 sm:$0xff]   ;;  %v5794_v4 = vld [vmem:[%s7575_s1 + $0xea4] ss:$16 sps:$4 sm:$0xff]  }
 0x169   : > { %3175 = vmatprep.subr.bf16.mxu1 %v5719_v3  ;;  %v5791_v3 = vld [vmem:[%s7575_s1 + $0xca4] ss:$16 sps:$4 sm:$0xff]  }
 0x16b   : > { %3201 = vmatpush1.bf16.msra.mxu0 %v5720_v8  ;;  %v5792_v8 = vld [vmem:[%s7575_s1 + $0xea0] ss:$16 sps:$4 sm:$0xff]  }
 0x16c   : > { %3176 = vmatpush1.bf16.msra.mxu1 %v5717_v5  ;;  %3202 = vmatprep.subr.bf16.mxu0 %v5728_v10  ;;  %v5789_v5 = vld [vmem:[%s7575_s1 + $0xca0] ss:$16 sps:$4 sm:$0xff]   ;;  %v5800_v10 = vld [vmem:[%s7575_s1 + $0xec4] ss:$16 sps:$4 sm:$0xff]  }
 0x16d   : > { %3177 = vmatprep.subr.bf16.mxu1 %v5725_v9  ;;  %v5797_v9 = vld [vmem:[%s7575_s1 + $0xcc4] ss:$16 sps:$4 sm:$0xff]  }
 0x16f   : > { %3203 = vmatpush1.bf16.msra.mxu0 %v5726_v12 }
 0x170   : > { %3178 = vmatpush1.bf16.msra.mxu1 %v5723_v11  ;;  %3204 = vmatprep.subr.bf16.mxu0 %v5734_v15 }
 0x171   : > { %3179 = vmatprep.subr.bf16.mxu1 %v5731_v13 }
 0x173   : > { %3205 = vmatpush1.bf16.msra.mxu0 %v5732_v19  ;;  %v5795_v19 = vld [vmem:[%s7575_s1 + $0xcc0] ss:$16 sps:$4 sm:$0xff]  }
 0x174   : > { %3180 = vmatpush1.bf16.msra.mxu1 %v5729_v17  ;;  %3206 = vmatprep.subr.bf16.mxu0 %v5740_v20 }
 0x175   : > { %3181 = vmatprep.subr.bf16.mxu1 %v5737_v28 }
 0x177   : > { %3207 = vmatpush1.bf16.msra.mxu0 %v5738_v22  ;;  %v5798_v22 = vld [vmem:[%s7575_s1 + $0xec0] ss:$16 sps:$4 sm:$0xff]  }
 0x178   : > { %3182 = vmatpush1.bf16.msra.mxu1 %v5735_v21  ;;  %3208 = vmatprep.subr.bf16.mxu0 %v5746_v24 }
 0x179   : > { %3183 = vmatprep.subr.bf16.mxu1 %v5743_v23  ;;  %v1570_v32 = vpop.f32.mrb[8].mxu0  ;;  %v3244_v23 = vld [vmem:[%s6027_s11 + $0x8] sm:$0xc] }
 0x17a   : > { %v1571_v33 = vadd.f32 %v1570_v32, %v6889_v14  ;;  %v1572_v34 = vpop.f32.mrb[9].mxu0  ;;  %v5755_v14 = vld [vmem:[%s7575_s1 + $0xaec] ss:$16 sps:$4 sm:$0xff]   ;;  %v5801_v32 = vld [vmem:[%s7575_s1 + $0xce0] ss:$16 sps:$4 sm:$0xff]  }
 0x17b   : > { %v1573_v35 = vadd.f32 %v1572_v34, %v6892_v16  ;;  %v1574_v36 = vpop.f32.mrb[10].mxu0  ;;  %3209 = vmatpush1.bf16.msra.mxu0 %v5744_v26  ;;  %v5758_v16 = vld [vmem:[%s7575_s1 + $0xbec] ss:$16 sps:$4 sm:$0xff]   ;;  %v5803_v26 = vld [vmem:[%s7575_s1 + $0xce4] ss:$16 sps:$4 sm:$0xff]  }
 0x17c   : > { %3184 = vmatpush1.bf16.msra.mxu1 %v5741_v25  ;;  %v7214_v7 = vadd.f32 %v7101_v47, %v1571_v33  ;;  %v1575_v39 = vpop.f32.mrb[11].mxu0  ;;  %3210 = vmatprep.subr.bf16.mxu0 %v5752_v31  ;;  %v5053_v47 = vcombine.high %v7226_v42, %v6872_v6  ;;  %v5054_v31 = vcombine.low %v3244_v23, %v6961_v45  ;;  %v5804_v33 = vld [vmem:[%s7575_s1 + $0xee0] ss:$16 sps:$4 sm:$0xff]   ;;  %v5809_v34 = vld [vmem:[%s7575_s1 + $0xd04] ss:$16 sps:$4 sm:$0xff]  }
 0x17d   : > { %3185 = vmatprep.subr.bf16.mxu1 %v5749_v30  ;;  %v7223_v40 = vadd.f32 %v7103_v48, %v1573_v35  ;;  %v5759_v48 = vld [vmem:[%s7575_s1 + $0xc00] ss:$16 sps:$4 sm:$0xff]   ;;  %v5813_v45 = vld [vmem:[%s7575_s1 + $0xc0c] ss:$16 sps:$4 sm:$0xff]  }
 0x17e   : > { %v7254_v51 = vrot.slane %v5053_v47, 2  ;;  %v7352_v35 = vrot.slane %v5054_v31, 2  ;;  %v5807_v36 = vld [vmem:[%s7575_s1 + $0xd00] ss:$16 sps:$4 sm:$0xff]   ;;  %v5819_v39 = vld [vmem:[%s7575_s1 + $0xc2c] ss:$16 sps:$4 sm:$0xff]  }
 0x17f   : > { %3211 = vmatpush1.bf16.msra.mxu0 %v5750_v38  ;;  %v5816_v38 = vld [vmem:[%s7575_s1 + $0xd24] ss:$16 sps:$4 sm:$0xff]   ;;  %v5878_v23 = vld [vmem:[%s7575_s1 + $0xd6c] ss:$16 sps:$4 sm:$0xff]   ;;  %v5882_v31 = vld [vmem:[%s7575_s1 + $0xd88] ss:$16 sps:$4 sm:$0xff]  }
 0x180   : > { %3186 = vmatpush1.bf16.msra.mxu1 %v5747_v37  ;;  %3212 = vmatprep.subr.bf16.mxu0 %v5758_v16  ;;  %v5811_v37 = vld [vmem:[%s7575_s1 + $0xc08] ss:$16 sps:$4 sm:$0xff]   ;;  %v5828_v47 = vld [vmem:[%s7575_s1 + $0xd64] ss:$16 sps:$4 sm:$0xff]  }
 0x181   : > { %3187 = vmatprep.subr.bf16.mxu1 %v5755_v14  ;;  %v5814_v14 = vld [vmem:[%s7575_s1 + $0xd20] ss:$16 sps:$4 sm:$0xff]   ;;  %v5817_v16 = vld [vmem:[%s7575_s1 + $0xc28] ss:$16 sps:$4 sm:$0xff]  }
 0x183   : > { %3213 = vmatpush1.bf16.msra.mxu0 %v5756_v43  ;;  %v5825_v43 = vld [vmem:[%s7575_s1 + $0xc4c] ss:$16 sps:$4 sm:$0xff]  }
 0x184   : > { %3188 = vmatpush1.bf16.msra.mxu1 %v5753_v29  ;;  %3836 = vmatprep.subr.bf16.mxu0 %v5761_v44  ;;  %v5822_v29 = vld [vmem:[%s7575_s1 + $0xd44] ss:$16 sps:$4 sm:$0xff]   ;;  %v5820_v44 = vld [vmem:[%s7575_s1 + $0xd40] ss:$16 sps:$4 sm:$0xff]  }
 0x185   : > { %3877 = vmatprep.subr.bf16.mxu1 %v5764_v46  ;;  %v5823_v46 = vld [vmem:[%s7575_s1 + $0xc48] ss:$16 sps:$4 sm:$0xff]  }
 0x186   : > { %3231 = vmatmul.mubr.bf16.vlgmr.msra.gmra.mrb[28].mxu0 %v7023_v18  ;;  %v5776_v18 = vld [vmem:[%s7575_s1 + $0xe44] ss:$16 sps:$4 sm:$0xff]  }
 0x187   : > { %3190 = vmatmul.mubr.bf16.vlgmr.msra.gmra.mrb[28].mxu1 %v7129_v0  ;;  %3837 = vmatpush1.bf16.msra.mxu0 %v5759_v48  ;;  %v5788_v0 = vld [vmem:[%s7575_s1 + $0xe84] ss:$16 sps:$4 sm:$0xff]   ;;  %v5831_v48 = vld [vmem:[%s7575_s1 + $0xc6c] ss:$16 sps:$4 sm:$0xff]  }
 0x188   : > { %3878 = vmatpush1.bf16.msra.mxu1 %v5762_v27  ;;  %3838 = vmatprep.subr.bf16.mxu0 %v5767_v49  ;;  %v5826_v27 = vld [vmem:[%s7575_s1 + $0xd60] ss:$16 sps:$4 sm:$0xff]   ;;  %v5829_v49 = vld [vmem:[%s7575_s1 + $0xc68] ss:$16 sps:$4 sm:$0xff]  }
 0x189   : > { %3879 = vmatprep.subr.bf16.mxu1 %v5770_v50  ;;  %3909 = vmatprep.mubr.bf16.mxu1 %v5917_v2  ;;  %v5834_v50 = vld [vmem:[%s7575_s1 + $0xd84] ss:$16 sps:$4 sm:$0xff]  }
 0x18a   : > { %3868 = vmatprep.mubr.bf16.mxu0 %v7254_v51 }
 0x18b   : > { %3839 = vmatpush1.bf16.msra.mxu0 %v5765_v52  ;;  %v5832_v52 = vld [vmem:[%s7575_s1 + $0xd80] ss:$16 sps:$4 sm:$0xff]  }
 0x18c   : > { %3880 = vmatpush1.bf16.msra.mxu1 %v5768_v53  ;;  %3840 = vmatprep.subr.bf16.mxu0 %v5773_v54  ;;  %v5835_v53 = vld [vmem:[%s7575_s1 + $0xc88] ss:$16 sps:$4 sm:$0xff]   ;;  %v5840_v54 = vld [vmem:[%s7575_s1 + $0xda4] ss:$16 sps:$4 sm:$0xff]  }
 0x18d   : > { %3881 = vmatprep.subr.bf16.mxu1 %v5776_v18  ;;  %v5843_v18 = vld [vmem:[%s7575_s1 + $0xcac] ss:$16 sps:$4 sm:$0xff]  }
 0x18f   : > { %3841 = vmatpush1.bf16.msra.mxu0 %v5771_v63  ;;  %v5838_v63 = vld [vmem:[%s7575_s1 + $0xda0] ss:$16 sps:$4 sm:$0xff]  }
 0x190   : > { %3882 = vmatpush1.bf16.msra.mxu1 %v5774_v55  ;;  %3842 = vmatprep.subr.bf16.mxu0 %v5779_v57  ;;  %v5841_v55 = vld [vmem:[%s7575_s1 + $0xca8] ss:$16 sps:$4 sm:$0xff]   ;;  %v5846_v57 = vld [vmem:[%s7575_s1 + $0xdc4] ss:$16 sps:$4 sm:$0xff]  }
 0x191   : > { %3883 = vmatprep.subr.bf16.mxu1 %v5782_v58  ;;  %v5849_v58 = vld [vmem:[%s7575_s1 + $0xccc] ss:$16 sps:$4 sm:$0xff]  }
 0x193   : > { %3843 = vmatpush1.bf16.msra.mxu0 %v5777_v59 }
 0x194   : > { %3884 = vmatpush1.bf16.msra.mxu1 %v5780_v61  ;;  %3844 = vmatprep.subr.bf16.mxu0 %v5785_v62 }
 0x195   : > { %3885 = vmatprep.subr.bf16.mxu1 %v5788_v0  ;;  %v5844_v0 = vld [vmem:[%s7575_s1 + $0xdc0] ss:$16 sps:$4 sm:$0xff]  }
 0x197   : > { %3845 = vmatpush1.bf16.msra.mxu0 %v5783_v56  ;;  %v5847_v56 = vld [vmem:[%s7575_s1 + $0xcc8] ss:$16 sps:$4 sm:$0xff]  }
 0x198   : > { %3886 = vmatpush1.bf16.msra.mxu1 %v5786_v41  ;;  %3846 = vmatprep.subr.bf16.mxu0 %v5791_v3  ;;  %v5852_v3 = vld [vmem:[%s7575_s1 + $0xde4] ss:$16 sps:$4 sm:$0xff]  }
 0x199   : > { %3887 = vmatprep.subr.bf16.mxu1 %v5794_v4  ;;  %v1693_v12 = vpop.f32.mrb[12].mxu0  ;;  %v5855_v4 = vld [vmem:[%s7575_s1 + $0xcec] ss:$16 sps:$4 sm:$0xff]  }
 0x19a   : > { %v1652_v11 = vpop.f32.mrb[12].mxu1  ;;  %v1695_v17 = vpop.f32.mrb[13].mxu0 }
 0x19b   : > { %v1653_v13 = vadd.f32 %v1652_v11, %v6998_v60  ;;  %v1654_v15 = vpop.f32.mrb[13].mxu1  ;;  %v1697_v21 = vpop.f32.mrb[14].mxu0  ;;  %3847 = vmatpush1.bf16.msra.mxu0 %v5789_v5  ;;  %v5052_v5 = vcombine.low %v7226_v42, %v6872_v6  ;;  %v5863_v6 = vld [vmem:[%s7575_s1 + $0xe0c] ss:$16 sps:$4 sm:$0xff]   ;;  %v5858_v11 = vld [vmem:[%s7575_s1 + $0xd08] ss:$16 sps:$4 sm:$0xff]  }
 0x19c   : > { %v1655_v28 = vadd.f32 %v1654_v15, %v7000_v1  ;;  %v1656_v20 = vpop.f32.mrb[14].mxu1  ;;  %3888 = vmatpush1.bf16.msra.mxu1 %v5792_v8  ;;  %v1698_v25 = vpop.f32.mrb[15].mxu0  ;;  %3848 = vmatprep.subr.bf16.mxu0 %v5797_v9  ;;  %v5806_v1 = vld [vmem:[%s7575_s1 + $0xee4] ss:$16 sps:$4 sm:$0xff]   ;;  %v5850_v8 = vld [vmem:[%s7575_s1 + $0xde0] ss:$16 sps:$4 sm:$0xff]  }
 0x19d   : > { %v7329_v24 = vadd.f32 %v1693_v12, %v1653_v13  ;;  %v1657_v60 = vpop.f32.mrb[15].mxu1  ;;  %3889 = vmatprep.subr.bf16.mxu1 %v5800_v10  ;;  %v5853_v9 = vld [vmem:[%s7575_s1 + $0xce8] ss:$16 sps:$4 sm:$0xff]   ;;  %v5860_v10 = vld [vmem:[%s7575_s1 + $0xd0c] ss:$16 sps:$4 sm:$0xff]   ;;  %v7458_v42 = vrot.slane %v5052_v5, 2 }
 0x19e   : > { %v7337_v30 = vadd.f32 %v1695_v17, %v1655_v28  ;;  %v5861_v12 = vld [vmem:[%s7575_s1 + $0xe08] ss:$16 sps:$4 sm:$0xff]   ;;  %v5866_v13 = vld [vmem:[%s7575_s1 + $0xd2c] ss:$16 sps:$4 sm:$0xff]  }
 0x19f   : > { %3849 = vmatpush1.bf16.msra.mxu0 %v5795_v19  ;;  %v5869_v15 = vld [vmem:[%s7575_s1 + $0xe2c] ss:$16 sps:$4 sm:$0xff]   ;;  %v5864_v17 = vld [vmem:[%s7575_s1 + $0xd28] ss:$16 sps:$4 sm:$0xff]  }
 0x1a0   : > { %3890 = vmatpush1.bf16.msra.mxu1 %v5798_v22  ;;  %3850 = vmatprep.subr.bf16.mxu0 %v5803_v26  ;;  %v5867_v19 = vld [vmem:[%s7575_s1 + $0xe28] ss:$16 sps:$4 sm:$0xff]   ;;  %v5872_v28 = vld [vmem:[%s7575_s1 + $0xd4c] ss:$16 sps:$4 sm:$0xff]  }
 0x1a1   : > { %3891 = vmatprep.subr.bf16.mxu1 %v5806_v1  ;;  %v5875_v20 = vld [vmem:[%s7575_s1 + $0xe4c] ss:$16 sps:$4 sm:$0xff]   ;;  %v5870_v21 = vld [vmem:[%s7575_s1 + $0xd48] ss:$16 sps:$4 sm:$0xff]  }
 0x1a2   : > { %v5873_v22 = vld [vmem:[%s7575_s1 + $0xe48] ss:$16 sps:$4 sm:$0xff]   ;;  %v5884_v26 = vld [vmem:[%s7575_s1 + $0xd8c] ss:$16 sps:$4 sm:$0xff]  }
 0x1a3   : > { %3851 = vmatpush1.bf16.msra.mxu0 %v5801_v32  ;;  %v5876_v60 = vld [vmem:[%s7575_s1 + $0xd68] ss:$16 sps:$4 sm:$0xff]   ;;  %v5887_v1 = vld [vmem:[%s7575_s1 + $0xe8c] ss:$16 sps:$4 sm:$0xff]  }
 0x1a4   : > { %3892 = vmatpush1.bf16.msra.mxu1 %v5804_v33  ;;  %3852 = vmatprep.subr.bf16.mxu0 %v5809_v34  ;;  %v5879_v25 = vld [vmem:[%s7575_s1 + $0xe68] ss:$16 sps:$4 sm:$0xff]   ;;  %v5890_v33 = vld [vmem:[%s7575_s1 + $0xdac] ss:$16 sps:$4 sm:$0xff]  }
 0x1a5   : > { %3918 = vmatprep.subr.bf16.mxu1 %v5813_v45  ;;  %v5885_v32 = vld [vmem:[%s7575_s1 + $0xe88] ss:$16 sps:$4 sm:$0xff]   ;;  %v5893_v34 = vld [vmem:[%s7575_s1 + $0xeac] ss:$16 sps:$4 sm:$0xff]  }
 0x1a6   : > { %v5888_v45 = vld [vmem:[%s7575_s1 + $0xda8] ss:$16 sps:$4 sm:$0xff]  }
 0x1a7   : > { %3910 = vmatmul.mubr.bf16.vlgmr.msra.gmra.mrb[32].mxu1 %v7352_v35  ;;  %3853 = vmatpush1.bf16.msra.mxu0 %v5807_v36  ;;  %v5891_v36 = vld [vmem:[%s7575_s1 + $0xea8] ss:$16 sps:$4 sm:$0xff]  }
 0x1a8   : > { %3919 = vmatpush1.bf16.msra.mxu1 %v5811_v37  ;;  %3854 = vmatprep.subr.bf16.mxu0 %v5816_v38  ;;  %v5896_v37 = vld [vmem:[%s7575_s1 + $0xdcc] ss:$16 sps:$4 sm:$0xff]  }
 0x1a9   : > { %3920 = vmatprep.subr.bf16.mxu1 %v5819_v39  ;;  %3950 = vmatprep.mubr.bf16.mxu1 %v7254_v51  ;;  %v5837_v51 = vld [vmem:[%s7575_s1 + $0xc8c] ss:$16 sps:$4 sm:$0xff]  }
 0x1aa   : > { %v5899_v38 = vld [vmem:[%s7575_s1 + $0xecc] ss:$16 sps:$4 sm:$0xff]  }
 0x1ab   : > { %3855 = vmatpush1.bf16.msra.mxu0 %v5814_v14 }
 0x1ac   : > { %3921 = vmatpush1.bf16.msra.mxu1 %v5817_v16  ;;  %3856 = vmatprep.subr.bf16.mxu0 %v5822_v29 }
 0x1ad   : > { %3922 = vmatprep.subr.bf16.mxu1 %v5825_v43 }
 0x1af   : > { %3857 = vmatpush1.bf16.msra.mxu0 %v5820_v44  ;;  %v5894_v44 = vld [vmem:[%s7575_s1 + $0xdc8] ss:$16 sps:$4 sm:$0xff]  }
 0x1b0   : > { %3923 = vmatpush1.bf16.msra.mxu1 %v5823_v46  ;;  %3858 = vmatprep.subr.bf16.mxu0 %v5828_v47  ;;  %v5897_v46 = vld [vmem:[%s7575_s1 + $0xec8] ss:$16 sps:$4 sm:$0xff]  }
 0x1b1   : > { %3924 = vmatprep.subr.bf16.mxu1 %v5831_v48 }
 0x1b3   : > { %3859 = vmatpush1.bf16.msra.mxu0 %v5826_v27  ;;  %v5902_v27 = vld [vmem:[%s7575_s1 + $0xdec] ss:$16 sps:$4 sm:$0xff]  }
 0x1b4   : > { %3925 = vmatpush1.bf16.msra.mxu1 %v5829_v49  ;;  %3860 = vmatprep.subr.bf16.mxu0 %v5834_v50  ;;  %v5905_v49 = vld [vmem:[%s7575_s1 + $0xeec] ss:$16 sps:$4 sm:$0xff]  }
 0x1b5   : > { %3926 = vmatprep.subr.bf16.mxu1 %v5837_v51  ;;  %v5900_v51 = vld [vmem:[%s7575_s1 + $0xde8] ss:$16 sps:$4 sm:$0xff]  }
 0x1b7   : > { %3861 = vmatpush1.bf16.msra.mxu0 %v5832_v52 }
 0x1b8   : > { %3927 = vmatpush1.bf16.msra.mxu1 %v5835_v53  ;;  %3862 = vmatprep.subr.bf16.mxu0 %v5840_v54 }
 0x1b9   : > { %3928 = vmatprep.subr.bf16.mxu1 %v5843_v18 }
 0x1ba   : > { %v7428_v59 = vpop.f32.mrb[16].mxu1 }
 0x1bb   : > { %v7430_v61 = vpop.f32.mrb[17].mxu1  ;;  %3863 = vmatpush1.bf16.msra.mxu0 %v5838_v63 }
 0x1bc   : > { %v2372_v62 = vpop.f32.mrb[18].mxu1  ;;  %3929 = vmatpush1.bf16.msra.mxu1 %v5841_v55  ;;  %3864 = vmatprep.subr.bf16.mxu0 %v5846_v57 }
 0x1bd   : > { %v2373_v41 = vpop.f32.mrb[19].mxu1  ;;  %3930 = vmatprep.subr.bf16.mxu1 %v5849_v58 }
 0x1bf   : > { %3865 = vmatpush1.bf16.msra.mxu0 %v5844_v0 }
 0x1c0   : > { %3931 = vmatpush1.bf16.msra.mxu1 %v5847_v56  ;;  %3866 = vmatprep.subr.bf16.mxu0 %v5852_v3 }
 0x1c1   : > { %3932 = vmatprep.subr.bf16.mxu1 %v5855_v4 }
 0x1c3   : > { %3867 = vmatpush1.bf16.msra.mxu0 %v5850_v8 }
 0x1c4   : > { %3933 = vmatpush1.bf16.msra.mxu1 %v5853_v9  ;;  %3959 = vmatprep.subr.bf16.mxu0 %v5863_v6 }
 0x1c5   : > { %3934 = vmatprep.subr.bf16.mxu1 %v5860_v10 }
 0x1c6   : > { %3869 = vmatmul.mubr.bf16.vlgmr.msra.gmra.mrb[32].mxu0 %v7458_v42 }
 0x1c7   : > { %3960 = vmatpush1.bf16.msra.mxu0 %v5861_v12  ;;  %3991 = vmatprep.mubr.bf16.mxu0 %v5917_v2  ;;  %v5881_v2 = vld [vmem:[%s7575_s1 + $0xe6c] ss:$16 sps:$4 sm:$0xff]  }
 0x1c8   : > { %3935 = vmatpush1.bf16.msra.mxu1 %v5858_v11  ;;  %3961 = vmatprep.subr.bf16.mxu0 %v5869_v15  ;;  %v5918_v11 = vmov 0.0  }
 0x1c9   : > { %3936 = vmatprep.subr.bf16.mxu1 %v5866_v13 }
 0x1cb   : > { %3962 = vmatpush1.bf16.msra.mxu0 %v5867_v19 }
 0x1cc   : > { %3937 = vmatpush1.bf16.msra.mxu1 %v5864_v17  ;;  %3963 = vmatprep.subr.bf16.mxu0 %v5875_v20 }
 0x1cd   : > { %3938 = vmatprep.subr.bf16.mxu1 %v5872_v28 }
 0x1cf   : > { %3964 = vmatpush1.bf16.msra.mxu0 %v5873_v22 }
 0x1d0   : > { %3939 = vmatpush1.bf16.msra.mxu1 %v5870_v21  ;;  %3965 = vmatprep.subr.bf16.mxu0 %v5881_v2 }
 0x1d1   : > { %3940 = vmatprep.subr.bf16.mxu1 %v5878_v23 }
 0x1d3   : > { %3966 = vmatpush1.bf16.msra.mxu0 %v5879_v25 }
 0x1d4   : > { %3941 = vmatpush1.bf16.msra.mxu1 %v5876_v60  ;;  %3967 = vmatprep.subr.bf16.mxu0 %v5887_v1 }
 0x1d5   : > { %3942 = vmatprep.subr.bf16.mxu1 %v5884_v26 }
 0x1d7   : > { %3968 = vmatpush1.bf16.msra.mxu0 %v5885_v32 }
 0x1d8   : > { %3943 = vmatpush1.bf16.msra.mxu1 %v5882_v31  ;;  %3969 = vmatprep.subr.bf16.mxu0 %v5893_v34 }
 0x1d9   : > { %3944 = vmatprep.subr.bf16.mxu1 %v5890_v33  ;;  %v2327_v39 = vpop.f32.mrb[16].mxu0 }
 0x1da   : > { %v2369_v14 = vadd.f32 %v7428_v59, %v2327_v39  ;;  %v2329_v16 = vpop.f32.mrb[17].mxu0 }
 0x1db   : > { %v2371_v29 = vadd.f32 %v7430_v61, %v2329_v16  ;;  %v2331_v43 = vpop.f32.mrb[18].mxu0  ;;  %3970 = vmatpush1.bf16.msra.mxu0 %v5891_v36 }
 0x1dc   : > { %3945 = vmatpush1.bf16.msra.mxu1 %v5888_v45  ;;  %v2457_v47 = vadd.f32 %v2369_v14, %v7214_v7  ;;  %v2332_v48 = vpop.f32.mrb[19].mxu0  ;;  %3971 = vmatprep.subr.bf16.mxu0 %v5899_v38  ;;  %v5903_v7 = vld [vmem:[%s7575_s1 + $0xee8] ss:$16 sps:$4 sm:$0xff]   ;;  %v4006_v38 = vlaneseq  ;;  %v4004_v43 = vld [vmem:[%s7576_s2] sm:$0xf] }
 0x1dd   : > { %3946 = vmatprep.subr.bf16.mxu1 %v5896_v37  ;;  %v2458_v50 = vadd.f32 %v2371_v29, %v7223_v40 }
 0x1de   : > { %v4007_v39 = vshrl.u32 %v4006_v38, 7 }
 0x1df   : > { %3972 = vmatpush1.bf16.msra.mxu0 %v5897_v46 }
 0x1e0   : > { %3947 = vmatpush1.bf16.msra.mxu1 %v5894_v44  ;;  %3973 = vmatprep.subr.bf16.mxu0 %v5905_v49  ;;  %v4008_v14 = vsub.s32 0, %v4007_v39  ;;  %v4012_v16 = vsub.s32 1, %v4007_v39  ;;  %v4016_v29 = vsub.s32 2, %v4007_v39  ;;  %v4020_v44 = vsub.s32 3, %v4007_v39 }
 0x1e1   : > { %3948 = vmatprep.subr.bf16.mxu1 %v5902_v27  ;;  %v4036_v46 = vmul.u32 2, %v4007_v39 }
 0x1e2   : > { %v4009_v27 = vrot.slane %v4004_v43, %v4008_v14  ;;  %v4013_v49 = vrot.slane %v4004_v43, %v4012_v16 }
 0x1e3   : > { %3974 = vmatpush1.bf16.msra.mxu0 %v5903_v7 }
 0x1e4   : > { %3949 = vmatpush1.bf16.msra.mxu1 %v5900_v51  ;;  %v4017_v51 = vrot.slane %v4004_v43, %v4016_v29 }
 0x1e6   : > { %3992 = vmatmul.mubr.bf16.vlgmr.msra.gmra.mrb[36].mxu0 %v7352_v35 }
 0x1e7   : > { %3951 = vmatmul.mubr.bf16.vlgmr.msra.gmra.mrb[36].mxu1 %v7458_v42  ;;  %4112 = vmatprep.mubr.f32.mxu0 %v5918_v11 }
 0x1e8   : > { %4186 = vmatprep.mubr.f32.mxu1 %v5918_v11 }
 0x1f9   : > { %v2450_v40 = vpop.f32.mrb[20].mxu0 }
 0x1fa   : > { %v2409_v52 = vpop.f32.mrb[20].mxu1  ;;  %v2452_v18 = vpop.f32.mrb[21].mxu0 }
 0x1fb   : > { %v2451_v53 = vadd.f32 %v2450_v40, %v2409_v52  ;;  %v2411_v54 = vpop.f32.mrb[21].mxu1  ;;  %v2454_v57 = vpop.f32.mrb[22].mxu0 }
 0x1fc   : > { %v2453_v63 = vadd.f32 %v2452_v18, %v2411_v54  ;;  %v2413_v55 = vpop.f32.mrb[22].mxu1  ;;  %v2455_v61 = vpop.f32.mrb[23].mxu0 }
 0x1fd   : > { %v2459_v58 = vadd.f32 %v2451_v53, %v7329_v24  ;;  %v2414_v59 = vpop.f32.mrb[23].mxu1  ;;  %v4021_v53 = vrot.slane %v4004_v43, %v4020_v44  ;;  %v4040_v55 = vadd.s32 1, %v4036_v46 }
 0x1fe   : > { %v2460_v62 = vadd.f32 %v2453_v63, %v7337_v30  ;;  %v4035_v63 = vand.u32 127, %v4006_v38 }
 0x200   : > { %vm4037_vm0 = vcmp.eq.s32.totalorder %v4035_v63, %v4036_v46  ;;  %vm4041_vm1 = vcmp.eq.s32.totalorder %v4035_v63, %v4040_v55 }
 0x21a   : > { %v3150_v0 = vpop.f32.mrb[24].mxu1 }
 0x21b   : > { %v3152_v56 = vpop.f32.mrb[25].mxu1 }
 0x21c   : > { %v3154_v41 = vpop.f32.mrb[26].mxu1 }
 0x21d   : > { %v3155_v3 = vpop.f32.mrb[27].mxu1 }
 0x239   : > { %v3109_v4 = vpop.f32.mrb[24].mxu0 }
 0x23a   : > { %v3151_v35 = vadd.f32 %v3150_v0, %v3109_v4  ;;  %v3111_v5 = vpop.f32.mrb[25].mxu0 }
 0x23b   : > { %v3153_v8 = vadd.f32 %v3152_v56, %v3111_v5  ;;  %v3113_v9 = vpop.f32.mrb[26].mxu0  ;;  %v5152_v5 = vsel %vm4041_vm1, 1.0, %v5918_v11 }
 0x23c   : > { %v3239_v10 = vadd.f32 %v3151_v35, %v2457_v47  ;;  %v3114_v6 = vpop.f32.mrb[27].mxu0  ;;  %v5151_v35 = vsel %vm4037_vm0, 1.0, %v5918_v11 }
 0x23d   : > { %v3240_v42 = vadd.f32 %v3153_v8, %v2458_v50 }
 0x259   : > { %v3232_v12 = vpop.f32.mrb[28].mxu0 }
 0x25a   : > { %v3191_v24 = vpop.f32.mrb[28].mxu1  ;;  %v3234_v15 = vpop.f32.mrb[29].mxu0 }
 0x25b   : > { %v3233_v30 = vadd.f32 %v3232_v12, %v3191_v24  ;;  %v3193_v13 = vpop.f32.mrb[29].mxu1  ;;  %v3236_v28 = vpop.f32.mrb[30].mxu0 }
 0x25c   : > { %v3235_v17 = vadd.f32 %v3234_v15, %v3193_v13  ;;  %v3195_v19 = vpop.f32.mrb[30].mxu1  ;;  %v3237_v22 = vpop.f32.mrb[31].mxu0 }
 0x25d   : > { %v3241_v20 = vadd.f32 %v3233_v30, %v2459_v58  ;;  %v3196_v21 = vpop.f32.mrb[31].mxu1 }
 0x25e   : > { %v3242_v23 = vadd.f32 %v3235_v17, %v2460_v62 }
 0x27a   : > { %v3911_v2 = vpop.f32.mrb[32].mxu1 }
 0x27b   : > { %v3913_v60 = vpop.f32.mrb[33].mxu1 }
 0x27c   : > { %v3915_v25 = vpop.f32.mrb[34].mxu1 }
 0x27d   : > { %v3916_v26 = vpop.f32.mrb[35].mxu1 }
 0x299   : > { %v3870_v1 = vpop.f32.mrb[32].mxu0 }
 0x29a   : > { %v3912_v31 = vadd.f32 %v3911_v2, %v3870_v1  ;;  %v3872_v32 = vpop.f32.mrb[33].mxu0 }
 0x29b   : > { %v3914_v33 = vadd.f32 %v3913_v60, %v3872_v32  ;;  %v3874_v34 = vpop.f32.mrb[34].mxu0 }
 0x29c   : > { %v4000_v45 = vadd.f32 %v3912_v31, %v3239_v10  ;;  %v3875_v36 = vpop.f32.mrb[35].mxu0 }
 0x29d   : > { %v4001_v37 = vadd.f32 %v3914_v33, %v3240_v42 }
 0x29e   : > { %v4026_v62 = vadd.f32 %v4009_v27, %v4000_v45 }
 0x29f   : > { %v4027_v56 = vadd.f32 %v4013_v49, %v4001_v37 }
 0x2b9   : > { %v3993_v48 = vpop.f32.mrb[36].mxu0 }
 0x2ba   : > { %v3952_v47 = vpop.f32.mrb[36].mxu1  ;;  %v3995_v52 = vpop.f32.mrb[37].mxu0 }
 0x2bb   : > { %v3994_v50 = vadd.f32 %v3993_v48, %v3952_v47  ;;  %v3954_v7 = vpop.f32.mrb[37].mxu1  ;;  %v3997_v18 = vpop.f32.mrb[38].mxu0 }
 0x2bc   : > { %v3996_v40 = vadd.f32 %v3995_v52, %v3954_v7  ;;  %v3956_v54 = vpop.f32.mrb[38].mxu1  ;;  %v3998_v59 = vpop.f32.mrb[39].mxu0 }
 0x2bd   : > { %v4002_v57 = vadd.f32 %v3994_v50, %v3241_v20  ;;  %v3957_v58 = vpop.f32.mrb[39].mxu1 }
 0x2be   : > { %v4003_v61 = vadd.f32 %v3996_v40, %v3242_v23 }
 0x2bf   : > { %v4028_v0 = vadd.f32 %v4017_v51, %v4002_v57 }
 0x2c0   : > { %v4029_v41 = vadd.f32 %v4021_v53, %v4003_v61 }
 0x2c1   : > { %v4030_v3 = vmax.f32 %v4026_v62, %v4028_v0 }
 0x2c2   : > { %v4031_v4 = vmax.f32 %v4027_v56, %v4029_v41 }
 0x2c4   : > { %4048 = vmatprep.subr.mxu0 %v4031_v4  ;;  %4122 = vmatprep.subr.mxu1 %v4031_v4 }
 0x2c5   : > { %4049 = vmatpush1.msra.mxu0 %v4030_v3  ;;  %4123 = vmatpush1.msra.mxu1 %v4030_v3 }
 0x2c6   : > { %5153 = vmatmul.mubr.msk.f32.vlgmr.msra.gmra.mrb[40].mxu0 %vm4044_vm2, %v5151_v35  ;;  %5154 = vmatmul.mubr.msk.f32.vlgmr.msra.gmra.mrb[40].mxu1 %vm4044_vm2, %v5152_v5 }
 0x399   : > { %v4114_v8 = vpop.f32.mrb[40].mxu0  ;;  %v4188_v9 = vpop.f32.mrb[40].mxu1 }
 0x39a   : > { %v4193_v10 = vmax.f32 %v4114_v8, %v4188_v9  ;;  %v4116_v6 = vpop.f32.mrb[41].mxu0  ;;  %v4190_v42 = vpop.f32.mrb[41].mxu1 }
 0x39b   : > { %v4194_v24 = vmax.f32 %v4116_v6, %v4190_v42 }
 0x39d   : > { %v5155_v12 = vpack.c.bf16 %v4194_v24, %v4193_v10 }
 0x39f   : > { %5156 = vst.sshfl [vmem:[%s170_s15] sm:$0x33 pattern:$0x76325410] %v5155_v12 }
 0x3a0 PF: > { %s13_s12 = sadd.s32 1, %s5915_s12  }
 0x3a1   : > { %p10_p4 = scmp.ge.s32.totalorder %s13_s12, 4  }
 0x3a3   :  { %12 = sbr.rel (!%p10_p4) target bundleno = 1 (0x1), region = 66 }

// kernel: forward.5
= control target key start
LH: loop header
LB: loop body
LE: loop exit
PB: predicated region body
PF: predicated region fallthrough
CT: control target
= control target key end

     0   :  { %8 = vsyncpa [#allocation3], 0  ;;  %s9534_s0 = inlined_call_operand.vmem [shape: bf16[2,20,640], index: 0, kind: input, shape index: {}]   ;;  %s9535_s1 = inlined_call_operand.hbm [shape: bf16[5,640,512], index: 1, kind: input, shape index: {}]   ;;  %s9536_s2 = inlined_call_operand.hbm [shape: f32[1,512], index: 2, kind: input, shape index: {}]   ;;  %s9537_s3 = inlined_call_operand.vmem [shape: bf16[2,8,256], index: 3, kind: output, shape index: {}]  }
   0x1   :  { %9 = vsyncpa [#allocation5], 0  ;;  %s9226_s12 = smov 0  }
   0x2 LB: > { %s9232_s13 = sadd.s32 4294967295, %s9198_s12   ;;  %p6898_p0 = scmp.ge.s32.totalorder %s9198_s12, 1  ;;  %s9198_s12 = sphi %s9226_s12, %s15_s12  }
   0x3   : > { %p114_p1 = scmp.lt.s32.totalorder %s9198_s12, 3  ;;  %s9200_s14 = smov [#allocation2]  }
   0x4   : > { %s126_s15 = sshll.u32 %s9200_s14, 4  ;;  %p9538_p3 = scmp.eq.s32.totalorder %s9232_s13, 0  ;;  %s127_s15 = int_to_ptr.vmem [resolvable:$true] %s126_s15 }
   0x5   : > { %p9236_p2 = pnand %p6898_p0, %p114_p1  ;;  %s9201_s17 = smov [#allocation4]  }
   0x6   : > { %s140_s18 = sshll.u32 %s9201_s17, 4  ;;  %s9128_s22 = scalar_lea.hbm %s9535_s1, 102400  ;;  %s9249_s18 = int_to_ptr.vmem [resolvable:$true] %s140_s18 }
   0x7   : > { %s9540_s16 = scalar_select %p9236_p2, 1, 0 }
   0x8   : > { %p7871_p4 = pneg %p9236_p2  ;;  %p9129_p6 = scmp.ne.s32.totalorder %s9535_s1, %s9128_s22 }
   0x9   : > { %p9135_p10 = scmp.lt.u32.totalorder %s9128_s22, %s9535_s1 }
   0xa   : > { %p9245_p5 = pnand %p9538_p3, %p7871_p4 }
   0xc   : > { %p9130_p7 = pneg %p9245_p5 }
   0xe   : > { %p9131_p8 = pnand %p9130_p7, %p9129_p6 }
  0x10   : > { %p9132_p9 = pneg %p9131_p8 }
  0x12   : > { %p9137_p11 = pnand %p9135_p10, %p9132_p9 }
  0x14   : > { %9140 = shalt.err (!%p9137_p11)
}
  0x15   : > { %s9141_s27 = scalar_lea.vmem %s127_s15, 102400  ;;  %p9149_p1 = scmp.lt.s32.totalorder %s127_s15, %s127_s15 }
  0x16   : > { %p9142_p12 = scmp.ne.s32.totalorder %s127_s15, %s9141_s27  ;;  %p9150_p4 = scmp.lt.s32.totalorder %s9141_s27, %s9141_s27 }
  0x18   : > { %p9144_p13 = pnand %p9142_p12, %p9130_p7  ;;  %p9151_p3 = por %p9150_p4, %p9149_p1 }
  0x1a   : > { %p9145_p0 = pneg %p9144_p13 }
  0x1c   : > { %p9152_p2 = pnand %p9151_p3, %p9145_p0 }
  0x1e   : > { %9155 = shalt.err (!%p9152_p2)
}
  0x1f   : > { %s9202_s28 = smov 256   ;;  %s9203_s29 = smov 16  }
  0x20   : > { %7874 = dma.hbm_to_vmem [thread:$0]  (!%p9245_p5), %s9535_s1, 102400, %s127_s15, [#allocation3], %s9202_s28, %s9202_s28, %s9203_s29  }
  0x21   : > { %s9156_s7 = scalar_lea.hbm %s9536_s2, 64 }
  0x22   : > { %p9157_p6 = scmp.ne.s32.totalorder %s9536_s2, %s9156_s7  ;;  %p9163_p8 = scmp.lt.u32.totalorder %s9156_s7, %s9536_s2 }
  0x24   : > { %p9159_p2 = pnand %p9157_p6, %p9130_p7 }
  0x26   : > { %p9160_p3 = pneg %p9159_p2 }
  0x28   : > { %p9165_p9 = pnand %p9163_p8, %p9160_p3 }
  0x2a   : > { %9168 = shalt.err (!%p9165_p9)
}
  0x2b   : > { %s9169_s14 = scalar_lea.vmem %s9249_s18, 64  ;;  %p9177_p13 = scmp.lt.s32.totalorder %s9249_s18, %s9249_s18 }
  0x2c   : > { %p9170_p10 = scmp.ne.s32.totalorder %s9249_s18, %s9169_s14  ;;  %p9178_p0 = scmp.lt.s32.totalorder %s9169_s14, %s9169_s14 }
  0x2e   : > { %p9172_p11 = pnand %p9170_p10, %p9130_p7  ;;  %p9179_p1 = por %p9178_p0, %p9177_p13 }
  0x30   : > { %p9173_p12 = pneg %p9172_p11 }
  0x32   : > { %p9180_p4 = pnand %p9179_p1, %p9173_p12 }
  0x34   : > { %9183 = shalt.err (!%p9180_p4)
}
  0x35   : > { %7877 = dma.hbm_to_vmem [thread:$0]  (!%p9245_p5), %s9536_s2, 64, %s9249_s18, [#allocation5]  }
  0x36   : > { %p9542_p6 = scmp.ne.s32.totalorder %s9540_s16, 0 }
  0x37   : > { %p9543_p2 = scmp.eq.s32.totalorder (!%p9542_p6), %s9232_s13, 0 }
  0x38   : > { %161 = sbr.rel (%p9542_p6) target bundleno = 1311 (0x51f), region = 32 }
  0x3f   : > { %9189 = dma.done.wait (%p9543_p2), [#allocation3], 102400   ;;  %p9544_p7 = pmov %p9543_p2 }
  0x40   : > { %p9545_p3 = pmov %p9543_p2 }
  0x41   : > { %9191 = vsyncadd (%p9544_p7), [#allocation3], 4294864896 }
  0x42   : > { %9193 = dma.done.wait (%p9545_p3), [#allocation5], 64   ;;  %p9546_p8 = pmov %p9543_p2 }
  0x43   : > { %v7896_v0 = vld [vmem:[#allocation2 + $0x504] ss:$16 sps:$4 sm:$0xff]   ;;  %v7898_v1 = vld [vmem:[#allocation2 + $0x50c] ss:$16 sps:$4 sm:$0xff]   ;;  %v7900_v2 = vld [vmem:[#allocation2 + $0x500] ss:$16 sps:$4 sm:$0xff]  }
  0x44   : > { %9195 = vsyncadd (%p9546_p8), [#allocation5], 4294967232  ;;  %1430 = vmatprep.subr.bf16.mxu0 %v7896_v0  ;;  %v7901_v3 = vld [vmem:[#allocation2 + $0x508] ss:$16 sps:$4 sm:$0xff]   ;;  %1559 = vmatprep.subr.bf16.mxu1 %v7898_v1  ;;  %v7902_v4 = vld [vmem:[#allocation2 + $0x524] ss:$16 sps:$4 sm:$0xff]  }
  0x45   : > { %1431 = vmatpush1.bf16.msra.mxu0 %v7900_v2  ;;  %1560 = vmatpush1.bf16.msra.mxu1 %v7901_v3  ;;  %v7904_v5 = vld [vmem:[#allocation2 + $0x52c] ss:$16 sps:$4 sm:$0xff]   ;;  %v7906_v6 = vld [vmem:[#allocation2 + $0x520] ss:$16 sps:$4 sm:$0xff]   ;;  %v7907_v7 = vld [vmem:[#allocation2 + $0x528] ss:$16 sps:$4 sm:$0xff]  }
  0x46   : > { %1432 = vmatprep.subr.bf16.mxu0 %v7902_v4  ;;  %1561 = vmatprep.subr.bf16.mxu1 %v7904_v5  ;;  %v7908_v8 = vld [vmem:[#allocation2 + $0x544] ss:$16 sps:$4 sm:$0xff]   ;;  %v7910_v9 = vld [vmem:[#allocation2 + $0x54c] ss:$16 sps:$4 sm:$0xff]   ;;  %v7912_v10 = vld [vmem:[#allocation2 + $0x540] ss:$16 sps:$4 sm:$0xff]  }
  0x47   : > { %v7913_v11 = vld [vmem:[#allocation2 + $0x548] ss:$16 sps:$4 sm:$0xff]   ;;  %v7914_v12 = vld [vmem:[#allocation2 + $0x564] ss:$16 sps:$4 sm:$0xff]   ;;  %v7916_v13 = vld [vmem:[#allocation2 + $0x56c] ss:$16 sps:$4 sm:$0xff]  }
  0x48   : > { %v7918_v14 = vld [vmem:[#allocation2 + $0x560] ss:$16 sps:$4 sm:$0xff]   ;;  %v7919_v15 = vld [vmem:[#allocation2 + $0x568] ss:$16 sps:$4 sm:$0xff]   ;;  %v7920_v16 = vld [vmem:[#allocation2 + $0x584] ss:$16 sps:$4 sm:$0xff]  }
  0x49   : > { %1433 = vmatpush1.bf16.msra.mxu0 %v7906_v6  ;;  %1562 = vmatpush1.bf16.msra.mxu1 %v7907_v7  ;;  %v7922_v17 = vld [vmem:[#allocation2 + $0x58c] ss:$16 sps:$4 sm:$0xff]   ;;  %v7924_v18 = vld [vmem:[#allocation2 + $0x580] ss:$16 sps:$4 sm:$0xff]   ;;  %v7925_v19 = vld [vmem:[#allocation2 + $0x588] ss:$16 sps:$4 sm:$0xff]  }
  0x4a   : > { %1434 = vmatprep.subr.bf16.mxu0 %v7908_v8  ;;  %1563 = vmatprep.subr.bf16.mxu1 %v7910_v9  ;;  %v7926_v20 = vld [vmem:[#allocation2 + $0x5a4] ss:$16 sps:$4 sm:$0xff]   ;;  %v7928_v21 = vld [vmem:[#allocation2 + $0x5ac] ss:$16 sps:$4 sm:$0xff]   ;;  %v7930_v22 = vld [vmem:[#allocation2 + $0x5a0] ss:$16 sps:$4 sm:$0xff]  }
  0x4b   : > { %v7931_v23 = vld [vmem:[#allocation2 + $0x5a8] ss:$16 sps:$4 sm:$0xff]   ;;  %v7932_v24 = vld [vmem:[#allocation2 + $0x5c4] ss:$16 sps:$4 sm:$0xff]   ;;  %v7934_v25 = vld [vmem:[#allocation2 + $0x5cc] ss:$16 sps:$4 sm:$0xff]  }
  0x4c   : > { %v7936_v26 = vld [vmem:[#allocation2 + $0x5c0] ss:$16 sps:$4 sm:$0xff]   ;;  %v7937_v27 = vld [vmem:[#allocation2 + $0x5c8] ss:$16 sps:$4 sm:$0xff]   ;;  %v7938_v28 = vld [vmem:[#allocation2 + $0x5e4] ss:$16 sps:$4 sm:$0xff]  }
  0x4d   : > { %1435 = vmatpush1.bf16.msra.mxu0 %v7912_v10  ;;  %1564 = vmatpush1.bf16.msra.mxu1 %v7913_v11  ;;  %v7940_v29 = vld [vmem:[#allocation2 + $0x5ec] ss:$16 sps:$4 sm:$0xff]   ;;  %v7942_v30 = vld [vmem:[#allocation2 + $0x5e0] ss:$16 sps:$4 sm:$0xff]   ;;  %p189_p5 = scmp.lt.s32.totalorder %s9232_s13, 1  ;;  %vm2928_vm1 = vcmask 1046528  }
  0x4e   : > { %1436 = vmatprep.subr.bf16.mxu0 %v7914_v12  ;;  %1565 = vmatprep.subr.bf16.mxu1 %v7916_v13  ;;  %v7943_v31 = vld [vmem:[#allocation2 + $0x5e8] ss:$16 sps:$4 sm:$0xff]   ;;  %v7944_v32 = vld [vmem:[#allocation2 + $0x604] ss:$16 sps:$4 sm:$0xff]   ;;  %v7946_v33 = vld [vmem:[#allocation2 + $0x60c] ss:$16 sps:$4 sm:$0xff]  }
  0x4f   : > { %v7948_v34 = vld [vmem:[#allocation2 + $0x600] ss:$16 sps:$4 sm:$0xff]   ;;  %v7949_v35 = vld [vmem:[#allocation2 + $0x608] ss:$16 sps:$4 sm:$0xff]   ;;  %s9548_s13 = smov (!%p189_p5, %s9232_s13), 1  ;;  %vm5526_vm3 = vcmask 1045504  }
  0x50   : > { %v7950_v36 = vld [vmem:[#allocation2 + $0x624] ss:$16 sps:$4 sm:$0xff]   ;;  %v7952_v37 = vld [vmem:[#allocation2 + $0x62c] ss:$16 sps:$4 sm:$0xff]   ;;  %v7954_v38 = vld [vmem:[#allocation2 + $0x620] ss:$16 sps:$4 sm:$0xff]  }
  0x51   : > { %1437 = vmatpush1.bf16.msra.mxu0 %v7918_v14  ;;  %1566 = vmatpush1.bf16.msra.mxu1 %v7919_v15  ;;  %s7862_s16 = smul.u32 60, %s9548_s13  ;;  %v7955_v39 = vld [vmem:[#allocation2 + $0x628] ss:$16 sps:$4 sm:$0xff]   ;;  %v7956_v40 = vld [vmem:[#allocation2 + $0x644] ss:$16 sps:$4 sm:$0xff]   ;;  %vm6659_vm6 = vcmask 130048  }
  0x52   : > { %1438 = vmatprep.subr.bf16.mxu0 %v7920_v16  ;;  %1567 = vmatprep.subr.bf16.mxu1 %v7922_v17  ;;  %v7958_v41 = vld [vmem:[#allocation2 + $0x64c] ss:$16 sps:$4 sm:$0xff]   ;;  %v7960_v42 = vld [vmem:[#allocation2 + $0x640] ss:$16 sps:$4 sm:$0xff]   ;;  %v7961_v43 = vld [vmem:[#allocation2 + $0x648] ss:$16 sps:$4 sm:$0xff]  }
  0x53   : > { %s9316_s20 = scalar_lea.vmem %s9534_s0, %s7862_s16  ;;  %v7962_v44 = vld [vmem:[#allocation2 + $0x664] ss:$16 sps:$4 sm:$0xff]   ;;  %v7964_v45 = vld [vmem:[#allocation2 + $0x66c] ss:$16 sps:$4 sm:$0xff]   ;;  %v7966_v46 = vld [vmem:[#allocation2 + $0x660] ss:$16 sps:$4 sm:$0xff]  }
  0x54   : > { %v200_v47 = vld [vmem:[%s9316_s20] sm:$0xff]  ;;  %v203_v48 = vld [vmem:[%s9316_s20 + $0x14] sm:$0xff]  ;;  %v366_v49 = vld [vmem:[%s9316_s20 + $0x28] sm:$0x11]  ;;  %vm564_vm0 = vsmask.f32 7424 }
  0x55   : > { %1439 = vmatpush1.bf16.msra.mxu0 %v7924_v18  ;;  %1568 = vmatpush1.bf16.msra.mxu1 %v7925_v19  ;;  %v7967_v50 = vld [vmem:[#allocation2 + $0x668] ss:$16 sps:$4 sm:$0xff]   ;;  %v7968_v51 = vld [vmem:[#allocation2 + $0x684] ss:$16 sps:$4 sm:$0xff]   ;;  %v9321_v52 = vcombine.high %v200_v47, %v203_v48  ;;  %v9323_v53 = vcombine.high %v366_v49, %v366_v49  ;;  %v7970_v54 = vld [vmem:[#allocation2 + $0x68c] ss:$16 sps:$4 sm:$0xff]   ;;  %v9328_v62 = vcombine.low %v200_v47, %v203_v48 }
  0x56   : > { %1440 = vmatprep.subr.bf16.mxu0 %v7926_v20  ;;  %1569 = vmatprep.subr.bf16.mxu1 %v7928_v21  ;;  %v7972_v58 = vld [vmem:[#allocation2 + $0x680] ss:$16 sps:$4 sm:$0xff]   ;;  %v7973_v59 = vld [vmem:[#allocation2 + $0x688] ss:$16 sps:$4 sm:$0xff]   ;;  %v7974_v63 = vld [vmem:[#allocation2 + $0x6a4] ss:$16 sps:$4 sm:$0xff]   ;;  %v9331_v5 = vcombine.low %v366_v49, %v366_v49 }
  0x57   : > { %v578_v55 = vshrl.u32 %v9321_v52, 16  ;;  %v580_v56 = vshll.u32 %v9321_v52, 16  ;;  %v585_v57 = vshll.u32 %v9323_v53, 16  ;;  %v7976_v0 = vld [vmem:[#allocation2 + $0x6ac] ss:$16 sps:$4 sm:$0xff]   ;;  %v568_v6 = vshll.u32 %v9328_v62, 16 }
  0x58   : > { %v7978_v2 = vld [vmem:[#allocation2 + $0x6a0] ss:$16 sps:$4 sm:$0xff]   ;;  %v7979_v3 = vld [vmem:[#allocation2 + $0x6a8] ss:$16 sps:$4 sm:$0xff]   ;;  %v7980_v7 = vld [vmem:[#allocation2 + $0x6c4] ss:$16 sps:$4 sm:$0xff]  }
  0x59   : > { %1441 = vmatpush1.bf16.msra.mxu0 %v7930_v22  ;;  %1570 = vmatpush1.bf16.msra.mxu1 %v7931_v23  ;;  %v582_v60 = vrot.slane %v580_v56, 1  ;;  %v587_v61 = vrot.slane %v585_v57, 1  ;;  %v7982_v8 = vld [vmem:[#allocation2 + $0x6cc] ss:$16 sps:$4 sm:$0xff]   ;;  %v7984_v9 = vld [vmem:[#allocation2 + $0x6c0] ss:$16 sps:$4 sm:$0xff]  }
  0x5a   : > { %1442 = vmatprep.subr.bf16.mxu0 %v7932_v24  ;;  %1571 = vmatprep.subr.bf16.mxu1 %v7934_v25  ;;  %v7985_v10 = vld [vmem:[#allocation2 + $0x6c8] ss:$16 sps:$4 sm:$0xff]   ;;  %v566_v11 = vshrl.u32 %v9328_v62, 16  ;;  %v570_v12 = vrot.slane %v568_v6, 1  ;;  %v573_v13 = vshll.u32 %v9331_v5, 16  ;;  %s7740_s21 = sshll.u32 %s9548_s13, 3 }
  0x5b   : > { %v583_v1 = vor.u32 %v582_v60, %v578_v55  ;;  %v7986_v14 = vld [vmem:[#allocation2 + $0x6e4] ss:$16 sps:$4 sm:$0xff]   ;;  %v7988_v15 = vld [vmem:[#allocation2 + $0x6ec] ss:$16 sps:$4 sm:$0xff]   ;;  %v7990_v16 = vld [vmem:[#allocation2 + $0x6e0] ss:$16 sps:$4 sm:$0xff]   ;;  %s198_s24 = scalar_lea.vmem %s9537_s3, %s7740_s21 }
  0x5c   : > { %v7991_v17 = vld [vmem:[#allocation2 + $0x6e8] ss:$16 sps:$4 sm:$0xff]   ;;  %v571_v18 = vor.u32 %v570_v12, %v566_v11  ;;  %v575_v19 = vrot.slane %v573_v13, 1  ;;  %v7996_v20 = vld [vmem:[#allocation2 + $0x704] ss:$16 sps:$4 sm:$0xff]  }
  0x5d   : > { %1443 = vmatpush1.bf16.msra.mxu0 %v7936_v26  ;;  %1572 = vmatpush1.bf16.msra.mxu1 %v7937_v27  ;;  %v588_v4 = vsel %vm564_vm0, %v583_v1, %v587_v61  ;;  %v7999_v21 = vld [vmem:[#allocation2 + $0x70c] ss:$16 sps:$4 sm:$0xff]   ;;  %v7994_v22 = vld [vmem:[#allocation2 + $0x700] ss:$16 sps:$4 sm:$0xff]   ;;  %v7997_v23 = vld [vmem:[#allocation2 + $0x708] ss:$16 sps:$4 sm:$0xff]  }
  0x5e   : > { %1444 = vmatprep.subr.bf16.mxu0 %v7938_v28  ;;  %1573 = vmatprep.subr.bf16.mxu1 %v7940_v29  ;;  %v576_v24 = vsel %vm564_vm0, %v571_v18, %v575_v19  ;;  %v8004_v25 = vld [vmem:[#allocation2 + $0x724] ss:$16 sps:$4 sm:$0xff]   ;;  %v8007_v26 = vld [vmem:[#allocation2 + $0x72c] ss:$16 sps:$4 sm:$0xff]   ;;  %v8002_v27 = vld [vmem:[#allocation2 + $0x720] ss:$16 sps:$4 sm:$0xff]  }
  0x5f   : > { %1462 = vmatprep.mubr.bf16.mxu0 %v588_v4  ;;  %1591 = vmatprep.mubr.bf16.mxu1 %v588_v4  ;;  %v8005_v28 = vld [vmem:[#allocation2 + $0x728] ss:$16 sps:$4 sm:$0xff]   ;;  %v8010_v29 = vld [vmem:[#allocation2 + $0x744] ss:$16 sps:$4 sm:$0xff]   ;;  %v8032_v47 = vld [vmem:[#allocation2 + $0x7c0] ss:$16 sps:$4 sm:$0xff]  }
  0x60   : > { %v8035_v48 = vld [vmem:[#allocation2 + $0x7c8] ss:$16 sps:$4 sm:$0xff]   ;;  %v8040_v55 = vld [vmem:[#allocation2 + $0x7e4] ss:$16 sps:$4 sm:$0xff]   ;;  %v8043_v56 = vld [vmem:[#allocation2 + $0x7ec] ss:$16 sps:$4 sm:$0xff]  }
  0x61   : > { %1445 = vmatpush1.bf16.msra.mxu0 %v7942_v30  ;;  %1574 = vmatpush1.bf16.msra.mxu1 %v7943_v31  ;;  %v8013_v30 = vld [vmem:[#allocation2 + $0x74c] ss:$16 sps:$4 sm:$0xff]   ;;  %v8008_v31 = vld [vmem:[#allocation2 + $0x740] ss:$16 sps:$4 sm:$0xff]   ;;  %v8041_v61 = vld [vmem:[#allocation2 + $0x7e8] ss:$16 sps:$4 sm:$0xff]  }
  0x62   : > { %1446 = vmatprep.subr.bf16.mxu0 %v7944_v32  ;;  %1575 = vmatprep.subr.bf16.mxu1 %v7946_v33  ;;  %v8011_v32 = vld [vmem:[#allocation2 + $0x748] ss:$16 sps:$4 sm:$0xff]   ;;  %v8016_v33 = vld [vmem:[#allocation2 + $0x764] ss:$16 sps:$4 sm:$0xff]   ;;  %v8038_v60 = vld [vmem:[#allocation2 + $0x7e0] ss:$16 sps:$4 sm:$0xff]  }
  0x63   : > { %v9338_v49 = vld [vmem:[%s9316_s20 + $0x8] sm:$0xff]  ;;  %v8044_v6 = vld [vmem:[#allocation2 + $0x800] ss:$16 sps:$4 sm:$0xff]   ;;  %v8058_v13 = vld [vmem:[#allocation2 + $0x844] ss:$16 sps:$4 sm:$0xff]  }
  0x64   : > { %v8049_v1 = vld [vmem:[#allocation2 + $0x80c] ss:$16 sps:$4 sm:$0xff]   ;;  %v8050_v11 = vld [vmem:[#allocation2 + $0x820] ss:$16 sps:$4 sm:$0xff]   ;;  %v8053_v12 = vld [vmem:[#allocation2 + $0x828] ss:$16 sps:$4 sm:$0xff]  }
  0x65   : > { %1447 = vmatpush1.bf16.msra.mxu0 %v7948_v34  ;;  %1576 = vmatpush1.bf16.msra.mxu1 %v7949_v35  ;;  %v8019_v34 = vld [vmem:[#allocation2 + $0x76c] ss:$16 sps:$4 sm:$0xff]   ;;  %v8014_v35 = vld [vmem:[#allocation2 + $0x760] ss:$16 sps:$4 sm:$0xff]   ;;  %vm4192_vm2 = vsmask.f32 6400 }
  0x66   : > { %1448 = vmatprep.subr.bf16.mxu0 %v7950_v36  ;;  %1577 = vmatprep.subr.bf16.mxu1 %v7952_v37  ;;  %v8017_v36 = vld [vmem:[#allocation2 + $0x768] ss:$16 sps:$4 sm:$0xff]   ;;  %v8022_v37 = vld [vmem:[#allocation2 + $0x784] ss:$16 sps:$4 sm:$0xff]   ;;  %v8067_v18 = vld [vmem:[#allocation2 + $0x86c] ss:$16 sps:$4 sm:$0xff]  }
  0x67   : > { %v8062_v19 = vld [vmem:[#allocation2 + $0x860] ss:$16 sps:$4 sm:$0xff]  }
  0x69   : > { %1449 = vmatpush1.bf16.msra.mxu0 %v7954_v38  ;;  %1578 = vmatpush1.bf16.msra.mxu1 %v7955_v39  ;;  %v8025_v38 = vld [vmem:[#allocation2 + $0x78c] ss:$16 sps:$4 sm:$0xff]   ;;  %v8020_v39 = vld [vmem:[#allocation2 + $0x780] ss:$16 sps:$4 sm:$0xff]  }
  0x6a   : > { %1450 = vmatprep.subr.bf16.mxu0 %v7956_v40  ;;  %1579 = vmatprep.subr.bf16.mxu1 %v7958_v41  ;;  %v8023_v40 = vld [vmem:[#allocation2 + $0x788] ss:$16 sps:$4 sm:$0xff]   ;;  %v8028_v41 = vld [vmem:[#allocation2 + $0x7a4] ss:$16 sps:$4 sm:$0xff]  }
  0x6d   : > { %1451 = vmatpush1.bf16.msra.mxu0 %v7960_v42  ;;  %1580 = vmatpush1.bf16.msra.mxu1 %v7961_v43  ;;  %v8031_v42 = vld [vmem:[#allocation2 + $0x7ac] ss:$16 sps:$4 sm:$0xff]   ;;  %v8026_v43 = vld [vmem:[#allocation2 + $0x7a0] ss:$16 sps:$4 sm:$0xff]  }
  0x6e   : > { %1452 = vmatprep.subr.bf16.mxu0 %v7962_v44  ;;  %1581 = vmatprep.subr.bf16.mxu1 %v7964_v45  ;;  %v8029_v44 = vld [vmem:[#allocation2 + $0x7a8] ss:$16 sps:$4 sm:$0xff]   ;;  %v8034_v45 = vld [vmem:[#allocation2 + $0x7c4] ss:$16 sps:$4 sm:$0xff]  }
  0x71   : > { %1453 = vmatpush1.bf16.msra.mxu0 %v7966_v46  ;;  %1582 = vmatpush1.bf16.msra.mxu1 %v7967_v50  ;;  %v8037_v46 = vld [vmem:[#allocation2 + $0x7cc] ss:$16 sps:$4 sm:$0xff]  }
  0x72   : > { %1454 = vmatprep.subr.bf16.mxu0 %v7968_v51  ;;  %1583 = vmatprep.subr.bf16.mxu1 %v7970_v54  ;;  %v9341_v50 = vld [vmem:[%s9316_s20 + $0x1c] sm:$0xff]  ;;  %v9344_v51 = vld [vmem:[%s9316_s20 + $0x30] sm:$0x11] }
  0x73   : > { %v9348_v54 = vcombine.high %v9338_v49, %v9341_v50  ;;  %v9352_v57 = vcombine.high %v9344_v51, %v9344_v51 }
  0x75   : > { %1455 = vmatpush1.bf16.msra.mxu0 %v7972_v58  ;;  %1584 = vmatpush1.bf16.msra.mxu1 %v7973_v59  ;;  %v602_v58 = vshrl.u32 %v9348_v54, 16  ;;  %v604_v59 = vshll.u32 %v9348_v54, 16 }
  0x76   : > { %1456 = vmatprep.subr.bf16.mxu0 %v7974_v63  ;;  %1585 = vmatprep.subr.bf16.mxu1 %v7976_v0  ;;  %v609_v63 = vshll.u32 %v9352_v57, 16  ;;  %v8046_v0 = vld [vmem:[#allocation2 + $0x804] ss:$16 sps:$4 sm:$0xff]  }
  0x79   : > { %1457 = vmatpush1.bf16.msra.mxu0 %v7978_v2  ;;  %1586 = vmatpush1.bf16.msra.mxu1 %v7979_v3  ;;  %v606_v2 = vrot.slane %v604_v59, 1  ;;  %v611_v3 = vrot.slane %v609_v63, 1  ;;  %v8113_v59 = vld [vmem:[#allocation2 + $0x94c] ss:$16 sps:$4 sm:$0xff]   ;;  %v8111_v63 = vld [vmem:[#allocation2 + $0x948] ss:$16 sps:$4 sm:$0xff]  }
  0x7a   : > { %1458 = vmatprep.subr.bf16.mxu0 %v7980_v7  ;;  %1587 = vmatprep.subr.bf16.mxu1 %v7982_v8  ;;  %v8047_v7 = vld [vmem:[#allocation2 + $0x808] ss:$16 sps:$4 sm:$0xff]   ;;  %v8052_v8 = vld [vmem:[#allocation2 + $0x824] ss:$16 sps:$4 sm:$0xff]  }
  0x7b   : > { %v607_v4 = vor.u32 %v606_v2, %v602_v58  ;;  %v8110_v58 = vld [vmem:[#allocation2 + $0x944] ss:$16 sps:$4 sm:$0xff]   ;;  %v8114_v2 = vld [vmem:[#allocation2 + $0x960] ss:$16 sps:$4 sm:$0xff]  }
  0x7d   : > { %1459 = vmatpush1.bf16.msra.mxu0 %v7984_v9  ;;  %1588 = vmatpush1.bf16.msra.mxu1 %v7985_v10  ;;  %v612_v9 = vsel %vm564_vm0, %v607_v4, %v611_v3  ;;  %v8055_v10 = vld [vmem:[#allocation2 + $0x82c] ss:$16 sps:$4 sm:$0xff]   ;;  %v8117_v3 = vld [vmem:[#allocation2 + $0x968] ss:$16 sps:$4 sm:$0xff]   ;;  %v8122_v4 = vld [vmem:[#allocation2 + $0x984] ss:$16 sps:$4 sm:$0xff]  }
  0x7e   : > { %1460 = vmatprep.subr.bf16.mxu0 %v7986_v14  ;;  %1589 = vmatprep.subr.bf16.mxu1 %v7988_v15  ;;  %v8061_v14 = vld [vmem:[#allocation2 + $0x84c] ss:$16 sps:$4 sm:$0xff]   ;;  %v8056_v15 = vld [vmem:[#allocation2 + $0x840] ss:$16 sps:$4 sm:$0xff]  }
  0x81   : > { %1461 = vmatpush1.bf16.msra.mxu0 %v7990_v16  ;;  %1590 = vmatpush1.bf16.msra.mxu1 %v7991_v17  ;;  %v8059_v16 = vld [vmem:[#allocation2 + $0x848] ss:$16 sps:$4 sm:$0xff]   ;;  %v8064_v17 = vld [vmem:[#allocation2 + $0x864] ss:$16 sps:$4 sm:$0xff]  }
  0x82   : > { %1473 = vmatprep.subr.bf16.mxu0 %v7996_v20  ;;  %1602 = vmatprep.subr.bf16.mxu1 %v7999_v21  ;;  %v8065_v20 = vld [vmem:[#allocation2 + $0x868] ss:$16 sps:$4 sm:$0xff]   ;;  %v8070_v21 = vld [vmem:[#allocation2 + $0x884] ss:$16 sps:$4 sm:$0xff]  }
  0x84   : > { %1463 = vmatmul.mubr.bf16.vlgmr.msra.gmra.mrb[0].mxu0 %v576_v24  ;;  %1592 = vmatmul.mubr.bf16.vlgmr.msra.gmra.mrb[0].mxu1 %v576_v24  ;;  %v8071_v24 = vld [vmem:[#allocation2 + $0x888] ss:$16 sps:$4 sm:$0xff]  }
  0x85   : > { %1474 = vmatpush1.bf16.msra.mxu0 %v7994_v22  ;;  %1603 = vmatpush1.bf16.msra.mxu1 %v7997_v23  ;;  %v8073_v22 = vld [vmem:[#allocation2 + $0x88c] ss:$16 sps:$4 sm:$0xff]   ;;  %v8068_v23 = vld [vmem:[#allocation2 + $0x880] ss:$16 sps:$4 sm:$0xff]  }
  0x86   : > { %1475 = vmatprep.subr.bf16.mxu0 %v8004_v25  ;;  %1604 = vmatprep.subr.bf16.mxu1 %v8007_v26  ;;  %v9360_v25 = vcombine.low %v9338_v49, %v9341_v50  ;;  %v8076_v26 = vld [vmem:[#allocation2 + $0x8a4] ss:$16 sps:$4 sm:$0xff]  }
  0x87   : > { %1505 = vmatprep.mubr.bf16.mxu0 %v612_v9  ;;  %1634 = vmatprep.mubr.bf16.mxu1 %v612_v9  ;;  %v8104_v50 = vld [vmem:[#allocation2 + $0x924] ss:$16 sps:$4 sm:$0xff]   ;;  %v8120_v9 = vld [vmem:[#allocation2 + $0x980] ss:$16 sps:$4 sm:$0xff]  }
  0x89   : > { %1476 = vmatpush1.bf16.msra.mxu0 %v8002_v27  ;;  %1605 = vmatpush1.bf16.msra.mxu1 %v8005_v28  ;;  %v8079_v27 = vld [vmem:[#allocation2 + $0x8ac] ss:$16 sps:$4 sm:$0xff]   ;;  %v8074_v28 = vld [vmem:[#allocation2 + $0x8a0] ss:$16 sps:$4 sm:$0xff]  }
  0x8a   : > { %1477 = vmatprep.subr.bf16.mxu0 %v8010_v29  ;;  %1606 = vmatprep.subr.bf16.mxu1 %v8013_v30  ;;  %v8077_v29 = vld [vmem:[#allocation2 + $0x8a8] ss:$16 sps:$4 sm:$0xff]   ;;  %v8082_v30 = vld [vmem:[#allocation2 + $0x8c4] ss:$16 sps:$4 sm:$0xff]  }
  0x8d   : > { %1478 = vmatpush1.bf16.msra.mxu0 %v8008_v31  ;;  %1607 = vmatpush1.bf16.msra.mxu1 %v8011_v32  ;;  %v9364_v31 = vcombine.low %v9344_v51, %v9344_v51  ;;  %v592_v32 = vshll.u32 %v9360_v25, 16  ;;  %v8107_v51 = vld [vmem:[#allocation2 + $0x92c] ss:$16 sps:$4 sm:$0xff]  }
  0x8e   : > { %1479 = vmatprep.subr.bf16.mxu0 %v8016_v33  ;;  %1608 = vmatprep.subr.bf16.mxu1 %v8019_v34  ;;  %v8085_v33 = vld [vmem:[#allocation2 + $0x8cc] ss:$16 sps:$4 sm:$0xff]   ;;  %v8080_v34 = vld [vmem:[#allocation2 + $0x8c0] ss:$16 sps:$4 sm:$0xff]  }
  0x91   : > { %1480 = vmatpush1.bf16.msra.mxu0 %v8014_v35  ;;  %1609 = vmatpush1.bf16.msra.mxu1 %v8017_v36  ;;  %v8083_v35 = vld [vmem:[#allocation2 + $0x8c8] ss:$16 sps:$4 sm:$0xff]   ;;  %v590_v36 = vshrl.u32 %v9360_v25, 16 }
  0x92   : > { %1481 = vmatprep.subr.bf16.mxu0 %v8022_v37  ;;  %1610 = vmatprep.subr.bf16.mxu1 %v8025_v38  ;;  %v594_v37 = vrot.slane %v592_v32, 1  ;;  %v597_v38 = vshll.u32 %v9364_v31, 16 }
  0x95   : > { %1482 = vmatpush1.bf16.msra.mxu0 %v8020_v39  ;;  %1611 = vmatpush1.bf16.msra.mxu1 %v8023_v40  ;;  %v8088_v39 = vld [vmem:[#allocation2 + $0x8e4] ss:$16 sps:$4 sm:$0xff]   ;;  %v8091_v40 = vld [vmem:[#allocation2 + $0x8ec] ss:$16 sps:$4 sm:$0xff]  }
  0x96   : > { %1483 = vmatprep.subr.bf16.mxu0 %v8028_v41  ;;  %1612 = vmatprep.subr.bf16.mxu1 %v8031_v42  ;;  %v8086_v41 = vld [vmem:[#allocation2 + $0x8e0] ss:$16 sps:$4 sm:$0xff]   ;;  %v8089_v42 = vld [vmem:[#allocation2 + $0x8e8] ss:$16 sps:$4 sm:$0xff]  }
  0x99   : > { %1484 = vmatpush1.bf16.msra.mxu0 %v8026_v43  ;;  %1613 = vmatpush1.bf16.msra.mxu1 %v8029_v44  ;;  %v595_v43 = vor.u32 %v594_v37, %v590_v36  ;;  %v599_v44 = vrot.slane %v597_v38, 1  ;;  %v8147_v36 = vld [vmem:[#allocation2 + $0x8] ss:$16 sps:$4 sm:$0xff]   ;;  %v8154_v38 = vld [vmem:[#allocation2 + $0x24] ss:$16 sps:$4 sm:$0xff]  }
  0x9a   : > { %1485 = vmatprep.subr.bf16.mxu0 %v8034_v45  ;;  %1614 = vmatprep.subr.bf16.mxu1 %v8037_v46  ;;  %v8096_v45 = vld [vmem:[#allocation2 + $0x904] ss:$16 sps:$4 sm:$0xff]   ;;  %v8099_v46 = vld [vmem:[#allocation2 + $0x90c] ss:$16 sps:$4 sm:$0xff]  }
  0x9b   : > { %v600_v49 = vsel %vm564_vm0, %v595_v43, %v599_v44  ;;  %v8163_v43 = vld [vmem:[#allocation2 + $0x4c] ss:$16 sps:$4 sm:$0xff]   ;;  %v8158_v44 = vld [vmem:[#allocation2 + $0x40] ss:$16 sps:$4 sm:$0xff]  }
  0x9d   : > { %1486 = vmatpush1.bf16.msra.mxu0 %v8032_v47  ;;  %1615 = vmatpush1.bf16.msra.mxu1 %v8035_v48  ;;  %v8094_v47 = vld [vmem:[#allocation2 + $0x900] ss:$16 sps:$4 sm:$0xff]   ;;  %v8097_v48 = vld [vmem:[#allocation2 + $0x908] ss:$16 sps:$4 sm:$0xff]  }
  0x9e   : > { %1487 = vmatprep.subr.bf16.mxu0 %v8040_v55  ;;  %1616 = vmatprep.subr.bf16.mxu1 %v8043_v56  ;;  %v8102_v55 = vld [vmem:[#allocation2 + $0x920] ss:$16 sps:$4 sm:$0xff]   ;;  %v8105_v56 = vld [vmem:[#allocation2 + $0x928] ss:$16 sps:$4 sm:$0xff]  }
  0xa1   : > { %1488 = vmatpush1.bf16.msra.mxu0 %v8038_v60  ;;  %1617 = vmatpush1.bf16.msra.mxu1 %v8041_v61  ;;  %v9204_v60 = vmov 0   ;;  %v8108_v61 = vld [vmem:[#allocation2 + $0x940] ss:$16 sps:$4 sm:$0xff]  }
  0xa2   : > { %1489 = vmatprep.subr.bf16.mxu0 %v8046_v0  ;;  %1618 = vmatprep.subr.bf16.mxu1 %v8049_v1  ;;  %v8116_v0 = vld [vmem:[#allocation2 + $0x964] ss:$16 sps:$4 sm:$0xff]   ;;  %v8119_v1 = vld [vmem:[#allocation2 + $0x96c] ss:$16 sps:$4 sm:$0xff]  }
  0xa5   : > { %1490 = vmatpush1.bf16.msra.mxu0 %v8044_v6  ;;  %1619 = vmatpush1.bf16.msra.mxu1 %v8047_v7  ;;  %v8125_v6 = vld [vmem:[#allocation2 + $0x98c] ss:$16 sps:$4 sm:$0xff]   ;;  %v202_v7 = vld [vmem:[%s9316_s20 + $0x10] sm:$0xf] }
  0xa6   : > { %1491 = vmatprep.subr.bf16.mxu0 %v8052_v8  ;;  %1620 = vmatprep.subr.bf16.mxu1 %v8055_v10  ;;  %v205_v8 = vld [vmem:[%s9316_s20 + $0x24] sm:$0xf]  ;;  %v8123_v10 = vld [vmem:[#allocation2 + $0x988] ss:$16 sps:$4 sm:$0xff]  }
  0xa9   : > { %1492 = vmatpush1.bf16.msra.mxu0 %v8050_v11  ;;  %1621 = vmatpush1.bf16.msra.mxu1 %v8053_v12  ;;  %v9374_v11 = vcombine.low %v202_v7, %v205_v8  ;;  %v8128_v12 = vld [vmem:[#allocation2 + $0x9a4] ss:$16 sps:$4 sm:$0xff]   ;;  %v8191_v7 = vld [vmem:[#allocation2 + $0xe8] ss:$16 sps:$4 sm:$0xff]  }
  0xaa   : > { %1493 = vmatprep.subr.bf16.mxu0 %v8058_v13  ;;  %1622 = vmatprep.subr.bf16.mxu1 %v8061_v14  ;;  %v8131_v13 = vld [vmem:[#allocation2 + $0x9ac] ss:$16 sps:$4 sm:$0xff]   ;;  %v8126_v14 = vld [vmem:[#allocation2 + $0x9a0] ss:$16 sps:$4 sm:$0xff]   ;;  %v8196_v8 = vld [vmem:[#allocation2 + $0x104] ss:$16 sps:$4 sm:$0xff]  }
  0xad   : > { %1494 = vmatpush1.bf16.msra.mxu0 %v8056_v15  ;;  %1623 = vmatpush1.bf16.msra.mxu1 %v8059_v16  ;;  %v8129_v15 = vld [vmem:[#allocation2 + $0x9a8] ss:$16 sps:$4 sm:$0xff]  }
  0xae   : > { %1495 = vmatprep.subr.bf16.mxu0 %v8064_v17  ;;  %1624 = vmatprep.subr.bf16.mxu1 %v8067_v18  ;;  %v8151_v16 = vld [vmem:[%s9316_s20 + $0x38] ss:$0 sps:$4 sm:$0x11]   ;;  %v616_v17 = vshll.u32 %v9374_v11, 16  ;;  %v8134_v18 = vld [vmem:[#allocation2 + $0x9c4] ss:$16 sps:$4 sm:$0xff]  }
  0xb1   : > { %1496 = vmatpush1.bf16.msra.mxu0 %v8062_v19  ;;  %1625 = vmatpush1.bf16.msra.mxu1 %v8065_v20  ;;  %v8137_v19 = vld [vmem:[#allocation2 + $0x9cc] ss:$16 sps:$4 sm:$0xff]   ;;  %v8132_v20 = vld [vmem:[#allocation2 + $0x9c0] ss:$16 sps:$4 sm:$0xff]  }
  0xb2   : > { %1497 = vmatprep.subr.bf16.mxu0 %v8070_v21  ;;  %1626 = vmatprep.subr.bf16.mxu1 %v8073_v22  ;;  %v8135_v21 = vld [vmem:[#allocation2 + $0x9c8] ss:$16 sps:$4 sm:$0xff]   ;;  %v614_v22 = vshrl.u32 %v9374_v11, 16 }
  0xb5   : > { %1498 = vmatpush1.bf16.msra.mxu0 %v8068_v23  ;;  %1627 = vmatpush1.bf16.msra.mxu1 %v8071_v24  ;;  %v618_v23 = vrot.slane %v616_v17, 1  ;;  %v621_v24 = vshll.u32 %v8151_v16, 16  ;;  %v8203_v16 = vld [vmem:[#allocation2 + $0x128] ss:$16 sps:$4 sm:$0xff]   ;;  %v8208_v17 = vld [vmem:[#allocation2 + $0x144] ss:$16 sps:$4 sm:$0xff]  }
  0xb6   : > { %1499 = vmatprep.subr.bf16.mxu0 %v8076_v26  ;;  %1628 = vmatprep.subr.bf16.mxu1 %v8079_v27  ;;  %v8140_v26 = vld [vmem:[#allocation2 + $0x9e4] ss:$16 sps:$4 sm:$0xff]   ;;  %v8143_v27 = vld [vmem:[#allocation2 + $0x9ec] ss:$16 sps:$4 sm:$0xff]  }
  0xb7   : > { %v623_v32 = vrot.slane %v621_v24, 1  ;;  %v8215_v24 = vld [vmem:[#allocation2 + $0x168] ss:$16 sps:$4 sm:$0xff]  }
  0xb9   : > { %1500 = vmatpush1.bf16.msra.mxu0 %v8074_v28  ;;  %1629 = vmatpush1.bf16.msra.mxu1 %v8077_v29  ;;  %v8138_v28 = vld [vmem:[#allocation2 + $0x9e0] ss:$16 sps:$4 sm:$0xff]   ;;  %v8141_v29 = vld [vmem:[#allocation2 + $0x9e8] ss:$16 sps:$4 sm:$0xff]  }
  0xba   : > { %1501 = vmatprep.subr.bf16.mxu0 %v8082_v30  ;;  %1630 = vmatprep.subr.bf16.mxu1 %v8085_v33  ;;  %v619_v30 = vor.u32 %v618_v23, %v614_v22  ;;  %v8146_v33 = vld [vmem:[#allocation2 + $0x4] ss:$16 sps:$4 sm:$0xff]   ;;  %v8217_v22 = vld [vmem:[#allocation2 + $0x16c] ss:$16 sps:$4 sm:$0xff]   ;;  %v8212_v23 = vld [vmem:[#allocation2 + $0x160] ss:$16 sps:$4 sm:$0xff]  }
  0xbc   : > { %v624_v37 = vsel %vm564_vm0, %v619_v30, %v623_v32  ;;  %v8226_v30 = vld [vmem:[#allocation2 + $0x1a4] ss:$16 sps:$4 sm:$0xff]   ;;  %v8229_v32 = vld [vmem:[#allocation2 + $0x1ac] ss:$16 sps:$4 sm:$0xff]  }
  0xbd   : > { %1502 = vmatpush1.bf16.msra.mxu0 %v8080_v34  ;;  %1631 = vmatpush1.bf16.msra.mxu1 %v8083_v35  ;;  %v8149_v34 = vld [vmem:[#allocation2 + $0xc] ss:$16 sps:$4 sm:$0xff]   ;;  %v8144_v35 = vld [vmem:[#allocation2] ss:$16 sps:$4 sm:$0xff]  }
  0xbe   : > { %1503 = vmatprep.subr.bf16.mxu0 %v8088_v39  ;;  %1632 = vmatprep.subr.bf16.mxu1 %v8091_v40  ;;  %v8157_v39 = vld [vmem:[#allocation2 + $0x2c] ss:$16 sps:$4 sm:$0xff]   ;;  %v8152_v40 = vld [vmem:[#allocation2 + $0x20] ss:$16 sps:$4 sm:$0xff]  }
  0xc1   : > { %1504 = vmatpush1.bf16.msra.mxu0 %v8086_v41  ;;  %1633 = vmatpush1.bf16.msra.mxu1 %v8089_v42  ;;  %v8155_v41 = vld [vmem:[#allocation2 + $0x28] ss:$16 sps:$4 sm:$0xff]   ;;  %v8160_v42 = vld [vmem:[#allocation2 + $0x44] ss:$16 sps:$4 sm:$0xff]  }
  0xc2   : > { %1516 = vmatprep.subr.bf16.mxu0 %v8096_v45  ;;  %1645 = vmatprep.subr.bf16.mxu1 %v8099_v46  ;;  %v8161_v45 = vld [vmem:[#allocation2 + $0x48] ss:$16 sps:$4 sm:$0xff]   ;;  %v8166_v46 = vld [vmem:[#allocation2 + $0x64] ss:$16 sps:$4 sm:$0xff]  }
  0xc4   : > { %1506 = vmatmul.mubr.bf16.vlgmr.msra.gmra.mrb[0].mxu0 %v600_v49  ;;  %1635 = vmatmul.mubr.bf16.vlgmr.msra.gmra.mrb[0].mxu1 %v600_v49  ;;  %v8167_v49 = vld [vmem:[#allocation2 + $0x68] ss:$16 sps:$4 sm:$0xff]  }
  0xc5   : > { %1517 = vmatpush1.bf16.msra.mxu0 %v8094_v47  ;;  %1646 = vmatpush1.bf16.msra.mxu1 %v8097_v48  ;;  %v8169_v47 = vld [vmem:[#allocation2 + $0x6c] ss:$16 sps:$4 sm:$0xff]   ;;  %v8164_v48 = vld [vmem:[#allocation2 + $0x60] ss:$16 sps:$4 sm:$0xff]  }
  0xc6   : > { %1518 = vmatprep.subr.bf16.mxu0 %v8104_v50  ;;  %1647 = vmatprep.subr.bf16.mxu1 %v8107_v51  ;;  %v8172_v50 = vld [vmem:[#allocation2 + $0x84] ss:$16 sps:$4 sm:$0xff]   ;;  %v8175_v51 = vld [vmem:[#allocation2 + $0x8c] ss:$16 sps:$4 sm:$0xff]  }
  0xc7   : > { %1548 = vmatprep.mubr.bf16.mxu0 %v9204_v60  ;;  %1677 = vmatprep.mubr.bf16.mxu1 %v9204_v60 }
  0xc9   : > { %1519 = vmatpush1.bf16.msra.mxu0 %v8102_v55  ;;  %1648 = vmatpush1.bf16.msra.mxu1 %v8105_v56  ;;  %v8170_v55 = vld [vmem:[#allocation2 + $0x80] ss:$16 sps:$4 sm:$0xff]   ;;  %v8178_v56 = vld [vmem:[#allocation2 + $0xa4] ss:$16 sps:$4 sm:$0xff]  }
  0xca   : > { %1520 = vmatprep.subr.bf16.mxu0 %v8110_v58  ;;  %1649 = vmatprep.subr.bf16.mxu1 %v8113_v59  ;;  %v8181_v58 = vld [vmem:[#allocation2 + $0xac] ss:$16 sps:$4 sm:$0xff]   ;;  %v8176_v59 = vld [vmem:[#allocation2 + $0xa0] ss:$16 sps:$4 sm:$0xff]  }
  0xcd   : > { %1521 = vmatpush1.bf16.msra.mxu0 %v8108_v61  ;;  %1650 = vmatpush1.bf16.msra.mxu1 %v8111_v63  ;;  %v8179_v61 = vld [vmem:[#allocation2 + $0xa8] ss:$16 sps:$4 sm:$0xff]   ;;  %v8184_v63 = vld [vmem:[#allocation2 + $0xc4] ss:$16 sps:$4 sm:$0xff]  }
  0xce   : > { %1522 = vmatprep.subr.bf16.mxu0 %v8116_v0  ;;  %1651 = vmatprep.subr.bf16.mxu1 %v8119_v1  ;;  %v8187_v0 = vld [vmem:[#allocation2 + $0xcc] ss:$16 sps:$4 sm:$0xff]   ;;  %v8182_v1 = vld [vmem:[#allocation2 + $0xc0] ss:$16 sps:$4 sm:$0xff]  }
  0xd1   : > { %1523 = vmatpush1.bf16.msra.mxu0 %v8114_v2  ;;  %1652 = vmatpush1.bf16.msra.mxu1 %v8117_v3  ;;  %v8185_v2 = vld [vmem:[#allocation2 + $0xc8] ss:$16 sps:$4 sm:$0xff]   ;;  %v8190_v3 = vld [vmem:[#allocation2 + $0xe4] ss:$16 sps:$4 sm:$0xff]  }
  0xd2   : > { %1524 = vmatprep.subr.bf16.mxu0 %v8122_v4  ;;  %1653 = vmatprep.subr.bf16.mxu1 %v8125_v6  ;;  %v8193_v4 = vld [vmem:[#allocation2 + $0xec] ss:$16 sps:$4 sm:$0xff]   ;;  %v8188_v6 = vld [vmem:[#allocation2 + $0xe0] ss:$16 sps:$4 sm:$0xff]  }
  0xd5   : > { %1525 = vmatpush1.bf16.msra.mxu0 %v8120_v9  ;;  %1654 = vmatpush1.bf16.msra.mxu1 %v8123_v10  ;;  %v8199_v9 = vld [vmem:[#allocation2 + $0x10c] ss:$16 sps:$4 sm:$0xff]   ;;  %v8194_v10 = vld [vmem:[#allocation2 + $0x100] ss:$16 sps:$4 sm:$0xff]  }
  0xd6   : > { %1526 = vmatprep.subr.bf16.mxu0 %v8128_v12  ;;  %1655 = vmatprep.subr.bf16.mxu1 %v8131_v13  ;;  %v8197_v12 = vld [vmem:[#allocation2 + $0x108] ss:$16 sps:$4 sm:$0xff]   ;;  %v8202_v13 = vld [vmem:[#allocation2 + $0x124] ss:$16 sps:$4 sm:$0xff]  }
  0xd9   : > { %1527 = vmatpush1.bf16.msra.mxu0 %v8126_v14  ;;  %1656 = vmatpush1.bf16.msra.mxu1 %v8129_v15  ;;  %v8205_v14 = vld [vmem:[#allocation2 + $0x12c] ss:$16 sps:$4 sm:$0xff]   ;;  %v8200_v15 = vld [vmem:[#allocation2 + $0x120] ss:$16 sps:$4 sm:$0xff]  }
  0xda   : > { %1528 = vmatprep.subr.bf16.mxu0 %v8134_v18  ;;  %1657 = vmatprep.subr.bf16.mxu1 %v8137_v19  ;;  %v8211_v18 = vld [vmem:[#allocation2 + $0x14c] ss:$16 sps:$4 sm:$0xff]   ;;  %v8206_v19 = vld [vmem:[#allocation2 + $0x140] ss:$16 sps:$4 sm:$0xff]  }
  0xdd   : > { %1529 = vmatpush1.bf16.msra.mxu0 %v8132_v20  ;;  %1658 = vmatpush1.bf16.msra.mxu1 %v8135_v21  ;;  %v8209_v20 = vld [vmem:[#allocation2 + $0x148] ss:$16 sps:$4 sm:$0xff]   ;;  %v8214_v21 = vld [vmem:[#allocation2 + $0x164] ss:$16 sps:$4 sm:$0xff]  }
  0xde   : > { %1530 = vmatprep.subr.bf16.mxu0 %v8140_v26  ;;  %1659 = vmatprep.subr.bf16.mxu1 %v8143_v27  ;;  %v8220_v26 = vld [vmem:[#allocation2 + $0x184] ss:$16 sps:$4 sm:$0xff]   ;;  %v8223_v27 = vld [vmem:[#allocation2 + $0x18c] ss:$16 sps:$4 sm:$0xff]  }
  0xe1   : > { %1531 = vmatpush1.bf16.msra.mxu0 %v8138_v28  ;;  %1660 = vmatpush1.bf16.msra.mxu1 %v8141_v29  ;;  %v8218_v28 = vld [vmem:[#allocation2 + $0x180] ss:$16 sps:$4 sm:$0xff]   ;;  %v8221_v29 = vld [vmem:[#allocation2 + $0x188] ss:$16 sps:$4 sm:$0xff]  }
  0xe2   : > { %2493 = vmatprep.subr.bf16.mxu0 %v8146_v33  ;;  %2622 = vmatprep.subr.bf16.mxu1 %v8149_v34  ;;  %v8224_v33 = vld [vmem:[#allocation2 + $0x1a0] ss:$16 sps:$4 sm:$0xff]   ;;  %v8227_v34 = vld [vmem:[#allocation2 + $0x1a8] ss:$16 sps:$4 sm:$0xff]  }
  0xe4   : > { %1549 = vmatmul.mubr.bf16.vlgmr.msra.gmra.mrb[0].mxu0 %v624_v37  ;;  %1678 = vmatmul.mubr.bf16.vlgmr.msra.gmra.mrb[0].mxu1 %v624_v37  ;;  %v8230_v37 = vld [vmem:[#allocation2 + $0x1c0] ss:$16 sps:$4 sm:$0xff]  }
  0xe5   : > { %2494 = vmatpush1.bf16.msra.mxu0 %v8144_v35  ;;  %2623 = vmatpush1.bf16.msra.mxu1 %v8147_v36  ;;  %v8232_v35 = vld [vmem:[#allocation2 + $0x1c4] ss:$16 sps:$4 sm:$0xff]   ;;  %v8235_v36 = vld [vmem:[#allocation2 + $0x1cc] ss:$16 sps:$4 sm:$0xff]  }
  0xe6   : > { %2495 = vmatprep.subr.bf16.mxu0 %v8154_v38  ;;  %2624 = vmatprep.subr.bf16.mxu1 %v8157_v39  ;;  %v8233_v38 = vld [vmem:[#allocation2 + $0x1c8] ss:$16 sps:$4 sm:$0xff]   ;;  %v8238_v39 = vld [vmem:[#allocation2 + $0x1e4] ss:$16 sps:$4 sm:$0xff]  }
  0xe7   : > { %2525 = vmatprep.mubr.bf16.mxu0 %v9321_v52  ;;  %2654 = vmatprep.mubr.bf16.mxu1 %v9321_v52  ;;  %v8173_v52 = vld [vmem:[#allocation2 + $0x88] ss:$16 sps:$4 sm:$0xff]  }
  0xe9   : > { %2496 = vmatpush1.bf16.msra.mxu0 %v8152_v40  ;;  %2625 = vmatpush1.bf16.msra.mxu1 %v8155_v41  ;;  %v8241_v40 = vld [vmem:[#allocation2 + $0x1ec] ss:$16 sps:$4 sm:$0xff]   ;;  %v8236_v41 = vld [vmem:[#allocation2 + $0x1e0] ss:$16 sps:$4 sm:$0xff]  }
  0xea   : > { %2497 = vmatprep.subr.bf16.mxu0 %v8160_v42  ;;  %2626 = vmatprep.subr.bf16.mxu1 %v8163_v43  ;;  %v8239_v42 = vld [vmem:[#allocation2 + $0x1e8] ss:$16 sps:$4 sm:$0xff]   ;;  %v8244_v43 = vld [vmem:[#allocation2 + $0x204] ss:$16 sps:$4 sm:$0xff]  }
  0xed   : > { %2498 = vmatpush1.bf16.msra.mxu0 %v8158_v44  ;;  %2627 = vmatpush1.bf16.msra.mxu1 %v8161_v45  ;;  %v8247_v44 = vld [vmem:[#allocation2 + $0x20c] ss:$16 sps:$4 sm:$0xff]   ;;  %v8242_v45 = vld [vmem:[#allocation2 + $0x200] ss:$16 sps:$4 sm:$0xff]  }
  0xee   : > { %2499 = vmatprep.subr.bf16.mxu0 %v8166_v46  ;;  %2628 = vmatprep.subr.bf16.mxu1 %v8169_v47  ;;  %v8245_v46 = vld [vmem:[#allocation2 + $0x208] ss:$16 sps:$4 sm:$0xff]   ;;  %v8250_v47 = vld [vmem:[#allocation2 + $0x224] ss:$16 sps:$4 sm:$0xff]  }
  0xf1   : > { %2500 = vmatpush1.bf16.msra.mxu0 %v8164_v48  ;;  %2629 = vmatpush1.bf16.msra.mxu1 %v8167_v49  ;;  %v8253_v48 = vld [vmem:[#allocation2 + $0x22c] ss:$16 sps:$4 sm:$0xff]   ;;  %v8248_v49 = vld [vmem:[#allocation2 + $0x220] ss:$16 sps:$4 sm:$0xff]  }
  0xf2   : > { %2501 = vmatprep.subr.bf16.mxu0 %v8172_v50  ;;  %2630 = vmatprep.subr.bf16.mxu1 %v8175_v51  ;;  %v8251_v50 = vld [vmem:[#allocation2 + $0x228] ss:$16 sps:$4 sm:$0xff]   ;;  %v8256_v51 = vld [vmem:[#allocation2 + $0x244] ss:$16 sps:$4 sm:$0xff]  }
  0xf5   : > { %2502 = vmatpush1.bf16.msra.mxu0 %v8170_v55  ;;  %2631 = vmatpush1.bf16.msra.mxu1 %v8173_v52  ;;  %v8259_v55 = vld [vmem:[#allocation2 + $0x24c] ss:$16 sps:$4 sm:$0xff]   ;;  %v8254_v52 = vld [vmem:[#allocation2 + $0x240] ss:$16 sps:$4 sm:$0xff]  }
  0xf6   : > { %2503 = vmatprep.subr.bf16.mxu0 %v8178_v56  ;;  %2632 = vmatprep.subr.bf16.mxu1 %v8181_v58  ;;  %v8257_v56 = vld [vmem:[#allocation2 + $0x248] ss:$16 sps:$4 sm:$0xff]   ;;  %v8262_v58 = vld [vmem:[#allocation2 + $0x264] ss:$16 sps:$4 sm:$0xff]  }
  0xf9   : > { %2504 = vmatpush1.bf16.msra.mxu0 %v8176_v59  ;;  %2633 = vmatpush1.bf16.msra.mxu1 %v8179_v61  ;;  %v8260_v59 = vld [vmem:[#allocation2 + $0x260] ss:$16 sps:$4 sm:$0xff]   ;;  %v8263_v61 = vld [vmem:[#allocation2 + $0x268] ss:$16 sps:$4 sm:$0xff]  }
  0xfa   : > { %2505 = vmatprep.subr.bf16.mxu0 %v8184_v63  ;;  %2634 = vmatprep.subr.bf16.mxu1 %v8187_v0  ;;  %v8268_v63 = vld [vmem:[#allocation2 + $0x284] ss:$16 sps:$4 sm:$0xff]   ;;  %v8271_v0 = vld [vmem:[#allocation2 + $0x28c] ss:$16 sps:$4 sm:$0xff]  }
  0xfd   : > { %2506 = vmatpush1.bf16.msra.mxu0 %v8182_v1  ;;  %2635 = vmatpush1.bf16.msra.mxu1 %v8185_v2  ;;  %v8266_v1 = vld [vmem:[#allocation2 + $0x280] ss:$16 sps:$4 sm:$0xff]   ;;  %v8274_v2 = vld [vmem:[#allocation2 + $0x2a4] ss:$16 sps:$4 sm:$0xff]  }
  0xfe   : > { %2507 = vmatprep.subr.bf16.mxu0 %v8190_v3  ;;  %2636 = vmatprep.subr.bf16.mxu1 %v8193_v4  ;;  %v8277_v3 = vld [vmem:[#allocation2 + $0x2ac] ss:$16 sps:$4 sm:$0xff]   ;;  %v8272_v4 = vld [vmem:[#allocation2 + $0x2a0] ss:$16 sps:$4 sm:$0xff]  }
 0x101   : > { %2508 = vmatpush1.bf16.msra.mxu0 %v8188_v6  ;;  %2637 = vmatpush1.bf16.msra.mxu1 %v8191_v7  ;;  %v8275_v6 = vld [vmem:[#allocation2 + $0x2a8] ss:$16 sps:$4 sm:$0xff]   ;;  %v8280_v7 = vld [vmem:[#allocation2 + $0x2c4] ss:$16 sps:$4 sm:$0xff]  }
 0x102   : > { %2509 = vmatprep.subr.bf16.mxu0 %v8196_v8  ;;  %2638 = vmatprep.subr.bf16.mxu1 %v8199_v9  ;;  %v8283_v8 = vld [vmem:[#allocation2 + $0x2cc] ss:$16 sps:$4 sm:$0xff]   ;;  %v8278_v9 = vld [vmem:[#allocation2 + $0x2c0] ss:$16 sps:$4 sm:$0xff]  }
 0x105   : > { %2510 = vmatpush1.bf16.msra.mxu0 %v8194_v10  ;;  %2639 = vmatpush1.bf16.msra.mxu1 %v8197_v12  ;;  %v8281_v10 = vld [vmem:[#allocation2 + $0x2c8] ss:$16 sps:$4 sm:$0xff]   ;;  %v8286_v12 = vld [vmem:[#allocation2 + $0x2e4] ss:$16 sps:$4 sm:$0xff]  }
 0x106   : > { %2511 = vmatprep.subr.bf16.mxu0 %v8202_v13  ;;  %2640 = vmatprep.subr.bf16.mxu1 %v8205_v14  ;;  %v8289_v13 = vld [vmem:[#allocation2 + $0x2ec] ss:$16 sps:$4 sm:$0xff]   ;;  %v8284_v14 = vld [vmem:[#allocation2 + $0x2e0] ss:$16 sps:$4 sm:$0xff]  }
 0x109   : > { %2512 = vmatpush1.bf16.msra.mxu0 %v8200_v15  ;;  %2641 = vmatpush1.bf16.msra.mxu1 %v8203_v16  ;;  %v8287_v15 = vld [vmem:[#allocation2 + $0x2e8] ss:$16 sps:$4 sm:$0xff]   ;;  %v8292_v16 = vld [vmem:[#allocation2 + $0x304] ss:$16 sps:$4 sm:$0xff]  }
 0x10a   : > { %2513 = vmatprep.subr.bf16.mxu0 %v8208_v17  ;;  %2642 = vmatprep.subr.bf16.mxu1 %v8211_v18  ;;  %v8295_v17 = vld [vmem:[#allocation2 + $0x30c] ss:$16 sps:$4 sm:$0xff]   ;;  %v8290_v18 = vld [vmem:[#allocation2 + $0x300] ss:$16 sps:$4 sm:$0xff]  }
 0x10d   : > { %2514 = vmatpush1.bf16.msra.mxu0 %v8206_v19  ;;  %2643 = vmatpush1.bf16.msra.mxu1 %v8209_v20  ;;  %v8293_v19 = vld [vmem:[#allocation2 + $0x308] ss:$16 sps:$4 sm:$0xff]   ;;  %v8298_v20 = vld [vmem:[#allocation2 + $0x324] ss:$16 sps:$4 sm:$0xff]  }
 0x10e   : > { %2515 = vmatprep.subr.bf16.mxu0 %v8214_v21  ;;  %2644 = vmatprep.subr.bf16.mxu1 %v8217_v22  ;;  %v8301_v21 = vld [vmem:[#allocation2 + $0x32c] ss:$16 sps:$4 sm:$0xff]   ;;  %v8296_v22 = vld [vmem:[#allocation2 + $0x320] ss:$16 sps:$4 sm:$0xff]  }
 0x111   : > { %2516 = vmatpush1.bf16.msra.mxu0 %v8212_v23  ;;  %2645 = vmatpush1.bf16.msra.mxu1 %v8215_v24  ;;  %v8299_v23 = vld [vmem:[#allocation2 + $0x328] ss:$16 sps:$4 sm:$0xff]   ;;  %v8304_v24 = vld [vmem:[#allocation2 + $0x344] ss:$16 sps:$4 sm:$0xff]  }
 0x112   : > { %2517 = vmatprep.subr.bf16.mxu0 %v8220_v26  ;;  %2646 = vmatprep.subr.bf16.mxu1 %v8223_v27  ;;  %v8307_v26 = vld [vmem:[#allocation2 + $0x34c] ss:$16 sps:$4 sm:$0xff]   ;;  %v8302_v27 = vld [vmem:[#allocation2 + $0x340] ss:$16 sps:$4 sm:$0xff]  }
 0x115   : > { %2518 = vmatpush1.bf16.msra.mxu0 %v8218_v28  ;;  %2647 = vmatpush1.bf16.msra.mxu1 %v8221_v29  ;;  %v8305_v28 = vld [vmem:[#allocation2 + $0x348] ss:$16 sps:$4 sm:$0xff]   ;;  %v8310_v29 = vld [vmem:[#allocation2 + $0x364] ss:$16 sps:$4 sm:$0xff]  }
 0x116   : > { %2519 = vmatprep.subr.bf16.mxu0 %v8226_v30  ;;  %2648 = vmatprep.subr.bf16.mxu1 %v8229_v32  ;;  %v8313_v30 = vld [vmem:[#allocation2 + $0x36c] ss:$16 sps:$4 sm:$0xff]   ;;  %v8308_v32 = vld [vmem:[#allocation2 + $0x360] ss:$16 sps:$4 sm:$0xff]  }
 0x119   : > { %2520 = vmatpush1.bf16.msra.mxu0 %v8224_v33  ;;  %2649 = vmatpush1.bf16.msra.mxu1 %v8227_v34  ;;  %v8311_v33 = vld [vmem:[#allocation2 + $0x368] ss:$16 sps:$4 sm:$0xff]   ;;  %v8316_v34 = vld [vmem:[#allocation2 + $0x384] ss:$16 sps:$4 sm:$0xff]  }
 0x11a   : > { %2521 = vmatprep.subr.bf16.mxu0 %v8232_v35  ;;  %2650 = vmatprep.subr.bf16.mxu1 %v8235_v36  ;;  %v8319_v35 = vld [vmem:[#allocation2 + $0x38c] ss:$16 sps:$4 sm:$0xff]   ;;  %v8314_v36 = vld [vmem:[#allocation2 + $0x380] ss:$16 sps:$4 sm:$0xff]  }
 0x11d   : > { %2522 = vmatpush1.bf16.msra.mxu0 %v8230_v37  ;;  %2651 = vmatpush1.bf16.msra.mxu1 %v8233_v38  ;;  %v8317_v37 = vld [vmem:[#allocation2 + $0x388] ss:$16 sps:$4 sm:$0xff]   ;;  %v8322_v38 = vld [vmem:[#allocation2 + $0x3a4] ss:$16 sps:$4 sm:$0xff]  }
 0x11e   : > { %2523 = vmatprep.subr.bf16.mxu0 %v8238_v39  ;;  %2652 = vmatprep.subr.bf16.mxu1 %v8241_v40  ;;  %v8325_v39 = vld [vmem:[#allocation2 + $0x3ac] ss:$16 sps:$4 sm:$0xff]   ;;  %v8320_v40 = vld [vmem:[#allocation2 + $0x3a0] ss:$16 sps:$4 sm:$0xff]  }
 0x121   : > { %2524 = vmatpush1.bf16.msra.mxu0 %v8236_v41  ;;  %2653 = vmatpush1.bf16.msra.mxu1 %v8239_v42  ;;  %v8323_v41 = vld [vmem:[#allocation2 + $0x3a8] ss:$16 sps:$4 sm:$0xff]   ;;  %v8328_v42 = vld [vmem:[#allocation2 + $0x3c4] ss:$16 sps:$4 sm:$0xff]  }
 0x122   : > { %2536 = vmatprep.subr.bf16.mxu0 %v8244_v43  ;;  %2665 = vmatprep.subr.bf16.mxu1 %v8247_v44  ;;  %v8331_v43 = vld [vmem:[#allocation2 + $0x3cc] ss:$16 sps:$4 sm:$0xff]   ;;  %v8326_v44 = vld [vmem:[#allocation2 + $0x3c0] ss:$16 sps:$4 sm:$0xff]  }
 0x124   : > { %2526 = vmatmul.mubr.bf16.vlgmr.msra.gmra.mrb[0].mxu0 %v9328_v62  ;;  %2655 = vmatmul.mubr.bf16.vlgmr.msra.gmra.mrb[0].mxu1 %v9328_v62  ;;  %v8265_v62 = vld [vmem:[#allocation2 + $0x26c] ss:$16 sps:$4 sm:$0xff]  }
 0x125   : > { %2537 = vmatpush1.bf16.msra.mxu0 %v8242_v45  ;;  %2666 = vmatpush1.bf16.msra.mxu1 %v8245_v46  ;;  %v8329_v45 = vld [vmem:[#allocation2 + $0x3c8] ss:$16 sps:$4 sm:$0xff]   ;;  %v8334_v46 = vld [vmem:[#allocation2 + $0x3e4] ss:$16 sps:$4 sm:$0xff]  }
 0x126   : > { %2538 = vmatprep.subr.bf16.mxu0 %v8250_v47  ;;  %2667 = vmatprep.subr.bf16.mxu1 %v8253_v48  ;;  %v8337_v47 = vld [vmem:[#allocation2 + $0x3ec] ss:$16 sps:$4 sm:$0xff]   ;;  %v8332_v48 = vld [vmem:[#allocation2 + $0x3e0] ss:$16 sps:$4 sm:$0xff]  }
 0x127   : > { %2568 = vmatprep.mubr.bf16.mxu0 %v9348_v54  ;;  %2697 = vmatprep.mubr.bf16.mxu1 %v9348_v54  ;;  %v8269_v54 = vld [vmem:[#allocation2 + $0x288] ss:$16 sps:$4 sm:$0xff]  }
 0x129   : > { %2539 = vmatpush1.bf16.msra.mxu0 %v8248_v49  ;;  %2668 = vmatpush1.bf16.msra.mxu1 %v8251_v50  ;;  %v8335_v49 = vld [vmem:[#allocation2 + $0x3e8] ss:$16 sps:$4 sm:$0xff]   ;;  %v8340_v50 = vld [vmem:[#allocation2 + $0x404] ss:$16 sps:$4 sm:$0xff]  }
 0x12a   : > { %2540 = vmatprep.subr.bf16.mxu0 %v8256_v51  ;;  %2669 = vmatprep.subr.bf16.mxu1 %v8259_v55  ;;  %v8343_v51 = vld [vmem:[#allocation2 + $0x40c] ss:$16 sps:$4 sm:$0xff]   ;;  %v8338_v55 = vld [vmem:[#allocation2 + $0x400] ss:$16 sps:$4 sm:$0xff]  }
 0x12d   : > { %2541 = vmatpush1.bf16.msra.mxu0 %v8254_v52  ;;  %2670 = vmatpush1.bf16.msra.mxu1 %v8257_v56  ;;  %v8341_v52 = vld [vmem:[#allocation2 + $0x408] ss:$16 sps:$4 sm:$0xff]   ;;  %v8346_v56 = vld [vmem:[#allocation2 + $0x424] ss:$16 sps:$4 sm:$0xff]  }
 0x12e   : > { %2542 = vmatprep.subr.bf16.mxu0 %v8262_v58  ;;  %2671 = vmatprep.subr.bf16.mxu1 %v8265_v62  ;;  %v8349_v58 = vld [vmem:[#allocation2 + $0x42c] ss:$16 sps:$4 sm:$0xff]   ;;  %v8344_v62 = vld [vmem:[#allocation2 + $0x420] ss:$16 sps:$4 sm:$0xff]  }
 0x131   : > { %2543 = vmatpush1.bf16.msra.mxu0 %v8260_v59  ;;  %2672 = vmatpush1.bf16.msra.mxu1 %v8263_v61  ;;  %v8347_v59 = vld [vmem:[#allocation2 + $0x428] ss:$16 sps:$4 sm:$0xff]   ;;  %v8352_v61 = vld [vmem:[#allocation2 + $0x444] ss:$16 sps:$4 sm:$0xff]  }
 0x132   : > { %2544 = vmatprep.subr.bf16.mxu0 %v8268_v63  ;;  %2673 = vmatprep.subr.bf16.mxu1 %v8271_v0  ;;  %v8355_v63 = vld [vmem:[#allocation2 + $0x44c] ss:$16 sps:$4 sm:$0xff]   ;;  %v8350_v0 = vld [vmem:[#allocation2 + $0x440] ss:$16 sps:$4 sm:$0xff]  }
 0x135   : > { %2545 = vmatpush1.bf16.msra.mxu0 %v8266_v1  ;;  %2674 = vmatpush1.bf16.msra.mxu1 %v8269_v54  ;;  %v8353_v1 = vld [vmem:[#allocation2 + $0x448] ss:$16 sps:$4 sm:$0xff]   ;;  %v8358_v54 = vld [vmem:[#allocation2 + $0x464] ss:$16 sps:$4 sm:$0xff]  }
 0x136   : > { %2546 = vmatprep.subr.bf16.mxu0 %v8274_v2  ;;  %2675 = vmatprep.subr.bf16.mxu1 %v8277_v3  ;;  %v8356_v2 = vld [vmem:[#allocation2 + $0x460] ss:$16 sps:$4 sm:$0xff]   ;;  %v8359_v3 = vld [vmem:[#allocation2 + $0x468] ss:$16 sps:$4 sm:$0xff]  }
 0x139   : > { %2547 = vmatpush1.bf16.msra.mxu0 %v8272_v4  ;;  %2676 = vmatpush1.bf16.msra.mxu1 %v8275_v6  ;;  %v8364_v4 = vld [vmem:[#allocation2 + $0x484] ss:$16 sps:$4 sm:$0xff]   ;;  %v8367_v6 = vld [vmem:[#allocation2 + $0x48c] ss:$16 sps:$4 sm:$0xff]  }
 0x13a   : > { %2548 = vmatprep.subr.bf16.mxu0 %v8280_v7  ;;  %2677 = vmatprep.subr.bf16.mxu1 %v8283_v8  ;;  %v8362_v7 = vld [vmem:[#allocation2 + $0x480] ss:$16 sps:$4 sm:$0xff]   ;;  %v8365_v8 = vld [vmem:[#allocation2 + $0x488] ss:$16 sps:$4 sm:$0xff]  }
 0x13d   : > { %2549 = vmatpush1.bf16.msra.mxu0 %v8278_v9  ;;  %2678 = vmatpush1.bf16.msra.mxu1 %v8281_v10  ;;  %v8370_v9 = vld [vmem:[#allocation2 + $0x4a4] ss:$16 sps:$4 sm:$0xff]   ;;  %v8373_v10 = vld [vmem:[#allocation2 + $0x4ac] ss:$16 sps:$4 sm:$0xff]  }
 0x13e   : > { %2550 = vmatprep.subr.bf16.mxu0 %v8286_v12  ;;  %2679 = vmatprep.subr.bf16.mxu1 %v8289_v13  ;;  %v8368_v12 = vld [vmem:[#allocation2 + $0x4a0] ss:$16 sps:$4 sm:$0xff]   ;;  %v8371_v13 = vld [vmem:[#allocation2 + $0x4a8] ss:$16 sps:$4 sm:$0xff]  }
 0x141   : > { %2551 = vmatpush1.bf16.msra.mxu0 %v8284_v14  ;;  %2680 = vmatpush1.bf16.msra.mxu1 %v8287_v15  ;;  %v8376_v14 = vld [vmem:[#allocation2 + $0x4c4] ss:$16 sps:$4 sm:$0xff]   ;;  %v8379_v15 = vld [vmem:[#allocation2 + $0x4cc] ss:$16 sps:$4 sm:$0xff]  }
 0x142   : > { %2552 = vmatprep.subr.bf16.mxu0 %v8292_v16  ;;  %2681 = vmatprep.subr.bf16.mxu1 %v8295_v17  ;;  %v8374_v16 = vld [vmem:[#allocation2 + $0x4c0] ss:$16 sps:$4 sm:$0xff]   ;;  %v8377_v17 = vld [vmem:[#allocation2 + $0x4c8] ss:$16 sps:$4 sm:$0xff]  }
 0x145   : > { %2553 = vmatpush1.bf16.msra.mxu0 %v8290_v18  ;;  %2682 = vmatpush1.bf16.msra.mxu1 %v8293_v19  ;;  %v9391_v18 = vld [vmem:[%s9316_s20] sm:$0xee] }
 0x146   : > { %2554 = vmatprep.subr.bf16.mxu0 %v8298_v20  ;;  %2683 = vmatprep.subr.bf16.mxu1 %v8301_v21  ;;  %v8382_v19 = vld [vmem:[#allocation2 + $0x4e4] ss:$16 sps:$4 sm:$0xff]   ;;  %v8385_v20 = vld [vmem:[#allocation2 + $0x4ec] ss:$16 sps:$4 sm:$0xff]  }
 0x147   : > { %v9394_v21 = vld [vmem:[%s9316_s20 + $0x14] sm:$0xff] }
 0x149   : > { %2555 = vmatpush1.bf16.msra.mxu0 %v8296_v22  ;;  %2684 = vmatpush1.bf16.msra.mxu1 %v8299_v23  ;;  %v9398_v22 = vcombine.high %v9391_v18, %v9394_v21  ;;  %v8380_v23 = vld [vmem:[#allocation2 + $0x4e0] ss:$16 sps:$4 sm:$0xff]  }
 0x14a   : > { %2556 = vmatprep.subr.bf16.mxu0 %v8304_v24  ;;  %2685 = vmatprep.subr.bf16.mxu1 %v8307_v26  ;;  %v8383_v24 = vld [vmem:[#allocation2 + $0x4e8] ss:$16 sps:$4 sm:$0xff]   ;;  %v8388_v26 = vld [vmem:[#allocation2 + $0xa04] ss:$16 sps:$4 sm:$0xff]  }
 0x14d   : > { %2557 = vmatpush1.bf16.msra.mxu0 %v8302_v27  ;;  %2686 = vmatpush1.bf16.msra.mxu1 %v8305_v28  ;;  %v8391_v27 = vld [vmem:[#allocation2 + $0xa0c] ss:$16 sps:$4 sm:$0xff]   ;;  %v2932_v28 = vrot.slane %v9398_v22, 1 }
 0x14e   : > { %2558 = vmatprep.subr.bf16.mxu0 %v8310_v29  ;;  %2687 = vmatprep.subr.bf16.mxu1 %v8313_v30  ;;  %v2933_v29 = vrot.slane %v9323_v53, 1  ;;  %v8386_v30 = vld [vmem:[#allocation2 + $0xa00] ss:$16 sps:$4 sm:$0xff]   ;;  %v8400_v53 = vld [vmem:[#allocation2 + $0xa44] ss:$16 sps:$4 sm:$0xff]  }
 0x151   : > { %2559 = vmatpush1.bf16.msra.mxu0 %v8308_v32  ;;  %2688 = vmatpush1.bf16.msra.mxu1 %v8311_v33  ;;  %v8389_v32 = vld [vmem:[#allocation2 + $0xa08] ss:$16 sps:$4 sm:$0xff]   ;;  %v8394_v33 = vld [vmem:[#allocation2 + $0xa24] ss:$16 sps:$4 sm:$0xff]  }
 0x152   : > { %2560 = vmatprep.subr.bf16.mxu0 %v8316_v34  ;;  %2689 = vmatprep.subr.bf16.mxu1 %v8319_v35  ;;  %v8397_v34 = vld [vmem:[#allocation2 + $0xa2c] ss:$16 sps:$4 sm:$0xff]   ;;  %v2934_v35 = vsel %vm2928_vm1, %v2932_v28, %v2933_v29  ;;  %v8472_v28 = vld [vmem:[#allocation2 + $0xbc4] ss:$16 sps:$4 sm:$0xff]  }
 0x153   : > { %v8475_v29 = vld [vmem:[#allocation2 + $0xbcc] ss:$16 sps:$4 sm:$0xff]  }
 0x155   : > { %2561 = vmatpush1.bf16.msra.mxu0 %v8314_v36  ;;  %2690 = vmatpush1.bf16.msra.mxu1 %v8317_v37  ;;  %v8392_v36 = vld [vmem:[#allocation2 + $0xa20] ss:$16 sps:$4 sm:$0xff]   ;;  %v8395_v37 = vld [vmem:[#allocation2 + $0xa28] ss:$16 sps:$4 sm:$0xff]  }
 0x156   : > { %2562 = vmatprep.subr.bf16.mxu0 %v8322_v38  ;;  %2691 = vmatprep.subr.bf16.mxu1 %v8325_v39  ;;  %v8403_v38 = vld [vmem:[#allocation2 + $0xa4c] ss:$16 sps:$4 sm:$0xff]   ;;  %v8398_v39 = vld [vmem:[#allocation2 + $0xa40] ss:$16 sps:$4 sm:$0xff]  }
 0x159   : > { %2563 = vmatpush1.bf16.msra.mxu0 %v8320_v40  ;;  %2692 = vmatpush1.bf16.msra.mxu1 %v8323_v41  ;;  %v8401_v40 = vld [vmem:[#allocation2 + $0xa48] ss:$16 sps:$4 sm:$0xff]   ;;  %v8406_v41 = vld [vmem:[#allocation2 + $0xa64] ss:$16 sps:$4 sm:$0xff]  }
 0x15a   : > { %2564 = vmatprep.subr.bf16.mxu0 %v8328_v42  ;;  %2693 = vmatprep.subr.bf16.mxu1 %v8331_v43  ;;  %v8404_v42 = vld [vmem:[#allocation2 + $0xa60] ss:$16 sps:$4 sm:$0xff]   ;;  %v8407_v43 = vld [vmem:[#allocation2 + $0xa68] ss:$16 sps:$4 sm:$0xff]  }
 0x15d   : > { %2565 = vmatpush1.bf16.msra.mxu0 %v8326_v44  ;;  %2694 = vmatpush1.bf16.msra.mxu1 %v8329_v45  ;;  %v8412_v44 = vld [vmem:[#allocation2 + $0xa84] ss:$16 sps:$4 sm:$0xff]   ;;  %v8415_v45 = vld [vmem:[#allocation2 + $0xa8c] ss:$16 sps:$4 sm:$0xff]  }
 0x15e   : > { %2566 = vmatprep.subr.bf16.mxu0 %v8334_v46  ;;  %2695 = vmatprep.subr.bf16.mxu1 %v8337_v47  ;;  %v8410_v46 = vld [vmem:[#allocation2 + $0xa80] ss:$16 sps:$4 sm:$0xff]   ;;  %v8413_v47 = vld [vmem:[#allocation2 + $0xa88] ss:$16 sps:$4 sm:$0xff]  }
 0x161   : > { %2567 = vmatpush1.bf16.msra.mxu0 %v8332_v48  ;;  %2696 = vmatpush1.bf16.msra.mxu1 %v8335_v49  ;;  %v8418_v48 = vld [vmem:[#allocation2 + $0xaa4] ss:$16 sps:$4 sm:$0xff]   ;;  %v8421_v49 = vld [vmem:[#allocation2 + $0xaac] ss:$16 sps:$4 sm:$0xff]  }
 0x162   : > { %2579 = vmatprep.subr.bf16.mxu0 %v8340_v50  ;;  %2708 = vmatprep.subr.bf16.mxu1 %v8343_v51  ;;  %v8416_v50 = vld [vmem:[#allocation2 + $0xaa0] ss:$16 sps:$4 sm:$0xff]   ;;  %v8419_v51 = vld [vmem:[#allocation2 + $0xaa8] ss:$16 sps:$4 sm:$0xff]  }
 0x164   : > { %2569 = vmatmul.mubr.bf16.vlgmr.msra.gmra.mrb[0].mxu0 %v9360_v25  ;;  %2698 = vmatmul.mubr.bf16.vlgmr.msra.gmra.mrb[0].mxu1 %v9360_v25  ;;  %v8361_v25 = vld [vmem:[#allocation2 + $0x46c] ss:$16 sps:$4 sm:$0xff]  }
 0x165   : > { %2580 = vmatpush1.bf16.msra.mxu0 %v8338_v55  ;;  %2709 = vmatpush1.bf16.msra.mxu1 %v8341_v52  ;;  %v8424_v55 = vld [vmem:[#allocation2 + $0xac4] ss:$16 sps:$4 sm:$0xff]   ;;  %v8427_v52 = vld [vmem:[#allocation2 + $0xacc] ss:$16 sps:$4 sm:$0xff]  }
 0x166   : > { %2581 = vmatprep.subr.bf16.mxu0 %v8346_v56  ;;  %2710 = vmatprep.subr.bf16.mxu1 %v8349_v58  ;;  %v8422_v56 = vld [vmem:[#allocation2 + $0xac0] ss:$16 sps:$4 sm:$0xff]   ;;  %v8425_v58 = vld [vmem:[#allocation2 + $0xac8] ss:$16 sps:$4 sm:$0xff]  }
 0x167   : > { %2611 = vmatprep.mubr.bf16.mxu0 %v9204_v60  ;;  %2740 = vmatprep.mubr.bf16.mxu1 %v9204_v60 }
 0x169   : > { %2582 = vmatpush1.bf16.msra.mxu0 %v8344_v62  ;;  %2711 = vmatpush1.bf16.msra.mxu1 %v8347_v59  ;;  %v8430_v62 = vld [vmem:[#allocation2 + $0xae4] ss:$16 sps:$4 sm:$0xff]   ;;  %v8433_v59 = vld [vmem:[#allocation2 + $0xaec] ss:$16 sps:$4 sm:$0xff]  }
 0x16a   : > { %2583 = vmatprep.subr.bf16.mxu0 %v8352_v61  ;;  %2712 = vmatprep.subr.bf16.mxu1 %v8355_v63  ;;  %v8428_v61 = vld [vmem:[#allocation2 + $0xae0] ss:$16 sps:$4 sm:$0xff]   ;;  %v8431_v63 = vld [vmem:[#allocation2 + $0xae8] ss:$16 sps:$4 sm:$0xff]  }
 0x16d   : > { %2584 = vmatpush1.bf16.msra.mxu0 %v8350_v0  ;;  %2713 = vmatpush1.bf16.msra.mxu1 %v8353_v1  ;;  %v8436_v0 = vld [vmem:[#allocation2 + $0xb04] ss:$16 sps:$4 sm:$0xff]   ;;  %v8439_v1 = vld [vmem:[#allocation2 + $0xb0c] ss:$16 sps:$4 sm:$0xff]  }
 0x16e   : > { %2585 = vmatprep.subr.bf16.mxu0 %v8358_v54  ;;  %2714 = vmatprep.subr.bf16.mxu1 %v8361_v25  ;;  %v8434_v54 = vld [vmem:[#allocation2 + $0xb00] ss:$16 sps:$4 sm:$0xff]   ;;  %v8437_v25 = vld [vmem:[#allocation2 + $0xb08] ss:$16 sps:$4 sm:$0xff]  }
 0x171   : > { %2586 = vmatpush1.bf16.msra.mxu0 %v8356_v2  ;;  %2715 = vmatpush1.bf16.msra.mxu1 %v8359_v3  ;;  %v8442_v2 = vld [vmem:[#allocation2 + $0xb24] ss:$16 sps:$4 sm:$0xff]   ;;  %v8445_v3 = vld [vmem:[#allocation2 + $0xb2c] ss:$16 sps:$4 sm:$0xff]  }
 0x172   : > { %2587 = vmatprep.subr.bf16.mxu0 %v8364_v4  ;;  %2716 = vmatprep.subr.bf16.mxu1 %v8367_v6  ;;  %v8440_v4 = vld [vmem:[#allocation2 + $0xb20] ss:$16 sps:$4 sm:$0xff]   ;;  %v8443_v6 = vld [vmem:[#allocation2 + $0xb28] ss:$16 sps:$4 sm:$0xff]  }
 0x175   : > { %2588 = vmatpush1.bf16.msra.mxu0 %v8362_v7  ;;  %2717 = vmatpush1.bf16.msra.mxu1 %v8365_v8  ;;  %v8448_v7 = vld [vmem:[#allocation2 + $0xb44] ss:$16 sps:$4 sm:$0xff]   ;;  %v8451_v8 = vld [vmem:[#allocation2 + $0xb4c] ss:$16 sps:$4 sm:$0xff]  }
 0x176   : > { %2589 = vmatprep.subr.bf16.mxu0 %v8370_v9  ;;  %2718 = vmatprep.subr.bf16.mxu1 %v8373_v10  ;;  %v8446_v9 = vld [vmem:[#allocation2 + $0xb40] ss:$16 sps:$4 sm:$0xff]   ;;  %v8449_v10 = vld [vmem:[#allocation2 + $0xb48] ss:$16 sps:$4 sm:$0xff]  }
 0x179   : > { %2590 = vmatpush1.bf16.msra.mxu0 %v8368_v12  ;;  %2719 = vmatpush1.bf16.msra.mxu1 %v8371_v13  ;;  %v8454_v12 = vld [vmem:[#allocation2 + $0xb64] ss:$16 sps:$4 sm:$0xff]   ;;  %v8457_v13 = vld [vmem:[#allocation2 + $0xb6c] ss:$16 sps:$4 sm:$0xff]  }
 0x17a   : > { %2591 = vmatprep.subr.bf16.mxu0 %v8376_v14  ;;  %2720 = vmatprep.subr.bf16.mxu1 %v8379_v15  ;;  %v8452_v14 = vld [vmem:[#allocation2 + $0xb60] ss:$16 sps:$4 sm:$0xff]   ;;  %v8455_v15 = vld [vmem:[#allocation2 + $0xb68] ss:$16 sps:$4 sm:$0xff]  }
 0x17d   : > { %2592 = vmatpush1.bf16.msra.mxu0 %v8374_v16  ;;  %2721 = vmatpush1.bf16.msra.mxu1 %v8377_v17  ;;  %v8460_v16 = vld [vmem:[#allocation2 + $0xb84] ss:$16 sps:$4 sm:$0xff]   ;;  %v8463_v17 = vld [vmem:[#allocation2 + $0xb8c] ss:$16 sps:$4 sm:$0xff]  }
 0x17e   : > { %2593 = vmatprep.subr.bf16.mxu0 %v8382_v19  ;;  %2722 = vmatprep.subr.bf16.mxu1 %v8385_v20  ;;  %v8458_v19 = vld [vmem:[#allocation2 + $0xb80] ss:$16 sps:$4 sm:$0xff]   ;;  %v8461_v20 = vld [vmem:[#allocation2 + $0xb88] ss:$16 sps:$4 sm:$0xff]  }
 0x181   : > { %2594 = vmatpush1.bf16.msra.mxu0 %v8380_v23  ;;  %2723 = vmatpush1.bf16.msra.mxu1 %v8383_v24  ;;  %v8466_v23 = vld [vmem:[#allocation2 + $0xba4] ss:$16 sps:$4 sm:$0xff]   ;;  %v8469_v24 = vld [vmem:[#allocation2 + $0xbac] ss:$16 sps:$4 sm:$0xff]  }
 0x182   : > { %3749 = vmatprep.subr.bf16.mxu0 %v8388_v26  ;;  %3878 = vmatprep.subr.bf16.mxu1 %v8391_v27  ;;  %v8464_v26 = vld [vmem:[#allocation2 + $0xba0] ss:$16 sps:$4 sm:$0xff]   ;;  %v8467_v27 = vld [vmem:[#allocation2 + $0xba8] ss:$16 sps:$4 sm:$0xff]  }
 0x184   : > { %2612 = vmatmul.mubr.bf16.vlgmr.msra.gmra.mrb[0].mxu0 %v9374_v11  ;;  %2741 = vmatmul.mubr.bf16.vlgmr.msra.gmra.mrb[0].mxu1 %v9374_v11  ;;  %v8409_v11 = vld [vmem:[#allocation2 + $0xa6c] ss:$16 sps:$4 sm:$0xff]  }
 0x185   : > { %3750 = vmatpush1.bf16.msra.mxu0 %v8386_v30  ;;  %3879 = vmatpush1.bf16.msra.mxu1 %v8389_v32  ;;  %v8470_v30 = vld [vmem:[#allocation2 + $0xbc0] ss:$16 sps:$4 sm:$0xff]   ;;  %v8473_v32 = vld [vmem:[#allocation2 + $0xbc8] ss:$16 sps:$4 sm:$0xff]  }
 0x186   : > { %3751 = vmatprep.subr.bf16.mxu0 %v8394_v33  ;;  %3880 = vmatprep.subr.bf16.mxu1 %v8397_v34  ;;  %v9407_v33 = vcombine.low %v9391_v18, %v9394_v21  ;;  %v9410_v34 = vld [vmem:[%s9316_s20 + $0x8] sm:$0xee]  ;;  %v8485_v21 = vld [vmem:[#allocation2 + $0xc04] ss:$16 sps:$4 sm:$0xff]  }
 0x187   : > { %3781 = vmatprep.mubr.bf16.mxu0 %v2934_v35  ;;  %3910 = vmatprep.mubr.bf16.mxu1 %v2934_v35  ;;  %v8478_v35 = vld [vmem:[#allocation2 + $0xbe4] ss:$16 sps:$4 sm:$0xff]  }
 0x188   : > { %v2929_v18 = vrot.slane %v9407_v33, 1 }
 0x189   : > { %3752 = vmatpush1.bf16.msra.mxu0 %v8392_v36  ;;  %3881 = vmatpush1.bf16.msra.mxu1 %v8395_v37  ;;  %v8481_v36 = vld [vmem:[#allocation2 + $0xbec] ss:$16 sps:$4 sm:$0xff]   ;;  %v2930_v37 = vrot.slane %v9331_v5, 1  ;;  %v2939_v5 = vrot.slane %v9352_v57, 1  ;;  %v8498_v57 = vld [vmem:[#allocation2 + $0xc44] ss:$16 sps:$4 sm:$0xff]  }
 0x18a   : > { %3753 = vmatprep.subr.bf16.mxu0 %v8400_v53  ;;  %3882 = vmatprep.subr.bf16.mxu1 %v8403_v38  ;;  %v9414_v53 = vld [vmem:[%s9316_s20 + $0x1c] sm:$0xff] }
 0x18b   : > { %v9418_v38 = vcombine.high %v9410_v34, %v9414_v53 }
 0x18d   : > { %3754 = vmatpush1.bf16.msra.mxu0 %v8398_v39  ;;  %3883 = vmatpush1.bf16.msra.mxu1 %v8401_v40  ;;  %v8476_v39 = vld [vmem:[#allocation2 + $0xbe0] ss:$16 sps:$4 sm:$0xff]   ;;  %v8479_v40 = vld [vmem:[#allocation2 + $0xbe8] ss:$16 sps:$4 sm:$0xff]  }
 0x18e   : > { %3755 = vmatprep.subr.bf16.mxu0 %v8406_v41  ;;  %3884 = vmatprep.subr.bf16.mxu1 %v8409_v11  ;;  %v8488_v41 = vld [vmem:[#allocation2 + $0xc0c] ss:$16 sps:$4 sm:$0xff]   ;;  %v2938_v11 = vrot.slane %v9418_v38, 1 }
 0x191   : > { %3756 = vmatpush1.bf16.msra.mxu0 %v8404_v42  ;;  %3885 = vmatpush1.bf16.msra.mxu1 %v8407_v43  ;;  %v8483_v42 = vld [vmem:[#allocation2 + $0xc00] ss:$16 sps:$4 sm:$0xff]   ;;  %v8486_v43 = vld [vmem:[#allocation2 + $0xc08] ss:$16 sps:$4 sm:$0xff]  }
 0x192   : > { %3757 = vmatprep.subr.bf16.mxu0 %v8412_v44  ;;  %3886 = vmatprep.subr.bf16.mxu1 %v8415_v45  ;;  %v2931_v44 = vsel %vm2928_vm1, %v2929_v18, %v2930_v37  ;;  %v8492_v45 = vld [vmem:[#allocation2 + $0xc24] ss:$16 sps:$4 sm:$0xff]   ;;  %v8561_v37 = vld [vmem:[#allocation2 + $0xd8c] ss:$16 sps:$4 sm:$0xff]  }
 0x193   : > { %v8564_v18 = vld [vmem:[#allocation2 + $0xda4] ss:$16 sps:$4 sm:$0xff]  }
 0x195   : > { %3758 = vmatpush1.bf16.msra.mxu0 %v8410_v46  ;;  %3887 = vmatpush1.bf16.msra.mxu1 %v8413_v47  ;;  %v8495_v46 = vld [vmem:[#allocation2 + $0xc2c] ss:$16 sps:$4 sm:$0xff]   ;;  %v2940_v47 = vsel %vm2928_vm1, %v2938_v11, %v2939_v5  ;;  %v8565_v11 = vld [vmem:[#allocation2 + $0xda8] ss:$16 sps:$4 sm:$0xff]   ;;  %v8570_v5 = vld [vmem:[#allocation2 + $0xdc4] ss:$16 sps:$4 sm:$0xff]  }
 0x196   : > { %3759 = vmatprep.subr.bf16.mxu0 %v8418_v48  ;;  %3888 = vmatprep.subr.bf16.mxu1 %v8421_v49  ;;  %v8490_v48 = vld [vmem:[#allocation2 + $0xc20] ss:$16 sps:$4 sm:$0xff]   ;;  %v8493_v49 = vld [vmem:[#allocation2 + $0xc28] ss:$16 sps:$4 sm:$0xff]  }
 0x199   : > { %3760 = vmatpush1.bf16.msra.mxu0 %v8416_v50  ;;  %3889 = vmatpush1.bf16.msra.mxu1 %v8419_v51  ;;  %v8501_v50 = vld [vmem:[#allocation2 + $0xc4c] ss:$16 sps:$4 sm:$0xff]   ;;  %v8496_v51 = vld [vmem:[#allocation2 + $0xc40] ss:$16 sps:$4 sm:$0xff]  }
 0x19a   : > { %3761 = vmatprep.subr.bf16.mxu0 %v8424_v55  ;;  %3890 = vmatprep.subr.bf16.mxu1 %v8427_v52  ;;  %v8499_v55 = vld [vmem:[#allocation2 + $0xc48] ss:$16 sps:$4 sm:$0xff]   ;;  %v8504_v52 = vld [vmem:[#allocation2 + $0xc64] ss:$16 sps:$4 sm:$0xff]  }
 0x19d   : > { %3762 = vmatpush1.bf16.msra.mxu0 %v8422_v56  ;;  %3891 = vmatpush1.bf16.msra.mxu1 %v8425_v58  ;;  %v8507_v56 = vld [vmem:[#allocation2 + $0xc6c] ss:$16 sps:$4 sm:$0xff]   ;;  %v8502_v58 = vld [vmem:[#allocation2 + $0xc60] ss:$16 sps:$4 sm:$0xff]  }
 0x19e   : > { %3763 = vmatprep.subr.bf16.mxu0 %v8430_v62  ;;  %3892 = vmatprep.subr.bf16.mxu1 %v8433_v59  ;;  %v8505_v62 = vld [vmem:[#allocation2 + $0xc68] ss:$16 sps:$4 sm:$0xff]   ;;  %v8510_v59 = vld [vmem:[#allocation2 + $0xc84] ss:$16 sps:$4 sm:$0xff]  }
 0x1a1   : > { %3764 = vmatpush1.bf16.msra.mxu0 %v8428_v61  ;;  %3893 = vmatpush1.bf16.msra.mxu1 %v8431_v63  ;;  %v8513_v61 = vld [vmem:[#allocation2 + $0xc8c] ss:$16 sps:$4 sm:$0xff]   ;;  %v8508_v63 = vld [vmem:[#allocation2 + $0xc80] ss:$16 sps:$4 sm:$0xff]  }
 0x1a2   : > { %3765 = vmatprep.subr.bf16.mxu0 %v8436_v0  ;;  %3894 = vmatprep.subr.bf16.mxu1 %v8439_v1  ;;  %v8511_v0 = vld [vmem:[#allocation2 + $0xc88] ss:$16 sps:$4 sm:$0xff]   ;;  %v8516_v1 = vld [vmem:[#allocation2 + $0xca4] ss:$16 sps:$4 sm:$0xff]  }
 0x1a5   : > { %3766 = vmatpush1.bf16.msra.mxu0 %v8434_v54  ;;  %3895 = vmatpush1.bf16.msra.mxu1 %v8437_v25  ;;  %v8519_v54 = vld [vmem:[#allocation2 + $0xcac] ss:$16 sps:$4 sm:$0xff]   ;;  %v8514_v25 = vld [vmem:[#allocation2 + $0xca0] ss:$16 sps:$4 sm:$0xff]  }
 0x1a6   : > { %3767 = vmatprep.subr.bf16.mxu0 %v8442_v2  ;;  %3896 = vmatprep.subr.bf16.mxu1 %v8445_v3  ;;  %v8517_v2 = vld [vmem:[#allocation2 + $0xca8] ss:$16 sps:$4 sm:$0xff]   ;;  %v8522_v3 = vld [vmem:[#allocation2 + $0xcc4] ss:$16 sps:$4 sm:$0xff]  }
 0x1a9   : > { %3768 = vmatpush1.bf16.msra.mxu0 %v8440_v4  ;;  %3897 = vmatpush1.bf16.msra.mxu1 %v8443_v6  ;;  %v8525_v4 = vld [vmem:[#allocation2 + $0xccc] ss:$16 sps:$4 sm:$0xff]   ;;  %v8520_v6 = vld [vmem:[#allocation2 + $0xcc0] ss:$16 sps:$4 sm:$0xff]  }
 0x1aa   : > { %3769 = vmatprep.subr.bf16.mxu0 %v8448_v7  ;;  %3898 = vmatprep.subr.bf16.mxu1 %v8451_v8  ;;  %v8523_v7 = vld [vmem:[#allocation2 + $0xcc8] ss:$16 sps:$4 sm:$0xff]   ;;  %v8528_v8 = vld [vmem:[#allocation2 + $0xce4] ss:$16 sps:$4 sm:$0xff]  }
 0x1ad   : > { %3770 = vmatpush1.bf16.msra.mxu0 %v8446_v9  ;;  %3899 = vmatpush1.bf16.msra.mxu1 %v8449_v10  ;;  %v8531_v9 = vld [vmem:[#allocation2 + $0xcec] ss:$16 sps:$4 sm:$0xff]   ;;  %v8526_v10 = vld [vmem:[#allocation2 + $0xce0] ss:$16 sps:$4 sm:$0xff]  }
 0x1ae   : > { %3771 = vmatprep.subr.bf16.mxu0 %v8454_v12  ;;  %3900 = vmatprep.subr.bf16.mxu1 %v8457_v13  ;;  %v8529_v12 = vld [vmem:[#allocation2 + $0xce8] ss:$16 sps:$4 sm:$0xff]   ;;  %v8534_v13 = vld [vmem:[#allocation2 + $0xd04] ss:$16 sps:$4 sm:$0xff]  }
 0x1b1   : > { %3772 = vmatpush1.bf16.msra.mxu0 %v8452_v14  ;;  %3901 = vmatpush1.bf16.msra.mxu1 %v8455_v15  ;;  %v8537_v14 = vld [vmem:[#allocation2 + $0xd0c] ss:$16 sps:$4 sm:$0xff]   ;;  %v8532_v15 = vld [vmem:[#allocation2 + $0xd00] ss:$16 sps:$4 sm:$0xff]  }
 0x1b2   : > { %3773 = vmatprep.subr.bf16.mxu0 %v8460_v16  ;;  %3902 = vmatprep.subr.bf16.mxu1 %v8463_v17  ;;  %v8535_v16 = vld [vmem:[#allocation2 + $0xd08] ss:$16 sps:$4 sm:$0xff]   ;;  %v8540_v17 = vld [vmem:[#allocation2 + $0xd24] ss:$16 sps:$4 sm:$0xff]  }
 0x1b5   : > { %3774 = vmatpush1.bf16.msra.mxu0 %v8458_v19  ;;  %3903 = vmatpush1.bf16.msra.mxu1 %v8461_v20  ;;  %v8543_v19 = vld [vmem:[#allocation2 + $0xd2c] ss:$16 sps:$4 sm:$0xff]   ;;  %v8538_v20 = vld [vmem:[#allocation2 + $0xd20] ss:$16 sps:$4 sm:$0xff]  }
 0x1b6   : > { %3775 = vmatprep.subr.bf16.mxu0 %v8466_v23  ;;  %3904 = vmatprep.subr.bf16.mxu1 %v8469_v24  ;;  %v8541_v23 = vld [vmem:[#allocation2 + $0xd28] ss:$16 sps:$4 sm:$0xff]   ;;  %v8546_v24 = vld [vmem:[#allocation2 + $0xd44] ss:$16 sps:$4 sm:$0xff]  }
 0x1b9   : > { %3776 = vmatpush1.bf16.msra.mxu0 %v8464_v26  ;;  %3905 = vmatpush1.bf16.msra.mxu1 %v8467_v27  ;;  %v8549_v26 = vld [vmem:[#allocation2 + $0xd4c] ss:$16 sps:$4 sm:$0xff]   ;;  %v8544_v27 = vld [vmem:[#allocation2 + $0xd40] ss:$16 sps:$4 sm:$0xff]  }
 0x1ba   : > { %3777 = vmatprep.subr.bf16.mxu0 %v8472_v28  ;;  %3906 = vmatprep.subr.bf16.mxu1 %v8475_v29  ;;  %v8547_v28 = vld [vmem:[#allocation2 + $0xd48] ss:$16 sps:$4 sm:$0xff]   ;;  %v8552_v29 = vld [vmem:[#allocation2 + $0xd64] ss:$16 sps:$4 sm:$0xff]  }
 0x1bd   : > { %3778 = vmatpush1.bf16.msra.mxu0 %v8470_v30  ;;  %3907 = vmatpush1.bf16.msra.mxu1 %v8473_v32  ;;  %v8555_v30 = vld [vmem:[#allocation2 + $0xd6c] ss:$16 sps:$4 sm:$0xff]   ;;  %v8550_v32 = vld [vmem:[#allocation2 + $0xd60] ss:$16 sps:$4 sm:$0xff]  }
 0x1be   : > { %3779 = vmatprep.subr.bf16.mxu0 %v8478_v35  ;;  %3908 = vmatprep.subr.bf16.mxu1 %v8481_v36  ;;  %v8553_v35 = vld [vmem:[#allocation2 + $0xd68] ss:$16 sps:$4 sm:$0xff]   ;;  %v8558_v36 = vld [vmem:[#allocation2 + $0xd84] ss:$16 sps:$4 sm:$0xff]  }
 0x1c1   : > { %3780 = vmatpush1.bf16.msra.mxu0 %v8476_v39  ;;  %3909 = vmatpush1.bf16.msra.mxu1 %v8479_v40  ;;  %v8556_v39 = vld [vmem:[#allocation2 + $0xd80] ss:$16 sps:$4 sm:$0xff]   ;;  %v8559_v40 = vld [vmem:[#allocation2 + $0xd88] ss:$16 sps:$4 sm:$0xff]  }
 0x1c2   : > { %3792 = vmatprep.subr.bf16.mxu0 %v8485_v21  ;;  %3921 = vmatprep.subr.bf16.mxu1 %v8488_v41  ;;  %v8567_v21 = vld [vmem:[#allocation2 + $0xdac] ss:$16 sps:$4 sm:$0xff]   ;;  %v8562_v41 = vld [vmem:[#allocation2 + $0xda0] ss:$16 sps:$4 sm:$0xff]  }
 0x1c4   : > { %3782 = vmatmul.mubr.bf16.vlgmr.msra.gmra.mrb[0].mxu0 %v2931_v44  ;;  %3911 = vmatmul.mubr.bf16.vlgmr.msra.gmra.mrb[0].mxu1 %v2931_v44  ;;  %v8571_v44 = vld [vmem:[#allocation2 + $0xdc8] ss:$16 sps:$4 sm:$0xff]  }
 0x1c5   : > { %3793 = vmatpush1.bf16.msra.mxu0 %v8483_v42  ;;  %3922 = vmatpush1.bf16.msra.mxu1 %v8486_v43  ;;  %v8573_v42 = vld [vmem:[#allocation2 + $0xdcc] ss:$16 sps:$4 sm:$0xff]   ;;  %v8568_v43 = vld [vmem:[#allocation2 + $0xdc0] ss:$16 sps:$4 sm:$0xff]  }
 0x1c6   : > { %3794 = vmatprep.subr.bf16.mxu0 %v8492_v45  ;;  %3923 = vmatprep.subr.bf16.mxu1 %v8495_v46  ;;  %v9427_v45 = vcombine.low %v9410_v34, %v9414_v53  ;;  %v8576_v46 = vld [vmem:[#allocation2 + $0xde4] ss:$16 sps:$4 sm:$0xff]   ;;  %v8581_v34 = vld [vmem:[#allocation2 + $0xe00] ss:$16 sps:$4 sm:$0xff]   ;;  %v8584_v53 = vld [vmem:[#allocation2 + $0xe08] ss:$16 sps:$4 sm:$0xff]  }
 0x1c7   : > { %3824 = vmatprep.mubr.bf16.mxu0 %v2940_v47  ;;  %3953 = vmatprep.mubr.bf16.mxu1 %v2940_v47  ;;  %v8579_v47 = vld [vmem:[#allocation2 + $0xdec] ss:$16 sps:$4 sm:$0xff]  }
 0x1c9   : > { %3795 = vmatpush1.bf16.msra.mxu0 %v8490_v48  ;;  %3924 = vmatpush1.bf16.msra.mxu1 %v8493_v49  ;;  %v8574_v48 = vld [vmem:[#allocation2 + $0xde0] ss:$16 sps:$4 sm:$0xff]   ;;  %v8577_v49 = vld [vmem:[#allocation2 + $0xde8] ss:$16 sps:$4 sm:$0xff]  }
 0x1ca   : > { %3796 = vmatprep.subr.bf16.mxu0 %v8498_v57  ;;  %3925 = vmatprep.subr.bf16.mxu1 %v8501_v50  ;;  %v2935_v57 = vrot.slane %v9427_v45, 1  ;;  %v2936_v50 = vrot.slane %v9364_v31, 1  ;;  %v8591_v31 = vld [vmem:[#allocation2 + $0xe28] ss:$16 sps:$4 sm:$0xff]  }
 0x1cd   : > { %3797 = vmatpush1.bf16.msra.mxu0 %v8496_v51  ;;  %3926 = vmatpush1.bf16.msra.mxu1 %v8499_v55  ;;  %v8583_v51 = vld [vmem:[#allocation2 + $0xe04] ss:$16 sps:$4 sm:$0xff]   ;;  %v8586_v55 = vld [vmem:[#allocation2 + $0xe0c] ss:$16 sps:$4 sm:$0xff]  }
 0x1ce   : > { %3798 = vmatprep.subr.bf16.mxu0 %v8504_v52  ;;  %3927 = vmatprep.subr.bf16.mxu1 %v8507_v56  ;;  %v2937_v52 = vsel %vm2928_vm1, %v2935_v57, %v2936_v50  ;;  %v8590_v56 = vld [vmem:[#allocation2 + $0xe24] ss:$16 sps:$4 sm:$0xff]   ;;  %v8637_v50 = vld [vmem:[#allocation2 + $0xf20] ss:$16 sps:$4 sm:$0xff]  }
 0x1d1   : > { %3799 = vmatpush1.bf16.msra.mxu0 %v8502_v58  ;;  %3928 = vmatpush1.bf16.msra.mxu1 %v8505_v62  ;;  %v8593_v58 = vld [vmem:[#allocation2 + $0xe2c] ss:$16 sps:$4 sm:$0xff]   ;;  %v8588_v62 = vld [vmem:[#allocation2 + $0xe20] ss:$16 sps:$4 sm:$0xff]  }
 0x1d2   : > { %3800 = vmatprep.subr.bf16.mxu0 %v8510_v59  ;;  %3929 = vmatprep.subr.bf16.mxu1 %v8513_v61  ;;  %v8596_v59 = vld [vmem:[#allocation2 + $0xe44] ss:$16 sps:$4 sm:$0xff]   ;;  %v8599_v61 = vld [vmem:[#allocation2 + $0xe4c] ss:$16 sps:$4 sm:$0xff]  }
 0x1d5   : > { %3801 = vmatpush1.bf16.msra.mxu0 %v8508_v63  ;;  %3930 = vmatpush1.bf16.msra.mxu1 %v8511_v0  ;;  %v8594_v63 = vld [vmem:[#allocation2 + $0xe40] ss:$16 sps:$4 sm:$0xff]   ;;  %v8597_v0 = vld [vmem:[#allocation2 + $0xe48] ss:$16 sps:$4 sm:$0xff]  }
 0x1d6   : > { %3802 = vmatprep.subr.bf16.mxu0 %v8516_v1  ;;  %3931 = vmatprep.subr.bf16.mxu1 %v8519_v54  ;;  %v8602_v1 = vld [vmem:[#allocation2 + $0xe64] ss:$16 sps:$4 sm:$0xff]   ;;  %v8605_v54 = vld [vmem:[#allocation2 + $0xe6c] ss:$16 sps:$4 sm:$0xff]  }
 0x1d9   : > { %3803 = vmatpush1.bf16.msra.mxu0 %v8514_v25  ;;  %3932 = vmatpush1.bf16.msra.mxu1 %v8517_v2  ;;  %v8600_v25 = vld [vmem:[#allocation2 + $0xe60] ss:$16 sps:$4 sm:$0xff]   ;;  %v8603_v2 = vld [vmem:[#allocation2 + $0xe68] ss:$16 sps:$4 sm:$0xff]  }
 0x1da   : > { %3804 = vmatprep.subr.bf16.mxu0 %v8522_v3  ;;  %3933 = vmatprep.subr.bf16.mxu1 %v8525_v4  ;;  %v8608_v3 = vld [vmem:[#allocation2 + $0xe84] ss:$16 sps:$4 sm:$0xff]   ;;  %v8611_v4 = vld [vmem:[#allocation2 + $0xe8c] ss:$16 sps:$4 sm:$0xff]  }
 0x1dd   : > { %3805 = vmatpush1.bf16.msra.mxu0 %v8520_v6  ;;  %3934 = vmatpush1.bf16.msra.mxu1 %v8523_v7  ;;  %v8606_v6 = vld [vmem:[#allocation2 + $0xe80] ss:$16 sps:$4 sm:$0xff]   ;;  %v8609_v7 = vld [vmem:[#allocation2 + $0xe88] ss:$16 sps:$4 sm:$0xff]  }
 0x1de   : > { %3806 = vmatprep.subr.bf16.mxu0 %v8528_v8  ;;  %3935 = vmatprep.subr.bf16.mxu1 %v8531_v9  ;;  %v9435_v8 = vld [vmem:[%s9316_s20 + $0x28] sm:$0x33]  ;;  %v8614_v9 = vld [vmem:[#allocation2 + $0xea4] ss:$16 sps:$4 sm:$0xff]  }
 0x1e1   : > { %3807 = vmatpush1.bf16.msra.mxu0 %v8526_v10  ;;  %3936 = vmatpush1.bf16.msra.mxu1 %v8529_v12  ;;  %v8617_v10 = vld [vmem:[#allocation2 + $0xeac] ss:$16 sps:$4 sm:$0xff]   ;;  %v8612_v12 = vld [vmem:[#allocation2 + $0xea0] ss:$16 sps:$4 sm:$0xff]  }
 0x1e2   : > { %3808 = vmatprep.subr.bf16.mxu0 %v8534_v13  ;;  %3937 = vmatprep.subr.bf16.mxu1 %v8537_v14  ;;  %v9439_v13 = vcombine.high %v9435_v8, %v9435_v8  ;;  %v8615_v14 = vld [vmem:[#allocation2 + $0xea8] ss:$16 sps:$4 sm:$0xff]  }
 0x1e5   : > { %3809 = vmatpush1.bf16.msra.mxu0 %v8532_v15  ;;  %3938 = vmatpush1.bf16.msra.mxu1 %v8535_v16  ;;  %v8620_v15 = vld [vmem:[#allocation2 + $0xec4] ss:$16 sps:$4 sm:$0xff]   ;;  %v8623_v16 = vld [vmem:[#allocation2 + $0xecc] ss:$16 sps:$4 sm:$0xff]  }
 0x1e6   : > { %3810 = vmatprep.subr.bf16.mxu0 %v8540_v17  ;;  %3939 = vmatprep.subr.bf16.mxu1 %v8543_v19  ;;  %v2753_v17 = vld [vmem:[%s9316_s20 + $0x10] sm:$0xe]  ;;  %v4211_v19 = vshrl.u32 %v9398_v22, 16 }
 0x1e9   : > { %3811 = vmatpush1.bf16.msra.mxu0 %v8538_v20  ;;  %3940 = vmatpush1.bf16.msra.mxu1 %v8541_v23  ;;  %v4214_v20 = vshll.u32 %v9398_v22, 16  ;;  %v4219_v23 = vshrl.u32 %v9439_v13, 16 }
 0x1ea   : > { %3812 = vmatprep.subr.bf16.mxu0 %v8546_v24  ;;  %3941 = vmatprep.subr.bf16.mxu1 %v8549_v26  ;;  %v4222_v24 = vshll.u32 %v9439_v13, 16  ;;  %v8618_v26 = vld [vmem:[#allocation2 + $0xec0] ss:$16 sps:$4 sm:$0xff]  }
 0x1ec   : > { %v4224_v22 = vrot.slane %v4222_v24, 2  ;;  %v8685_v24 = vld [vmem:[#allocation2 + $0x1020] ss:$16 sps:$4 sm:$0xff]  }
 0x1ed   : > { %3813 = vmatpush1.bf16.msra.mxu0 %v8544_v27  ;;  %3942 = vmatpush1.bf16.msra.mxu1 %v8547_v28  ;;  %v8621_v27 = vld [vmem:[#allocation2 + $0xec8] ss:$16 sps:$4 sm:$0xff]   ;;  %v9123_v28 = vld [vmem:[%s9316_s20 + $0x24] sm:$0xf] }
 0x1ee   : > { %3814 = vmatprep.subr.bf16.mxu0 %v8552_v29  ;;  %3943 = vmatprep.subr.bf16.mxu1 %v8555_v30  ;;  %v9447_v29 = vcombine.low %v2753_v17, %v9123_v28  ;;  %v8626_v30 = vld [vmem:[#allocation2 + $0xee4] ss:$16 sps:$4 sm:$0xff]   ;;  %v8679_v17 = vld [vmem:[#allocation2 + $0x1000] ss:$16 sps:$4 sm:$0xff]   ;;  %v8696_v28 = vld [vmem:[#allocation2 + $0x104c] ss:$16 sps:$4 sm:$0xff]  }
 0x1f1   : > { %3815 = vmatpush1.bf16.msra.mxu0 %v8550_v32  ;;  %3944 = vmatpush1.bf16.msra.mxu1 %v8553_v35  ;;  %v8629_v32 = vld [vmem:[#allocation2 + $0xeec] ss:$16 sps:$4 sm:$0xff]   ;;  %v4213_v35 = vrot.slane %v4211_v19, 1  ;;  %v8682_v19 = vld [vmem:[#allocation2 + $0x1008] ss:$16 sps:$4 sm:$0xff]  }
 0x1f2   : > { %3816 = vmatprep.subr.bf16.mxu0 %v8558_v36  ;;  %3945 = vmatprep.subr.bf16.mxu1 %v8561_v37  ;;  %v4216_v36 = vrot.slane %v4214_v20, 2  ;;  %v4221_v37 = vrot.slane %v4219_v23, 1  ;;  %v8687_v20 = vld [vmem:[#allocation2 + $0x1024] ss:$16 sps:$4 sm:$0xff]   ;;  %v8690_v23 = vld [vmem:[#allocation2 + $0x102c] ss:$16 sps:$4 sm:$0xff]  }
 0x1f5   : > { %3817 = vmatpush1.bf16.msra.mxu0 %v8556_v39  ;;  %3946 = vmatpush1.bf16.msra.mxu1 %v8559_v40  ;;  %v8624_v39 = vld [vmem:[#allocation2 + $0xee0] ss:$16 sps:$4 sm:$0xff]   ;;  %v8627_v40 = vld [vmem:[#allocation2 + $0xee8] ss:$16 sps:$4 sm:$0xff]  }
 0x1f6   : > { %3818 = vmatprep.subr.bf16.mxu0 %v8564_v18  ;;  %3947 = vmatprep.subr.bf16.mxu1 %v8567_v21  ;;  %v2941_v18 = vrot.slane %v9447_v29, 1  ;;  %v9124_v21 = vld [vmem:[%s9316_s20 + $0x38] ss:$0 sps:$4 sm:$0x11]  }
 0x1f9   : > { %3819 = vmatpush1.bf16.msra.mxu0 %v8562_v41  ;;  %3948 = vmatpush1.bf16.msra.mxu1 %v8565_v11  ;;  %v2942_v41 = vrot.slane %v9124_v21, 1  ;;  %v8632_v11 = vld [vmem:[#allocation2 + $0xf04] ss:$16 sps:$4 sm:$0xff]   ;;  %v8706_v21 = vld [vmem:[#allocation2 + $0x1088] ss:$16 sps:$4 sm:$0xff]  }
 0x1fa   : > { %3820 = vmatprep.subr.bf16.mxu0 %v8570_v5  ;;  %3949 = vmatprep.subr.bf16.mxu1 %v8573_v42  ;;  %v8635_v5 = vld [vmem:[#allocation2 + $0xf0c] ss:$16 sps:$4 sm:$0xff]   ;;  %v4217_v42 = vor.u32 %v4216_v36, %v4213_v35  ;;  %v8699_v35 = vld [vmem:[#allocation2 + $0x1064] ss:$16 sps:$4 sm:$0xff]  }
 0x1fb   : > { %v8702_v36 = vld [vmem:[#allocation2 + $0x106c] ss:$16 sps:$4 sm:$0xff]  }
 0x1fd   : > { %3821 = vmatpush1.bf16.msra.mxu0 %v8568_v43  ;;  %3950 = vmatpush1.bf16.msra.mxu1 %v8571_v44  ;;  %v4225_v43 = vor.u32 %v4224_v22, %v4221_v37  ;;  %v8630_v44 = vld [vmem:[#allocation2 + $0xf00] ss:$16 sps:$4 sm:$0xff]   ;;  %v8700_v22 = vld [vmem:[#allocation2 + $0x1068] ss:$16 sps:$4 sm:$0xff]  }
 0x1fe   : > { %3822 = vmatprep.subr.bf16.mxu0 %v8576_v46  ;;  %3951 = vmatprep.subr.bf16.mxu1 %v8579_v47  ;;  %v8633_v46 = vld [vmem:[#allocation2 + $0xf08] ss:$16 sps:$4 sm:$0xff]   ;;  %v2943_v47 = vsel %vm2928_vm1, %v2941_v18, %v2942_v41  ;;  %v8697_v37 = vld [vmem:[#allocation2 + $0x1060] ss:$16 sps:$4 sm:$0xff]   ;;  %v9455_v41 = vcombine.low %v9435_v8, %v9435_v8 }
 0x1ff   : > { %v4226_v57 = vsel %vm4192_vm2, %v4217_v42, %v4225_v43  ;;  %v8703_v18 = vld [vmem:[#allocation2 + $0x1080] ss:$16 sps:$4 sm:$0xff]   ;;  %v8714_v42 = vld [vmem:[#allocation2 + $0x10ac] ss:$16 sps:$4 sm:$0xff]  }
 0x200   : > { %v8709_v43 = vld [vmem:[#allocation2 + $0x10a0] ss:$16 sps:$4 sm:$0xff]   ;;  %v4202_v8 = vshrl.u32 %v9455_v41, 16 }
 0x201   : > { %3823 = vmatpush1.bf16.msra.mxu0 %v8574_v48  ;;  %3952 = vmatpush1.bf16.msra.mxu1 %v8577_v49  ;;  %v8639_v48 = vld [vmem:[#allocation2 + $0xf24] ss:$16 sps:$4 sm:$0xff]   ;;  %v8642_v49 = vld [vmem:[#allocation2 + $0xf2c] ss:$16 sps:$4 sm:$0xff]  }
 0x202   : > { %3835 = vmatprep.subr.bf16.mxu0 %v8583_v51  ;;  %3964 = vmatprep.subr.bf16.mxu1 %v8586_v55  ;;  %v8640_v51 = vld [vmem:[#allocation2 + $0xf28] ss:$16 sps:$4 sm:$0xff]   ;;  %v8645_v55 = vld [vmem:[#allocation2 + $0xf44] ss:$16 sps:$4 sm:$0xff]  }
 0x204   : > { %3825 = vmatmul.mubr.bf16.vlgmr.msra.gmra.mrb[0].mxu0 %v2937_v52  ;;  %3954 = vmatmul.mubr.bf16.vlgmr.msra.gmra.mrb[0].mxu1 %v2937_v52  ;;  %v8646_v52 = vld [vmem:[#allocation2 + $0xf48] ss:$16 sps:$4 sm:$0xff]  }
 0x205   : > { %3836 = vmatpush1.bf16.msra.mxu0 %v8581_v34  ;;  %3965 = vmatpush1.bf16.msra.mxu1 %v8584_v53  ;;  %v8648_v34 = vld [vmem:[#allocation2 + $0xf4c] ss:$16 sps:$4 sm:$0xff]   ;;  %v8643_v53 = vld [vmem:[#allocation2 + $0xf40] ss:$16 sps:$4 sm:$0xff]  }
 0x206   : > { %3837 = vmatprep.subr.bf16.mxu0 %v8590_v56  ;;  %3966 = vmatprep.subr.bf16.mxu1 %v8593_v58  ;;  %v8651_v56 = vld [vmem:[#allocation2 + $0xf64] ss:$16 sps:$4 sm:$0xff]   ;;  %v8654_v58 = vld [vmem:[#allocation2 + $0xf6c] ss:$16 sps:$4 sm:$0xff]  }
 0x207   : > { %3867 = vmatprep.mubr.bf16.mxu0 %v9204_v60  ;;  %3996 = vmatprep.mubr.bf16.mxu1 %v9204_v60 }
 0x209   : > { %3838 = vmatpush1.bf16.msra.mxu0 %v8588_v62  ;;  %3967 = vmatpush1.bf16.msra.mxu1 %v8591_v31  ;;  %v8649_v62 = vld [vmem:[#allocation2 + $0xf60] ss:$16 sps:$4 sm:$0xff]   ;;  %v8652_v31 = vld [vmem:[#allocation2 + $0xf68] ss:$16 sps:$4 sm:$0xff]  }
 0x20a   : > { %3839 = vmatprep.subr.bf16.mxu0 %v8596_v59  ;;  %3968 = vmatprep.subr.bf16.mxu1 %v8599_v61  ;;  %v8657_v59 = vld [vmem:[#allocation2 + $0xf84] ss:$16 sps:$4 sm:$0xff]   ;;  %v8660_v61 = vld [vmem:[#allocation2 + $0xf8c] ss:$16 sps:$4 sm:$0xff]  }
 0x20d   : > { %3840 = vmatpush1.bf16.msra.mxu0 %v8594_v63  ;;  %3969 = vmatpush1.bf16.msra.mxu1 %v8597_v0  ;;  %v8655_v63 = vld [vmem:[#allocation2 + $0xf80] ss:$16 sps:$4 sm:$0xff]   ;;  %v8658_v0 = vld [vmem:[#allocation2 + $0xf88] ss:$16 sps:$4 sm:$0xff]  }
 0x20e   : > { %3841 = vmatprep.subr.bf16.mxu0 %v8602_v1  ;;  %3970 = vmatprep.subr.bf16.mxu1 %v8605_v54  ;;  %v8663_v1 = vld [vmem:[#allocation2 + $0xfa4] ss:$16 sps:$4 sm:$0xff]   ;;  %v8666_v54 = vld [vmem:[#allocation2 + $0xfac] ss:$16 sps:$4 sm:$0xff]  }
 0x211   : > { %3842 = vmatpush1.bf16.msra.mxu0 %v8600_v25  ;;  %3971 = vmatpush1.bf16.msra.mxu1 %v8603_v2  ;;  %v8661_v25 = vld [vmem:[#allocation2 + $0xfa0] ss:$16 sps:$4 sm:$0xff]   ;;  %v8664_v2 = vld [vmem:[#allocation2 + $0xfa8] ss:$16 sps:$4 sm:$0xff]  }
 0x212   : > { %3843 = vmatprep.subr.bf16.mxu0 %v8608_v3  ;;  %3972 = vmatprep.subr.bf16.mxu1 %v8611_v4  ;;  %v8669_v3 = vld [vmem:[#allocation2 + $0xfc4] ss:$16 sps:$4 sm:$0xff]   ;;  %v8672_v4 = vld [vmem:[#allocation2 + $0xfcc] ss:$16 sps:$4 sm:$0xff]  }
 0x215   : > { %3844 = vmatpush1.bf16.msra.mxu0 %v8606_v6  ;;  %3973 = vmatpush1.bf16.msra.mxu1 %v8609_v7  ;;  %v8667_v6 = vld [vmem:[#allocation2 + $0xfc0] ss:$16 sps:$4 sm:$0xff]   ;;  %v8670_v7 = vld [vmem:[#allocation2 + $0xfc8] ss:$16 sps:$4 sm:$0xff]  }
 0x216   : > { %3845 = vmatprep.subr.bf16.mxu0 %v8614_v9  ;;  %3974 = vmatprep.subr.bf16.mxu1 %v8617_v10  ;;  %v8675_v9 = vld [vmem:[#allocation2 + $0xfe4] ss:$16 sps:$4 sm:$0xff]   ;;  %v8678_v10 = vld [vmem:[#allocation2 + $0xfec] ss:$16 sps:$4 sm:$0xff]  }
 0x219   : > { %3846 = vmatpush1.bf16.msra.mxu0 %v8612_v12  ;;  %3975 = vmatpush1.bf16.msra.mxu1 %v8615_v14  ;;  %v8673_v12 = vld [vmem:[#allocation2 + $0xfe0] ss:$16 sps:$4 sm:$0xff]   ;;  %v8676_v14 = vld [vmem:[#allocation2 + $0xfe8] ss:$16 sps:$4 sm:$0xff]  }
 0x21a   : > { %3847 = vmatprep.subr.bf16.mxu0 %v8620_v15  ;;  %3976 = vmatprep.subr.bf16.mxu1 %v8623_v16  ;;  %v8681_v15 = vld [vmem:[#allocation2 + $0x1004] ss:$16 sps:$4 sm:$0xff]   ;;  %v8684_v16 = vld [vmem:[#allocation2 + $0x100c] ss:$16 sps:$4 sm:$0xff]  }
 0x21d   : > { %3848 = vmatpush1.bf16.msra.mxu0 %v8618_v26  ;;  %3977 = vmatpush1.bf16.msra.mxu1 %v8621_v27  ;;  %v8688_v26 = vld [vmem:[#allocation2 + $0x1028] ss:$16 sps:$4 sm:$0xff]   ;;  %v8693_v27 = vld [vmem:[#allocation2 + $0x1044] ss:$16 sps:$4 sm:$0xff]  }
 0x21e   : > { %3849 = vmatprep.subr.bf16.mxu0 %v8626_v30  ;;  %3978 = vmatprep.subr.bf16.mxu1 %v8629_v32  ;;  %v8691_v30 = vld [vmem:[#allocation2 + $0x1040] ss:$16 sps:$4 sm:$0xff]   ;;  %v8694_v32 = vld [vmem:[#allocation2 + $0x1048] ss:$16 sps:$4 sm:$0xff]  }
 0x221   : > { %3850 = vmatpush1.bf16.msra.mxu0 %v8624_v39  ;;  %3979 = vmatpush1.bf16.msra.mxu1 %v8627_v40  ;;  %v8705_v39 = vld [vmem:[#allocation2 + $0x1084] ss:$16 sps:$4 sm:$0xff]   ;;  %v8708_v40 = vld [vmem:[#allocation2 + $0x108c] ss:$16 sps:$4 sm:$0xff]  }
 0x222   : > { %5083 = vmatprep.subr.bf16.mxu0 %v8632_v11  ;;  %5212 = vmatprep.subr.bf16.mxu1 %v8635_v5  ;;  %v9458_v11 = vld [vmem:[%s9316_s20 + $0x30] sm:$0x33] }
 0x223   : > { %v8711_v5 = vld [vmem:[#allocation2 + $0x10a4] ss:$16 sps:$4 sm:$0xff]  }
 0x224   : > { %3868 = vmatmul.mubr.bf16.vlgmr.msra.gmra.mrb[0].mxu0 %v2943_v47  ;;  %3997 = vmatmul.mubr.bf16.vlgmr.msra.gmra.mrb[0].mxu1 %v2943_v47  ;;  %v4194_v47 = vshrl.u32 %v9407_v33, 16 }
 0x225   : > { %5084 = vmatpush1.bf16.msra.mxu0 %v8630_v44  ;;  %5213 = vmatpush1.bf16.msra.mxu1 %v8633_v46  ;;  %v9462_v44 = vcombine.high %v9458_v11, %v9458_v11  ;;  %v8712_v46 = vld [vmem:[#allocation2 + $0x10a8] ss:$16 sps:$4 sm:$0xff]  }
 0x226   : > { %5085 = vmatprep.subr.bf16.mxu0 %v8639_v48  ;;  %5214 = vmatprep.subr.bf16.mxu1 %v8642_v49  ;;  %v4197_v48 = vshll.u32 %v9407_v33, 16  ;;  %v4205_v49 = vshll.u32 %v9455_v41, 16  ;;  %v8718_v33 = vld [vmem:[#allocation2 + $0x10c8] ss:$16 sps:$4 sm:$0xff]  }
 0x227   : > { %5115 = vmatprep.mubr.bf16.mxu0 %v4226_v57  ;;  %5244 = vmatprep.mubr.bf16.mxu1 %v4226_v57  ;;  %v8717_v57 = vld [vmem:[#allocation2 + $0x10c4] ss:$16 sps:$4 sm:$0xff]  }
 0x229   : > { %5086 = vmatpush1.bf16.msra.mxu0 %v8637_v50  ;;  %5215 = vmatpush1.bf16.msra.mxu1 %v8640_v51  ;;  %v8720_v50 = vld [vmem:[#allocation2 + $0x10cc] ss:$16 sps:$4 sm:$0xff]   ;;  %v8715_v51 = vld [vmem:[#allocation2 + $0x10c0] ss:$16 sps:$4 sm:$0xff]  }
 0x22a   : > { %5087 = vmatprep.subr.bf16.mxu0 %v8645_v55  ;;  %5216 = vmatprep.subr.bf16.mxu1 %v8648_v34  ;;  %v4245_v55 = vshrl.u32 %v9418_v38, 16  ;;  %v4248_v34 = vshll.u32 %v9418_v38, 16  ;;  %v8721_v38 = vld [vmem:[#allocation2 + $0x10e0] ss:$16 sps:$4 sm:$0xff]  }
 0x22d   : > { %5088 = vmatpush1.bf16.msra.mxu0 %v8643_v53  ;;  %5217 = vmatpush1.bf16.msra.mxu1 %v8646_v52  ;;  %v4253_v53 = vshrl.u32 %v9462_v44, 16  ;;  %v4256_v52 = vshll.u32 %v9462_v44, 16 }
 0x22e   : > { %5089 = vmatprep.subr.bf16.mxu0 %v8651_v56  ;;  %5218 = vmatprep.subr.bf16.mxu1 %v8654_v58  ;;  %v4196_v56 = vrot.slane %v4194_v47, 1  ;;  %v4199_v58 = vrot.slane %v4197_v48, 2  ;;  %v8768_v47 = vld [vmem:[#allocation2 + $0x11c8] ss:$16 sps:$4 sm:$0xff]   ;;  %v8773_v48 = vld [vmem:[#allocation2 + $0x11e4] ss:$16 sps:$4 sm:$0xff]  }
 0x231   : > { %5090 = vmatpush1.bf16.msra.mxu0 %v8649_v62  ;;  %5219 = vmatpush1.bf16.msra.mxu1 %v8652_v31  ;;  %v4204_v62 = vrot.slane %v4202_v8, 1  ;;  %v4207_v31 = vrot.slane %v4205_v49, 2  ;;  %v8776_v8 = vld [vmem:[#allocation2 + $0x11ec] ss:$16 sps:$4 sm:$0xff]   ;;  %v8771_v49 = vld [vmem:[#allocation2 + $0x11e0] ss:$16 sps:$4 sm:$0xff]  }
 0x232   : > { %5091 = vmatprep.subr.bf16.mxu0 %v8657_v59  ;;  %5220 = vmatprep.subr.bf16.mxu1 %v8660_v61  ;;  %v8723_v59 = vld [vmem:[#allocation2 + $0x10e4] ss:$16 sps:$4 sm:$0xff]   ;;  %v8726_v61 = vld [vmem:[#allocation2 + $0x10ec] ss:$16 sps:$4 sm:$0xff]  }
 0x235   : > { %5092 = vmatpush1.bf16.msra.mxu0 %v8655_v63  ;;  %5221 = vmatpush1.bf16.msra.mxu1 %v8658_v0  ;;  %v4247_v63 = vrot.slane %v4245_v55, 1  ;;  %v4250_v0 = vrot.slane %v4248_v34, 2  ;;  %v8777_v55 = vld [vmem:[#allocation2 + $0x1200] ss:$16 sps:$4 sm:$0xff]   ;;  %v8780_v34 = vld [vmem:[#allocation2 + $0x1208] ss:$16 sps:$4 sm:$0xff]  }
 0x236   : > { %5093 = vmatprep.subr.bf16.mxu0 %v8663_v1  ;;  %5222 = vmatprep.subr.bf16.mxu1 %v8666_v54  ;;  %v4255_v1 = vrot.slane %v4253_v53, 1  ;;  %v4258_v54 = vrot.slane %v4256_v52, 2  ;;  %v8785_v53 = vld [vmem:[#allocation2 + $0x1224] ss:$16 sps:$4 sm:$0xff]   ;;  %v8788_v52 = vld [vmem:[#allocation2 + $0x122c] ss:$16 sps:$4 sm:$0xff]  }
 0x239   : > { %5094 = vmatpush1.bf16.msra.mxu0 %v8661_v25  ;;  %5223 = vmatpush1.bf16.msra.mxu1 %v8664_v2  ;;  %v8724_v25 = vld [vmem:[#allocation2 + $0x10e8] ss:$16 sps:$4 sm:$0xff]   ;;  %v4200_v2 = vor.u32 %v4199_v58, %v4196_v56  ;;  %v8791_v58 = vld [vmem:[#allocation2 + $0x1244] ss:$16 sps:$4 sm:$0xff]  }
 0x23a   : > { %5095 = vmatprep.subr.bf16.mxu0 %v8669_v3  ;;  %5224 = vmatprep.subr.bf16.mxu1 %v8672_v4  ;;  %v4208_v3 = vor.u32 %v4207_v31, %v4204_v62  ;;  %v8730_v4 = vld [vmem:[#allocation2 + $0x1104] ss:$16 sps:$4 sm:$0xff]   ;;  %v8786_v56 = vld [vmem:[#allocation2 + $0x1228] ss:$16 sps:$4 sm:$0xff]   ;;  %v8794_v62 = vld [vmem:[#allocation2 + $0x124c] ss:$16 sps:$4 sm:$0xff]  }
 0x23b   : > { %v8789_v31 = vld [vmem:[#allocation2 + $0x1240] ss:$16 sps:$4 sm:$0xff]  }
 0x23d   : > { %5096 = vmatpush1.bf16.msra.mxu0 %v8667_v6  ;;  %5225 = vmatpush1.bf16.msra.mxu1 %v8670_v7  ;;  %v8733_v6 = vld [vmem:[#allocation2 + $0x110c] ss:$16 sps:$4 sm:$0xff]   ;;  %v4251_v7 = vor.u32 %v4250_v0, %v4247_v63  ;;  %v8795_v0 = vld [vmem:[#allocation2 + $0x1260] ss:$16 sps:$4 sm:$0xff]  }
 0x23e   : > { %5097 = vmatprep.subr.bf16.mxu0 %v8675_v9  ;;  %5226 = vmatprep.subr.bf16.mxu1 %v8678_v10  ;;  %v4259_v9 = vor.u32 %v4258_v54, %v4255_v1  ;;  %v8728_v10 = vld [vmem:[#allocation2 + $0x1100] ss:$16 sps:$4 sm:$0xff]   ;;  %v8800_v63 = vld [vmem:[#allocation2 + $0x126c] ss:$16 sps:$4 sm:$0xff]   ;;  %v8798_v1 = vld [vmem:[#allocation2 + $0x1268] ss:$16 sps:$4 sm:$0xff]  }
 0x23f   : > { %v8803_v54 = vld [vmem:[#allocation2 + $0x1284] ss:$16 sps:$4 sm:$0xff]  }
 0x241   : > { %5098 = vmatpush1.bf16.msra.mxu0 %v8673_v12  ;;  %5227 = vmatpush1.bf16.msra.mxu1 %v8676_v14  ;;  %v8731_v12 = vld [vmem:[#allocation2 + $0x1108] ss:$16 sps:$4 sm:$0xff]   ;;  %v4209_v14 = vsel %vm4192_vm2, %v4200_v2, %v4208_v3  ;;  %v9476_v3 = vcombine.low %v9458_v11, %v9458_v11  ;;  %v8815_v11 = vld [vmem:[#allocation2 + $0x12c4] ss:$16 sps:$4 sm:$0xff]  }
 0x242   : > { %5099 = vmatprep.subr.bf16.mxu0 %v8681_v15  ;;  %5228 = vmatprep.subr.bf16.mxu1 %v8684_v16  ;;  %v8737_v15 = vld [vmem:[#allocation2 + $0x1124] ss:$16 sps:$4 sm:$0xff]   ;;  %v8740_v16 = vld [vmem:[#allocation2 + $0x112c] ss:$16 sps:$4 sm:$0xff]   ;;  %v8804_v2 = vld [vmem:[#allocation2 + $0x1288] ss:$16 sps:$4 sm:$0xff]  }
 0x245   : > { %5100 = vmatpush1.bf16.msra.mxu0 %v8679_v17  ;;  %5229 = vmatpush1.bf16.msra.mxu1 %v8682_v19  ;;  %v4260_v17 = vsel %vm4192_vm2, %v4251_v7, %v4259_v9  ;;  %v8735_v19 = vld [vmem:[#allocation2 + $0x1120] ss:$16 sps:$4 sm:$0xff]   ;;  %v8810_v9 = vld [vmem:[#allocation2 + $0x12a8] ss:$16 sps:$4 sm:$0xff]  }
 0x246   : > { %5101 = vmatprep.subr.bf16.mxu0 %v8687_v20  ;;  %5230 = vmatprep.subr.bf16.mxu1 %v8690_v23  ;;  %v8738_v20 = vld [vmem:[#allocation2 + $0x1128] ss:$16 sps:$4 sm:$0xff]   ;;  %v8743_v23 = vld [vmem:[#allocation2 + $0x1144] ss:$16 sps:$4 sm:$0xff]   ;;  %v8807_v7 = vld [vmem:[#allocation2 + $0x12a0] ss:$16 sps:$4 sm:$0xff]  }
 0x249   : > { %5102 = vmatpush1.bf16.msra.mxu0 %v8685_v24  ;;  %5231 = vmatpush1.bf16.msra.mxu1 %v8688_v26  ;;  %v8746_v24 = vld [vmem:[#allocation2 + $0x114c] ss:$16 sps:$4 sm:$0xff]   ;;  %v8741_v26 = vld [vmem:[#allocation2 + $0x1140] ss:$16 sps:$4 sm:$0xff]  }
 0x24a   : > { %5103 = vmatprep.subr.bf16.mxu0 %v8693_v27  ;;  %5232 = vmatprep.subr.bf16.mxu1 %v8696_v28  ;;  %v8744_v27 = vld [vmem:[#allocation2 + $0x1148] ss:$16 sps:$4 sm:$0xff]   ;;  %v8749_v28 = vld [vmem:[#allocation2 + $0x1164] ss:$16 sps:$4 sm:$0xff]  }
 0x24d   : > { %5104 = vmatpush1.bf16.msra.mxu0 %v8691_v30  ;;  %5233 = vmatpush1.bf16.msra.mxu1 %v8694_v32  ;;  %v8752_v30 = vld [vmem:[#allocation2 + $0x116c] ss:$16 sps:$4 sm:$0xff]   ;;  %v8747_v32 = vld [vmem:[#allocation2 + $0x1160] ss:$16 sps:$4 sm:$0xff]  }
 0x24e   : > { %5105 = vmatprep.subr.bf16.mxu0 %v8699_v35  ;;  %5234 = vmatprep.subr.bf16.mxu1 %v8702_v36  ;;  %v8750_v35 = vld [vmem:[#allocation2 + $0x1168] ss:$16 sps:$4 sm:$0xff]   ;;  %v8755_v36 = vld [vmem:[#allocation2 + $0x1184] ss:$16 sps:$4 sm:$0xff]  }
 0x251   : > { %5106 = vmatpush1.bf16.msra.mxu0 %v8697_v37  ;;  %5235 = vmatpush1.bf16.msra.mxu1 %v8700_v22  ;;  %v8758_v37 = vld [vmem:[#allocation2 + $0x118c] ss:$16 sps:$4 sm:$0xff]   ;;  %v8753_v22 = vld [vmem:[#allocation2 + $0x1180] ss:$16 sps:$4 sm:$0xff]  }
 0x252   : > { %5107 = vmatprep.subr.bf16.mxu0 %v8705_v39  ;;  %5236 = vmatprep.subr.bf16.mxu1 %v8708_v40  ;;  %v8756_v39 = vld [vmem:[#allocation2 + $0x1188] ss:$16 sps:$4 sm:$0xff]   ;;  %v8761_v40 = vld [vmem:[#allocation2 + $0x11a4] ss:$16 sps:$4 sm:$0xff]  }
 0x255   : > { %5108 = vmatpush1.bf16.msra.mxu0 %v8703_v18  ;;  %5237 = vmatpush1.bf16.msra.mxu1 %v8706_v21  ;;  %v8764_v18 = vld [vmem:[#allocation2 + $0x11ac] ss:$16 sps:$4 sm:$0xff]   ;;  %v8759_v21 = vld [vmem:[#allocation2 + $0x11a0] ss:$16 sps:$4 sm:$0xff]  }
 0x256   : > { %5109 = vmatprep.subr.bf16.mxu0 %v8711_v5  ;;  %5238 = vmatprep.subr.bf16.mxu1 %v8714_v42  ;;  %v8762_v5 = vld [vmem:[#allocation2 + $0x11a8] ss:$16 sps:$4 sm:$0xff]   ;;  %v8767_v42 = vld [vmem:[#allocation2 + $0x11c4] ss:$16 sps:$4 sm:$0xff]  }
 0x259   : > { %5110 = vmatpush1.bf16.msra.mxu0 %v8709_v43  ;;  %5239 = vmatpush1.bf16.msra.mxu1 %v8712_v46  ;;  %v8770_v43 = vld [vmem:[#allocation2 + $0x11cc] ss:$16 sps:$4 sm:$0xff]   ;;  %v8765_v46 = vld [vmem:[#allocation2 + $0x11c0] ss:$16 sps:$4 sm:$0xff]  }
 0x25a   : > { %5111 = vmatprep.subr.bf16.mxu0 %v8717_v57  ;;  %5240 = vmatprep.subr.bf16.mxu1 %v8720_v50  ;;  %v8774_v57 = vld [vmem:[#allocation2 + $0x11e8] ss:$16 sps:$4 sm:$0xff]   ;;  %v8779_v50 = vld [vmem:[#allocation2 + $0x1204] ss:$16 sps:$4 sm:$0xff]  }
 0x25d   : > { %5112 = vmatpush1.bf16.msra.mxu0 %v8715_v51  ;;  %5241 = vmatpush1.bf16.msra.mxu1 %v8718_v33  ;;  %v8782_v51 = vld [vmem:[#allocation2 + $0x120c] ss:$16 sps:$4 sm:$0xff]   ;;  %v8783_v33 = vld [vmem:[#allocation2 + $0x1220] ss:$16 sps:$4 sm:$0xff]  }
 0x25e   : > { %5113 = vmatprep.subr.bf16.mxu0 %v8723_v59  ;;  %5242 = vmatprep.subr.bf16.mxu1 %v8726_v61  ;;  %v8792_v59 = vld [vmem:[#allocation2 + $0x1248] ss:$16 sps:$4 sm:$0xff]   ;;  %v8797_v61 = vld [vmem:[#allocation2 + $0x1264] ss:$16 sps:$4 sm:$0xff]  }
 0x261   : > { %5114 = vmatpush1.bf16.msra.mxu0 %v8721_v38  ;;  %5243 = vmatpush1.bf16.msra.mxu1 %v8724_v25  ;;  %v8806_v38 = vld [vmem:[#allocation2 + $0x128c] ss:$16 sps:$4 sm:$0xff]   ;;  %v8801_v25 = vld [vmem:[#allocation2 + $0x1280] ss:$16 sps:$4 sm:$0xff]  }
 0x262   : > { %5126 = vmatprep.subr.bf16.mxu0 %v8730_v4  ;;  %5255 = vmatprep.subr.bf16.mxu1 %v8733_v6  ;;  %v8809_v4 = vld [vmem:[#allocation2 + $0x12a4] ss:$16 sps:$4 sm:$0xff]   ;;  %v8812_v6 = vld [vmem:[#allocation2 + $0x12ac] ss:$16 sps:$4 sm:$0xff]  }
 0x264   : > { %5116 = vmatmul.mubr.bf16.vlgmr.msra.gmra.mrb[0].mxu0 %v4209_v14  ;;  %5245 = vmatmul.mubr.bf16.vlgmr.msra.gmra.mrb[0].mxu1 %v4209_v14  ;;  %v4236_v14 = vshrl.u32 %v9476_v3, 16 }
 0x265   : > { %5127 = vmatpush1.bf16.msra.mxu0 %v8728_v10  ;;  %5256 = vmatpush1.bf16.msra.mxu1 %v8731_v12  ;;  %v4228_v10 = vshrl.u32 %v9427_v45, 16  ;;  %v4231_v12 = vshll.u32 %v9427_v45, 16  ;;  %v8824_v45 = vld [vmem:[#allocation2 + $0x12ec] ss:$16 sps:$4 sm:$0xff]  }
 0x266   : > { %5128 = vmatprep.subr.bf16.mxu0 %v8737_v15  ;;  %5257 = vmatprep.subr.bf16.mxu1 %v8740_v16  ;;  %v4239_v15 = vshll.u32 %v9476_v3, 16  ;;  %v8818_v16 = vld [vmem:[#allocation2 + $0x12cc] ss:$16 sps:$4 sm:$0xff]  }
 0x267   : > { %5158 = vmatprep.mubr.bf16.mxu0 %v4260_v17  ;;  %5287 = vmatprep.mubr.bf16.mxu1 %v4260_v17  ;;  %v8813_v17 = vld [vmem:[#allocation2 + $0x12c0] ss:$16 sps:$4 sm:$0xff]  }
 0x269   : > { %5129 = vmatpush1.bf16.msra.mxu0 %v8735_v19  ;;  %5258 = vmatpush1.bf16.msra.mxu1 %v8738_v20  ;;  %v8816_v19 = vld [vmem:[#allocation2 + $0x12c8] ss:$16 sps:$4 sm:$0xff]   ;;  %v4230_v20 = vrot.slane %v4228_v10, 1 }
 0x26a   : > { %5130 = vmatprep.subr.bf16.mxu0 %v8743_v23  ;;  %5259 = vmatprep.subr.bf16.mxu1 %v8746_v24  ;;  %v4233_v23 = vrot.slane %v4231_v12, 2  ;;  %v4238_v24 = vrot.slane %v4236_v14, 1  ;;  %v9496_v10 = vld [vmem:[%s9316_s20 + $0x14] sm:$0xff]  ;;  %v8869_v14 = vld [vmem:[#allocation2 + $0x13e0] ss:$16 sps:$4 sm:$0xff]  }
 0x26d   : > { %5131 = vmatpush1.bf16.msra.mxu0 %v8741_v26  ;;  %5260 = vmatpush1.bf16.msra.mxu1 %v8744_v27  ;;  %v4241_v26 = vrot.slane %v4239_v15, 2  ;;  %v8821_v27 = vld [vmem:[#allocation2 + $0x12e4] ss:$16 sps:$4 sm:$0xff]   ;;  %v8872_v15 = vld [vmem:[#allocation2 + $0x13e8] ss:$16 sps:$4 sm:$0xff]  }
 0x26e   : > { %5132 = vmatprep.subr.bf16.mxu0 %v8749_v28  ;;  %5261 = vmatprep.subr.bf16.mxu1 %v8752_v30  ;;  %v8819_v28 = vld [vmem:[#allocation2 + $0x12e0] ss:$16 sps:$4 sm:$0xff]   ;;  %v8822_v30 = vld [vmem:[#allocation2 + $0x12e8] ss:$16 sps:$4 sm:$0xff]  }
 0x271   : > { %5133 = vmatpush1.bf16.msra.mxu0 %v8747_v32  ;;  %5262 = vmatpush1.bf16.msra.mxu1 %v8750_v35  ;;  %v4234_v32 = vor.u32 %v4233_v23, %v4230_v20  ;;  %v4242_v35 = vor.u32 %v4241_v26, %v4238_v24  ;;  %v5531_v23 = vrot.slane %v9439_v13, 2  ;;  %v8875_v24 = vld [vmem:[#allocation2 + $0x1400] ss:$16 sps:$4 sm:$0xff]   ;;  %v8878_v26 = vld [vmem:[#allocation2 + $0x1408] ss:$16 sps:$4 sm:$0xff]  }
 0x272   : > { %5134 = vmatprep.subr.bf16.mxu0 %v8755_v36  ;;  %5263 = vmatprep.subr.bf16.mxu1 %v8758_v37  ;;  %v8828_v36 = vld [vmem:[#allocation2 + $0x1304] ss:$16 sps:$4 sm:$0xff]   ;;  %v8831_v37 = vld [vmem:[#allocation2 + $0x130c] ss:$16 sps:$4 sm:$0xff]  }
 0x273   : > { %v8890_v13 = vld [vmem:[#allocation2 + $0x1444] ss:$16 sps:$4 sm:$0xff]  }
 0x275   : > { %5135 = vmatpush1.bf16.msra.mxu0 %v8753_v22  ;;  %5264 = vmatpush1.bf16.msra.mxu1 %v8756_v39  ;;  %v8826_v22 = vld [vmem:[#allocation2 + $0x1300] ss:$16 sps:$4 sm:$0xff]   ;;  %v8829_v39 = vld [vmem:[#allocation2 + $0x1308] ss:$16 sps:$4 sm:$0xff]  }
 0x276   : > { %5136 = vmatprep.subr.bf16.mxu0 %v8761_v40  ;;  %5265 = vmatprep.subr.bf16.mxu1 %v8764_v18  ;;  %v4243_v40 = vsel %vm4192_vm2, %v4234_v32, %v4242_v35  ;;  %v8835_v18 = vld [vmem:[#allocation2 + $0x1324] ss:$16 sps:$4 sm:$0xff]   ;;  %v8882_v32 = vld [vmem:[#allocation2 + $0x1420] ss:$16 sps:$4 sm:$0xff]   ;;  %v8885_v35 = vld [vmem:[#allocation2 + $0x1428] ss:$16 sps:$4 sm:$0xff]  }
 0x279   : > { %5137 = vmatpush1.bf16.msra.mxu0 %v8759_v21  ;;  %5266 = vmatpush1.bf16.msra.mxu1 %v8762_v5  ;;  %v8838_v21 = vld [vmem:[#allocation2 + $0x132c] ss:$16 sps:$4 sm:$0xff]   ;;  %v8833_v5 = vld [vmem:[#allocation2 + $0x1320] ss:$16 sps:$4 sm:$0xff]  }
 0x27a   : > { %5138 = vmatprep.subr.bf16.mxu0 %v8767_v42  ;;  %5267 = vmatprep.subr.bf16.mxu1 %v8770_v43  ;;  %v8836_v42 = vld [vmem:[#allocation2 + $0x1328] ss:$16 sps:$4 sm:$0xff]   ;;  %v8841_v43 = vld [vmem:[#allocation2 + $0x1344] ss:$16 sps:$4 sm:$0xff]  }
 0x27d   : > { %5139 = vmatpush1.bf16.msra.mxu0 %v8765_v46  ;;  %5268 = vmatpush1.bf16.msra.mxu1 %v8768_v47  ;;  %v8844_v46 = vld [vmem:[#allocation2 + $0x134c] ss:$16 sps:$4 sm:$0xff]   ;;  %v8839_v47 = vld [vmem:[#allocation2 + $0x1340] ss:$16 sps:$4 sm:$0xff]  }
 0x27e   : > { %5140 = vmatprep.subr.bf16.mxu0 %v8773_v48  ;;  %5269 = vmatprep.subr.bf16.mxu1 %v8776_v8  ;;  %v8842_v48 = vld [vmem:[#allocation2 + $0x1348] ss:$16 sps:$4 sm:$0xff]   ;;  %v8847_v8 = vld [vmem:[#allocation2 + $0x1364] ss:$16 sps:$4 sm:$0xff]  }
 0x281   : > { %5141 = vmatpush1.bf16.msra.mxu0 %v8771_v49  ;;  %5270 = vmatpush1.bf16.msra.mxu1 %v8774_v57  ;;  %v8850_v49 = vld [vmem:[#allocation2 + $0x136c] ss:$16 sps:$4 sm:$0xff]   ;;  %v8845_v57 = vld [vmem:[#allocation2 + $0x1360] ss:$16 sps:$4 sm:$0xff]  }
 0x282   : > { %5142 = vmatprep.subr.bf16.mxu0 %v8779_v50  ;;  %5271 = vmatprep.subr.bf16.mxu1 %v8782_v51  ;;  %v8848_v50 = vld [vmem:[#allocation2 + $0x1368] ss:$16 sps:$4 sm:$0xff]   ;;  %v8853_v51 = vld [vmem:[#allocation2 + $0x1384] ss:$16 sps:$4 sm:$0xff]  }
 0x285   : > { %5143 = vmatpush1.bf16.msra.mxu0 %v8777_v55  ;;  %5272 = vmatpush1.bf16.msra.mxu1 %v8780_v34  ;;  %v8856_v55 = vld [vmem:[#allocation2 + $0x138c] ss:$16 sps:$4 sm:$0xff]   ;;  %v8851_v34 = vld [vmem:[#allocation2 + $0x1380] ss:$16 sps:$4 sm:$0xff]  }
 0x286   : > { %5144 = vmatprep.subr.bf16.mxu0 %v8785_v53  ;;  %5273 = vmatprep.subr.bf16.mxu1 %v8788_v52  ;;  %v8854_v53 = vld [vmem:[#allocation2 + $0x1388] ss:$16 sps:$4 sm:$0xff]  }
 0x287   : > { %v9486_v52 = vld [vmem:[%s9316_s20 + $0x38] ss:$0 sps:$4 sm:$0x33]  }
 0x289   : > { %5145 = vmatpush1.bf16.msra.mxu0 %v8783_v33  ;;  %5274 = vmatpush1.bf16.msra.mxu1 %v8786_v56  ;;  %v8859_v33 = vld [vmem:[#allocation2 + $0x13a4] ss:$16 sps:$4 sm:$0xff]   ;;  %v8862_v56 = vld [vmem:[#allocation2 + $0x13ac] ss:$16 sps:$4 sm:$0xff]  }
 0x28a   : > { %5146 = vmatprep.subr.bf16.mxu0 %v8791_v58  ;;  %5275 = vmatprep.subr.bf16.mxu1 %v8794_v62  ;;  %v8857_v58 = vld [vmem:[#allocation2 + $0x13a0] ss:$16 sps:$4 sm:$0xff]   ;;  %v8860_v62 = vld [vmem:[#allocation2 + $0x13a8] ss:$16 sps:$4 sm:$0xff]  }
 0x28d   : > { %5147 = vmatpush1.bf16.msra.mxu0 %v8789_v31  ;;  %5276 = vmatpush1.bf16.msra.mxu1 %v8792_v59  ;;  %v4262_v31 = vshrl.u32 %v9447_v29, 16  ;;  %v4265_v59 = vshll.u32 %v9447_v29, 16  ;;  %v8871_v29 = vld [vmem:[#allocation2 + $0x13e4] ss:$16 sps:$4 sm:$0xff]  }
 0x28e   : > { %5148 = vmatprep.subr.bf16.mxu0 %v8797_v61  ;;  %5277 = vmatprep.subr.bf16.mxu1 %v8800_v63  ;;  %v4270_v61 = vshrl.u32 %v9486_v52, 16  ;;  %v4273_v63 = vshll.u32 %v9486_v52, 16 }
 0x291   : > { %5149 = vmatpush1.bf16.msra.mxu0 %v8795_v0  ;;  %5278 = vmatpush1.bf16.msra.mxu1 %v8798_v1  ;;  %v8865_v0 = vld [vmem:[#allocation2 + $0x13c4] ss:$16 sps:$4 sm:$0xff]   ;;  %v8868_v1 = vld [vmem:[#allocation2 + $0x13cc] ss:$16 sps:$4 sm:$0xff]  }
 0x292   : > { %5150 = vmatprep.subr.bf16.mxu0 %v8803_v54  ;;  %5279 = vmatprep.subr.bf16.mxu1 %v8806_v38  ;;  %v8863_v54 = vld [vmem:[#allocation2 + $0x13c0] ss:$16 sps:$4 sm:$0xff]   ;;  %v8866_v38 = vld [vmem:[#allocation2 + $0x13c8] ss:$16 sps:$4 sm:$0xff]  }
 0x295   : > { %5151 = vmatpush1.bf16.msra.mxu0 %v8801_v25  ;;  %5280 = vmatpush1.bf16.msra.mxu1 %v8804_v2  ;;  %v4264_v25 = vrot.slane %v4262_v31, 1  ;;  %v4267_v2 = vrot.slane %v4265_v59, 2  ;;  %v8924_v31 = vld [vmem:[#allocation2 + $0x1500] ss:$16 sps:$4 sm:$0xff]   ;;  %v8927_v59 = vld [vmem:[#allocation2 + $0x1508] ss:$16 sps:$4 sm:$0xff]  }
 0x296   : > { %5152 = vmatprep.subr.bf16.mxu0 %v8809_v4  ;;  %5281 = vmatprep.subr.bf16.mxu1 %v8812_v6  ;;  %v4272_v4 = vrot.slane %v4270_v61, 1  ;;  %v4275_v6 = vrot.slane %v4273_v63, 2  ;;  %v8932_v61 = vld [vmem:[#allocation2 + $0x1524] ss:$16 sps:$4 sm:$0xff]   ;;  %v8935_v63 = vld [vmem:[#allocation2 + $0x152c] ss:$16 sps:$4 sm:$0xff]  }
 0x299   : > { %5153 = vmatpush1.bf16.msra.mxu0 %v8807_v7  ;;  %5282 = vmatpush1.bf16.msra.mxu1 %v8810_v9  ;;  %v9493_v7 = vld [vmem:[%s9316_s20] sm:$0xcc]  ;;  %v8874_v9 = vld [vmem:[#allocation2 + $0x13ec] ss:$16 sps:$4 sm:$0xff]  }
 0x29a   : > { %5154 = vmatprep.subr.bf16.mxu0 %v8815_v11  ;;  %5283 = vmatprep.subr.bf16.mxu1 %v8818_v16  ;;  %v7569_v12 = vcombine.high %v9493_v7, %v9496_v10  ;;  %v4268_v11 = vor.u32 %v4267_v2, %v4264_v25  ;;  %v4276_v16 = vor.u32 %v4275_v6, %v4272_v4  ;;  %v8936_v25 = vld [vmem:[#allocation2 + $0x1540] ss:$16 sps:$4 sm:$0xff]   ;;  %v8939_v2 = vld [vmem:[#allocation2 + $0x1548] ss:$16 sps:$4 sm:$0xff]   ;;  %v8944_v4 = vld [vmem:[#allocation2 + $0x1564] ss:$16 sps:$4 sm:$0xff]  }
 0x29b   : > { %v8947_v6 = vld [vmem:[#allocation2 + $0x156c] ss:$16 sps:$4 sm:$0xff]  }
 0x29c   : > { %v5530_v20 = vrot.slane %v7569_v12, 2  ;;  %v8950_v12 = vld [vmem:[#allocation2 + $0x1584] ss:$16 sps:$4 sm:$0xff]  }
 0x29d   : > { %5155 = vmatpush1.bf16.msra.mxu0 %v8813_v17  ;;  %5284 = vmatpush1.bf16.msra.mxu1 %v8816_v19  ;;  %v8877_v17 = vld [vmem:[#allocation2 + $0x1404] ss:$16 sps:$4 sm:$0xff]   ;;  %v8880_v19 = vld [vmem:[#allocation2 + $0x140c] ss:$16 sps:$4 sm:$0xff]  }
 0x29e   : > { %5156 = vmatprep.subr.bf16.mxu0 %v8821_v27  ;;  %5285 = vmatprep.subr.bf16.mxu1 %v8824_v45  ;;  %v4277_v27 = vsel %vm4192_vm2, %v4268_v11, %v4276_v16  ;;  %v8884_v45 = vld [vmem:[#allocation2 + $0x1424] ss:$16 sps:$4 sm:$0xff]   ;;  %v8951_v11 = vld [vmem:[#allocation2 + $0x1588] ss:$16 sps:$4 sm:$0xff]  }
 0x29f   : > { %v8956_v16 = vld [vmem:[#allocation2 + $0x15a4] ss:$16 sps:$4 sm:$0xff]  }
 0x2a1   : > { %5157 = vmatpush1.bf16.msra.mxu0 %v8819_v28  ;;  %5286 = vmatpush1.bf16.msra.mxu1 %v8822_v30  ;;  %v8887_v28 = vld [vmem:[#allocation2 + $0x142c] ss:$16 sps:$4 sm:$0xff]   ;;  %v5532_v30 = vsel %vm5526_vm3, %v5530_v20, %v5531_v23  ;;  %v8957_v20 = vld [vmem:[#allocation2 + $0x15a8] ss:$16 sps:$4 sm:$0xff]   ;;  %v8962_v23 = vld [vmem:[#allocation2 + $0x15c4] ss:$16 sps:$4 sm:$0xff]  }
 0x2a2   : > { %5169 = vmatprep.subr.bf16.mxu0 %v8828_v36  ;;  %5298 = vmatprep.subr.bf16.mxu1 %v8831_v37  ;;  %v8893_v36 = vld [vmem:[#allocation2 + $0x144c] ss:$16 sps:$4 sm:$0xff]   ;;  %v8888_v37 = vld [vmem:[#allocation2 + $0x1440] ss:$16 sps:$4 sm:$0xff]  }
 0x2a4   : > { %5159 = vmatmul.mubr.bf16.vlgmr.msra.gmra.mrb[0].mxu0 %v4243_v40  ;;  %5288 = vmatmul.mubr.bf16.vlgmr.msra.gmra.mrb[0].mxu1 %v4243_v40  ;;  %v8899_v40 = vld [vmem:[#allocation2 + $0x146c] ss:$16 sps:$4 sm:$0xff]  }
 0x2a5   : > { %5170 = vmatpush1.bf16.msra.mxu0 %v8826_v22  ;;  %5299 = vmatpush1.bf16.msra.mxu1 %v8829_v39  ;;  %v8891_v22 = vld [vmem:[#allocation2 + $0x1448] ss:$16 sps:$4 sm:$0xff]   ;;  %v8896_v39 = vld [vmem:[#allocation2 + $0x1464] ss:$16 sps:$4 sm:$0xff]  }
 0x2a6   : > { %5171 = vmatprep.subr.bf16.mxu0 %v8835_v18  ;;  %5300 = vmatprep.subr.bf16.mxu1 %v8838_v21  ;;  %v8894_v18 = vld [vmem:[#allocation2 + $0x1460] ss:$16 sps:$4 sm:$0xff]   ;;  %v8897_v21 = vld [vmem:[#allocation2 + $0x1468] ss:$16 sps:$4 sm:$0xff]  }
 0x2a7   : > { %5201 = vmatprep.mubr.bf16.mxu0 %v9204_v60  ;;  %5330 = vmatprep.mubr.bf16.mxu1 %v9204_v60 }
 0x2a9   : > { %5172 = vmatpush1.bf16.msra.mxu0 %v8833_v5  ;;  %5301 = vmatpush1.bf16.msra.mxu1 %v8836_v42  ;;  %v8902_v5 = vld [vmem:[#allocation2 + $0x1484] ss:$16 sps:$4 sm:$0xff]   ;;  %v8905_v42 = vld [vmem:[#allocation2 + $0x148c] ss:$16 sps:$4 sm:$0xff]  }
 0x2aa   : > { %5173 = vmatprep.subr.bf16.mxu0 %v8841_v43  ;;  %5302 = vmatprep.subr.bf16.mxu1 %v8844_v46  ;;  %v8900_v43 = vld [vmem:[#allocation2 + $0x1480] ss:$16 sps:$4 sm:$0xff]   ;;  %v8903_v46 = vld [vmem:[#allocation2 + $0x1488] ss:$16 sps:$4 sm:$0xff]  }
 0x2ad   : > { %5174 = vmatpush1.bf16.msra.mxu0 %v8839_v47  ;;  %5303 = vmatpush1.bf16.msra.mxu1 %v8842_v48  ;;  %v8908_v47 = vld [vmem:[#allocation2 + $0x14a4] ss:$16 sps:$4 sm:$0xff]   ;;  %v8911_v48 = vld [vmem:[#allocation2 + $0x14ac] ss:$16 sps:$4 sm:$0xff]  }
 0x2ae   : > { %5175 = vmatprep.subr.bf16.mxu0 %v8847_v8  ;;  %5304 = vmatprep.subr.bf16.mxu1 %v8850_v49  ;;  %v8906_v8 = vld [vmem:[#allocation2 + $0x14a0] ss:$16 sps:$4 sm:$0xff]   ;;  %v8909_v49 = vld [vmem:[#allocation2 + $0x14a8] ss:$16 sps:$4 sm:$0xff]  }
 0x2b1   : > { %5176 = vmatpush1.bf16.msra.mxu0 %v8845_v57  ;;  %5305 = vmatpush1.bf16.msra.mxu1 %v8848_v50  ;;  %v8914_v57 = vld [vmem:[#allocation2 + $0x14c4] ss:$16 sps:$4 sm:$0xff]   ;;  %v8917_v50 = vld [vmem:[#allocation2 + $0x14cc] ss:$16 sps:$4 sm:$0xff]  }
 0x2b2   : > { %5177 = vmatprep.subr.bf16.mxu0 %v8853_v51  ;;  %5306 = vmatprep.subr.bf16.mxu1 %v8856_v55  ;;  %v8912_v51 = vld [vmem:[#allocation2 + $0x14c0] ss:$16 sps:$4 sm:$0xff]   ;;  %v8915_v55 = vld [vmem:[#allocation2 + $0x14c8] ss:$16 sps:$4 sm:$0xff]  }
 0x2b5   : > { %5178 = vmatpush1.bf16.msra.mxu0 %v8851_v34  ;;  %5307 = vmatpush1.bf16.msra.mxu1 %v8854_v53  ;;  %v8920_v34 = vld [vmem:[#allocation2 + $0x14e4] ss:$16 sps:$4 sm:$0xff]   ;;  %v8923_v53 = vld [vmem:[#allocation2 + $0x14ec] ss:$16 sps:$4 sm:$0xff]  }
 0x2b6   : > { %5179 = vmatprep.subr.bf16.mxu0 %v8859_v33  ;;  %5308 = vmatprep.subr.bf16.mxu1 %v8862_v56  ;;  %v8918_v33 = vld [vmem:[#allocation2 + $0x14e0] ss:$16 sps:$4 sm:$0xff]   ;;  %v8921_v56 = vld [vmem:[#allocation2 + $0x14e8] ss:$16 sps:$4 sm:$0xff]  }
 0x2b9   : > { %5180 = vmatpush1.bf16.msra.mxu0 %v8857_v58  ;;  %5309 = vmatpush1.bf16.msra.mxu1 %v8860_v62  ;;  %v8926_v58 = vld [vmem:[#allocation2 + $0x1504] ss:$16 sps:$4 sm:$0xff]   ;;  %v8929_v62 = vld [vmem:[#allocation2 + $0x150c] ss:$16 sps:$4 sm:$0xff]  }
 0x2ba   : > { %5181 = vmatprep.subr.bf16.mxu0 %v8865_v0  ;;  %5310 = vmatprep.subr.bf16.mxu1 %v8868_v1  ;;  %v8930_v0 = vld [vmem:[#allocation2 + $0x1520] ss:$16 sps:$4 sm:$0xff]   ;;  %v8933_v1 = vld [vmem:[#allocation2 + $0x1528] ss:$16 sps:$4 sm:$0xff]  }
 0x2bd   : > { %5182 = vmatpush1.bf16.msra.mxu0 %v8863_v54  ;;  %5311 = vmatpush1.bf16.msra.mxu1 %v8866_v38  ;;  %v8938_v54 = vld [vmem:[#allocation2 + $0x1544] ss:$16 sps:$4 sm:$0xff]   ;;  %v8941_v38 = vld [vmem:[#allocation2 + $0x154c] ss:$16 sps:$4 sm:$0xff]  }
 0x2be   : > { %5183 = vmatprep.subr.bf16.mxu0 %v8871_v29  ;;  %5312 = vmatprep.subr.bf16.mxu1 %v8874_v9  ;;  %v8942_v29 = vld [vmem:[#allocation2 + $0x1560] ss:$16 sps:$4 sm:$0xff]   ;;  %v8945_v9 = vld [vmem:[#allocation2 + $0x1568] ss:$16 sps:$4 sm:$0xff]  }
 0x2c1   : > { %5184 = vmatpush1.bf16.msra.mxu0 %v8869_v14  ;;  %5313 = vmatpush1.bf16.msra.mxu1 %v8872_v15  ;;  %v8953_v14 = vld [vmem:[#allocation2 + $0x158c] ss:$16 sps:$4 sm:$0xff]   ;;  %v8948_v15 = vld [vmem:[#allocation2 + $0x1580] ss:$16 sps:$4 sm:$0xff]  }
 0x2c2   : > { %6347 = vmatprep.subr.bf16.mxu0 %v8877_v17  ;;  %6476 = vmatprep.subr.bf16.mxu1 %v8880_v19  ;;  %v8959_v17 = vld [vmem:[#allocation2 + $0x15ac] ss:$16 sps:$4 sm:$0xff]   ;;  %v8954_v19 = vld [vmem:[#allocation2 + $0x15a0] ss:$16 sps:$4 sm:$0xff]  }
 0x2c4   : > { %5202 = vmatmul.mubr.bf16.vlgmr.msra.gmra.mrb[0].mxu0 %v4277_v27  ;;  %5331 = vmatmul.mubr.bf16.vlgmr.msra.gmra.mrb[0].mxu1 %v4277_v27  ;;  %v8963_v27 = vld [vmem:[#allocation2 + $0x15c8] ss:$16 sps:$4 sm:$0xff]  }
 0x2c5   : > { %6348 = vmatpush1.bf16.msra.mxu0 %v8875_v24  ;;  %6477 = vmatpush1.bf16.msra.mxu1 %v8878_v26  ;;  %v8965_v24 = vld [vmem:[#allocation2 + $0x15cc] ss:$16 sps:$4 sm:$0xff]   ;;  %v8960_v26 = vld [vmem:[#allocation2 + $0x15c0] ss:$16 sps:$4 sm:$0xff]  }
 0x2c6   : > { %6349 = vmatprep.subr.bf16.mxu0 %v8884_v45  ;;  %6478 = vmatprep.subr.bf16.mxu1 %v8887_v28  ;;  %v7568_v45 = vcombine.low %v9493_v7, %v9496_v10  ;;  %v9506_v28 = vld [vmem:[%s9316_s20 + $0x8] sm:$0xcc]  ;;  %v8975_v7 = vld [vmem:[#allocation2 + $0x1604] ss:$16 sps:$4 sm:$0xff]  }
 0x2c7   : > { %6379 = vmatprep.mubr.bf16.mxu0 %v5532_v30  ;;  %6508 = vmatprep.mubr.bf16.mxu1 %v5532_v30  ;;  %v8968_v30 = vld [vmem:[#allocation2 + $0x15e4] ss:$16 sps:$4 sm:$0xff]   ;;  %v8978_v10 = vld [vmem:[#allocation2 + $0x160c] ss:$16 sps:$4 sm:$0xff]  }
 0x2c9   : > { %6350 = vmatpush1.bf16.msra.mxu0 %v8882_v32  ;;  %6479 = vmatpush1.bf16.msra.mxu1 %v8885_v35  ;;  %v8971_v32 = vld [vmem:[#allocation2 + $0x15ec] ss:$16 sps:$4 sm:$0xff]  }
 0x2ca   : > { %6351 = vmatprep.subr.bf16.mxu0 %v8890_v13  ;;  %6480 = vmatprep.subr.bf16.mxu1 %v8893_v36  ;;  %v9509_v35 = vld [vmem:[%s9316_s20 + $0x1c] sm:$0xff] }
 0x2cb   : > { %v7571_v13 = vcombine.high %v9506_v28, %v9509_v35  ;;  %v8966_v36 = vld [vmem:[#allocation2 + $0x15e0] ss:$16 sps:$4 sm:$0xff]  }
 0x2cd   : > { %6352 = vmatpush1.bf16.msra.mxu0 %v8888_v37  ;;  %6481 = vmatpush1.bf16.msra.mxu1 %v8891_v22  ;;  %v8969_v37 = vld [vmem:[#allocation2 + $0x15e8] ss:$16 sps:$4 sm:$0xff]   ;;  %v5527_v22 = vrot.slane %v7568_v45, 2 }
 0x2ce   : > { %6353 = vmatprep.subr.bf16.mxu0 %v8896_v39  ;;  %6482 = vmatprep.subr.bf16.mxu1 %v8899_v40  ;;  %v5528_v39 = vrot.slane %v9455_v41, 2  ;;  %v5536_v40 = vrot.slane %v7571_v13, 2  ;;  %v9043_v45 = vld [vmem:[#allocation2 + $0x1768] ss:$16 sps:$4 sm:$0xff]   ;;  %v9046_v13 = vld [vmem:[#allocation2 + $0x1780] ss:$16 sps:$4 sm:$0xff]  }
 0x2d1   : > { %6354 = vmatpush1.bf16.msra.mxu0 %v8894_v18  ;;  %6483 = vmatpush1.bf16.msra.mxu1 %v8897_v21  ;;  %v5537_v18 = vrot.slane %v9462_v44, 2  ;;  %v8973_v21 = vld [vmem:[#allocation2 + $0x1600] ss:$16 sps:$4 sm:$0xff]   ;;  %v8988_v44 = vld [vmem:[#allocation2 + $0x1644] ss:$16 sps:$4 sm:$0xff]  }
 0x2d2   : > { %6355 = vmatprep.subr.bf16.mxu0 %v8902_v5  ;;  %6484 = vmatprep.subr.bf16.mxu1 %v8905_v42  ;;  %v8976_v5 = vld [vmem:[#allocation2 + $0x1608] ss:$16 sps:$4 sm:$0xff]   ;;  %v5529_v42 = vsel %vm5526_vm3, %v5527_v22, %v5528_v39  ;;  %v9057_v22 = vld [vmem:[#allocation2 + $0x17ac] ss:$16 sps:$4 sm:$0xff]   ;;  %v9052_v39 = vld [vmem:[#allocation2 + $0x17a0] ss:$16 sps:$4 sm:$0xff]  }
 0x2d3   : > { %v5538_v41 = vsel %vm5526_vm3, %v5536_v40, %v5537_v18  ;;  %v9063_v40 = vld [vmem:[#allocation2 + $0x17cc] ss:$16 sps:$4 sm:$0xff]   ;;  %v9058_v18 = vld [vmem:[#allocation2 + $0x17c0] ss:$16 sps:$4 sm:$0xff]  }
 0x2d5   : > { %6356 = vmatpush1.bf16.msra.mxu0 %v8900_v43  ;;  %6485 = vmatpush1.bf16.msra.mxu1 %v8903_v46  ;;  %v8982_v43 = vld [vmem:[#allocation2 + $0x1624] ss:$16 sps:$4 sm:$0xff]   ;;  %v8985_v46 = vld [vmem:[#allocation2 + $0x162c] ss:$16 sps:$4 sm:$0xff]  }
 0x2d6   : > { %6357 = vmatprep.subr.bf16.mxu0 %v8908_v47  ;;  %6486 = vmatprep.subr.bf16.mxu1 %v8911_v48  ;;  %v8980_v47 = vld [vmem:[#allocation2 + $0x1620] ss:$16 sps:$4 sm:$0xff]   ;;  %v8983_v48 = vld [vmem:[#allocation2 + $0x1628] ss:$16 sps:$4 sm:$0xff]  }
 0x2d9   : > { %6358 = vmatpush1.bf16.msra.mxu0 %v8906_v8  ;;  %6487 = vmatpush1.bf16.msra.mxu1 %v8909_v49  ;;  %v8991_v8 = vld [vmem:[#allocation2 + $0x164c] ss:$16 sps:$4 sm:$0xff]   ;;  %v8986_v49 = vld [vmem:[#allocation2 + $0x1640] ss:$16 sps:$4 sm:$0xff]  }
 0x2da   : > { %6359 = vmatprep.subr.bf16.mxu0 %v8914_v57  ;;  %6488 = vmatprep.subr.bf16.mxu1 %v8917_v50  ;;  %v8989_v57 = vld [vmem:[#allocation2 + $0x1648] ss:$16 sps:$4 sm:$0xff]   ;;  %v8994_v50 = vld [vmem:[#allocation2 + $0x1664] ss:$16 sps:$4 sm:$0xff]  }
 0x2dd   : > { %6360 = vmatpush1.bf16.msra.mxu0 %v8912_v51  ;;  %6489 = vmatpush1.bf16.msra.mxu1 %v8915_v55  ;;  %v8997_v51 = vld [vmem:[#allocation2 + $0x166c] ss:$16 sps:$4 sm:$0xff]   ;;  %v8992_v55 = vld [vmem:[#allocation2 + $0x1660] ss:$16 sps:$4 sm:$0xff]  }
 0x2de   : > { %6361 = vmatprep.subr.bf16.mxu0 %v8920_v34  ;;  %6490 = vmatprep.subr.bf16.mxu1 %v8923_v53  ;;  %v8995_v34 = vld [vmem:[#allocation2 + $0x1668] ss:$16 sps:$4 sm:$0xff]   ;;  %v9000_v53 = vld [vmem:[#allocation2 + $0x1684] ss:$16 sps:$4 sm:$0xff]  }
 0x2e1   : > { %6362 = vmatpush1.bf16.msra.mxu0 %v8918_v33  ;;  %6491 = vmatpush1.bf16.msra.mxu1 %v8921_v56  ;;  %v9003_v33 = vld [vmem:[#allocation2 + $0x168c] ss:$16 sps:$4 sm:$0xff]   ;;  %v8998_v56 = vld [vmem:[#allocation2 + $0x1680] ss:$16 sps:$4 sm:$0xff]  }
 0x2e2   : > { %6363 = vmatprep.subr.bf16.mxu0 %v8926_v58  ;;  %6492 = vmatprep.subr.bf16.mxu1 %v8929_v62  ;;  %v9001_v58 = vld [vmem:[#allocation2 + $0x1688] ss:$16 sps:$4 sm:$0xff]   ;;  %v9006_v62 = vld [vmem:[#allocation2 + $0x16a4] ss:$16 sps:$4 sm:$0xff]  }
 0x2e5   : > { %6364 = vmatpush1.bf16.msra.mxu0 %v8924_v31  ;;  %6493 = vmatpush1.bf16.msra.mxu1 %v8927_v59  ;;  %v9009_v31 = vld [vmem:[#allocation2 + $0x16ac] ss:$16 sps:$4 sm:$0xff]   ;;  %v9004_v59 = vld [vmem:[#allocation2 + $0x16a0] ss:$16 sps:$4 sm:$0xff]  }
 0x2e6   : > { %6365 = vmatprep.subr.bf16.mxu0 %v8932_v61  ;;  %6494 = vmatprep.subr.bf16.mxu1 %v8935_v63  ;;  %v9007_v61 = vld [vmem:[#allocation2 + $0x16a8] ss:$16 sps:$4 sm:$0xff]   ;;  %v9012_v63 = vld [vmem:[#allocation2 + $0x16c4] ss:$16 sps:$4 sm:$0xff]  }
 0x2e9   : > { %6366 = vmatpush1.bf16.msra.mxu0 %v8930_v0  ;;  %6495 = vmatpush1.bf16.msra.mxu1 %v8933_v1  ;;  %v9015_v0 = vld [vmem:[#allocation2 + $0x16cc] ss:$16 sps:$4 sm:$0xff]   ;;  %v9010_v1 = vld [vmem:[#allocation2 + $0x16c0] ss:$16 sps:$4 sm:$0xff]  }
 0x2ea   : > { %6367 = vmatprep.subr.bf16.mxu0 %v8938_v54  ;;  %6496 = vmatprep.subr.bf16.mxu1 %v8941_v38  ;;  %v9013_v54 = vld [vmem:[#allocation2 + $0x16c8] ss:$16 sps:$4 sm:$0xff]   ;;  %v9018_v38 = vld [vmem:[#allocation2 + $0x16e4] ss:$16 sps:$4 sm:$0xff]  }
 0x2ed   : > { %6368 = vmatpush1.bf16.msra.mxu0 %v8936_v25  ;;  %6497 = vmatpush1.bf16.msra.mxu1 %v8939_v2  ;;  %v9021_v25 = vld [vmem:[#allocation2 + $0x16ec] ss:$16 sps:$4 sm:$0xff]   ;;  %v9016_v2 = vld [vmem:[#allocation2 + $0x16e0] ss:$16 sps:$4 sm:$0xff]  }
 0x2ee   : > { %6369 = vmatprep.subr.bf16.mxu0 %v8944_v4  ;;  %6498 = vmatprep.subr.bf16.mxu1 %v8947_v6  ;;  %v9019_v4 = vld [vmem:[#allocation2 + $0x16e8] ss:$16 sps:$4 sm:$0xff]   ;;  %v9024_v6 = vld [vmem:[#allocation2 + $0x1704] ss:$16 sps:$4 sm:$0xff]  }
 0x2f1   : > { %6370 = vmatpush1.bf16.msra.mxu0 %v8942_v29  ;;  %6499 = vmatpush1.bf16.msra.mxu1 %v8945_v9  ;;  %v9027_v29 = vld [vmem:[#allocation2 + $0x170c] ss:$16 sps:$4 sm:$0xff]   ;;  %v9022_v9 = vld [vmem:[#allocation2 + $0x1700] ss:$16 sps:$4 sm:$0xff]  }
 0x2f2   : > { %6371 = vmatprep.subr.bf16.mxu0 %v8950_v12  ;;  %6500 = vmatprep.subr.bf16.mxu1 %v8953_v14  ;;  %v9025_v12 = vld [vmem:[#allocation2 + $0x1708] ss:$16 sps:$4 sm:$0xff]   ;;  %v9030_v14 = vld [vmem:[#allocation2 + $0x1724] ss:$16 sps:$4 sm:$0xff]  }
 0x2f5   : > { %6372 = vmatpush1.bf16.msra.mxu0 %v8948_v15  ;;  %6501 = vmatpush1.bf16.msra.mxu1 %v8951_v11  ;;  %v9033_v15 = vld [vmem:[#allocation2 + $0x172c] ss:$16 sps:$4 sm:$0xff]   ;;  %v9028_v11 = vld [vmem:[#allocation2 + $0x1720] ss:$16 sps:$4 sm:$0xff]  }
 0x2f6   : > { %6373 = vmatprep.subr.bf16.mxu0 %v8956_v16  ;;  %6502 = vmatprep.subr.bf16.mxu1 %v8959_v17  ;;  %v9031_v16 = vld [vmem:[#allocation2 + $0x1728] ss:$16 sps:$4 sm:$0xff]   ;;  %v9036_v17 = vld [vmem:[#allocation2 + $0x1744] ss:$16 sps:$4 sm:$0xff]  }
 0x2f9   : > { %6374 = vmatpush1.bf16.msra.mxu0 %v8954_v19  ;;  %6503 = vmatpush1.bf16.msra.mxu1 %v8957_v20  ;;  %v9039_v19 = vld [vmem:[#allocation2 + $0x174c] ss:$16 sps:$4 sm:$0xff]   ;;  %v9034_v20 = vld [vmem:[#allocation2 + $0x1740] ss:$16 sps:$4 sm:$0xff]  }
 0x2fa   : > { %6375 = vmatprep.subr.bf16.mxu0 %v8962_v23  ;;  %6504 = vmatprep.subr.bf16.mxu1 %v8965_v24  ;;  %v9037_v23 = vld [vmem:[#allocation2 + $0x1748] ss:$16 sps:$4 sm:$0xff]   ;;  %v9042_v24 = vld [vmem:[#allocation2 + $0x1764] ss:$16 sps:$4 sm:$0xff]  }
 0x2fd   : > { %6376 = vmatpush1.bf16.msra.mxu0 %v8960_v26  ;;  %6505 = vmatpush1.bf16.msra.mxu1 %v8963_v27  ;;  %v9045_v26 = vld [vmem:[#allocation2 + $0x176c] ss:$16 sps:$4 sm:$0xff]   ;;  %v9040_v27 = vld [vmem:[#allocation2 + $0x1760] ss:$16 sps:$4 sm:$0xff]  }
 0x2fe   : > { %6377 = vmatprep.subr.bf16.mxu0 %v8968_v30  ;;  %6506 = vmatprep.subr.bf16.mxu1 %v8971_v32  ;;  %v9048_v30 = vld [vmem:[#allocation2 + $0x1784] ss:$16 sps:$4 sm:$0xff]   ;;  %v9051_v32 = vld [vmem:[#allocation2 + $0x178c] ss:$16 sps:$4 sm:$0xff]  }
 0x301   : > { %6378 = vmatpush1.bf16.msra.mxu0 %v8966_v36  ;;  %6507 = vmatpush1.bf16.msra.mxu1 %v8969_v37  ;;  %v9049_v36 = vld [vmem:[#allocation2 + $0x1788] ss:$16 sps:$4 sm:$0xff]   ;;  %v9054_v37 = vld [vmem:[#allocation2 + $0x17a4] ss:$16 sps:$4 sm:$0xff]  }
 0x302   : > { %6390 = vmatprep.subr.bf16.mxu0 %v8975_v7  ;;  %6519 = vmatprep.subr.bf16.mxu1 %v8978_v10  ;;  %v9055_v7 = vld [vmem:[#allocation2 + $0x17a8] ss:$16 sps:$4 sm:$0xff]   ;;  %v9060_v10 = vld [vmem:[#allocation2 + $0x17c4] ss:$16 sps:$4 sm:$0xff]  }
 0x304   : > { %6380 = vmatmul.mubr.bf16.vlgmr.msra.gmra.mrb[0].mxu0 %v5529_v42  ;;  %6509 = vmatmul.mubr.bf16.vlgmr.msra.gmra.mrb[0].mxu1 %v5529_v42  ;;  %v9066_v42 = vld [vmem:[#allocation2 + $0x17e4] ss:$16 sps:$4 sm:$0xff]  }
 0x305   : > { %6391 = vmatpush1.bf16.msra.mxu0 %v8973_v21  ;;  %6520 = vmatpush1.bf16.msra.mxu1 %v8976_v5  ;;  %v9061_v21 = vld [vmem:[#allocation2 + $0x17c8] ss:$16 sps:$4 sm:$0xff]   ;;  %v7570_v5 = vcombine.low %v9506_v28, %v9509_v35  ;;  %v9080_v35 = vld [vmem:[#allocation2 + $0x1824] ss:$16 sps:$4 sm:$0xff]  }
 0x306   : > { %6392 = vmatprep.subr.bf16.mxu0 %v8982_v43  ;;  %6521 = vmatprep.subr.bf16.mxu1 %v8985_v46  ;;  %v9069_v43 = vld [vmem:[#allocation2 + $0x17ec] ss:$16 sps:$4 sm:$0xff]   ;;  %v9064_v46 = vld [vmem:[#allocation2 + $0x17e0] ss:$16 sps:$4 sm:$0xff]  }
 0x307   : > { %6422 = vmatprep.mubr.bf16.mxu0 %v5538_v41  ;;  %6551 = vmatprep.mubr.bf16.mxu1 %v5538_v41  ;;  %v9067_v41 = vld [vmem:[#allocation2 + $0x17e8] ss:$16 sps:$4 sm:$0xff]  }
 0x309   : > { %6393 = vmatpush1.bf16.msra.mxu0 %v8980_v47  ;;  %6522 = vmatpush1.bf16.msra.mxu1 %v8983_v48  ;;  %v5533_v47 = vrot.slane %v7570_v5, 2  ;;  %v5534_v48 = vrot.slane %v9476_v3, 2  ;;  %v9081_v3 = vld [vmem:[#allocation2 + $0x1828] ss:$16 sps:$4 sm:$0xff]  }
 0x30a   : > { %6394 = vmatprep.subr.bf16.mxu0 %v8988_v44  ;;  %6523 = vmatprep.subr.bf16.mxu1 %v8991_v8  ;;  %v9073_v44 = vld [vmem:[#allocation2 + $0x1804] ss:$16 sps:$4 sm:$0xff]   ;;  %v9076_v8 = vld [vmem:[#allocation2 + $0x180c] ss:$16 sps:$4 sm:$0xff]  }
 0x30b   : > { %v5535_v28 = vsel %vm5526_vm3, %v5533_v47, %v5534_v48 }
 0x30d   : > { %6395 = vmatpush1.bf16.msra.mxu0 %v8986_v49  ;;  %6524 = vmatpush1.bf16.msra.mxu1 %v8989_v57  ;;  %v9071_v49 = vld [vmem:[#allocation2 + $0x1800] ss:$16 sps:$4 sm:$0xff]   ;;  %v9074_v57 = vld [vmem:[#allocation2 + $0x1808] ss:$16 sps:$4 sm:$0xff]  }
 0x30e   : > { %6396 = vmatprep.subr.bf16.mxu0 %v8994_v50  ;;  %6525 = vmatprep.subr.bf16.mxu1 %v8997_v51  ;;  %v9083_v50 = vld [vmem:[#allocation2 + $0x182c] ss:$16 sps:$4 sm:$0xff]   ;;  %v9078_v51 = vld [vmem:[#allocation2 + $0x1820] ss:$16 sps:$4 sm:$0xff]  }
 0x311   : > { %6397 = vmatpush1.bf16.msra.mxu0 %v8992_v55  ;;  %6526 = vmatpush1.bf16.msra.mxu1 %v8995_v34  ;;  %v9086_v55 = vld [vmem:[#allocation2 + $0x1844] ss:$16 sps:$4 sm:$0xff]   ;;  %v9089_v34 = vld [vmem:[#allocation2 + $0x184c] ss:$16 sps:$4 sm:$0xff]  }
 0x312   : > { %6398 = vmatprep.subr.bf16.mxu0 %v9000_v53  ;;  %6527 = vmatprep.subr.bf16.mxu1 %v9003_v33  ;;  %v9084_v53 = vld [vmem:[#allocation2 + $0x1840] ss:$16 sps:$4 sm:$0xff]   ;;  %v9087_v33 = vld [vmem:[#allocation2 + $0x1848] ss:$16 sps:$4 sm:$0xff]  }
 0x315   : > { %6399 = vmatpush1.bf16.msra.mxu0 %v8998_v56  ;;  %6528 = vmatpush1.bf16.msra.mxu1 %v9001_v58  ;;  %v9092_v56 = vld [vmem:[#allocation2 + $0x1864] ss:$16 sps:$4 sm:$0xff]   ;;  %v9095_v58 = vld [vmem:[#allocation2 + $0x186c] ss:$16 sps:$4 sm:$0xff]  }
 0x316   : > { %6400 = vmatprep.subr.bf16.mxu0 %v9006_v62  ;;  %6529 = vmatprep.subr.bf16.mxu1 %v9009_v31  ;;  %v9090_v62 = vld [vmem:[#allocation2 + $0x1860] ss:$16 sps:$4 sm:$0xff]   ;;  %v9093_v31 = vld [vmem:[#allocation2 + $0x1868] ss:$16 sps:$4 sm:$0xff]  }
 0x319   : > { %6401 = vmatpush1.bf16.msra.mxu0 %v9004_v59  ;;  %6530 = vmatpush1.bf16.msra.mxu1 %v9007_v61  ;;  %v9098_v59 = vld [vmem:[#allocation2 + $0x1884] ss:$16 sps:$4 sm:$0xff]   ;;  %v9101_v61 = vld [vmem:[#allocation2 + $0x188c] ss:$16 sps:$4 sm:$0xff]  }
 0x31a   : > { %6402 = vmatprep.subr.bf16.mxu0 %v9012_v63  ;;  %6531 = vmatprep.subr.bf16.mxu1 %v9015_v0  ;;  %v9099_v63 = vld [vmem:[#allocation2 + $0x1888] ss:$16 sps:$4 sm:$0xff]   ;;  %v9104_v0 = vld [vmem:[#allocation2 + $0x18a4] ss:$16 sps:$4 sm:$0xff]  }
 0x31d   : > { %6403 = vmatpush1.bf16.msra.mxu0 %v9010_v1  ;;  %6532 = vmatpush1.bf16.msra.mxu1 %v9013_v54  ;;  %v9107_v1 = vld [vmem:[#allocation2 + $0x18ac] ss:$16 sps:$4 sm:$0xff]   ;;  %v9102_v54 = vld [vmem:[#allocation2 + $0x18a0] ss:$16 sps:$4 sm:$0xff]  }
 0x31e   : > { %6404 = vmatprep.subr.bf16.mxu0 %v9018_v38  ;;  %6533 = vmatprep.subr.bf16.mxu1 %v9021_v25  ;;  %v9105_v38 = vld [vmem:[#allocation2 + $0x18a8] ss:$16 sps:$4 sm:$0xff]   ;;  %v9110_v25 = vld [vmem:[#allocation2 + $0x18c4] ss:$16 sps:$4 sm:$0xff]  }
 0x321   : > { %6405 = vmatpush1.bf16.msra.mxu0 %v9016_v2  ;;  %6534 = vmatpush1.bf16.msra.mxu1 %v9019_v4  ;;  %v9113_v2 = vld [vmem:[#allocation2 + $0x18cc] ss:$16 sps:$4 sm:$0xff]   ;;  %v5351_v4 = vld [vmem:[%s9316_s20 + $0x10] sm:$0xc] }
 0x322   : > { %6406 = vmatprep.subr.bf16.mxu0 %v9024_v6  ;;  %6535 = vmatprep.subr.bf16.mxu1 %v9027_v29  ;;  %v9108_v6 = vld [vmem:[#allocation2 + $0x18c0] ss:$16 sps:$4 sm:$0xff]   ;;  %v9111_v29 = vld [vmem:[#allocation2 + $0x18c8] ss:$16 sps:$4 sm:$0xff]  }
 0x325   : > { %6407 = vmatpush1.bf16.msra.mxu0 %v9022_v9  ;;  %6536 = vmatpush1.bf16.msra.mxu1 %v9025_v12  ;;  %v9127_v9 = vld [vmem:[%s9316_s20 + $0x24] sm:$0xf] }
 0x326   : > { %6408 = vmatprep.subr.bf16.mxu0 %v9030_v14  ;;  %6537 = vmatprep.subr.bf16.mxu1 %v9033_v15  ;;  %v7572_v12 = vcombine.low %v5351_v4, %v9127_v9  ;;  %v9116_v14 = vld [vmem:[#allocation2 + $0x18e4] ss:$16 sps:$4 sm:$0xff]   ;;  %v9119_v15 = vld [vmem:[#allocation2 + $0x18ec] ss:$16 sps:$4 sm:$0xff]  }
 0x329   : > { %6409 = vmatpush1.bf16.msra.mxu0 %v9028_v11  ;;  %6538 = vmatpush1.bf16.msra.mxu1 %v9031_v16  ;;  %v9114_v11 = vld [vmem:[#allocation2 + $0x18e0] ss:$16 sps:$4 sm:$0xff]   ;;  %v9117_v16 = vld [vmem:[#allocation2 + $0x18e8] ss:$16 sps:$4 sm:$0xff]  }
 0x32a   : > { %6410 = vmatprep.subr.bf16.mxu0 %v9036_v17  ;;  %6539 = vmatprep.subr.bf16.mxu1 %v9039_v19  ;;  %v5539_v17 = vrot.slane %v7572_v12, 2  ;;  %v5540_v19 = vrot.slane %v9486_v52, 2 }
 0x32d   : > { %6411 = vmatpush1.bf16.msra.mxu0 %v9034_v20  ;;  %6540 = vmatpush1.bf16.msra.mxu1 %v9037_v23  ;;  %v5541_v20 = vsel %vm5526_vm3, %v5539_v17, %v5540_v19  ;;  %v9205_v23 = vmov 0.0  }
 0x32e   : > { %6412 = vmatprep.subr.bf16.mxu0 %v9042_v24  ;;  %6541 = vmatprep.subr.bf16.mxu1 %v9045_v26  ;;  %v6615_v24 = vlaneseq }
 0x330   : > { %v6616_v26 = vshrl.u32 %v6615_v24, 7 }
 0x331   : > { %6413 = vmatpush1.bf16.msra.mxu0 %v9040_v27  ;;  %6542 = vmatpush1.bf16.msra.mxu1 %v9043_v45 }
 0x332   : > { %6414 = vmatprep.subr.bf16.mxu0 %v9048_v30  ;;  %6543 = vmatprep.subr.bf16.mxu1 %v9051_v32  ;;  %v6617_v27 = vsub.s32 0, %v6616_v26  ;;  %v6625_v45 = vsub.s32 2, %v6616_v26  ;;  %v6613_v30 = vld [vmem:[#allocation4] sm:$0xf]  ;;  %v6621_v32 = vsub.s32 1, %v6616_v26 }
 0x334   : > { %v6626_v52 = vrot.slane %v6613_v30, %v6625_v45 }
 0x335   : > { %6415 = vmatpush1.bf16.msra.mxu0 %v9046_v13  ;;  %6544 = vmatpush1.bf16.msra.mxu1 %v9049_v36  ;;  %v6629_v13 = vsub.s32 3, %v6616_v26  ;;  %v6618_v36 = vrot.slane %v6613_v30, %v6617_v27 }
 0x336   : > { %6416 = vmatprep.subr.bf16.mxu0 %v9054_v37  ;;  %6545 = vmatprep.subr.bf16.mxu1 %v9057_v22  ;;  %v6622_v37 = vrot.slane %v6613_v30, %v6621_v32 }
 0x337   : > { %v6630_v22 = vrot.slane %v6613_v30, %v6629_v13 }
 0x339   : > { %6417 = vmatpush1.bf16.msra.mxu0 %v9052_v39  ;;  %6546 = vmatpush1.bf16.msra.mxu1 %v9055_v7 }
 0x33a   : > { %6418 = vmatprep.subr.bf16.mxu0 %v9060_v10  ;;  %6547 = vmatprep.subr.bf16.mxu1 %v9063_v40  ;;  %v6651_v10 = vmul.u32 2, %v6616_v26 }
 0x33d   : > { %6419 = vmatpush1.bf16.msra.mxu0 %v9058_v18  ;;  %6548 = vmatpush1.bf16.msra.mxu1 %v9061_v21 }
 0x33e   : > { %6420 = vmatprep.subr.bf16.mxu0 %v9066_v42  ;;  %6549 = vmatprep.subr.bf16.mxu1 %v9069_v43 }
 0x341   : > { %6421 = vmatpush1.bf16.msra.mxu0 %v9064_v46  ;;  %6550 = vmatpush1.bf16.msra.mxu1 %v9067_v41 }
 0x342   : > { %6433 = vmatprep.subr.bf16.mxu0 %v9073_v44  ;;  %6562 = vmatprep.subr.bf16.mxu1 %v9076_v8 }
 0x344   : > { %6423 = vmatmul.mubr.bf16.vlgmr.msra.gmra.mrb[0].mxu0 %v5535_v28  ;;  %6552 = vmatmul.mubr.bf16.vlgmr.msra.gmra.mrb[0].mxu1 %v5535_v28 }
 0x345   : > { %6434 = vmatpush1.bf16.msra.mxu0 %v9071_v49  ;;  %6563 = vmatpush1.bf16.msra.mxu1 %v9074_v57  ;;  %v6650_v57 = vand.u32 127, %v6615_v24 }
 0x346   : > { %6435 = vmatprep.subr.bf16.mxu0 %v9080_v35  ;;  %6564 = vmatprep.subr.bf16.mxu1 %v9083_v50 }
 0x347   : > { %6465 = vmatprep.mubr.bf16.mxu0 %v9204_v60  ;;  %6594 = vmatprep.mubr.bf16.mxu1 %v9204_v60  ;;  %v9096_v60 = vld [vmem:[#allocation2 + $0x1880] ss:$16 sps:$4 sm:$0xff]   ;;  %vm6652_vm4 = vcmp.eq.s32.totalorder %v6650_v57, %v6651_v10 }
 0x349   : > { %6436 = vmatpush1.bf16.msra.mxu0 %v9078_v51  ;;  %6565 = vmatpush1.bf16.msra.mxu1 %v9081_v3  ;;  %v6655_v51 = vadd.s32 1, %v6651_v10 }
 0x34a   : > { %6437 = vmatprep.subr.bf16.mxu0 %v9086_v55  ;;  %6566 = vmatprep.subr.bf16.mxu1 %v9089_v34 }
 0x34b   : > { %vm6656_vm5 = vcmp.eq.s32.totalorder %v6650_v57, %v6655_v51 }
 0x34d   : > { %6438 = vmatpush1.bf16.msra.mxu0 %v9084_v53  ;;  %6567 = vmatpush1.bf16.msra.mxu1 %v9087_v33  ;;  %v7733_v33 = vsel %vm6652_vm4, 1.0, %v9205_v23 }
 0x34e   : > { %6439 = vmatprep.subr.bf16.mxu0 %v9092_v56  ;;  %6568 = vmatprep.subr.bf16.mxu1 %v9095_v58  ;;  %v7734_v56 = vsel %vm6656_vm5, 1.0, %v9205_v23 }
 0x351   : > { %6440 = vmatpush1.bf16.msra.mxu0 %v9090_v62  ;;  %6569 = vmatpush1.bf16.msra.mxu1 %v9093_v31 }
 0x352   : > { %6441 = vmatprep.subr.bf16.mxu0 %v9098_v59  ;;  %6570 = vmatprep.subr.bf16.mxu1 %v9101_v61 }
 0x355   : > { %6442 = vmatpush1.bf16.msra.mxu0 %v9096_v60  ;;  %6571 = vmatpush1.bf16.msra.mxu1 %v9099_v63 }
 0x356   : > { %6443 = vmatprep.subr.bf16.mxu0 %v9104_v0  ;;  %6572 = vmatprep.subr.bf16.mxu1 %v9107_v1 }
 0x359   : > { %6444 = vmatpush1.bf16.msra.mxu0 %v9102_v54  ;;  %6573 = vmatpush1.bf16.msra.mxu1 %v9105_v38 }
 0x35a   : > { %6445 = vmatprep.subr.bf16.mxu0 %v9110_v25  ;;  %6574 = vmatprep.subr.bf16.mxu1 %v9113_v2 }
 0x35d   : > { %6446 = vmatpush1.bf16.msra.mxu0 %v9108_v6  ;;  %6575 = vmatpush1.bf16.msra.mxu1 %v9111_v29 }
 0x35e   : > { %6447 = vmatprep.subr.bf16.mxu0 %v9116_v14  ;;  %6576 = vmatprep.subr.bf16.mxu1 %v9119_v15 }
 0x361   : > { %6448 = vmatpush1.bf16.msra.mxu0 %v9114_v11  ;;  %6577 = vmatpush1.bf16.msra.mxu1 %v9117_v16 }
 0x364   : > { %6466 = vmatmul.mubr.bf16.vlgmr.msra.gmra.mrb[0].mxu0 %v5541_v20  ;;  %6595 = vmatmul.mubr.bf16.vlgmr.msra.gmra.mrb[0].mxu1 %v5541_v20 }
 0x365   : > { %6727 = vmatprep.mubr.f32.mxu0 %v9205_v23  ;;  %6801 = vmatprep.mubr.f32.mxu1 %v9205_v23 }
 0x437   : > { %v6467_v39 = vpop.f32.mrb[0].mxu0  ;;  %v6596_v7 = vpop.f32.mrb[0].mxu1 }
 0x438   : > { %v6635_v40 = vadd.f32 %v6618_v36, %v6467_v39  ;;  %v6637_v18 = vadd.f32 %v6626_v52, %v6596_v7  ;;  %v6469_v21 = vpop.f32.mrb[1].mxu0  ;;  %v6598_v5 = vpop.f32.mrb[1].mxu1 }
 0x439   : > { %v6636_v42 = vadd.f32 %v6622_v37, %v6469_v21  ;;  %v6638_v43 = vadd.f32 %v6630_v22, %v6598_v5  ;;  %v6471_v46 = vpop.f32.mrb[2].mxu0  ;;  %v6600_v41 = vpop.f32.mrb[2].mxu1 }
 0x43a   : > { %v6643_v47 = vmax.f32 %v6635_v40, %v6637_v18  ;;  %v6639_v48 = vadd.f32 %v6618_v36, %v6471_v46  ;;  %v6641_v44 = vadd.f32 %v6626_v52, %v6600_v41  ;;  %v6473_v8 = vpop.f32.mrb[3].mxu0  ;;  %v6602_v49 = vpop.f32.mrb[3].mxu1 }
 0x43b   : > { %v6644_v28 = vmax.f32 %v6636_v42, %v6638_v43  ;;  %v6640_v35 = vadd.f32 %v6622_v37, %v6473_v8  ;;  %v6642_v50 = vadd.f32 %v6630_v22, %v6602_v49 }
 0x43c   : > { %v6645_v3 = vmax.f32 %v6639_v48, %v6641_v44 }
 0x43d   : > { %v6646_v55 = vmax.f32 %v6640_v35, %v6642_v50 }
 0x43e   : > { %v7744_v34 = vpack.c.bf16 %v6645_v3, %v6643_v47 }
 0x43f   : > { %v7742_v53 = vpack.c.bf16 %v6646_v55, %v6644_v28 }
 0x441   : > { %7743 = vmatprep.subr.bf16.mxu0 %v7742_v53  ;;  %7747 = vmatprep.subr.bf16.mxu1 %v7742_v53 }
 0x442   : > { %7745 = vmatpush1.bf16.msra.mxu0 %v7744_v34  ;;  %7749 = vmatpush1.bf16.msra.mxu1 %v7744_v34 }
 0x445   : > { %7735 = vmatmul.mubr.msk.f32.vlgmr.msra.gmra.mrb[4].mxu0 %vm6659_vm6, %v7733_v33  ;;  %7736 = vmatmul.mubr.msk.f32.vlgmr.msra.gmra.mrb[4].mxu1 %vm6659_vm6, %v7734_v56 }
 0x518   : > { %v6729_v58 = vpop.f32.mrb[4].mxu0  ;;  %v6803_v62 = vpop.f32.mrb[4].mxu1 }
 0x519   : > { %v6808_v31 = vmax.f32 %v6729_v58, %v6803_v62  ;;  %v6731_v59 = vpop.f32.mrb[5].mxu0  ;;  %v6805_v61 = vpop.f32.mrb[5].mxu1 }
 0x51a   : > { %v6809_v60 = vmax.f32 %v6731_v59, %v6805_v61 }
 0x51c   : > { %v7741_v63 = vpack.c.bf16 %v6809_v60, %v6808_v31 }
 0x51e   : > { %6818 = vst [vmem:[%s198_s24] sm:$0xff] %v7741_v63 }
 0x51f PF: > { %s15_s12 = sadd.s32 1, %s9198_s12  }
 0x520   : > { %p12_p9 = scmp.ge.s32.totalorder %s15_s12, 4  }
 0x522   :  { %14 = sbr.rel (!%p12_p9) target bundleno = 2 (0x2), region = 75 }
 0x529   :  { %6840 = vsyncpa [#allocation3], 1 }
 0x52a   :  { %6842 = vsyncpa [#allocation3 + $0x1], 1 }
 0x52b   :  { %6843 = vsyncpa [#allocation5], 1 }

</bundles_post_ra>
